<compile_context>
chip_gen: v5e
topology: v5e:2x2
jax: 0.10.0
libtpu: 0.0.40
codegen_flags: <defaults>
</compile_context>

<pallas_src>
import functools

import numpy as np
import jax
import jax.numpy as jnp
from jax.experimental import pallas as pl
from jax.experimental.pallas import tpu as pltpu

KSIZE = 3
NTAPS = KSIZE * KSIZE


# ----------------------------------------------------------------------------
# Host-side (one-time) construction of 0/1 shift matrices, stored as int8 and
# concatenated along the taps on the column (lane) axis:
#   (flat_in (C, N_in) @ S_cat)[:, t*N_out:(t+1)*N_out]  ==  in shifted by tap t
# For ConvTranspose, the (k-1) zero padding is folded directly into S.
# ----------------------------------------------------------------------------
def _conv_shift_cat(h_in, w_in):
    h_out, w_out = h_in - KSIZE + 1, w_in - KSIZE + 1
    n_in, n_out = h_in * w_in, h_out * w_out
    s = np.zeros((n_in, NTAPS * n_out), np.int8)
    for dy in range(KSIZE):
        for dx in range(KSIZE):
            t = dy * KSIZE + dx
            for y in range(h_out):
                for x in range(w_out):
                    s[(y + dy) * w_in + (x + dx), t * n_out + y * w_out + x] = 1
    return jnp.asarray(s)


def _convT_shift_cat(h_in, w_in):
    p = KSIZE - 1
    h_out, w_out = h_in + p, w_in + p
    n_in, n_out = h_in * w_in, h_out * w_out
    s = np.zeros((n_in, NTAPS * n_out), np.int8)
    for dy in range(KSIZE):
        for dx in range(KSIZE):
            t = dy * KSIZE + dx
            for Y in range(h_out):
                for X in range(w_out):
                    yy, xx = Y + dy - p, X + dx - p
                    if 0 <= yy < h_in and 0 <= xx < w_in:
                        s[yy * w_in + xx, t * n_out + Y * w_out + X] = 1
    return jnp.asarray(s)


# ----------------------------------------------------------------------------
# One-time parameter preparation (weight flips / transposes / layouts hoisted
# out of the forward pass).
# ----------------------------------------------------------------------------
def prepare_fused_params(params, n_tokens, H, W, latent_dim):
    f32 = jnp.float32
    H1, W1 = H - 2, W - 2      # after conv1
    H2, W2 = H - 4, W - 4      # after conv2
    hw2 = H2 * W2

    def conv_w_flat(w):
        # (C_out, C_in, 3, 3) -> (C_out, 9*C_in), column index = t*C_in + c_in,
        # tap t = dy*3 + dx (matches the shift-matrix column blocks / row blocks).
        c_out, c_in = w.shape[0], w.shape[1]
        taps = jnp.transpose(w, (2, 3, 0, 1)).reshape(NTAPS, c_out, c_in)
        return jnp.transpose(taps, (1, 0, 2)).reshape(c_out, NTAPS * c_in).astype(f32)

    def convT_w_flat(w):
        # ConvTranspose == full conv with flipped, channel-swapped weights.
        w_eff = jnp.transpose(jnp.flip(w, axis=(2, 3)), (1, 0, 2, 3))
        return conv_w_flat(w_eff)

    # fc21 / fc22 merged along the output dim -> (4*hw2, 2*latent)
    w2122 = jnp.concatenate([params["w21"], params["w22"]], axis=1).astype(f32)
    b2122 = jnp.concatenate([params["b21"], params["b22"]]).reshape(1, 2 * latent_dim).astype(f32)

    return dict(
        s1=_conv_shift_cat(H, W),         # (H*W,   9*H1*W1) int8
        s2=_conv_shift_cat(H1, W1),       # (H1*W1, 9*H2*W2) int8
        s3=_convT_shift_cat(H2, W2),      # (H2*W2, 9*H1*W1) int8
        s4=_convT_shift_cat(H1, W1),      # (H1*W1, 9*H*W)   int8
        w1=conv_w_flat(params["w1"]), b1=params["b1"].reshape(-1, 1).astype(f32),
        w2=conv_w_flat(params["w2"]), b2=params["b2"].reshape(-1, 1).astype(f32),
        w2122=w2122,                                   # (4*hw2, 2L)
        b2122=b2122,                                   # (1, 2L)
        w31=params["w31"].astype(f32),                 # (L, 4*hw2)
        b31=params["b31"].reshape(4, hw2).astype(f32),
        w3=convT_w_flat(params["w3"]), b3=params["b3"].reshape(-1, 1).astype(f32),
        w4=convT_w_flat(params["w4"]), b4=params["b4"].reshape(-1, 1).astype(f32),
    )


# ----------------------------------------------------------------------------
# The single fused Pallas kernel (runs one sample per grid step)
# ----------------------------------------------------------------------------
def _vae_fused_kernel(x_ref, eps_ref,
                      s1_ref, s2_ref, s3_ref, s4_ref,
                      w1_ref, b1_ref, w2_ref, b2_ref,
                      w2122_ref, b2122_ref, w31_ref, b31_ref,
                      w3_ref, b3_ref, w4_ref, b4_ref,
                      recon_ref, mulv_ref,
                      *, latent_dim, hw2):
    f32 = jnp.float32
    dot = functools.partial(jnp.dot, preferred_element_type=f32)

    def conv2d(inp, s_ref, w_ref, b_ref):
        # inp:   (C_in, N_in)            f32
        # s_ref: (N_in, 9*N_out)         int8 (0/1), upcast to f32 on the VPU (exact)
        # w_ref: (C_out, 9*C_in)         f32
        # b_ref: (C_out, 1)              f32
        n_out = s_ref.shape[1] // NTAPS
        s = s_ref[...].astype(f32)                 # exact 0/1 upcast
        p = dot(inp, s)                            # (C_in, 9*N_out): one wide, lane-dense dot
        p_taps = jnp.concatenate(
            [p[:, t * n_out:(t + 1) * n_out] for t in range(NTAPS)], axis=0
        )                                          # (9*C_in, N_out), row = t*C_in + c_in
        return dot(w_ref[...], p_taps) + b_ref[...]

    x = x_ref[0]                                   # (C_in, H*W)

    # ---------------- encoder ----------------
    h1 = jnp.maximum(conv2d(x, s1_ref, w1_ref, b1_ref), 0.0)      # (12, H1*W1)
    h2 = jnp.maximum(conv2d(h1, s2_ref, w2_ref, b2_ref), 0.0)     # (4,  H2*W2)

    # torch.flatten order is (c, y, x): lane-concat the 4 channel rows -> (1, 4*hw2),
    # then one (1, 576)@(576, 2L) matmul for fc21 & fc22 merged.
    h2_flat = jnp.concatenate([h2[c:c + 1, :] for c in range(4)], axis=1)
    mulv = dot(h2_flat, w2122_ref[...]) + b2122_ref[...]          # (1, 2L)
    mu = mulv[:, :latent_dim]
    logvar = mulv[:, latent_dim:]

    # ---------------- reparameterize (fused) ----------------
    z = mu + eps_ref[0] * jnp.exp(0.5 * logvar)                   # (1, L)

    # ---------------- decoder ----------------
    # fc31: one (1, L)@(L, 4*hw2) dot, then split the flat (c, y, x) vector into the
    # (4, hw2) channel map via static slices + a sublane concat (no masked adds).
    d = dot(z, w31_ref[...])                                      # (1, 4*hw2)
    zimg = jnp.concatenate(
        [d[:, c * hw2:(c + 1) * hw2] for c in range(4)], axis=0
    ) + b31_ref[...]                                              # (4, hw2)

    h3 = jnp.maximum(conv2d(zimg, s3_ref, w3_ref, b3_ref), 0.0)   # (12, H1*W1)
    out = jax.nn.sigmoid(conv2d(h3, s4_ref, w4_ref, b4_ref))      # (C,  H*W) lane-dense

    recon_ref[0] = out
    mulv_ref[0] = mulv


def _const_spec(a):
    r = a.ndim
    return pl.BlockSpec(a.shape, lambda b, _r=r: (0,) * _r)   # pinned -> DMA'd once per call


def vae_forward_fused(x, prep, eps):
    B, C, H, W = x.shape
    latent_dim = eps.shape[-1]
    hw = H * W
    hw2 = (H - 4) * (W - 4)

    x_flat = x.reshape(B, C, hw).astype(jnp.float32)
    eps3 = eps.reshape(B, 1, latent_dim).astype(jnp.float32)

    order = ("s1", "s2", "s3", "s4", "w1", "b1", "w2", "b2",
             "w2122", "b2122", "w31", "b31", "w3", "b3", "w4", "b4")
    consts = tuple(prep[k] for k in order)

    in_specs = (
        [pl.BlockSpec((1, C, hw), lambda b: (b, 0, 0)),            # per-sample x
         pl.BlockSpec((1, 1, latent_dim), lambda b: (b, 0, 0))]    # per-sample eps
        + [_const_spec(a) for a in consts]
    )

    out_shapes = (
        jax.ShapeDtypeStruct((B, C, hw), jnp.float32),             # recon (lane-dense, 256)
        jax.ShapeDtypeStruct((B, 1, 2 * latent_dim), jnp.float32), # mu || logvar merged
    )
    out_specs = (
        pl.BlockSpec((1, C, hw), lambda b: (b, 0, 0)),
        pl.BlockSpec((1, 1, 2 * latent_dim), lambda b: (b, 0, 0)),
    )

    recon_flat, mulv = pl.pallas_call(
        functools.partial(_vae_fused_kernel, latent_dim=latent_dim, hw2=hw2),
        out_shape=out_shapes,
        grid=(B,),
        in_specs=in_specs,
        out_specs=out_specs,
        compiler_params=pltpu.CompilerParams(
            # batch axis is embarrassingly parallel -> shard across v7x's 2 TCs
            dimension_semantics=("parallel",),
            vmem_limit_bytes=32 * 1024 * 1024,   # safe on v5e/v6e/v7x; actual use ~6 MiB
        ),
    )(x_flat, eps3, *consts)

    mulv = mulv[:, 0, :]
    mu = mulv[:, :latent_dim]
    logvar = mulv[:, latent_dim:]
    return recon_flat.reshape(B, C, H, W), mu, logvar


# ----------------------------------------------------------------------------
# Pure-JAX reference (correctness check of the fused Pallas path)
# ----------------------------------------------------------------------------
def im2col(x_chw, k):
    C, H, W = x_chw.shape
    Ho, Wo = H - k + 1, W - k + 1
    patches = []
    for dy in range(k):
        for dx in range(k):
            patches.append(x_chw[:, dy:dy + Ho, dx:dx + Wo])
    p = jnp.stack(patches, axis=1).reshape(C * k * k, Ho * Wo)
    return p.T, Ho, Wo


def _ref_matmul(x, w, b, activation="none"):
    y = x @ w + b.reshape(1, -1)
    if activation == "relu":
        y = jnp.maximum(y, 0.0)
    elif activation == "sigmoid":
        y = jax.nn.sigmoid(y)
    return y


def _ref_conv2d(x_chw, weight, bias, activation="none"):
    C_out = weight.shape[0]
    cols, Ho, Wo = im2col(x_chw, weight.shape[2])
    y = _ref_matmul(cols, weight.reshape(C_out, -1).T, bias, activation)
    return y.T.reshape(C_out, Ho, Wo)


def _ref_convT(x_chw, weight, bias, activation="none"):
    k = weight.shape[2]
    xp = jnp.pad(x_chw, ((0, 0), (k - 1, k - 1), (k - 1, k - 1)))
    w_eff = jnp.flip(weight, axis=(2, 3)).transpose(1, 0, 2, 3)
    return _ref_conv2d(xp, w_eff, bias, activation)


def vae_forward_ref(x, params, eps):
    B, C, H, W = x.shape
    recons, mus, logvars = [], [], []
    for b in range(B):
        x0 = x[b]
        h1 = _ref_conv2d(x0, params["w1"], params["b1"], "relu")
        h2 = _ref_conv2d(h1, params["w2"], params["b2"], "relu")
        flat = h2.reshape(1, -1)
        mu = _ref_matmul(flat, params["w21"], params["b21"])
        logvar = _ref_matmul(flat, params["w22"], params["b22"])
        z = mu + eps[b:b + 1] * jnp.exp(0.5 * logvar)
        d = _ref_matmul(z, params["w31"], params["b31"])
        zimg = d.reshape(4, H - 4, W - 4)
        h3 = _ref_convT(zimg, params["w3"], params["b3"], "relu")
        out = _ref_convT(h3, params["w4"], params["b4"], "sigmoid")
        recons.append(out)
        mus.append(mu)
        logvars.append(logvar)
    return (jnp.stack(recons, axis=0),
            jnp.concatenate(mus, axis=0),
            jnp.concatenate(logvars, axis=0))


# ----------------------------------------------------------------------------
# Deterministic parameter init + driver
# ----------------------------------------------------------------------------
def init_params(key, n_tokens, H, W, latent_dim):
    flat_dim = 4 * (H - 4) * (W - 4)
    ks = jax.random.split(key, 12)
    s = 0.05
    return {
        "w1": jax.random.normal(ks[0], (12, n_tokens, 3, 3), jnp.float32) * s,
        "b1": jax.random.normal(ks[1], (12,), jnp.float32) * s,
        "w2": jax.random.normal(ks[2], (4, 12, 3, 3), jnp.float32) * s,
        "b2": jax.random.normal(ks[3], (4,), jnp.float32) * s,
        "w21": jax.random.normal(ks[4], (flat_dim, latent_dim), jnp.float32) * s,
        "b21": jax.random.normal(ks[5], (latent_dim,), jnp.float32) * s,
        "w22": jax.random.normal(ks[6], (flat_dim, latent_dim), jnp.float32) * s,
        "b22": jax.random.normal(ks[7], (latent_dim,), jnp.float32) * s,
        "w31": jax.random.normal(ks[8], (latent_dim, flat_dim), jnp.float32) * s,
        "b31": jax.random.normal(ks[9], (flat_dim,), jnp.float32) * s,
        "w3": jax.random.normal(ks[10], (4, 12, 3, 3), jnp.float32) * s,
        "b3": jnp.zeros((12,), jnp.float32),
        "w4": jax.random.normal(ks[11], (12, n_tokens, 3, 3), jnp.float32) * s,
        "b4": jnp.zeros((n_tokens,), jnp.float32),
        # NOTE: fc32 exists in the PyTorch __init__ but is unused in forward(); omitted.
    }


if __name__ == "__main__":
    B, n_tokens, H, W, latent_dim = 2, 4, 16, 16, 32

    key = jax.random.PRNGKey(0)
    k_x, k_p, k_eps = jax.random.split(key, 3)

    x = jax.random.uniform(k_x, (B, n_tokens, H, W), jnp.float32)
    params = init_params(k_p, n_tokens, H, W, latent_dim)
    eps = jax.random.normal(k_eps, (B, latent_dim), jnp.float32)  # randn_like(std), fixed

    # one-time parameter / shift-matrix preparation (hoisted out of the forward pass)
    prep = prepare_fused_params(params, n_tokens, H, W, latent_dim)

    vae_jit = jax.jit(vae_forward_fused)
    recon, mu, logvar = vae_jit(x, prep, eps)
    jax.block_until_ready((recon, mu, logvar))

    # sanity check against a pure-JAX reference
    recon_r, mu_r, logvar_r = vae_forward_ref(x, params, eps)
    assert recon.shape == (B, n_tokens, H, W)
    assert mu.shape == (B, latent_dim) and logvar.shape == (B, latent_dim)
    assert jnp.allclose(recon, recon_r, atol=1e-4)
    assert jnp.allclose(mu, mu_r, atol=1e-4)
    assert jnp.allclose(logvar, logvar_r, atol=1e-4)

    print("KERNEL_OK")
</pallas_src>

<mosaic_0001>
module attributes {stable_mosaic.version = 11 : i64} {
  func.func @_vae_fused_kernel(%arg0: i32, %arg1: memref<1x4x256xf32, #tpu.memory_space<vmem>>, %arg2: memref<1x1x32xf32, #tpu.memory_space<vmem>>, %arg3: memref<256x1764xi8, #tpu.memory_space<vmem>>, %arg4: memref<196x1296xi8, #tpu.memory_space<vmem>>, %arg5: memref<144x1764xi8, #tpu.memory_space<vmem>>, %arg6: memref<196x2304xi8, #tpu.memory_space<vmem>>, %arg7: memref<12x36xf32, #tpu.memory_space<vmem>>, %arg8: memref<12x1xf32, #tpu.memory_space<vmem>>, %arg9: memref<4x108xf32, #tpu.memory_space<vmem>>, %arg10: memref<4x1xf32, #tpu.memory_space<vmem>>, %arg11: memref<576x64xf32, #tpu.memory_space<vmem>>, %arg12: memref<1x64xf32, #tpu.memory_space<vmem>>, %arg13: memref<32x576xf32, #tpu.memory_space<vmem>>, %arg14: memref<4x144xf32, #tpu.memory_space<vmem>>, %arg15: memref<12x36xf32, #tpu.memory_space<vmem>>, %arg16: memref<12x1xf32, #tpu.memory_space<vmem>>, %arg17: memref<4x108xf32, #tpu.memory_space<vmem>>, %arg18: memref<4x1xf32, #tpu.memory_space<vmem>>, %arg19: memref<1x4x256xf32, #tpu.memory_space<vmem>>, %arg20: memref<1x1x64xf32, #tpu.memory_space<vmem>>) attributes {dimension_semantics = [#tpu.dimension_semantics<parallel>], iteration_bounds = array<i64: 2>, scalar_prefetch = 0 : i64, scratch_operands = 0 : i64, tpu.core_type = #tpu.core_type<tc>, window_params = [{transform_indices = @transform_0, window_bounds = array<i64: 1, 4, 256>}, {transform_indices = @transform_1, window_bounds = array<i64: 1, 1, 32>}, {pipeline_mode = #tpu.pipeline_mode<synchronous>, transform_indices = @transform_2, window_bounds = array<i64: 256, 1764>}, {pipeline_mode = #tpu.pipeline_mode<synchronous>, transform_indices = @transform_3, window_bounds = array<i64: 196, 1296>}, {pipeline_mode = #tpu.pipeline_mode<synchronous>, transform_indices = @transform_4, window_bounds = array<i64: 144, 1764>}, {pipeline_mode = #tpu.pipeline_mode<synchronous>, transform_indices = @transform_5, window_bounds = array<i64: 196, 2304>}, {pipeline_mode = #tpu.pipeline_mode<synchronous>, transform_indices = @transform_6, window_bounds = array<i64: 12, 36>}, {pipeline_mode = #tpu.pipeline_mode<synchronous>, transform_indices = @transform_7, window_bounds = array<i64: 12, 1>}, {pipeline_mode = #tpu.pipeline_mode<synchronous>, transform_indices = @transform_8, window_bounds = array<i64: 4, 108>}, {pipeline_mode = #tpu.pipeline_mode<synchronous>, transform_indices = @transform_9, window_bounds = array<i64: 4, 1>}, {pipeline_mode = #tpu.pipeline_mode<synchronous>, transform_indices = @transform_10, window_bounds = array<i64: 576, 64>}, {pipeline_mode = #tpu.pipeline_mode<synchronous>, transform_indices = @transform_11, window_bounds = array<i64: 1, 64>}, {pipeline_mode = #tpu.pipeline_mode<synchronous>, transform_indices = @transform_12, window_bounds = array<i64: 32, 576>}, {pipeline_mode = #tpu.pipeline_mode<synchronous>, transform_indices = @transform_13, window_bounds = array<i64: 4, 144>}, {pipeline_mode = #tpu.pipeline_mode<synchronous>, transform_indices = @transform_14, window_bounds = array<i64: 12, 36>}, {pipeline_mode = #tpu.pipeline_mode<synchronous>, transform_indices = @transform_15, window_bounds = array<i64: 12, 1>}, {pipeline_mode = #tpu.pipeline_mode<synchronous>, transform_indices = @transform_16, window_bounds = array<i64: 4, 108>}, {pipeline_mode = #tpu.pipeline_mode<synchronous>, transform_indices = @transform_17, window_bounds = array<i64: 4, 1>}, {transform_indices = @transform_18, window_bounds = array<i64: 1, 4, 256>}, {transform_indices = @transform_19, window_bounds = array<i64: 1, 1, 64>}]} {
    %c0 = arith.constant 0 : index
    %c0_0 = arith.constant 0 : index
    %c0_1 = arith.constant 0 : index
    %0 = vector.load %arg1[%c0, %c0_0, %c0_1] : memref<1x4x256xf32, #tpu.memory_space<vmem>>, vector<1x4x256xf32>
    %1 = vector.shape_cast %0 : vector<1x4x256xf32> to vector<4x256xf32>
    %c0_2 = arith.constant 0 : index
    %c0_3 = arith.constant 0 : index
    %2 = vector.load %arg3[%c0_2, %c0_3] : memref<256x1764xi8, #tpu.memory_space<vmem>>, vector<256x1764xi8>
    %3 = arith.sitofp %2 : vector<256x1764xi8> to vector<256x1764xf32>
    %cst = arith.constant dense<0.000000e+00> : vector<4x1764xf32>
    %4 = tpu.matmul %1, %3, %cst {dimension_numbers = #tpu.dot_dimension_numbers<[1], [0], [0], [1], [0, 0, 1, 1], [], []>} : vector<4x256xf32>, vector<256x1764xf32>, vector<4x1764xf32> -> vector<4x1764xf32>
    %5 = vector.extract_strided_slice %4 {offsets = [0, 0], sizes = [4, 196], strides = [1, 1]} : vector<4x1764xf32> to vector<4x196xf32>
    %6 = vector.extract_strided_slice %4 {offsets = [0, 196], sizes = [4, 196], strides = [1, 1]} : vector<4x1764xf32> to vector<4x196xf32>
    %7 = vector.extract_strided_slice %4 {offsets = [0, 392], sizes = [4, 196], strides = [1, 1]} : vector<4x1764xf32> to vector<4x196xf32>
    %8 = vector.extract_strided_slice %4 {offsets = [0, 588], sizes = [4, 196], strides = [1, 1]} : vector<4x1764xf32> to vector<4x196xf32>
    %9 = vector.extract_strided_slice %4 {offsets = [0, 784], sizes = [4, 196], strides = [1, 1]} : vector<4x1764xf32> to vector<4x196xf32>
    %10 = vector.extract_strided_slice %4 {offsets = [0, 980], sizes = [4, 196], strides = [1, 1]} : vector<4x1764xf32> to vector<4x196xf32>
    %11 = vector.extract_strided_slice %4 {offsets = [0, 1176], sizes = [4, 196], strides = [1, 1]} : vector<4x1764xf32> to vector<4x196xf32>
    %12 = vector.extract_strided_slice %4 {offsets = [0, 1372], sizes = [4, 196], strides = [1, 1]} : vector<4x1764xf32> to vector<4x196xf32>
    %13 = vector.extract_strided_slice %4 {offsets = [0, 1568], sizes = [4, 196], strides = [1, 1]} : vector<4x1764xf32> to vector<4x196xf32>
    %14 = tpu.concatenate %5, %6, %7, %8, %9, %10, %11, %12, %13 in 0 : vector<4x196xf32>, vector<4x196xf32>, vector<4x196xf32>, vector<4x196xf32>, vector<4x196xf32>, vector<4x196xf32>, vector<4x196xf32>, vector<4x196xf32>, vector<4x196xf32> -> vector<36x196xf32>
    %c0_4 = arith.constant 0 : index
    %c0_5 = arith.constant 0 : index
    %15 = vector.load %arg7[%c0_4, %c0_5] : memref<12x36xf32, #tpu.memory_space<vmem>>, vector<12x36xf32>
    %cst_6 = arith.constant dense<0.000000e+00> : vector<12x196xf32>
    %16 = tpu.matmul %15, %14, %cst_6 {dimension_numbers = #tpu.dot_dimension_numbers<[1], [0], [0], [1], [0, 0, 1, 1], [], []>} : vector<12x36xf32>, vector<36x196xf32>, vector<12x196xf32> -> vector<12x196xf32>
    %c0_7 = arith.constant 0 : index
    %c0_8 = arith.constant 0 : index
    %17 = vector.load %arg8[%c0_7, %c0_8] : memref<12x1xf32, #tpu.memory_space<vmem>>, vector<12x1xf32>
    %18 = vector.broadcast %17 : vector<12x1xf32> to vector<12x196xf32>
    %19 = arith.addf %16, %18 : vector<12x196xf32>
    %cst_9 = arith.constant 0.000000e+00 : f32
    %20 = vector.broadcast %cst_9 : f32 to vector<12x196xf32>
    %21 = arith.maximumf %19, %20 : vector<12x196xf32>
    %c0_10 = arith.constant 0 : index
    %c0_11 = arith.constant 0 : index
    %22 = vector.load %arg4[%c0_10, %c0_11] : memref<196x1296xi8, #tpu.memory_space<vmem>>, vector<196x1296xi8>
    %23 = arith.sitofp %22 : vector<196x1296xi8> to vector<196x1296xf32>
    %cst_12 = arith.constant dense<0.000000e+00> : vector<12x1296xf32>
    %24 = tpu.matmul %21, %23, %cst_12 {dimension_numbers = #tpu.dot_dimension_numbers<[1], [0], [0], [1], [0, 0, 1, 1], [], []>} : vector<12x196xf32>, vector<196x1296xf32>, vector<12x1296xf32> -> vector<12x1296xf32>
    %25 = vector.extract_strided_slice %24 {offsets = [0, 0], sizes = [12, 144], strides = [1, 1]} : vector<12x1296xf32> to vector<12x144xf32>
    %26 = vector.extract_strided_slice %24 {offsets = [0, 144], sizes = [12, 144], strides = [1, 1]} : vector<12x1296xf32> to vector<12x144xf32>
    %27 = vector.extract_strided_slice %24 {offsets = [0, 288], sizes = [12, 144], strides = [1, 1]} : vector<12x1296xf32> to vector<12x144xf32>
    %28 = vector.extract_strided_slice %24 {offsets = [0, 432], sizes = [12, 144], strides = [1, 1]} : vector<12x1296xf32> to vector<12x144xf32>
    %29 = vector.extract_strided_slice %24 {offsets = [0, 576], sizes = [12, 144], strides = [1, 1]} : vector<12x1296xf32> to vector<12x144xf32>
    %30 = vector.extract_strided_slice %24 {offsets = [0, 720], sizes = [12, 144], strides = [1, 1]} : vector<12x1296xf32> to vector<12x144xf32>
    %31 = vector.extract_strided_slice %24 {offsets = [0, 864], sizes = [12, 144], strides = [1, 1]} : vector<12x1296xf32> to vector<12x144xf32>
    %32 = vector.extract_strided_slice %24 {offsets = [0, 1008], sizes = [12, 144], strides = [1, 1]} : vector<12x1296xf32> to vector<12x144xf32>
    %33 = vector.extract_strided_slice %24 {offsets = [0, 1152], sizes = [12, 144], strides = [1, 1]} : vector<12x1296xf32> to vector<12x144xf32>
    %34 = tpu.concatenate %25, %26, %27, %28, %29, %30, %31, %32, %33 in 0 : vector<12x144xf32>, vector<12x144xf32>, vector<12x144xf32>, vector<12x144xf32>, vector<12x144xf32>, vector<12x144xf32>, vector<12x144xf32>, vector<12x144xf32>, vector<12x144xf32> -> vector<108x144xf32>
    %c0_13 = arith.constant 0 : index
    %c0_14 = arith.constant 0 : index
    %35 = vector.load %arg9[%c0_13, %c0_14] : memref<4x108xf32, #tpu.memory_space<vmem>>, vector<4x108xf32>
    %cst_15 = arith.constant dense<0.000000e+00> : vector<4x144xf32>
    %36 = tpu.matmul %35, %34, %cst_15 {dimension_numbers = #tpu.dot_dimension_numbers<[1], [0], [0], [1], [0, 0, 1, 1], [], []>} : vector<4x108xf32>, vector<108x144xf32>, vector<4x144xf32> -> vector<4x144xf32>
    %c0_16 = arith.constant 0 : index
    %c0_17 = arith.constant 0 : index
    %37 = vector.load %arg10[%c0_16, %c0_17] : memref<4x1xf32, #tpu.memory_space<vmem>>, vector<4x1xf32>
    %38 = vector.broadcast %37 : vector<4x1xf32> to vector<4x144xf32>
    %39 = arith.addf %36, %38 : vector<4x144xf32>
    %cst_18 = arith.constant 0.000000e+00 : f32
    %40 = vector.broadcast %cst_18 : f32 to vector<4x144xf32>
    %41 = arith.maximumf %39, %40 : vector<4x144xf32>
    %42 = vector.extract_strided_slice %41 {offsets = [0, 0], sizes = [1, 144], strides = [1, 1]} : vector<4x144xf32> to vector<1x144xf32>
    %43 = vector.extract_strided_slice %41 {offsets = [1, 0], sizes = [1, 144], strides = [1, 1]} : vector<4x144xf32> to vector<1x144xf32>
    %44 = vector.extract_strided_slice %41 {offsets = [2, 0], sizes = [1, 144], strides = [1, 1]} : vector<4x144xf32> to vector<1x144xf32>
    %45 = vector.extract_strided_slice %41 {offsets = [3, 0], sizes = [1, 144], strides = [1, 1]} : vector<4x144xf32> to vector<1x144xf32>
    %46 = tpu.concatenate %42, %43, %44, %45 in 1 : vector<1x144xf32>, vector<1x144xf32>, vector<1x144xf32>, vector<1x144xf32> -> vector<1x576xf32>
    %c0_19 = arith.constant 0 : index
    %c0_20 = arith.constant 0 : index
    %47 = vector.load %arg11[%c0_19, %c0_20] : memref<576x64xf32, #tpu.memory_space<vmem>>, vector<576x64xf32>
    %cst_21 = arith.constant dense<0.000000e+00> : vector<1x64xf32>
    %48 = tpu.matmul %46, %47, %cst_21 {dimension_numbers = #tpu.dot_dimension_numbers<[1], [0], [0], [1], [0, 0, 1, 1], [], []>} : vector<1x576xf32>, vector<576x64xf32>, vector<1x64xf32> -> vector<1x64xf32>
    %c0_22 = arith.constant 0 : index
    %c0_23 = arith.constant 0 : index
    %49 = vector.load %arg12[%c0_22, %c0_23] : memref<1x64xf32, #tpu.memory_space<vmem>>, vector<1x64xf32>
    %50 = arith.addf %48, %49 : vector<1x64xf32>
    %51 = vector.extract_strided_slice %50 {offsets = [0, 0], sizes = [1, 32], strides = [1, 1]} : vector<1x64xf32> to vector<1x32xf32>
    %52 = vector.extract_strided_slice %50 {offsets = [0, 32], sizes = [1, 32], strides = [1, 1]} : vector<1x64xf32> to vector<1x32xf32>
    %c0_24 = arith.constant 0 : index
    %c0_25 = arith.constant 0 : index
    %c0_26 = arith.constant 0 : index
    %53 = vector.load %arg2[%c0_24, %c0_25, %c0_26] : memref<1x1x32xf32, #tpu.memory_space<vmem>>, vector<1x1x32xf32>
    %54 = vector.shape_cast %53 : vector<1x1x32xf32> to vector<1x32xf32>
    %cst_27 = arith.constant 5.000000e-01 : f32
    %55 = vector.broadcast %cst_27 : f32 to vector<1x32xf32>
    %56 = arith.mulf %55, %52 : vector<1x32xf32>
    %57 = math.exp %56 : vector<1x32xf32>
    %58 = arith.mulf %54, %57 : vector<1x32xf32>
    %59 = arith.addf %51, %58 : vector<1x32xf32>
    %c0_28 = arith.constant 0 : index
    %c0_29 = arith.constant 0 : index
    %60 = vector.load %arg13[%c0_28, %c0_29] : memref<32x576xf32, #tpu.memory_space<vmem>>, vector<32x576xf32>
    %cst_30 = arith.constant dense<0.000000e+00> : vector<1x576xf32>
    %61 = tpu.matmul %59, %60, %cst_30 {dimension_numbers = #tpu.dot_dimension_numbers<[1], [0], [0], [1], [0, 0, 1, 1], [], []>} : vector<1x32xf32>, vector<32x576xf32>, vector<1x576xf32> -> vector<1x576xf32>
    %62 = vector.extract_strided_slice %61 {offsets = [0, 0], sizes = [1, 144], strides = [1, 1]} : vector<1x576xf32> to vector<1x144xf32>
    %63 = vector.extract_strided_slice %61 {offsets = [0, 144], sizes = [1, 144], strides = [1, 1]} : vector<1x576xf32> to vector<1x144xf32>
    %64 = vector.extract_strided_slice %61 {offsets = [0, 288], sizes = [1, 144], strides = [1, 1]} : vector<1x576xf32> to vector<1x144xf32>
    %65 = vector.extract_strided_slice %61 {offsets = [0, 432], sizes = [1, 144], strides = [1, 1]} : vector<1x576xf32> to vector<1x144xf32>
    %66 = tpu.concatenate %62, %63, %64, %65 in 0 : vector<1x144xf32>, vector<1x144xf32>, vector<1x144xf32>, vector<1x144xf32> -> vector<4x144xf32>
    %c0_31 = arith.constant 0 : index
    %c0_32 = arith.constant 0 : index
    %67 = vector.load %arg14[%c0_31, %c0_32] : memref<4x144xf32, #tpu.memory_space<vmem>>, vector<4x144xf32>
    %68 = arith.addf %66, %67 : vector<4x144xf32>
    %c0_33 = arith.constant 0 : index
    %c0_34 = arith.constant 0 : index
    %69 = vector.load %arg5[%c0_33, %c0_34] : memref<144x1764xi8, #tpu.memory_space<vmem>>, vector<144x1764xi8>
    %70 = arith.sitofp %69 : vector<144x1764xi8> to vector<144x1764xf32>
    %cst_35 = arith.constant dense<0.000000e+00> : vector<4x1764xf32>
    %71 = tpu.matmul %68, %70, %cst_35 {dimension_numbers = #tpu.dot_dimension_numbers<[1], [0], [0], [1], [0, 0, 1, 1], [], []>} : vector<4x144xf32>, vector<144x1764xf32>, vector<4x1764xf32> -> vector<4x1764xf32>
    %72 = vector.extract_strided_slice %71 {offsets = [0, 0], sizes = [4, 196], strides = [1, 1]} : vector<4x1764xf32> to vector<4x196xf32>
    %73 = vector.extract_strided_slice %71 {offsets = [0, 196], sizes = [4, 196], strides = [1, 1]} : vector<4x1764xf32> to vector<4x196xf32>
    %74 = vector.extract_strided_slice %71 {offsets = [0, 392], sizes = [4, 196], strides = [1, 1]} : vector<4x1764xf32> to vector<4x196xf32>
    %75 = vector.extract_strided_slice %71 {offsets = [0, 588], sizes = [4, 196], strides = [1, 1]} : vector<4x1764xf32> to vector<4x196xf32>
    %76 = vector.extract_strided_slice %71 {offsets = [0, 784], sizes = [4, 196], strides = [1, 1]} : vector<4x1764xf32> to vector<4x196xf32>
    %77 = vector.extract_strided_slice %71 {offsets = [0, 980], sizes = [4, 196], strides = [1, 1]} : vector<4x1764xf32> to vector<4x196xf32>
    %78 = vector.extract_strided_slice %71 {offsets = [0, 1176], sizes = [4, 196], strides = [1, 1]} : vector<4x1764xf32> to vector<4x196xf32>
    %79 = vector.extract_strided_slice %71 {offsets = [0, 1372], sizes = [4, 196], strides = [1, 1]} : vector<4x1764xf32> to vector<4x196xf32>
    %80 = vector.extract_strided_slice %71 {offsets = [0, 1568], sizes = [4, 196], strides = [1, 1]} : vector<4x1764xf32> to vector<4x196xf32>
    %81 = tpu.concatenate %72, %73, %74, %75, %76, %77, %78, %79, %80 in 0 : vector<4x196xf32>, vector<4x196xf32>, vector<4x196xf32>, vector<4x196xf32>, vector<4x196xf32>, vector<4x196xf32>, vector<4x196xf32>, vector<4x196xf32>, vector<4x196xf32> -> vector<36x196xf32>
    %c0_36 = arith.constant 0 : index
    %c0_37 = arith.constant 0 : index
    %82 = vector.load %arg15[%c0_36, %c0_37] : memref<12x36xf32, #tpu.memory_space<vmem>>, vector<12x36xf32>
    %cst_38 = arith.constant dense<0.000000e+00> : vector<12x196xf32>
    %83 = tpu.matmul %82, %81, %cst_38 {dimension_numbers = #tpu.dot_dimension_numbers<[1], [0], [0], [1], [0, 0, 1, 1], [], []>} : vector<12x36xf32>, vector<36x196xf32>, vector<12x196xf32> -> vector<12x196xf32>
    %c0_39 = arith.constant 0 : index
    %c0_40 = arith.constant 0 : index
    %84 = vector.load %arg16[%c0_39, %c0_40] : memref<12x1xf32, #tpu.memory_space<vmem>>, vector<12x1xf32>
    %85 = vector.broadcast %84 : vector<12x1xf32> to vector<12x196xf32>
    %86 = arith.addf %83, %85 : vector<12x196xf32>
    %cst_41 = arith.constant 0.000000e+00 : f32
    %87 = vector.broadcast %cst_41 : f32 to vector<12x196xf32>
    %88 = arith.maximumf %86, %87 : vector<12x196xf32>
    %c0_42 = arith.constant 0 : index
    %c0_43 = arith.constant 0 : index
    %89 = vector.load %arg6[%c0_42, %c0_43] : memref<196x2304xi8, #tpu.memory_space<vmem>>, vector<196x2304xi8>
    %90 = arith.sitofp %89 : vector<196x2304xi8> to vector<196x2304xf32>
    %cst_44 = arith.constant dense<0.000000e+00> : vector<12x2304xf32>
    %91 = tpu.matmul %88, %90, %cst_44 {dimension_numbers = #tpu.dot_dimension_numbers<[1], [0], [0], [1], [0, 0, 1, 1], [], []>} : vector<12x196xf32>, vector<196x2304xf32>, vector<12x2304xf32> -> vector<12x2304xf32>
    %92 = vector.extract_strided_slice %91 {offsets = [0, 0], sizes = [12, 256], strides = [1, 1]} : vector<12x2304xf32> to vector<12x256xf32>
    %93 = vector.extract_strided_slice %91 {offsets = [0, 256], sizes = [12, 256], strides = [1, 1]} : vector<12x2304xf32> to vector<12x256xf32>
    %94 = vector.extract_strided_slice %91 {offsets = [0, 512], sizes = [12, 256], strides = [1, 1]} : vector<12x2304xf32> to vector<12x256xf32>
    %95 = vector.extract_strided_slice %91 {offsets = [0, 768], sizes = [12, 256], strides = [1, 1]} : vector<12x2304xf32> to vector<12x256xf32>
    %96 = vector.extract_strided_slice %91 {offsets = [0, 1024], sizes = [12, 256], strides = [1, 1]} : vector<12x2304xf32> to vector<12x256xf32>
    %97 = vector.extract_strided_slice %91 {offsets = [0, 1280], sizes = [12, 256], strides = [1, 1]} : vector<12x2304xf32> to vector<12x256xf32>
    %98 = vector.extract_strided_slice %91 {offsets = [0, 1536], sizes = [12, 256], strides = [1, 1]} : vector<12x2304xf32> to vector<12x256xf32>
    %99 = vector.extract_strided_slice %91 {offsets = [0, 1792], sizes = [12, 256], strides = [1, 1]} : vector<12x2304xf32> to vector<12x256xf32>
    %100 = vector.extract_strided_slice %91 {offsets = [0, 2048], sizes = [12, 256], strides = [1, 1]} : vector<12x2304xf32> to vector<12x256xf32>
    %101 = tpu.concatenate %92, %93, %94, %95, %96, %97, %98, %99, %100 in 0 : vector<12x256xf32>, vector<12x256xf32>, vector<12x256xf32>, vector<12x256xf32>, vector<12x256xf32>, vector<12x256xf32>, vector<12x256xf32>, vector<12x256xf32>, vector<12x256xf32> -> vector<108x256xf32>
    %c0_45 = arith.constant 0 : index
    %c0_46 = arith.constant 0 : index
    %102 = vector.load %arg17[%c0_45, %c0_46] : memref<4x108xf32, #tpu.memory_space<vmem>>, vector<4x108xf32>
    %cst_47 = arith.constant dense<0.000000e+00> : vector<4x256xf32>
    %103 = tpu.matmul %102, %101, %cst_47 {dimension_numbers = #tpu.dot_dimension_numbers<[1], [0], [0], [1], [0, 0, 1, 1], [], []>} : vector<4x108xf32>, vector<108x256xf32>, vector<4x256xf32> -> vector<4x256xf32>
    %c0_48 = arith.constant 0 : index
    %c0_49 = arith.constant 0 : index
    %104 = vector.load %arg18[%c0_48, %c0_49] : memref<4x1xf32, #tpu.memory_space<vmem>>, vector<4x1xf32>
    %105 = vector.broadcast %104 : vector<4x1xf32> to vector<4x256xf32>
    %106 = arith.addf %103, %105 : vector<4x256xf32>
    %107 = arith.negf %106 : vector<4x256xf32>
    %108 = math.exp %107 : vector<4x256xf32>
    %cst_50 = arith.constant 1.000000e+00 : f32
    %109 = vector.broadcast %cst_50 : f32 to vector<4x256xf32>
    %110 = arith.addf %109, %108 : vector<4x256xf32>
    %111 = arith.divf %109, %110 : vector<4x256xf32>
    %c0_51 = arith.constant 0 : index
    %c0_52 = arith.constant 0 : index
    %c0_53 = arith.constant 0 : index
    %112 = vector.load %arg19[%c0_51, %c0_52, %c0_53] : memref<1x4x256xf32, #tpu.memory_space<vmem>>, vector<1x4x256xf32>
    %113 = vector.shape_cast %112 : vector<1x4x256xf32> to vector<4x256xf32>
    %114 = vector.shape_cast %111 : vector<4x256xf32> to vector<1x4x256xf32>
    tpu.vector_store %arg19[%c0_51, %c0_52, %c0_53], %114 {strides = array<i32>} : memref<1x4x256xf32, #tpu.memory_space<vmem>>, vector<1x4x256xf32>,
    %c0_54 = arith.constant 0 : index
    %c0_55 = arith.constant 0 : index
    %c0_56 = arith.constant 0 : index
    %115 = vector.load %arg20[%c0_54, %c0_55, %c0_56] : memref<1x1x64xf32, #tpu.memory_space<vmem>>, vector<1x1x64xf32>
    %116 = vector.shape_cast %115 : vector<1x1x64xf32> to vector<1x64xf32>
    %117 = vector.shape_cast %50 : vector<1x64xf32> to vector<1x1x64xf32>
    tpu.vector_store %arg20[%c0_54, %c0_55, %c0_56], %117 {strides = array<i32>} : memref<1x1x64xf32, #tpu.memory_space<vmem>>, vector<1x1x64xf32>,
    return
  }
  func.func @transform_0(%arg0: i32) -> (i32, i32, i32) {
    %c0_i32 = arith.constant 0 : i32
    %c0_i32_0 = arith.constant 0 : i32
    %c0_i32_1 = arith.constant 0 : i32
    return %arg0, %c0_i32, %c0_i32_0 : i32, i32, i32
  }
  func.func @transform_1(%arg0: i32) -> (i32, i32, i32) {
    %c0_i32 = arith.constant 0 : i32
    %c0_i32_0 = arith.constant 0 : i32
    %c0_i32_1 = arith.constant 0 : i32
    return %arg0, %c0_i32, %c0_i32_0 : i32, i32, i32
  }
  func.func @transform_2(%arg0: i32) -> (i32, i32) {
    %c0_i32 = arith.constant 0 : i32
    %c0_i32_0 = arith.constant 0 : i32
    %c0_i32_1 = arith.constant 0 : i32
    return %c0_i32, %c0_i32_0 : i32, i32
  }
  func.func @transform_3(%arg0: i32) -> (i32, i32) {
    %c0_i32 = arith.constant 0 : i32
    %c0_i32_0 = arith.constant 0 : i32
    %c0_i32_1 = arith.constant 0 : i32
    return %c0_i32, %c0_i32_0 : i32, i32
  }
  func.func @transform_4(%arg0: i32) -> (i32, i32) {
    %c0_i32 = arith.constant 0 : i32
    %c0_i32_0 = arith.constant 0 : i32
    %c0_i32_1 = arith.constant 0 : i32
    return %c0_i32, %c0_i32_0 : i32, i32
  }
  func.func @transform_5(%arg0: i32) -> (i32, i32) {
    %c0_i32 = arith.constant 0 : i32
    %c0_i32_0 = arith.constant 0 : i32
    %c0_i32_1 = arith.constant 0 : i32
    return %c0_i32, %c0_i32_0 : i32, i32
  }
  func.func @transform_6(%arg0: i32) -> (i32, i32) {
    %c0_i32 = arith.constant 0 : i32
    %c0_i32_0 = arith.constant 0 : i32
    %c0_i32_1 = arith.constant 0 : i32
    return %c0_i32, %c0_i32_0 : i32, i32
  }
  func.func @transform_7(%arg0: i32) -> (i32, i32) {
    %c0_i32 = arith.constant 0 : i32
    %c0_i32_0 = arith.constant 0 : i32
    %c0_i32_1 = arith.constant 0 : i32
    return %c0_i32, %c0_i32_0 : i32, i32
  }
  func.func @transform_8(%arg0: i32) -> (i32, i32) {
    %c0_i32 = arith.constant 0 : i32
    %c0_i32_0 = arith.constant 0 : i32
    %c0_i32_1 = arith.constant 0 : i32
    return %c0_i32, %c0_i32_0 : i32, i32
  }
  func.func @transform_9(%arg0: i32) -> (i32, i32) {
    %c0_i32 = arith.constant 0 : i32
    %c0_i32_0 = arith.constant 0 : i32
    %c0_i32_1 = arith.constant 0 : i32
    return %c0_i32, %c0_i32_0 : i32, i32
  }
  func.func @transform_10(%arg0: i32) -> (i32, i32) {
    %c0_i32 = arith.constant 0 : i32
    %c0_i32_0 = arith.constant 0 : i32
    %c0_i32_1 = arith.constant 0 : i32
    return %c0_i32, %c0_i32_0 : i32, i32
  }
  func.func @transform_11(%arg0: i32) -> (i32, i32) {
    %c0_i32 = arith.constant 0 : i32
    %c0_i32_0 = arith.constant 0 : i32
    %c0_i32_1 = arith.constant 0 : i32
    return %c0_i32, %c0_i32_0 : i32, i32
  }
  func.func @transform_12(%arg0: i32) -> (i32, i32) {
    %c0_i32 = arith.constant 0 : i32
    %c0_i32_0 = arith.constant 0 : i32
    %c0_i32_1 = arith.constant 0 : i32
    return %c0_i32, %c0_i32_0 : i32, i32
  }
  func.func @transform_13(%arg0: i32) -> (i32, i32) {
    %c0_i32 = arith.constant 0 : i32
    %c0_i32_0 = arith.constant 0 : i32
    %c0_i32_1 = arith.constant 0 : i32
    return %c0_i32, %c0_i32_0 : i32, i32
  }
  func.func @transform_14(%arg0: i32) -> (i32, i32) {
    %c0_i32 = arith.constant 0 : i32
    %c0_i32_0 = arith.constant 0 : i32
    %c0_i32_1 = arith.constant 0 : i32
    return %c0_i32, %c0_i32_0 : i32, i32
  }
  func.func @transform_15(%arg0: i32) -> (i32, i32) {
    %c0_i32 = arith.constant 0 : i32
    %c0_i32_0 = arith.constant 0 : i32
    %c0_i32_1 = arith.constant 0 : i32
    return %c0_i32, %c0_i32_0 : i32, i32
  }
  func.func @transform_16(%arg0: i32) -> (i32, i32) {
    %c0_i32 = arith.constant 0 : i32
    %c0_i32_0 = arith.constant 0 : i32
    %c0_i32_1 = arith.constant 0 : i32
    return %c0_i32, %c0_i32_0 : i32, i32
  }
  func.func @transform_17(%arg0: i32) -> (i32, i32) {
    %c0_i32 = arith.constant 0 : i32
    %c0_i32_0 = arith.constant 0 : i32
    %c0_i32_1 = arith.constant 0 : i32
    return %c0_i32, %c0_i32_0 : i32, i32
  }
  func.func @transform_18(%arg0: i32) -> (i32, i32, i32) {
    %c0_i32 = arith.constant 0 : i32
    %c0_i32_0 = arith.constant 0 : i32
    %c0_i32_1 = arith.constant 0 : i32
    return %arg0, %c0_i32, %c0_i32_0 : i32, i32, i32
  }
  func.func @transform_19(%arg0: i32) -> (i32, i32, i32) {
    %c0_i32 = arith.constant 0 : i32
    %c0_i32_0 = arith.constant 0 : i32
    %c0_i32_1 = arith.constant 0 : i32
    return %arg0, %c0_i32, %c0_i32_0 : i32, i32, i32
  }
}

</mosaic_0001>

<bundles_post_ra>
// kernel: vae_forward_fused.1
= control target key start
LH: loop header
LB: loop body
LE: loop exit
PB: predicated region body
PF: predicated region fallthrough
CT: control target
= control target key end

     0   :  { %s12892_s0 = inlined_call_operand.vmem [shape: f32[2,4,256], index: 0, kind: input, shape index: {}]   ;;  %s12893_s1 = inlined_call_operand.hbm [shape: f32[2,1,32], index: 1, kind: input, shape index: {}]   ;;  %s12894_s2 = inlined_call_operand.vmem [shape: s8[256,1764], index: 2, kind: input, shape index: {}]   ;;  %s12895_s3 = inlined_call_operand.vmem [shape: s8[196,1296], index: 3, kind: input, shape index: {}]   ;;  %s12896_s4 = inlined_call_operand.vmem [shape: s8[144,1764], index: 4, kind: input, shape index: {}]   ;;  %s12897_s5 = inlined_call_operand.vmem [shape: s8[196,2304], index: 5, kind: input, shape index: {}]   ;;  %s12898_s6 = inlined_call_operand.vmem [shape: f32[12,36], index: 6, kind: input, shape index: {}]   ;;  %s12899_s7 = inlined_call_operand.vmem [shape: f32[12,1], index: 7, kind: input, shape index: {}]   ;;  %s12900_s8 = inlined_call_operand.hbm [shape: f32[4,108], index: 8, kind: input, shape index: {}]   ;;  %s12901_s9 = inlined_call_operand.vmem [shape: f32[4,1], index: 9, kind: input, shape index: {}]   ;;  %s12902_s10 = inlined_call_operand.vmem [shape: f32[576,64], index: 10, kind: input, shape index: {}]   ;;  %s12903_s11 = inlined_call_operand.vmem [shape: f32[1,64], index: 11, kind: input, shape index: {}]   ;;  %s12904_s12 = inlined_call_operand.hbm [shape: f32[32,576], index: 12, kind: input, shape index: {}]   ;;  %s12905_s13 = inlined_call_operand.hbm [shape: f32[4,144], index: 13, kind: input, shape index: {}]   ;;  %s12906_s14 = inlined_call_operand.vmem [shape: f32[12,36], index: 14, kind: input, shape index: {}]   ;;  %s12907_s15 = inlined_call_operand.vmem [shape: f32[12,1], index: 15, kind: input, shape index: {}]   ;;  %s12908_s16 = inlined_call_operand.hbm [shape: f32[4,108], index: 16, kind: input, shape index: {}]   ;;  %s12909_s17 = inlined_call_operand.vmem [shape: f32[4,1], index: 17, kind: input, shape index: {}]   ;;  %s12910_s18 = inlined_call_operand.vmem [shape: f32[2,4,256], index: 18, kind: output, shape index: {0}]   ;;  %s12911_s19 = inlined_call_operand.vmem [shape: f32[2,1,64], index: 19, kind: output, shape index: {1}]  }
   0x1   :  { %12934 = sst [smem:[#allocation14_spill]] %s12892_s0 }
   0x2   :  { %12935 = sst [smem:[#allocation15_spill]] %s12893_s1 }
   0x3   :  { %12936 = sst [smem:[#allocation16_spill]] %s12894_s2 }
   0x4   :  { %12937 = sst [smem:[#allocation17_spill]] %s12895_s3 }
   0x5   :  { %12938 = sst [smem:[#allocation18_spill]] %s12900_s8 }
   0x6   :  { %12939 = sst [smem:[#allocation19_spill]] %s12904_s12 }
   0x7   :  { %12940 = sst [smem:[#allocation20_spill]] %s12905_s13 }
   0x8   :  { %12941 = sst [smem:[#allocation21_spill]] %s12908_s16 }
   0x9   :  { %12942 = sst [smem:[#allocation22_spill]] %s12910_s18 }
   0xa   :  { %25 = vsyncpa [#allocation3], 0 }
   0xb   :  { %27 = vsyncpa [#allocation3 + $0x1], 0 }
   0xc   :  { %28 = vsyncpa [#allocation5], 0 }
   0xd   :  { %29 = vsyncpa [#allocation8], 0  ;;  %s8468_s0 = smov 0   ;;  %s8470_s30 = smov 0  }
   0xe   :  { %s8472_s20 = smov 0   ;;  %s8474_s21 = smov 0  }
   0xf LB: > { %s12943_s8 = sld [smem:[#allocation18_spill]]  ;;  %s8492_s23 = sadd.s32 4294967295, %s8346_s21   ;;  %s8346_s21 = sphi %s8474_s21, %s12972_s21   ;;  %s8342_s20 = sphi %s8472_s20, %s12971_s20   ;;  %s8338_s30 = sphi %s8470_s30, %s12970_s30   ;;  %s8334_s0 = sphi %s8468_s0, %s12969_s0  }
  0x10   : > { %p7763_p0 = scmp.ge.s32.totalorder %s8346_s21, 1  ;;  %p82_p1 = scmp.eq.s32.totalorder %s8492_s23, 0 }
  0x11   : > { %p480_p2 = scmp.lt.s32.totalorder %s8346_s21, 3  ;;  %s8348_s25 = smov [#allocation4]  }
  0x12   : > { %s512_s3 = sshll.u32 %s8348_s25, 4  ;;  %s12945_s13 = sld [smem:[#allocation20_spill]]  ;;  %s513_s3 = int_to_ptr.vmem [resolvable:$true] %s512_s3 }
  0x13   : > { %p8497_p3 = pnand %p7763_p0, %p480_p2  ;;  %s8349_s1 = smov [#allocation7]  }
  0x14   : > { %s547_s22 = sshll.u32 %s8349_s1, 4  ;;  %s12947_s12 = sld [smem:[#allocation19_spill]]  ;;  %s548_s22 = int_to_ptr.vmem [resolvable:$true] %s547_s22 }
  0x15   : > { %s510_s2 = sshll.u32 %s12943_s8, 4  ;;  %p7929_p4 = pneg %p8497_p3  ;;  %s511_s2 = int_to_ptr.hbm [resolvable:$true] %s510_s2 }
  0x16   : > { %s8350_s26 = smov [#allocation6]   ;;  %s12948_s16 = sld [smem:[#allocation21_spill]] }
  0x17   : > { %p8508_p5 = pnand %p7929_p4, %p82_p1  ;;  %s532_s27 = sshll.u32 %s8350_s26, 4  ;;  %s533_s27 = int_to_ptr.vmem [resolvable:$true] %s532_s27 }
  0x18   : > { %s545_s28 = sshll.u32 %s12945_s13, 4  ;;  %s8351_s25 = smov 640   ;;  %s546_s28 = int_to_ptr.hbm [resolvable:$true] %s545_s28 }
  0x19   : > { %7932 = dma.hbm_to_vmem [thread:$0]  (!%p8508_p5), %s511_s2, 64, %s513_s3, [#allocation5]  }
  0x1a   : > { %s530_s18 = sshll.u32 %s12947_s12, 4  ;;  %s8352_s12 = smov 40   ;;  %s531_s18 = int_to_ptr.hbm [resolvable:$true] %s530_s18 }
  0x1b   : > { %7938 = dma.hbm_to_vmem [thread:$0]  (!%p8508_p5), %s546_s28, 128, %s548_s22, [#allocation8]  }
  0x1c   : > { %s563_s8 = sshll.u32 %s12948_s16, 4  ;;  %s8353_s2 = smov [#allocation9]   ;;  %s564_s8 = int_to_ptr.hbm [resolvable:$true] %s563_s8 }
  0x1d   : > { %7935 = dma.hbm_to_vmem [thread:$0]  (!%p8508_p5), %s531_s18, 2560, %s533_s27, [#allocation5], %s8351_s25, %s8351_s25, %s8352_s12  }
  0x1e   : > { %s565_s3 = sshll.u32 %s8353_s2, 4  ;;  %s8527_s28 = sadd.s32 1, %s8346_s21   ;;  %s566_s3 = int_to_ptr.vmem [resolvable:$true] %s565_s3 }
  0x1f   : > { %7941 = dma.hbm_to_vmem [thread:$0]  (!%p8508_p5), %s564_s8, 64, %s566_s3, [#allocation8]  }
  0x20   : > { %s68_s13 = sadd.s32 1, %s8342_s20  ;;  %s65_s22 = ssub.s32 %s8346_s21, %s8527_s28 }
  0x21   : > { %p75_p6 = scmp.ne.s32.totalorder %s8342_s20, %s8338_s30  ;;  %p66_p7 = scmp.eq.s32.totalorder %s65_s22, 0 }
  0x22   : > { %p76_p8 = scmp.eq.s32.totalorder %s8346_s21, 0  ;;  %p81_p9 = scmp.ne.s32.totalorder %s8338_s30, %s8334_s0 }
  0x23   : > { %p7950_p10 = scmp.lt.s32.totalorder %s8346_s21, 2  ;;  %s587_s29 = sand.u32 1, %s8342_s20  }
  0x24   : > { %s8539_s12 = scalar_select %p66_p7, %s8342_s20, %s68_s13  }
  0x25   : > { %p77_p11 = por %p76_p8, %p75_p6  ;;  %p8543_p12 = por %p82_p1, %p81_p9 }
  0x26   : > { %12949 = sst [smem:[#allocation13_spill]] %s8539_s12  ;;  %s590_s2 = scalar_lea.vmem [#allocation2], %s587_s29 }
  0x27   : > { %s12951_s1 = sld [smem:[#allocation15_spill]]  ;;  %s597_s3 = sshll.u32 %s590_s2, 4  ;;  %s598_s3 = int_to_ptr.vmem [resolvable:$true] %s597_s3 }
  0x28   : > { %p8552_p13 = pnand %p7950_p10, %p77_p11  ;;  %s588_s13 = scalar_lea.sflag [#allocation3], %s587_s29 }
  0x2a   : > { %p8278_p2 = pneg %p8552_p13 }
  0x2d   : > { %s593_s8 = scalar_lea.hbm %s12951_s1, %s8346_s21  ;;  %s8281_s27 = scalar_lea.hbm %s12951_s1, 2 }
  0x2e   : > { %s595_s25 = sshll.u32 %s593_s8, 4  ;;  %s596_s25 = int_to_ptr.hbm [resolvable:$true] %s595_s25 }
  0x2f   : > { %s8274_s22 = sshra.s32 %s596_s25, 4  ;;  %s8275_s22 = int_to_ptr.hbm [resolvable:$true] %s8274_s22 }
  0x30   : > { %s8276_s16 = scalar_lea.hbm %s8275_s22, 1  ;;  %p8282_p6 = scmp.lt.s32.totalorder %s8275_s22, %s12951_s1 }
  0x31   : > { %p8277_p0 = scmp.ne.s32.totalorder %s8275_s22, %s8276_s16  ;;  %p8283_p7 = scmp.lt.s32.totalorder %s8281_s27, %s8276_s16 }
  0x33   : > { %p8279_p4 = pnand %p8278_p2, %p8277_p0  ;;  %p8284_p8 = por %p8283_p7, %p8282_p6 }
  0x35   : > { %p8280_p5 = pneg %p8279_p4 }
  0x37   : > { %p8285_p9 = pnand %p8284_p8, %p8280_p5 }
  0x39   : > { %8288 = shalt.err (!%p8285_p9)
}
  0x3a   : > { %7945 = dma.hbm_to_vmem [thread:$0]  (!%p8552_p13), %s596_s25, 16, %s598_s3, %s588_s13  }
  0x3b   : > { %606 = sbr.rel (%p8497_p3) target bundleno = 2923 (0xb6b), region = 92  ;;  %s608_s29 = sand.u32 (!%p8497_p3), 1, %s8338_s30  }
  0x3c   : > { %s609_s12 = scalar_lea.sflag (!%p8497_p3), [#allocation3], %s608_s29  ;;  %s8569_s21 = scalar_lea.vmem (!%p8497_p3), [#allocation2], %s608_s29 }
  0x40   : > { %8321 = dma.done.wait (%p8543_p12), %s609_s12, 16  }
  0x41   : > { %8323 = vsyncadd (%p8543_p12), %s609_s12, 4294967280 }
  0x42   : > { %8325 = dma.done.wait (%p82_p1), [#allocation5], 2624  }
  0x43   : > { %8327 = vsyncadd (%p82_p1), [#allocation5], 4294964672 }
  0x44   : > { %8329 = dma.done.wait (%p82_p1), [#allocation8], 192  }
  0x45   : > { %8331 = vsyncadd (%p82_p1), [#allocation8], 4294967104  ;;  %s12953_s25 = sld [smem:[#allocation16_spill]]  ;;  %p694_p1 = scmp.lt.s32.totalorder %s8492_s23, 1  ;;  %vm2319_vm0 = vcmask 424960   ;;  %vm2369_vm1 = vcmask 293888  }
  0x46   : > { %s12954_s18 = sld [smem:[#allocation14_spill]]  ;;  %s12925_s2 = smov 120   ;;  %vm2379_vm2 = vcmask 785408   ;;  %vm2344_vm3 = vcmask 359424   ;;  %vm2294_vm4 = vcmask 490496   ;;  %vm2381_vm5 = vcmask 1043456  }
  0x47   : > { %s12974_s23 = smov (!%p694_p1, %s8492_s23), 1  ;;  %s12916_s29 = smov 52   ;;  %vm2354_vm6 = vcmask 850944   ;;  %vm2329_vm7 = vcmask 916480   ;;  %vm2304_vm8 = vcmask 982016   ;;  %vm3089_vm9 = vcmask 556032  }
  0x48   : > { %s12915_s3 = sshll.u32 %s12974_s23, 3  ;;  %s12928_s16 = smov 112   ;;  %vm3771_vm10 = vcmask 130048   ;;  %vm3748_vm11 = vcmask 261120   ;;  %vm3731_vm12 = vcmask 392192   ;;  %vm3708_vm13 = vcmask 523264  }
  0x49   : > { %s12922_s24 = smov 104   ;;  %s12923_s0 = smov 44   ;;  %vm3691_vm14 = vcmask 654336   ;;  %vm3793_vm15 = vcmask 883712  }
  0x4a   : > { %s12918_s12 = smov 60   ;;  %s8364_s27 = smov 32  }
  0x4b   : > { %v750_v0 = vld [vmem:[%s12953_s25 + $0x150] sm:$0xff]  ;;  %v751_v6 = vld [vmem:[%s12953_s25 + $0x158] sm:$0xff]  ;;  %v736_v12 = vld [vmem:[%s12953_s25 + $0xe0] sm:$0xff]  ;;  %s8365_s8 = smov 16   ;;  %s12932_s22 = smov 48  }
  0x4c   : > { %v806_v1 = vld [vmem:[%s12953_s25 + $0x310] sm:$0xff]  ;;  %v1030_v2 = vunpack.c.3.s8 %v750_v0  ;;  %v1016_v4 = vunpack.c.2.s8 %v750_v0  ;;  %v1002_v7 = vunpack.c.1.s8 %v750_v0  ;;  %v988_v9 = vunpack.c.0.s8 %v750_v0  ;;  %v807_v11 = vld [vmem:[%s12953_s25 + $0x318] sm:$0xff]  ;;  %v792_v13 = vld [vmem:[%s12953_s25 + $0x2a0] sm:$0xff]  ;;  %s698_s13 = scalar_lea.vmem %s12954_s18, %s12915_s3  ;;  %s12920_s18 = smov 36  }
  0x4d   : > { %v1254_v3 = vunpack.c.3.s8 %v806_v1  ;;  %v1240_v5 = vunpack.c.2.s8 %v806_v1  ;;  %v1226_v8 = vunpack.c.1.s8 %v806_v1  ;;  %v1212_v10 = vunpack.c.0.s8 %v806_v1  ;;  %v8604_v42 = vld [vmem:[%s12953_s25 + $0xe8] sm:$0xff]  ;;  %v8614_v48 = vld [vmem:[%s12953_s25 + $0x70] sm:$0xff]  ;;  %s12955_s3 = sld [smem:[#allocation17_spill]]  ;;  %s12965_s26 = smov 52  }
  0x4e   : > { %v1478_v14 = vcvt.s32.f32 %v1030_v2  ;;  %v1464_v16 = vcvt.s32.f32 %v1016_v4  ;;  %v1450_v18 = vcvt.s32.f32 %v1002_v7  ;;  %v1436_v20 = vcvt.s32.f32 %v988_v9  ;;  %v8609_v47 = vld [vmem:[%s12953_s25 + $0x2a8] sm:$0xff]  ;;  %v8619_v49 = vld [vmem:[%s12953_s25 + $0x230] sm:$0xff] }
  0x4f   : > { %v1702_v15 = vcvt.s32.f32 %v1254_v3  ;;  %v1688_v17 = vcvt.s32.f32 %v1240_v5  ;;  %v1674_v19 = vcvt.s32.f32 %v1226_v8  ;;  %v1660_v21 = vcvt.s32.f32 %v1212_v10 }
  0x50   : > { %1722 = vmatpush.msra.mxu0 %v1478_v14  ;;  %v1031_v22 = vunpack.c.3.s8 %v751_v6  ;;  %v1255_v23 = vunpack.c.3.s8 %v807_v11  ;;  %v974_v24 = vunpack.c.3.s8 %v736_v12  ;;  %v1198_v25 = vunpack.c.3.s8 %v792_v13  ;;  %v8637_v14 = vld [vmem:[%s12953_s25 + $0x78] sm:$0xff] }
  0x51   : > { %1742 = vmatpush.msra.mxu1 %v1702_v15  ;;  %v1017_v26 = vunpack.c.2.s8 %v751_v6  ;;  %v1241_v27 = vunpack.c.2.s8 %v807_v11  ;;  %v960_v28 = vunpack.c.2.s8 %v736_v12  ;;  %v1184_v29 = vunpack.c.2.s8 %v792_v13 }
  0x52   : > { %1723 = vmatpush.msra.mxu0 %v1464_v16  ;;  %v1479_v30 = vcvt.s32.f32 %v1031_v22  ;;  %v1703_v31 = vcvt.s32.f32 %v1255_v23  ;;  %v1422_v32 = vcvt.s32.f32 %v974_v24  ;;  %v1646_v33 = vcvt.s32.f32 %v1198_v25 }
  0x53   : > { %1743 = vmatpush.msra.mxu1 %v1688_v17  ;;  %v1465_v34 = vcvt.s32.f32 %v1017_v26  ;;  %v1689_v35 = vcvt.s32.f32 %v1241_v27  ;;  %v1408_v36 = vcvt.s32.f32 %v960_v28  ;;  %v1632_v37 = vcvt.s32.f32 %v1184_v29 }
  0x54   : > { %1724 = vmatpush.msra.mxu0 %v1450_v18  ;;  %v1003_v38 = vunpack.c.1.s8 %v751_v6  ;;  %v1227_v39 = vunpack.c.1.s8 %v807_v11  ;;  %v946_v40 = vunpack.c.1.s8 %v736_v12  ;;  %v1170_v41 = vunpack.c.1.s8 %v792_v13  ;;  %1762 = vmatpush.msra.mxu2 %v1479_v30 }
  0x55   : > { %1744 = vmatpush.msra.mxu1 %v1674_v19  ;;  %1782 = vmatpush.msra.mxu3 %v1703_v31  ;;  %v989_v43 = vunpack.c.0.s8 %v751_v6  ;;  %v1213_v44 = vunpack.c.0.s8 %v807_v11  ;;  %v932_v45 = vunpack.c.0.s8 %v736_v12  ;;  %v1156_v46 = vunpack.c.0.s8 %v792_v13  ;;  %v8651_v19 = vld [vmem:[%s12953_s25 + $0x238] sm:$0xff] }
  0x56   : > { %1725 = vmatpush.msra.mxu0 %v1436_v20  ;;  %v1451_v50 = vcvt.s32.f32 %v1003_v38  ;;  %v1675_v51 = vcvt.s32.f32 %v1227_v39  ;;  %v1394_v52 = vcvt.s32.f32 %v946_v40  ;;  %v1618_v53 = vcvt.s32.f32 %v1170_v41  ;;  %1763 = vmatpush.msra.mxu2 %v1465_v34  ;;  %v8656_v20 = vld [vmem:[%s12953_s25] sm:$0xff] }
  0x57   : > { %1745 = vmatpush.msra.mxu1 %v1660_v21  ;;  %1783 = vmatpush.msra.mxu3 %v1689_v35  ;;  %v1437_v54 = vcvt.s32.f32 %v989_v43  ;;  %v1661_v55 = vcvt.s32.f32 %v1213_v44  ;;  %v1380_v56 = vcvt.s32.f32 %v932_v45  ;;  %v1604_v57 = vcvt.s32.f32 %v1156_v46  ;;  %v8661_v21 = vld [vmem:[%s12953_s25 + $0x1c0] sm:$0xff] }
  0x58   : > { %1726 = vmatpush.msra.mxu0 %v1422_v32  ;;  %v975_v58 = vunpack.c.3.s8 %v8604_v42  ;;  %v1199_v59 = vunpack.c.3.s8 %v8609_v47  ;;  %v918_v60 = vunpack.c.3.s8 %v8614_v48  ;;  %v1142_v61 = vunpack.c.3.s8 %v8619_v49  ;;  %1764 = vmatpush.msra.mxu2 %v1451_v50  ;;  %v8684_v50 = vld [vmem:[%s12953_s25 + $0x8] sm:$0xff] }
  0x59   : > { %1746 = vmatpush.msra.mxu1 %v1646_v33  ;;  %1784 = vmatpush.msra.mxu3 %v1675_v51  ;;  %v961_v62 = vunpack.c.2.s8 %v8604_v42  ;;  %v1185_v63 = vunpack.c.2.s8 %v8609_v47  ;;  %v904_v0 = vunpack.c.2.s8 %v8614_v48  ;;  %v1128_v1 = vunpack.c.2.s8 %v8619_v49 }
  0x5a   : > { %1727 = vmatpush.msra.mxu0 %v1408_v36  ;;  %v1423_v2 = vcvt.s32.f32 %v975_v58  ;;  %v1647_v3 = vcvt.s32.f32 %v1199_v59  ;;  %v1366_v4 = vcvt.s32.f32 %v918_v60  ;;  %v1590_v5 = vcvt.s32.f32 %v1142_v61  ;;  %1765 = vmatpush.msra.mxu2 %v1437_v54 }
  0x5b   : > { %1747 = vmatpush.msra.mxu1 %v1632_v37  ;;  %1785 = vmatpush.msra.mxu3 %v1661_v55  ;;  %v1409_v6 = vcvt.s32.f32 %v961_v62  ;;  %v1633_v7 = vcvt.s32.f32 %v1185_v63  ;;  %v1352_v8 = vcvt.s32.f32 %v904_v0  ;;  %v1576_v9 = vcvt.s32.f32 %v1128_v1  ;;  %v8693_v55 = vld [vmem:[%s12953_s25 + $0x1c8] sm:$0xff]  ;;  %v707_v62 = vld [vmem:[%s698_s13] sm:$0xff]  ;;  %s12930_s13 = smov 96  }
  0x5c   : > { %1728 = vmatpush.msra.mxu0 %v1394_v52  ;;  %v947_v10 = vunpack.c.1.s8 %v8604_v42  ;;  %v1171_v11 = vunpack.c.1.s8 %v8609_v47  ;;  %v890_v12 = vunpack.c.1.s8 %v8614_v48  ;;  %v1114_v13 = vunpack.c.1.s8 %v8619_v49  ;;  %1766 = vmatpush.msra.mxu2 %v1423_v2  ;;  %1717 = vst [vmem:[#allocation1] ss:$2 sm:$0xff] %v707_v62 }
  0x5d   : > { %1748 = vmatpush.msra.mxu1 %v1618_v53  ;;  %1786 = vmatpush.msra.mxu3 %v1647_v3  ;;  %v933_v15 = vunpack.c.0.s8 %v8604_v42  ;;  %v1157_v16 = vunpack.c.0.s8 %v8609_v47  ;;  %v876_v17 = vunpack.c.0.s8 %v8614_v48  ;;  %v1100_v18 = vunpack.c.0.s8 %v8619_v49 }
  0x5e   : > { %1729 = vmatpush.msra.mxu0 %v1380_v56  ;;  %v1395_v22 = vcvt.s32.f32 %v947_v10  ;;  %v1619_v23 = vcvt.s32.f32 %v1171_v11  ;;  %v1338_v24 = vcvt.s32.f32 %v890_v12  ;;  %v1562_v25 = vcvt.s32.f32 %v1114_v13  ;;  %1767 = vmatpush.msra.mxu2 %v1409_v6  ;;  %v8698_v56 = vld [vmem:[%s12953_s25 + $0x160] sm:$0xff] }
  0x5f   : > { %1749 = vmatpush.msra.mxu1 %v1604_v57  ;;  %1787 = vmatpush.msra.mxu3 %v1633_v7  ;;  %v1381_v26 = vcvt.s32.f32 %v933_v15  ;;  %v1605_v27 = vcvt.s32.f32 %v1157_v16  ;;  %v1324_v28 = vcvt.s32.f32 %v876_v17  ;;  %v1548_v29 = vcvt.s32.f32 %v1100_v18  ;;  %v8703_v57 = vld [vmem:[%s12953_s25 + $0x320] sm:$0xff] }
  0x60   : > { %1730 = vmatpush.msra.mxu0 %v1366_v4  ;;  %v919_v30 = vunpack.c.3.s8 %v8637_v14  ;;  %v1143_v31 = vunpack.c.3.s8 %v8651_v19  ;;  %v862_v32 = vunpack.c.3.s8 %v8656_v20  ;;  %v1086_v33 = vunpack.c.3.s8 %v8661_v21  ;;  %1768 = vmatpush.msra.mxu2 %v1395_v22 }
  0x61   : > { %1750 = vmatpush.msra.mxu1 %v1590_v5  ;;  %1788 = vmatpush.msra.mxu3 %v1619_v23  ;;  %v905_v34 = vunpack.c.2.s8 %v8637_v14  ;;  %v1129_v35 = vunpack.c.2.s8 %v8651_v19  ;;  %v848_v36 = vunpack.c.2.s8 %v8656_v20  ;;  %v1072_v37 = vunpack.c.2.s8 %v8661_v21  ;;  %v8720_v23 = vld [vmem:[%s12953_s25 + $0x168] sm:$0xff] }
  0x62   : > { %1731 = vmatpush.msra.mxu0 %v1352_v8  ;;  %v1367_v38 = vcvt.s32.f32 %v919_v30  ;;  %v1591_v39 = vcvt.s32.f32 %v1143_v31  ;;  %v1310_v40 = vcvt.s32.f32 %v862_v32  ;;  %v1534_v41 = vcvt.s32.f32 %v1086_v33  ;;  %1769 = vmatpush.msra.mxu2 %v1381_v26  ;;  %v8739_v30 = vld [vmem:[%s12953_s25 + $0x2b0] sm:$0xff] }
  0x63   : > { %1751 = vmatpush.msra.mxu1 %v1576_v9  ;;  %1789 = vmatpush.msra.mxu3 %v1605_v27  ;;  %v1353_v42 = vcvt.s32.f32 %v905_v34  ;;  %v1577_v43 = vcvt.s32.f32 %v1129_v35  ;;  %v1296_v44 = vcvt.s32.f32 %v848_v36  ;;  %v1520_v45 = vcvt.s32.f32 %v1072_v37 }
  0x64   : > { %1732 = vmatpush.msra.mxu0 %v1338_v24  ;;  %v891_v46 = vunpack.c.1.s8 %v8637_v14  ;;  %v1115_v47 = vunpack.c.1.s8 %v8651_v19  ;;  %v834_v48 = vunpack.c.1.s8 %v8656_v20  ;;  %v1058_v49 = vunpack.c.1.s8 %v8661_v21  ;;  %1770 = vmatpush.msra.mxu2 %v1367_v38 }
  0x65   : > { %1752 = vmatpush.msra.mxu1 %v1562_v25  ;;  %1790 = vmatpush.msra.mxu3 %v1591_v39  ;;  %v877_v51 = vunpack.c.0.s8 %v8637_v14  ;;  %v1101_v52 = vunpack.c.0.s8 %v8651_v19  ;;  %v820_v53 = vunpack.c.0.s8 %v8656_v20  ;;  %v1044_v54 = vunpack.c.0.s8 %v8661_v21 }
  0x66   : > { %1733 = vmatpush.msra.mxu0 %v1324_v28  ;;  %v1339_v58 = vcvt.s32.f32 %v891_v46  ;;  %v1563_v59 = vcvt.s32.f32 %v1115_v47  ;;  %v1282_v60 = vcvt.s32.f32 %v834_v48  ;;  %v1506_v61 = vcvt.s32.f32 %v1058_v49  ;;  %1771 = vmatpush.msra.mxu2 %v1353_v42  ;;  %v8729_v28 = vld [vmem:[%s12953_s25 + $0x328] sm:$0xff] }
  0x67   : > { %1753 = vmatpush.msra.mxu1 %v1548_v29  ;;  %1791 = vmatpush.msra.mxu3 %v1577_v43  ;;  %v1325_v63 = vcvt.s32.f32 %v877_v51  ;;  %v1549_v0 = vcvt.s32.f32 %v1101_v52  ;;  %v1268_v1 = vcvt.s32.f32 %v820_v53  ;;  %v1492_v2 = vcvt.s32.f32 %v1044_v54  ;;  %v8734_v29 = vld [vmem:[%s12953_s25 + $0xf0] sm:$0xff] }
  0x68   : > { %1734 = vmatpush.msra.mxu0 %v1310_v40  ;;  %v863_v3 = vunpack.c.3.s8 %v8684_v50  ;;  %v1087_v4 = vunpack.c.3.s8 %v8693_v55  ;;  %v1032_v5 = vunpack.c.3.s8 %v8698_v56  ;;  %v1256_v6 = vunpack.c.3.s8 %v8703_v57  ;;  %1772 = vmatpush.msra.mxu2 %v1339_v58 }
  0x69   : > { %1754 = vmatpush.msra.mxu1 %v1534_v41  ;;  %1792 = vmatpush.msra.mxu3 %v1563_v59  ;;  %v849_v7 = vunpack.c.2.s8 %v8684_v50  ;;  %v1073_v8 = vunpack.c.2.s8 %v8693_v55  ;;  %v1018_v9 = vunpack.c.2.s8 %v8698_v56  ;;  %v1242_v10 = vunpack.c.2.s8 %v8703_v57  ;;  %v8756_v59 = vld [vmem:[%s12953_s25 + $0xf8] sm:$0xff] }
  0x6a   : > { %1735 = vmatpush.msra.mxu0 %v1296_v44  ;;  %v1311_v11 = vcvt.s32.f32 %v863_v3  ;;  %v1535_v12 = vcvt.s32.f32 %v1087_v4  ;;  %v1480_v13 = vcvt.s32.f32 %v1032_v5  ;;  %v1704_v14 = vcvt.s32.f32 %v1256_v6  ;;  %1773 = vmatpush.msra.mxu2 %v1325_v63 }
  0x6b   : > { %1755 = vmatpush.msra.mxu1 %v1520_v45  ;;  %1793 = vmatpush.msra.mxu3 %v1549_v0  ;;  %v1297_v15 = vcvt.s32.f32 %v849_v7  ;;  %v1521_v16 = vcvt.s32.f32 %v1073_v8  ;;  %v1466_v17 = vcvt.s32.f32 %v1018_v9  ;;  %v1690_v18 = vcvt.s32.f32 %v1242_v10  ;;  %v8765_v0 = vld [vmem:[%s12953_s25 + $0x2b8] sm:$0xff] }
  0x6c   : > { %1736 = vmatpush.msra.mxu0 %v1282_v60  ;;  %v835_v19 = vunpack.c.1.s8 %v8684_v50  ;;  %v1059_v20 = vunpack.c.1.s8 %v8693_v55  ;;  %v1004_v21 = vunpack.c.1.s8 %v8698_v56  ;;  %v1228_v22 = vunpack.c.1.s8 %v8703_v57  ;;  %1774 = vmatpush.msra.mxu2 %v1311_v11 }
  0x6d   : > { %1756 = vmatpush.msra.mxu1 %v1506_v61  ;;  %1794 = vmatpush.msra.mxu3 %v1535_v12  ;;  %v821_v24 = vunpack.c.0.s8 %v8684_v50  ;;  %v1045_v25 = vunpack.c.0.s8 %v8693_v55  ;;  %v990_v26 = vunpack.c.0.s8 %v8698_v56  ;;  %v1214_v27 = vunpack.c.0.s8 %v8703_v57 }
  0x6e   : > { %1737 = vmatpush.msra.mxu0 %v1268_v1  ;;  %v1283_v31 = vcvt.s32.f32 %v835_v19  ;;  %v1507_v32 = vcvt.s32.f32 %v1059_v20  ;;  %v1452_v33 = vcvt.s32.f32 %v1004_v21  ;;  %v1676_v34 = vcvt.s32.f32 %v1228_v22  ;;  %1775 = vmatpush.msra.mxu2 %v1297_v15  ;;  %v8770_v1 = vld [vmem:[%s12953_s25 + $0x80] sm:$0xff] }
  0x6f   : > { %1757 = vmatpush.msra.mxu1 %v1492_v2  ;;  %v1269_v35 = vcvt.s32.f32 %v821_v24  ;;  %v1493_v36 = vcvt.s32.f32 %v1045_v25  ;;  %v1438_v37 = vcvt.s32.f32 %v990_v26  ;;  %v1662_v38 = vcvt.s32.f32 %v1214_v27  ;;  %1795 = vmatpush.msra.mxu3 %v1521_v16  ;;  %v8775_v2 = vld [vmem:[%s12953_s25 + $0x240] sm:$0xff] }
  0x70   : > { %1802 = vmatpush.msrb.mxu0 %v1480_v13  ;;  %v1033_v39 = vunpack.c.3.s8 %v8720_v23  ;;  %v1257_v40 = vunpack.c.3.s8 %v8729_v28  ;;  %v976_v41 = vunpack.c.3.s8 %v8734_v29  ;;  %v1200_v42 = vunpack.c.3.s8 %v8739_v30  ;;  %1776 = vmatpush.msra.mxu2 %v1283_v31  ;;  %v8792_v31 = vld [vmem:[%s12953_s25 + $0x88] sm:$0xff] }
  0x71   : > { %1822 = vmatpush.msrb.mxu1 %v1704_v14  ;;  %v1019_v43 = vunpack.c.2.s8 %v8720_v23  ;;  %v1243_v44 = vunpack.c.2.s8 %v8729_v28  ;;  %v962_v45 = vunpack.c.2.s8 %v8734_v29  ;;  %v1186_v46 = vunpack.c.2.s8 %v8739_v30  ;;  %1796 = vmatpush.msra.mxu3 %v1507_v32 }
  0x72   : > { %1803 = vmatpush.msrb.mxu0 %v1466_v17  ;;  %v1481_v47 = vcvt.s32.f32 %v1033_v39  ;;  %v1705_v48 = vcvt.s32.f32 %v1257_v40  ;;  %v1424_v49 = vcvt.s32.f32 %v976_v41  ;;  %v1648_v50 = vcvt.s32.f32 %v1200_v42  ;;  %1777 = vmatpush.msra.mxu2 %v1269_v35 }
  0x73   : > { %1823 = vmatpush.msrb.mxu1 %v1690_v18  ;;  %v1467_v51 = vcvt.s32.f32 %v1019_v43  ;;  %v1691_v52 = vcvt.s32.f32 %v1243_v44  ;;  %v1410_v53 = vcvt.s32.f32 %v962_v45  ;;  %v1634_v54 = vcvt.s32.f32 %v1186_v46  ;;  %1797 = vmatpush.msra.mxu3 %v1493_v36  ;;  %v8801_v36 = vld [vmem:[%s12953_s25 + $0x248] sm:$0xff] }
  0x74   : > { %1804 = vmatpush.msrb.mxu0 %v1452_v33  ;;  %v1005_v55 = vunpack.c.1.s8 %v8720_v23  ;;  %v1229_v56 = vunpack.c.1.s8 %v8729_v28  ;;  %v948_v57 = vunpack.c.1.s8 %v8734_v29  ;;  %v1172_v58 = vunpack.c.1.s8 %v8739_v30  ;;  %1842 = vmatpush.msrb.mxu2 %v1481_v47 }
  0x75   : > { %1824 = vmatpush.msrb.mxu1 %v1676_v34  ;;  %v991_v60 = vunpack.c.0.s8 %v8720_v23  ;;  %v1215_v61 = vunpack.c.0.s8 %v8729_v28  ;;  %v934_v62 = vunpack.c.0.s8 %v8734_v29  ;;  %v1158_v63 = vunpack.c.0.s8 %v8739_v30  ;;  %1862 = vmatpush.msrb.mxu3 %v1705_v48 }
  0x76   : > { %1805 = vmatpush.msrb.mxu0 %v1438_v37  ;;  %v1453_v3 = vcvt.s32.f32 %v1005_v55  ;;  %v1677_v4 = vcvt.s32.f32 %v1229_v56  ;;  %v1396_v5 = vcvt.s32.f32 %v948_v57  ;;  %v1620_v6 = vcvt.s32.f32 %v1172_v58  ;;  %1843 = vmatpush.msrb.mxu2 %v1467_v51  ;;  %v8806_v37 = vld [vmem:[%s12953_s25 + $0x10] sm:$0xff] }
  0x77   : > { %1825 = vmatpush.msrb.mxu1 %v1662_v38  ;;  %v1439_v7 = vcvt.s32.f32 %v991_v60  ;;  %v1663_v8 = vcvt.s32.f32 %v1215_v61  ;;  %v1382_v9 = vcvt.s32.f32 %v934_v62  ;;  %v1606_v10 = vcvt.s32.f32 %v1158_v63  ;;  %1863 = vmatpush.msrb.mxu3 %v1691_v52  ;;  %v8811_v38 = vld [vmem:[%s12953_s25 + $0x1d0] sm:$0xff] }
  0x78   : > { %1806 = vmatpush.msrb.mxu0 %v1424_v49  ;;  %v977_v11 = vunpack.c.3.s8 %v8756_v59  ;;  %v1201_v12 = vunpack.c.3.s8 %v8765_v0  ;;  %v920_v13 = vunpack.c.3.s8 %v8770_v1  ;;  %v1144_v14 = vunpack.c.3.s8 %v8775_v2  ;;  %1844 = vmatpush.msrb.mxu2 %v1453_v3  ;;  %v8828_v3 = vld [vmem:[%s12953_s25 + $0x18] sm:$0xff] }
  0x79   : > { %1826 = vmatpush.msrb.mxu1 %v1648_v50  ;;  %v963_v15 = vunpack.c.2.s8 %v8756_v59  ;;  %v1187_v16 = vunpack.c.2.s8 %v8765_v0  ;;  %v906_v17 = vunpack.c.2.s8 %v8770_v1  ;;  %v1130_v18 = vunpack.c.2.s8 %v8775_v2  ;;  %1864 = vmatpush.msrb.mxu3 %v1677_v4 }
  0x7a   : > { %1807 = vmatpush.msrb.mxu0 %v1410_v53  ;;  %v1425_v19 = vcvt.s32.f32 %v977_v11  ;;  %v1649_v20 = vcvt.s32.f32 %v1201_v12  ;;  %v1368_v21 = vcvt.s32.f32 %v920_v13  ;;  %v1592_v22 = vcvt.s32.f32 %v1144_v14  ;;  %1845 = vmatpush.msrb.mxu2 %v1439_v7 }
  0x7b   : > { %1827 = vmatpush.msrb.mxu1 %v1634_v54  ;;  %v1411_v23 = vcvt.s32.f32 %v963_v15  ;;  %v1635_v24 = vcvt.s32.f32 %v1187_v16  ;;  %v1354_v25 = vcvt.s32.f32 %v906_v17  ;;  %v1578_v26 = vcvt.s32.f32 %v1130_v18  ;;  %1865 = vmatpush.msrb.mxu3 %v1663_v8  ;;  %v8837_v8 = vld [vmem:[%s12953_s25 + $0x1d8] sm:$0xff] }
  0x7c   : > { %1808 = vmatpush.msrb.mxu0 %v1396_v5  ;;  %v949_v27 = vunpack.c.1.s8 %v8756_v59  ;;  %v1173_v28 = vunpack.c.1.s8 %v8765_v0  ;;  %v892_v29 = vunpack.c.1.s8 %v8770_v1  ;;  %v1116_v30 = vunpack.c.1.s8 %v8775_v2  ;;  %1846 = vmatpush.msrb.mxu2 %v1425_v19 }
  0x7d   : > { %1828 = vmatpush.msrb.mxu1 %v1620_v6  ;;  %v935_v32 = vunpack.c.0.s8 %v8756_v59  ;;  %v1159_v33 = vunpack.c.0.s8 %v8765_v0  ;;  %v878_v34 = vunpack.c.0.s8 %v8770_v1  ;;  %v1102_v35 = vunpack.c.0.s8 %v8775_v2  ;;  %1866 = vmatpush.msrb.mxu3 %v1649_v20 }
  0x7e   : > { %1809 = vmatpush.msrb.mxu0 %v1382_v9  ;;  %v1397_v39 = vcvt.s32.f32 %v949_v27  ;;  %v1621_v40 = vcvt.s32.f32 %v1173_v28  ;;  %v1340_v41 = vcvt.s32.f32 %v892_v29  ;;  %v1564_v42 = vcvt.s32.f32 %v1116_v30  ;;  %1847 = vmatpush.msrb.mxu2 %v1411_v23  ;;  %v8842_v9 = vld [vmem:[%s12953_s25 + $0x170] sm:$0xff] }
  0x7f   : > { %1829 = vmatpush.msrb.mxu1 %v1606_v10  ;;  %v1383_v43 = vcvt.s32.f32 %v935_v32  ;;  %v1607_v44 = vcvt.s32.f32 %v1159_v33  ;;  %v1326_v45 = vcvt.s32.f32 %v878_v34  ;;  %v1550_v46 = vcvt.s32.f32 %v1102_v35  ;;  %1867 = vmatpush.msrb.mxu3 %v1635_v24  ;;  %v8847_v10 = vld [vmem:[%s12953_s25 + $0x330] sm:$0xff]  ;;  %v8859_v32 = vld.sshfl [vmem:[#allocation1 + $0x8] sm:$0xff pattern:$0x75316420] }
  0x80   : > { %1810 = vmatpush.msrb.mxu0 %v1368_v21  ;;  %v921_v47 = vunpack.c.3.s8 %v8792_v31  ;;  %v1145_v48 = vunpack.c.3.s8 %v8801_v36  ;;  %v864_v49 = vunpack.c.3.s8 %v8806_v37  ;;  %v1088_v50 = vunpack.c.3.s8 %v8811_v38  ;;  %1848 = vmatpush.msrb.mxu2 %v1397_v39 }
  0x81   : > { %1830 = vmatpush.msrb.mxu1 %v1592_v22  ;;  %v907_v51 = vunpack.c.2.s8 %v8792_v31  ;;  %v1131_v52 = vunpack.c.2.s8 %v8801_v36  ;;  %v850_v53 = vunpack.c.2.s8 %v8806_v37  ;;  %v1074_v54 = vunpack.c.2.s8 %v8811_v38  ;;  %1868 = vmatpush.msrb.mxu3 %v1621_v40 }
  0x82   : > { %1811 = vmatpush.msrb.mxu0 %v1354_v25  ;;  %v1369_v55 = vcvt.s32.f32 %v921_v47  ;;  %v1593_v56 = vcvt.s32.f32 %v1145_v48  ;;  %v1312_v57 = vcvt.s32.f32 %v864_v49  ;;  %v1536_v58 = vcvt.s32.f32 %v1088_v50  ;;  %1849 = vmatpush.msrb.mxu2 %v1383_v43 }
  0x83   : > { %1831 = vmatpush.msrb.mxu1 %v1578_v26  ;;  %v1355_v59 = vcvt.s32.f32 %v907_v51  ;;  %v1579_v60 = vcvt.s32.f32 %v1131_v52  ;;  %v1298_v61 = vcvt.s32.f32 %v850_v53  ;;  %v1522_v62 = vcvt.s32.f32 %v1074_v54  ;;  %1869 = vmatpush.msrb.mxu3 %v1607_v44 }
  0x84   : > { %1812 = vmatpush.msrb.mxu0 %v1340_v41  ;;  %v893_v63 = vunpack.c.1.s8 %v8792_v31  ;;  %v1117_v0 = vunpack.c.1.s8 %v8801_v36  ;;  %v836_v1 = vunpack.c.1.s8 %v8806_v37  ;;  %v1060_v2 = vunpack.c.1.s8 %v8811_v38  ;;  %1850 = vmatpush.msrb.mxu2 %v1369_v55  ;;  %v8870_v41 = vld [vmem:[%s12953_s25 + $0x178] sm:$0xff] }
  0x85   : > { %1832 = vmatpush.msrb.mxu1 %v1564_v42  ;;  %v879_v4 = vunpack.c.0.s8 %v8792_v31  ;;  %v1103_v5 = vunpack.c.0.s8 %v8801_v36  ;;  %v822_v6 = vunpack.c.0.s8 %v8806_v37  ;;  %v1046_v7 = vunpack.c.0.s8 %v8811_v38  ;;  %1870 = vmatpush.msrb.mxu3 %v1593_v56  ;;  %v8857_v31 = vld.sshfl [vmem:[#allocation1] sm:$0xff pattern:$0x75316420]  ;;  %v8875_v42 = vld [vmem:[%s12953_s25 + $0x338] sm:$0xff] }
  0x86   : > { %1813 = vmatpush.msrb.mxu0 %v1326_v45  ;;  %v1341_v11 = vcvt.s32.f32 %v893_v63  ;;  %v1565_v12 = vcvt.s32.f32 %v1117_v0  ;;  %v1284_v13 = vcvt.s32.f32 %v836_v1  ;;  %v1508_v14 = vcvt.s32.f32 %v1060_v2  ;;  %1851 = vmatpush.msrb.mxu2 %v1355_v59  ;;  %v8880_v45 = vld [vmem:[%s12953_s25 + $0x100] sm:$0xff] }
  0x87   : > { %1833 = vmatpush.msrb.mxu1 %v1550_v46  ;;  %v1327_v15 = vcvt.s32.f32 %v879_v4  ;;  %v1551_v16 = vcvt.s32.f32 %v1103_v5  ;;  %1871 = vmatpush.msrb.mxu3 %v1579_v60  ;;  %v865_v17 = vunpack.c.3.s8 %v8828_v3  ;;  %v1089_v18 = vunpack.c.3.s8 %v8837_v8  ;;  %v8885_v46 = vld [vmem:[%s12953_s25 + $0x2c0] sm:$0xff] }
  0x88   : > { %1814 = vmatpush.msrb.mxu0 %v1312_v57  ;;  %v1034_v19 = vunpack.c.3.s8 %v8842_v9  ;;  %v1258_v20 = vunpack.c.3.s8 %v8847_v10  ;;  %v1270_v21 = vcvt.s32.f32 %v822_v6  ;;  %v1494_v22 = vcvt.s32.f32 %v1046_v7  ;;  %1852 = vmatpush.msrb.mxu2 %v1341_v11 }
  0x89   : > { %1834 = vmatpush.msrb.mxu1 %v1536_v58  ;;  %v851_v23 = vunpack.c.2.s8 %v8828_v3  ;;  %v1075_v24 = vunpack.c.2.s8 %v8837_v8  ;;  %1872 = vmatpush.msrb.mxu3 %v1565_v12  ;;  %v1313_v25 = vcvt.s32.f32 %v865_v17  ;;  %v1537_v26 = vcvt.s32.f32 %v1089_v18 }
  0x8a   : > { %1815 = vmatpush.msrb.mxu0 %v1298_v61  ;;  %v1020_v27 = vunpack.c.2.s8 %v8842_v9  ;;  %v1244_v28 = vunpack.c.2.s8 %v8847_v10  ;;  %v1482_v29 = vcvt.s32.f32 %v1034_v19  ;;  %v1706_v30 = vcvt.s32.f32 %v1258_v20  ;;  %1853 = vmatpush.msrb.mxu2 %v1327_v15  ;;  %v8920_v15 = vld [vmem:[%s12953_s25 + $0x90] sm:$0xff] }
  0x8b   : > { %1835 = vmatpush.msrb.mxu1 %v1522_v62  ;;  %1873 = vmatpush.msrb.mxu3 %v1551_v16  ;;  %v837_v33 = vunpack.c.1.s8 %v8828_v3  ;;  %v1061_v34 = vunpack.c.1.s8 %v8837_v8  ;;  %v1006_v35 = vunpack.c.1.s8 %v8842_v9  ;;  %v1230_v36 = vunpack.c.1.s8 %v8847_v10  ;;  %v8925_v16 = vld [vmem:[%s12953_s25 + $0x250] sm:$0xff] }
  0x8c   : > { %1816 = vmatpush.msrb.mxu0 %v1284_v13  ;;  %v1299_v37 = vcvt.s32.f32 %v851_v23  ;;  %v1523_v38 = vcvt.s32.f32 %v1075_v24  ;;  %v823_v39 = vunpack.c.0.s8 %v8828_v3  ;;  %v1047_v40 = vunpack.c.0.s8 %v8837_v8  ;;  %1854 = vmatpush.msrb.mxu2 %v1313_v25 }
  0x8d   : > { %1836 = vmatpush.msrb.mxu1 %v1508_v14  ;;  %1874 = vmatpush.msrb.mxu3 %v1537_v26  ;;  %v1468_v43 = vcvt.s32.f32 %v1020_v27  ;;  %v1692_v44 = vcvt.s32.f32 %v1244_v28  ;;  %v1285_v47 = vcvt.s32.f32 %v837_v33  ;;  %v1509_v48 = vcvt.s32.f32 %v1061_v34 }
  0x8e   : > { %1817 = vmatpush.msrb.mxu0 %v1270_v21  ;;  %1758 = vmatmul.f32.vlgmr.msra.gmra.mxu1 %v8859_v32  ;;  %v992_v49 = vunpack.c.0.s8 %v8842_v9  ;;  %v1216_v50 = vunpack.c.0.s8 %v8847_v10  ;;  %v1454_v51 = vcvt.s32.f32 %v1006_v35  ;;  %v1678_v52 = vcvt.s32.f32 %v1230_v36  ;;  %v8906_v9 = vld [vmem:[%s12953_s25 + $0x108] sm:$0xff] }
  0x8f   : > { %1837 = vmatpush.msrb.mxu1 %v1494_v22  ;;  %1738 = vmatmul.f32.vlgmr.msra.gmra.mxu0 %v8857_v31  ;;  %v1035_v53 = vunpack.c.3.s8 %v8870_v41  ;;  %v1259_v54 = vunpack.c.3.s8 %v8875_v42  ;;  %v1271_v55 = vcvt.s32.f32 %v823_v39  ;;  %v1495_v56 = vcvt.s32.f32 %v1047_v40  ;;  %v8911_v10 = vld [vmem:[%s12953_s25 + $0x2c8] sm:$0xff] }
  0x90   : > { %1882 = vmatpush.msra.mxu0 %v1482_v29  ;;  %1855 = vmatpush.msrb.mxu2 %v1299_v37  ;;  %v978_v57 = vunpack.c.3.s8 %v8880_v45  ;;  %v1202_v58 = vunpack.c.3.s8 %v8885_v46  ;;  %v1021_v59 = vunpack.c.2.s8 %v8870_v41  ;;  %v1245_v60 = vunpack.c.2.s8 %v8875_v42 }
  0x91   : > { %1902 = vmatpush.msra.mxu1 %v1706_v30  ;;  %1875 = vmatpush.msrb.mxu3 %v1523_v38  ;;  %v1440_v61 = vcvt.s32.f32 %v992_v49  ;;  %v1664_v62 = vcvt.s32.f32 %v1216_v50  ;;  %v964_v63 = vunpack.c.2.s8 %v8880_v45  ;;  %v1188_v0 = vunpack.c.2.s8 %v8885_v46 }
  0x92   : > { %1883 = vmatpush.msra.mxu0 %v1468_v43  ;;  %1856 = vmatpush.msrb.mxu2 %v1285_v47  ;;  %v1483_v1 = vcvt.s32.f32 %v1035_v53  ;;  %v1707_v2 = vcvt.s32.f32 %v1259_v54  ;;  %v1007_v3 = vunpack.c.1.s8 %v8870_v41  ;;  %v1231_v4 = vunpack.c.1.s8 %v8875_v42  ;;  %v8944_v47 = vld [vmem:[%s12953_s25 + $0x98] sm:$0xff]  ;;  %v8956_v53 = vld [vmem:[%s12953_s25 + $0x20] sm:$0xff] }
  0x93   : > { %1903 = vmatpush.msra.mxu1 %v1692_v44  ;;  %1876 = vmatpush.msrb.mxu3 %v1509_v48  ;;  %v1426_v5 = vcvt.s32.f32 %v978_v57  ;;  %v1650_v6 = vcvt.s32.f32 %v1202_v58  ;;  %v950_v7 = vunpack.c.1.s8 %v8880_v45  ;;  %v1174_v8 = vunpack.c.1.s8 %v8885_v46  ;;  %v8949_v48 = vld [vmem:[%s12953_s25 + $0x258] sm:$0xff]  ;;  %v8961_v54 = vld [vmem:[%s12953_s25 + $0x1e0] sm:$0xff] }
  0x94   : > { %1884 = vmatpush.msra.mxu0 %v1454_v51  ;;  %1857 = vmatpush.msrb.mxu2 %v1271_v55  ;;  %v1469_v11 = vcvt.s32.f32 %v1021_v59  ;;  %v1693_v12 = vcvt.s32.f32 %v1245_v60  ;;  %v993_v13 = vunpack.c.0.s8 %v8870_v41  ;;  %v1217_v14 = vunpack.c.0.s8 %v8875_v42 }
  0x95   : > { %1904 = vmatpush.msra.mxu1 %v1678_v52  ;;  %1877 = vmatpush.msrb.mxu3 %v1495_v56  ;;  %v1412_v17 = vcvt.s32.f32 %v964_v63  ;;  %v1636_v18 = vcvt.s32.f32 %v1188_v0  ;;  %v936_v19 = vunpack.c.0.s8 %v8880_v45  ;;  %v1160_v20 = vunpack.c.0.s8 %v8885_v46 }
  0x96   : > { %1778 = vmatmul.f32.vlgmr.msra.gmra.mxu2 %v8857_v31  ;;  %1798 = vmatmul.f32.vlgmr.msra.gmra.mxu3 %v8859_v32  ;;  %v1455_v21 = vcvt.s32.f32 %v1007_v3  ;;  %v1679_v22 = vcvt.s32.f32 %v1231_v4  ;;  %v979_v23 = vunpack.c.3.s8 %v8906_v9  ;;  %v1203_v24 = vunpack.c.3.s8 %v8911_v10 }
  0x97   : > { %1885 = vmatpush.msra.mxu0 %v1440_v61  ;;  %1905 = vmatpush.msra.mxu1 %v1664_v62  ;;  %v1398_v25 = vcvt.s32.f32 %v950_v7  ;;  %v1622_v26 = vcvt.s32.f32 %v1174_v8  ;;  %v922_v27 = vunpack.c.3.s8 %v8920_v15  ;;  %v1146_v28 = vunpack.c.3.s8 %v8925_v16 }
  0x98   : > { %1922 = vmatpush.msra.mxu2 %v1483_v1  ;;  %1942 = vmatpush.msra.mxu3 %v1707_v2  ;;  %v1441_v29 = vcvt.s32.f32 %v993_v13  ;;  %v1665_v30 = vcvt.s32.f32 %v1217_v14  ;;  %v965_v33 = vunpack.c.2.s8 %v8906_v9  ;;  %v1189_v34 = vunpack.c.2.s8 %v8911_v10 }
  0x99   : > { %1886 = vmatpush.msra.mxu0 %v1426_v5  ;;  %1906 = vmatpush.msra.mxu1 %v1650_v6  ;;  %v1384_v35 = vcvt.s32.f32 %v936_v19  ;;  %v1608_v36 = vcvt.s32.f32 %v1160_v20  ;;  %v908_v37 = vunpack.c.2.s8 %v8920_v15  ;;  %v1132_v38 = vunpack.c.2.s8 %v8925_v16 }
  0x9a   : > { %1923 = vmatpush.msra.mxu2 %v1469_v11  ;;  %1943 = vmatpush.msra.mxu3 %v1693_v12  ;;  %v1427_v39 = vcvt.s32.f32 %v979_v23  ;;  %v1651_v40 = vcvt.s32.f32 %v1203_v24  ;;  %v951_v41 = vunpack.c.1.s8 %v8906_v9  ;;  %v1175_v42 = vunpack.c.1.s8 %v8911_v10 }
  0x9b   : > { %1887 = vmatpush.msra.mxu0 %v1412_v17  ;;  %1907 = vmatpush.msra.mxu1 %v1636_v18  ;;  %v1370_v43 = vcvt.s32.f32 %v922_v27  ;;  %v1594_v44 = vcvt.s32.f32 %v1146_v28  ;;  %v894_v45 = vunpack.c.1.s8 %v8920_v15  ;;  %v1118_v46 = vunpack.c.1.s8 %v8925_v16 }
  0x9c   : > { %1924 = vmatpush.msra.mxu2 %v1455_v21  ;;  %1944 = vmatpush.msra.mxu3 %v1679_v22  ;;  %v1413_v49 = vcvt.s32.f32 %v965_v33  ;;  %v1637_v50 = vcvt.s32.f32 %v1189_v34  ;;  %v937_v51 = vunpack.c.0.s8 %v8906_v9  ;;  %v1161_v52 = vunpack.c.0.s8 %v8911_v10  ;;  %v8980_v21 = vld [vmem:[%s12953_s25 + $0x28] sm:$0xff] }
  0x9d   : > { %1888 = vmatpush.msra.mxu0 %v1398_v25  ;;  %1908 = vmatpush.msra.mxu1 %v1622_v26  ;;  %v1356_v55 = vcvt.s32.f32 %v908_v37  ;;  %v1580_v56 = vcvt.s32.f32 %v1132_v38  ;;  %v880_v57 = vunpack.c.0.s8 %v8920_v15  ;;  %v1104_v58 = vunpack.c.0.s8 %v8925_v16  ;;  %v8985_v22 = vld [vmem:[%s12953_s25 + $0x1e8] sm:$0xff] }
  0x9e   : > { %1925 = vmatpush.msra.mxu2 %v1441_v29  ;;  %1945 = vmatpush.msra.mxu3 %v1665_v30  ;;  %v1399_v59 = vcvt.s32.f32 %v951_v41  ;;  %v1623_v60 = vcvt.s32.f32 %v1175_v42  ;;  %v923_v61 = vunpack.c.3.s8 %v8944_v47  ;;  %v1147_v62 = vunpack.c.3.s8 %v8949_v48  ;;  %v8994_v29 = vld [vmem:[%s12953_s25 + $0x180] sm:$0xff] }
  0x9f   : > { %1889 = vmatpush.msra.mxu0 %v1384_v35  ;;  %1909 = vmatpush.msra.mxu1 %v1608_v36  ;;  %v1342_v63 = vcvt.s32.f32 %v894_v45  ;;  %v1566_v0 = vcvt.s32.f32 %v1118_v46  ;;  %v866_v1 = vunpack.c.3.s8 %v8956_v53  ;;  %v1090_v2 = vunpack.c.3.s8 %v8961_v54  ;;  %v8999_v30 = vld [vmem:[%s12953_s25 + $0x340] sm:$0xff] }
  0xa0   : > { %1926 = vmatpush.msra.mxu2 %v1427_v39  ;;  %1946 = vmatpush.msra.mxu3 %v1651_v40  ;;  %v1385_v3 = vcvt.s32.f32 %v937_v51  ;;  %v1609_v4 = vcvt.s32.f32 %v1161_v52  ;;  %v909_v5 = vunpack.c.2.s8 %v8944_v47  ;;  %v1133_v6 = vunpack.c.2.s8 %v8949_v48 }
  0xa1   : > { %1890 = vmatpush.msra.mxu0 %v1370_v43  ;;  %1910 = vmatpush.msra.mxu1 %v1594_v44  ;;  %v1328_v7 = vcvt.s32.f32 %v880_v57  ;;  %v1552_v8 = vcvt.s32.f32 %v1104_v58  ;;  %v1371_v9 = vcvt.s32.f32 %v923_v61  ;;  %v1595_v10 = vcvt.s32.f32 %v1147_v62  ;;  %v9018_v57 = vld [vmem:[%s12953_s25 + $0x188] sm:$0xff] }
  0xa2   : > { %1927 = vmatpush.msra.mxu2 %v1413_v49  ;;  %1947 = vmatpush.msra.mxu3 %v1637_v50  ;;  %v852_v11 = vunpack.c.2.s8 %v8956_v53  ;;  %v1076_v12 = vunpack.c.2.s8 %v8961_v54  ;;  %v1314_v13 = vcvt.s32.f32 %v866_v1  ;;  %v1538_v14 = vcvt.s32.f32 %v1090_v2  ;;  %v9023_v58 = vld [vmem:[%s12953_s25 + $0x348] sm:$0xff] }
  0xa3   : > { %1891 = vmatpush.msra.mxu0 %v1356_v55  ;;  %1911 = vmatpush.msra.mxu1 %v1580_v56  ;;  %v895_v15 = vunpack.c.1.s8 %v8944_v47  ;;  %v1119_v16 = vunpack.c.1.s8 %v8949_v48  ;;  %v1357_v17 = vcvt.s32.f32 %v909_v5  ;;  %v1581_v18 = vcvt.s32.f32 %v1133_v6 }
  0xa4   : > { %1928 = vmatpush.msra.mxu2 %v1399_v59  ;;  %1948 = vmatpush.msra.mxu3 %v1623_v60  ;;  %v838_v19 = vunpack.c.1.s8 %v8956_v53  ;;  %v1062_v20 = vunpack.c.1.s8 %v8961_v54  ;;  %v881_v23 = vunpack.c.0.s8 %v8944_v47  ;;  %v1105_v24 = vunpack.c.0.s8 %v8949_v48 }
  0xa5   : > { %1892 = vmatpush.msra.mxu0 %v1342_v63  ;;  %1912 = vmatpush.msra.mxu1 %v1566_v0  ;;  %v1300_v25 = vcvt.s32.f32 %v852_v11  ;;  %v1524_v26 = vcvt.s32.f32 %v1076_v12  ;;  %v824_v27 = vunpack.c.0.s8 %v8956_v53  ;;  %v1048_v28 = vunpack.c.0.s8 %v8961_v54  ;;  %v9030_v63 = vld [vmem:[%s12953_s25 + $0x110] sm:$0xff] }
  0xa6   : > { %1929 = vmatpush.msra.mxu2 %v1385_v3  ;;  %1949 = vmatpush.msra.mxu3 %v1609_v4  ;;  %v1343_v33 = vcvt.s32.f32 %v895_v15  ;;  %v1567_v34 = vcvt.s32.f32 %v1119_v16  ;;  %v867_v35 = vunpack.c.3.s8 %v8980_v21  ;;  %v1091_v36 = vunpack.c.3.s8 %v8985_v22  ;;  %v9035_v0 = vld [vmem:[%s12953_s25 + $0x2d0] sm:$0xff] }
  0xa7   : > { %1893 = vmatpush.msra.mxu0 %v1328_v7  ;;  %1913 = vmatpush.msra.mxu1 %v1552_v8  ;;  %v1286_v37 = vcvt.s32.f32 %v838_v19  ;;  %v1510_v38 = vcvt.s32.f32 %v1062_v20  ;;  %v1329_v39 = vcvt.s32.f32 %v881_v23  ;;  %v1553_v40 = vcvt.s32.f32 %v1105_v24 }
  0xa8   : > { %1930 = vmatpush.msra.mxu2 %v1371_v9  ;;  %1950 = vmatpush.msra.mxu3 %v1595_v10  ;;  %v1036_v41 = vunpack.c.3.s8 %v8994_v29  ;;  %v1260_v42 = vunpack.c.3.s8 %v8999_v30  ;;  %v1272_v43 = vcvt.s32.f32 %v824_v27  ;;  %v1496_v44 = vcvt.s32.f32 %v1048_v28 }
  0xa9   : > { %1894 = vmatpush.msra.mxu0 %v1314_v13  ;;  %1914 = vmatpush.msra.mxu1 %v1538_v14  ;;  %v853_v45 = vunpack.c.2.s8 %v8980_v21  ;;  %v1077_v46 = vunpack.c.2.s8 %v8985_v22  ;;  %v1315_v47 = vcvt.s32.f32 %v867_v35  ;;  %v1539_v48 = vcvt.s32.f32 %v1091_v36 }
  0xaa   : > { %1931 = vmatpush.msra.mxu2 %v1357_v17  ;;  %1951 = vmatpush.msra.mxu3 %v1581_v18  ;;  %v1022_v49 = vunpack.c.2.s8 %v8994_v29  ;;  %v1246_v50 = vunpack.c.2.s8 %v8999_v30  ;;  %v839_v51 = vunpack.c.1.s8 %v8980_v21  ;;  %v1063_v52 = vunpack.c.1.s8 %v8985_v22 }
  0xab   : > { %1858 = vmatmul.f32.vlgmr.msrb.gmra.mxu2 %v8857_v31  ;;  %1878 = vmatmul.f32.vlgmr.msrb.gmra.mxu3 %v8859_v32  ;;  %v1484_v53 = vcvt.s32.f32 %v1036_v41  ;;  %v1708_v54 = vcvt.s32.f32 %v1260_v42  ;;  %v1008_v55 = vunpack.c.1.s8 %v8994_v29  ;;  %v1232_v56 = vunpack.c.1.s8 %v8999_v30 }
  0xac   : > { %1895 = vmatpush.msra.mxu0 %v1300_v25  ;;  %1915 = vmatpush.msra.mxu1 %v1524_v26  ;;  %v1301_v59 = vcvt.s32.f32 %v853_v45  ;;  %v1525_v60 = vcvt.s32.f32 %v1077_v46  ;;  %v825_v61 = vunpack.c.0.s8 %v8980_v21  ;;  %v1049_v62 = vunpack.c.0.s8 %v8985_v22 }
  0xad   : > { %1932 = vmatpush.msra.mxu2 %v1343_v33  ;;  %1952 = vmatpush.msra.mxu3 %v1567_v34  ;;  %v1470_v1 = vcvt.s32.f32 %v1022_v49  ;;  %v1694_v2 = vcvt.s32.f32 %v1246_v50  ;;  %v994_v3 = vunpack.c.0.s8 %v8994_v29  ;;  %v1218_v4 = vunpack.c.0.s8 %v8999_v30  ;;  %v9056_v29 = vld [vmem:[%s12953_s25 + $0x118] sm:$0xff] }
  0xae   : > { %1896 = vmatpush.msra.mxu0 %v1286_v37  ;;  %1916 = vmatpush.msra.mxu1 %v1510_v38  ;;  %v1287_v5 = vcvt.s32.f32 %v839_v51  ;;  %v1511_v6 = vcvt.s32.f32 %v1063_v52  ;;  %v1037_v7 = vunpack.c.3.s8 %v9018_v57  ;;  %v1261_v8 = vunpack.c.3.s8 %v9023_v58  ;;  %v9061_v30 = vld [vmem:[%s12953_s25 + $0x2d8] sm:$0xff]  ;;  %v9068_v37 = vld [vmem:[%s12953_s25 + $0xa0] sm:$0xff] }
  0xaf   : > { %1933 = vmatpush.msra.mxu2 %v1329_v39  ;;  %1953 = vmatpush.msra.mxu3 %v1553_v40  ;;  %v1456_v9 = vcvt.s32.f32 %v1008_v55  ;;  %v1680_v10 = vcvt.s32.f32 %v1232_v56  ;;  %v980_v11 = vunpack.c.3.s8 %v9030_v63  ;;  %v1204_v12 = vunpack.c.3.s8 %v9035_v0  ;;  %v9073_v38 = vld [vmem:[%s12953_s25 + $0x260] sm:$0xff] }
  0xb0   : > { %1897 = vmatpush.msra.mxu0 %v1272_v43  ;;  %1917 = vmatpush.msra.mxu1 %v1496_v44  ;;  %v1273_v13 = vcvt.s32.f32 %v825_v61  ;;  %v1497_v14 = vcvt.s32.f32 %v1049_v62  ;;  %v1023_v15 = vunpack.c.2.s8 %v9018_v57  ;;  %v1247_v16 = vunpack.c.2.s8 %v9023_v58 }
  0xb1   : > { %1934 = vmatpush.msra.mxu2 %v1315_v47  ;;  %1954 = vmatpush.msra.mxu3 %v1539_v48  ;;  %v1442_v17 = vcvt.s32.f32 %v994_v3  ;;  %v1666_v18 = vcvt.s32.f32 %v1218_v4  ;;  %v966_v19 = vunpack.c.2.s8 %v9030_v63  ;;  %v1190_v20 = vunpack.c.2.s8 %v9035_v0  ;;  %v9092_v3 = vld [vmem:[%s12953_s25 + $0xa8] sm:$0xff] }
  0xb2   : > { %1818 = vmatmul.f32.vlgmr.msrb.gmra.mxu0 %v8857_v31  ;;  %1838 = vmatmul.f32.vlgmr.msrb.gmra.mxu1 %v8859_v32  ;;  %v1485_v21 = vcvt.s32.f32 %v1037_v7  ;;  %v1709_v22 = vcvt.s32.f32 %v1261_v8  ;;  %v1009_v23 = vunpack.c.1.s8 %v9018_v57  ;;  %v1233_v24 = vunpack.c.1.s8 %v9023_v58  ;;  %v9097_v4 = vld [vmem:[%s12953_s25 + $0x268] sm:$0xff] }
  0xb3   : > { %1962 = vmatpush.msrb.mxu0 %v1484_v53  ;;  %1982 = vmatpush.msrb.mxu1 %v1708_v54  ;;  %v1428_v25 = vcvt.s32.f32 %v980_v11  ;;  %v1652_v26 = vcvt.s32.f32 %v1204_v12  ;;  %v952_v27 = vunpack.c.1.s8 %v9030_v63  ;;  %v1176_v28 = vunpack.c.1.s8 %v9035_v0 }
  0xb4   : > { %1935 = vmatpush.msra.mxu2 %v1301_v59  ;;  %1955 = vmatpush.msra.mxu3 %v1525_v60  ;;  %v1471_v33 = vcvt.s32.f32 %v1023_v15  ;;  %v1695_v34 = vcvt.s32.f32 %v1247_v16  ;;  %v995_v35 = vunpack.c.0.s8 %v9018_v57  ;;  %v1219_v36 = vunpack.c.0.s8 %v9023_v58 }
  0xb5   : > { %1963 = vmatpush.msrb.mxu0 %v1470_v1  ;;  %1983 = vmatpush.msrb.mxu1 %v1694_v2  ;;  %v1414_v39 = vcvt.s32.f32 %v966_v19  ;;  %v1638_v40 = vcvt.s32.f32 %v1190_v20  ;;  %v938_v41 = vunpack.c.0.s8 %v9030_v63  ;;  %v1162_v42 = vunpack.c.0.s8 %v9035_v0 }
  0xb6   : > { %1936 = vmatpush.msra.mxu2 %v1287_v5  ;;  %1956 = vmatpush.msra.mxu3 %v1511_v6  ;;  %v1457_v43 = vcvt.s32.f32 %v1009_v23  ;;  %v1681_v44 = vcvt.s32.f32 %v1233_v24  ;;  %v981_v45 = vunpack.c.3.s8 %v9056_v29  ;;  %v1205_v46 = vunpack.c.3.s8 %v9061_v30 }
  0xb7   : > { %1964 = vmatpush.msrb.mxu0 %v1456_v9  ;;  %1984 = vmatpush.msrb.mxu1 %v1680_v10  ;;  %v1400_v47 = vcvt.s32.f32 %v952_v27  ;;  %v1624_v48 = vcvt.s32.f32 %v1176_v28  ;;  %v924_v49 = vunpack.c.3.s8 %v9068_v37  ;;  %v1148_v50 = vunpack.c.3.s8 %v9073_v38  ;;  %v9104_v9 = vld [vmem:[%s12953_s25 + $0x30] sm:$0xff] }
  0xb8   : > { %1937 = vmatpush.msra.mxu2 %v1273_v13  ;;  %1957 = vmatpush.msra.mxu3 %v1497_v14  ;;  %v1443_v51 = vcvt.s32.f32 %v995_v35  ;;  %v1667_v52 = vcvt.s32.f32 %v1219_v36  ;;  %v967_v53 = vunpack.c.2.s8 %v9056_v29  ;;  %v1191_v54 = vunpack.c.2.s8 %v9061_v30  ;;  %v9109_v10 = vld [vmem:[%s12953_s25 + $0x1f0] sm:$0xff] }
  0xb9   : > { %1965 = vmatpush.msrb.mxu0 %v1442_v17  ;;  %1985 = vmatpush.msrb.mxu1 %v1666_v18  ;;  %v1386_v55 = vcvt.s32.f32 %v938_v41  ;;  %v1610_v56 = vcvt.s32.f32 %v1162_v42  ;;  %v910_v57 = vunpack.c.2.s8 %v9068_v37  ;;  %v1134_v58 = vunpack.c.2.s8 %v9073_v38 }
  0xba   : > { %2002 = vmatpush.msrb.mxu2 %v1485_v21  ;;  %2022 = vmatpush.msrb.mxu3 %v1709_v22  ;;  %v1429_v59 = vcvt.s32.f32 %v981_v45  ;;  %v1653_v60 = vcvt.s32.f32 %v1205_v46  ;;  %v953_v61 = vunpack.c.1.s8 %v9056_v29  ;;  %v1177_v62 = vunpack.c.1.s8 %v9061_v30 }
  0xbb   : > { %1966 = vmatpush.msrb.mxu0 %v1428_v25  ;;  %1986 = vmatpush.msrb.mxu1 %v1652_v26  ;;  %v1372_v63 = vcvt.s32.f32 %v924_v49  ;;  %v1596_v0 = vcvt.s32.f32 %v1148_v50  ;;  %v896_v1 = vunpack.c.1.s8 %v9068_v37  ;;  %v1120_v2 = vunpack.c.1.s8 %v9073_v38 }
  0xbc   : > { %2003 = vmatpush.msrb.mxu2 %v1471_v33  ;;  %2023 = vmatpush.msrb.mxu3 %v1695_v34  ;;  %v1415_v5 = vcvt.s32.f32 %v967_v53  ;;  %v1639_v6 = vcvt.s32.f32 %v1191_v54  ;;  %v939_v7 = vunpack.c.0.s8 %v9056_v29  ;;  %v1163_v8 = vunpack.c.0.s8 %v9061_v30 }
  0xbd   : > { %1967 = vmatpush.msrb.mxu0 %v1414_v39  ;;  %1987 = vmatpush.msrb.mxu1 %v1638_v40  ;;  %v1358_v11 = vcvt.s32.f32 %v910_v57  ;;  %v1582_v12 = vcvt.s32.f32 %v1134_v58  ;;  %v882_v13 = vunpack.c.0.s8 %v9068_v37  ;;  %v1106_v14 = vunpack.c.0.s8 %v9073_v38 }
  0xbe   : > { %2004 = vmatpush.msrb.mxu2 %v1457_v43  ;;  %2024 = vmatpush.msrb.mxu3 %v1681_v44  ;;  %v1401_v15 = vcvt.s32.f32 %v953_v61  ;;  %v1625_v16 = vcvt.s32.f32 %v1177_v62  ;;  %v925_v17 = vunpack.c.3.s8 %v9092_v3  ;;  %v1149_v18 = vunpack.c.3.s8 %v9097_v4  ;;  %v9128_v43 = vld [vmem:[%s12953_s25 + $0x38] sm:$0xff] }
  0xbf   : > { %1968 = vmatpush.msrb.mxu0 %v1400_v47  ;;  %1988 = vmatpush.msrb.mxu1 %v1624_v48  ;;  %v1344_v19 = vcvt.s32.f32 %v896_v1  ;;  %v1568_v20 = vcvt.s32.f32 %v1120_v2  ;;  %v868_v21 = vunpack.c.3.s8 %v9104_v9  ;;  %v1092_v22 = vunpack.c.3.s8 %v9109_v10  ;;  %v9133_v44 = vld [vmem:[%s12953_s25 + $0x1f8] sm:$0xff]  ;;  %v9140_v47 = vld [vmem:[%s12953_s25 + $0x190] sm:$0xff] }
  0xc0   : > { %2005 = vmatpush.msrb.mxu2 %v1443_v51  ;;  %2025 = vmatpush.msrb.mxu3 %v1667_v52  ;;  %v1387_v23 = vcvt.s32.f32 %v939_v7  ;;  %v1611_v24 = vcvt.s32.f32 %v1163_v8  ;;  %v911_v25 = vunpack.c.2.s8 %v9092_v3  ;;  %v1135_v26 = vunpack.c.2.s8 %v9097_v4  ;;  %v9145_v48 = vld [vmem:[%s12953_s25 + $0x350] sm:$0xff] }
  0xc1   : > { %1969 = vmatpush.msrb.mxu0 %v1386_v55  ;;  %1989 = vmatpush.msrb.mxu1 %v1610_v56  ;;  %v1330_v27 = vcvt.s32.f32 %v882_v13  ;;  %v1554_v28 = vcvt.s32.f32 %v1106_v14  ;;  %v1373_v29 = vcvt.s32.f32 %v925_v17  ;;  %v1597_v30 = vcvt.s32.f32 %v1149_v18  ;;  %v9168_v17 = vld [vmem:[%s12953_s25 + $0x198] sm:$0xff] }
  0xc2   : > { %2006 = vmatpush.msrb.mxu2 %v1429_v59  ;;  %2026 = vmatpush.msrb.mxu3 %v1653_v60  ;;  %v854_v33 = vunpack.c.2.s8 %v9104_v9  ;;  %v1078_v34 = vunpack.c.2.s8 %v9109_v10  ;;  %v1316_v35 = vcvt.s32.f32 %v868_v21  ;;  %v1540_v36 = vcvt.s32.f32 %v1092_v22  ;;  %v9173_v18 = vld [vmem:[%s12953_s25 + $0x358] sm:$0xff]  ;;  %v9178_v21 = vld [vmem:[%s12953_s25 + $0x120] sm:$0xff] }
  0xc3   : > { %1970 = vmatpush.msrb.mxu0 %v1372_v63  ;;  %1990 = vmatpush.msrb.mxu1 %v1596_v0  ;;  %v897_v37 = vunpack.c.1.s8 %v9092_v3  ;;  %v1121_v38 = vunpack.c.1.s8 %v9097_v4  ;;  %v1359_v39 = vcvt.s32.f32 %v911_v25  ;;  %v1583_v40 = vcvt.s32.f32 %v1135_v26  ;;  %v9183_v22 = vld [vmem:[%s12953_s25 + $0x2e0] sm:$0xff] }
  0xc4   : > { %2007 = vmatpush.msrb.mxu2 %v1415_v5  ;;  %2027 = vmatpush.msrb.mxu3 %v1639_v6  ;;  %v840_v41 = vunpack.c.1.s8 %v9104_v9  ;;  %v1064_v42 = vunpack.c.1.s8 %v9109_v10  ;;  %v883_v45 = vunpack.c.0.s8 %v9092_v3  ;;  %v1107_v46 = vunpack.c.0.s8 %v9097_v4 }
  0xc5   : > { %1971 = vmatpush.msrb.mxu0 %v1358_v11  ;;  %1991 = vmatpush.msrb.mxu1 %v1582_v12  ;;  %v1302_v49 = vcvt.s32.f32 %v854_v33  ;;  %v1526_v50 = vcvt.s32.f32 %v1078_v34  ;;  %v826_v51 = vunpack.c.0.s8 %v9104_v9  ;;  %v1050_v52 = vunpack.c.0.s8 %v9109_v10 }
  0xc6   : > { %2008 = vmatpush.msrb.mxu2 %v1401_v15  ;;  %2028 = vmatpush.msrb.mxu3 %v1625_v16  ;;  %v1345_v53 = vcvt.s32.f32 %v897_v37  ;;  %v1569_v54 = vcvt.s32.f32 %v1121_v38  ;;  %v869_v55 = vunpack.c.3.s8 %v9128_v43  ;;  %v1093_v56 = vunpack.c.3.s8 %v9133_v44 }
  0xc7   : > { %1972 = vmatpush.msrb.mxu0 %v1344_v19  ;;  %1992 = vmatpush.msrb.mxu1 %v1568_v20  ;;  %v1288_v57 = vcvt.s32.f32 %v840_v41  ;;  %v1512_v58 = vcvt.s32.f32 %v1064_v42  ;;  %v1038_v59 = vunpack.c.3.s8 %v9140_v47  ;;  %v1262_v60 = vunpack.c.3.s8 %v9145_v48 }
  0xc8   : > { %2009 = vmatpush.msrb.mxu2 %v1387_v23  ;;  %2029 = vmatpush.msrb.mxu3 %v1611_v24  ;;  %v1331_v61 = vcvt.s32.f32 %v883_v45  ;;  %v1555_v62 = vcvt.s32.f32 %v1107_v46  ;;  %v855_v63 = vunpack.c.2.s8 %v9128_v43  ;;  %v1079_v0 = vunpack.c.2.s8 %v9133_v44 }
  0xc9   : > { %1973 = vmatpush.msrb.mxu0 %v1330_v27  ;;  %1993 = vmatpush.msrb.mxu1 %v1554_v28  ;;  %v1274_v1 = vcvt.s32.f32 %v826_v51  ;;  %v1498_v2 = vcvt.s32.f32 %v1050_v52  ;;  %v1024_v3 = vunpack.c.2.s8 %v9140_v47  ;;  %v1248_v4 = vunpack.c.2.s8 %v9145_v48 }
  0xca   : > { %2010 = vmatpush.msrb.mxu2 %v1373_v29  ;;  %2030 = vmatpush.msrb.mxu3 %v1597_v30  ;;  %v1317_v5 = vcvt.s32.f32 %v869_v55  ;;  %v1541_v6 = vcvt.s32.f32 %v1093_v56  ;;  %v841_v7 = vunpack.c.1.s8 %v9128_v43  ;;  %v1065_v8 = vunpack.c.1.s8 %v9133_v44 }
  0xcb   : > { %1974 = vmatpush.msrb.mxu0 %v1316_v35  ;;  %1994 = vmatpush.msrb.mxu1 %v1540_v36  ;;  %v1486_v9 = vcvt.s32.f32 %v1038_v59  ;;  %v1710_v10 = vcvt.s32.f32 %v1262_v60  ;;  %v1010_v11 = vunpack.c.1.s8 %v9140_v47  ;;  %v1234_v12 = vunpack.c.1.s8 %v9145_v48 }
  0xcc   : > { %2011 = vmatpush.msrb.mxu2 %v1359_v39  ;;  %2031 = vmatpush.msrb.mxu3 %v1583_v40  ;;  %v1303_v13 = vcvt.s32.f32 %v855_v63  ;;  %v1527_v14 = vcvt.s32.f32 %v1079_v0  ;;  %v827_v15 = vunpack.c.0.s8 %v9128_v43  ;;  %v1051_v16 = vunpack.c.0.s8 %v9133_v44 }
  0xcd   : > { %1898 = vmatmul.f32.vlgmr.msra.gmra.mxu0 %v8857_v31  ;;  %1918 = vmatmul.f32.vlgmr.msra.gmra.mxu1 %v8859_v32  ;;  %v1472_v19 = vcvt.s32.f32 %v1024_v3  ;;  %v1696_v20 = vcvt.s32.f32 %v1248_v4  ;;  %v1289_v23 = vcvt.s32.f32 %v841_v7  ;;  %v1513_v24 = vcvt.s32.f32 %v1065_v8 }
  0xce   : > { %1975 = vmatpush.msrb.mxu0 %v1302_v49  ;;  %1995 = vmatpush.msrb.mxu1 %v1526_v50  ;;  %v996_v25 = vunpack.c.0.s8 %v9140_v47  ;;  %v1220_v26 = vunpack.c.0.s8 %v9145_v48  ;;  %v1458_v27 = vcvt.s32.f32 %v1010_v11  ;;  %v1682_v28 = vcvt.s32.f32 %v1234_v12 }
  0xcf   : > { %2012 = vmatpush.msrb.mxu2 %v1345_v53  ;;  %2032 = vmatpush.msrb.mxu3 %v1569_v54  ;;  %v1039_v29 = vunpack.c.3.s8 %v9168_v17  ;;  %v1263_v30 = vunpack.c.3.s8 %v9173_v18  ;;  %v1275_v33 = vcvt.s32.f32 %v827_v15  ;;  %v1499_v34 = vcvt.s32.f32 %v1051_v16  ;;  %v9204_v53 = vld [vmem:[%s12953_s25 + $0x128] sm:$0xff] }
  0xd0   : > { %1976 = vmatpush.msrb.mxu0 %v1288_v57  ;;  %1996 = vmatpush.msrb.mxu1 %v1512_v58  ;;  %v982_v35 = vunpack.c.3.s8 %v9178_v21  ;;  %v1206_v36 = vunpack.c.3.s8 %v9183_v22  ;;  %v1025_v37 = vunpack.c.2.s8 %v9168_v17  ;;  %v1249_v38 = vunpack.c.2.s8 %v9173_v18  ;;  %v9209_v54 = vld [vmem:[%s12953_s25 + $0x2e8] sm:$0xff]  ;;  %v9216_v57 = vld [vmem:[%s12953_s25 + $0xb0] sm:$0xff] }
  0xd1   : > { %2013 = vmatpush.msrb.mxu2 %v1331_v61  ;;  %2033 = vmatpush.msrb.mxu3 %v1555_v62  ;;  %v1444_v39 = vcvt.s32.f32 %v996_v25  ;;  %v1668_v40 = vcvt.s32.f32 %v1220_v26  ;;  %v968_v41 = vunpack.c.2.s8 %v9178_v21  ;;  %v1192_v42 = vunpack.c.2.s8 %v9183_v22  ;;  %v9221_v58 = vld [vmem:[%s12953_s25 + $0x270] sm:$0xff] }
  0xd2   : > { %1977 = vmatpush.msrb.mxu0 %v1274_v1  ;;  %1997 = vmatpush.msrb.mxu1 %v1498_v2  ;;  %v1487_v43 = vcvt.s32.f32 %v1039_v29  ;;  %v1711_v44 = vcvt.s32.f32 %v1263_v30  ;;  %v1011_v45 = vunpack.c.1.s8 %v9168_v17  ;;  %v1235_v46 = vunpack.c.1.s8 %v9173_v18  ;;  %v9258_v29 = vld [vmem:[%s12953_s25 + $0x40] sm:$0xff] }
  0xd3   : > { %2014 = vmatpush.msrb.mxu2 %v1317_v5  ;;  %2034 = vmatpush.msrb.mxu3 %v1541_v6  ;;  %v1430_v47 = vcvt.s32.f32 %v982_v35  ;;  %v1654_v48 = vcvt.s32.f32 %v1206_v36  ;;  %v1473_v49 = vcvt.s32.f32 %v1025_v37  ;;  %v1697_v50 = vcvt.s32.f32 %v1249_v38  ;;  %v9263_v30 = vld [vmem:[%s12953_s25 + $0x200] sm:$0xff] }
  0xd4   : > { %2042 = vmatpush.msra.mxu0 %v1486_v9  ;;  %2062 = vmatpush.msra.mxu1 %v1710_v10  ;;  %v954_v51 = vunpack.c.1.s8 %v9178_v21  ;;  %v1178_v52 = vunpack.c.1.s8 %v9183_v22  ;;  %v997_v55 = vunpack.c.0.s8 %v9168_v17  ;;  %v1221_v56 = vunpack.c.0.s8 %v9173_v18 }
  0xd5   : > { %2015 = vmatpush.msrb.mxu2 %v1303_v13  ;;  %2035 = vmatpush.msrb.mxu3 %v1527_v14  ;;  %v1459_v59 = vcvt.s32.f32 %v1011_v45  ;;  %v1683_v60 = vcvt.s32.f32 %v1235_v46  ;;  %v940_v61 = vunpack.c.0.s8 %v9178_v21  ;;  %v1164_v62 = vunpack.c.0.s8 %v9183_v22  ;;  %v9233_v13 = vld.sshfl [vmem:[#allocation1] sm:$0xff pattern:$0x75316420]  ;;  %v9236_v14 = vld.sshfl [vmem:[#allocation1 + $0x8] sm:$0xff pattern:$0x75316420] }
  0xd6   : > { %2043 = vmatpush.msra.mxu0 %v1472_v19  ;;  %2063 = vmatpush.msra.mxu1 %v1696_v20  ;;  %v983_v63 = vunpack.c.3.s8 %v9204_v53  ;;  %v1207_v0 = vunpack.c.3.s8 %v9209_v54  ;;  %v1402_v1 = vcvt.s32.f32 %v954_v51  ;;  %v1626_v2 = vcvt.s32.f32 %v1178_v52 }
  0xd7   : > { %2016 = vmatpush.msrb.mxu2 %v1289_v23  ;;  %2036 = vmatpush.msrb.mxu3 %v1513_v24  ;;  %v926_v3 = vunpack.c.3.s8 %v9216_v57  ;;  %v1150_v4 = vunpack.c.3.s8 %v9221_v58  ;;  %v1445_v5 = vcvt.s32.f32 %v997_v55  ;;  %v1669_v6 = vcvt.s32.f32 %v1221_v56  ;;  %v9246_v23 = vld [vmem:[%s12953_s25 + $0xb8] sm:$0xff] }
  0xd8   : > { %2044 = vmatpush.msra.mxu0 %v1458_v27  ;;  %2064 = vmatpush.msra.mxu1 %v1682_v28  ;;  %v969_v7 = vunpack.c.2.s8 %v9204_v53  ;;  %v1193_v8 = vunpack.c.2.s8 %v9209_v54  ;;  %v1388_v9 = vcvt.s32.f32 %v940_v61  ;;  %v1612_v10 = vcvt.s32.f32 %v1164_v62  ;;  %v9251_v24 = vld [vmem:[%s12953_s25 + $0x278] sm:$0xff] }
  0xd9   : > { %2017 = vmatpush.msrb.mxu2 %v1275_v33  ;;  %2037 = vmatpush.msrb.mxu3 %v1499_v34  ;;  %v912_v11 = vunpack.c.2.s8 %v9216_v57  ;;  %v1136_v12 = vunpack.c.2.s8 %v9221_v58  ;;  %v1431_v15 = vcvt.s32.f32 %v983_v63  ;;  %v1655_v16 = vcvt.s32.f32 %v1207_v0 }
  0xda   : > { %1938 = vmatmul.f32.vlgmr.msra.gmra.mxu2 %v8857_v31  ;;  %1958 = vmatmul.f32.vlgmr.msra.gmra.mxu3 %v8859_v32  ;;  %v1416_v31 = vcvt.s32.f32 %v968_v41  ;;  %v1640_v32 = vcvt.s32.f32 %v1192_v42  ;;  %v955_v17 = vunpack.c.1.s8 %v9204_v53  ;;  %v1179_v18 = vunpack.c.1.s8 %v9209_v54 }
  0xdb   : > { %2045 = vmatpush.msra.mxu0 %v1444_v39  ;;  %2065 = vmatpush.msra.mxu1 %v1668_v40  ;;  %v1374_v19 = vcvt.s32.f32 %v926_v3  ;;  %v1598_v20 = vcvt.s32.f32 %v1150_v4  ;;  %v898_v21 = vunpack.c.1.s8 %v9216_v57  ;;  %v1122_v22 = vunpack.c.1.s8 %v9221_v58 }
  0xdc   : > { %2082 = vmatpush.msra.mxu2 %v1487_v43  ;;  %2102 = vmatpush.msra.mxu3 %v1711_v44  ;;  %v1417_v25 = vcvt.s32.f32 %v969_v7  ;;  %v1641_v26 = vcvt.s32.f32 %v1193_v8  ;;  %v941_v27 = vunpack.c.0.s8 %v9204_v53  ;;  %v1165_v28 = vunpack.c.0.s8 %v9209_v54 }
  0xdd   : > { %2046 = vmatpush.msra.mxu0 %v1430_v47  ;;  %2066 = vmatpush.msra.mxu1 %v1654_v48  ;;  %v1360_v33 = vcvt.s32.f32 %v912_v11  ;;  %v1584_v34 = vcvt.s32.f32 %v1136_v12  ;;  %v884_v35 = vunpack.c.0.s8 %v9216_v57  ;;  %v1108_v36 = vunpack.c.0.s8 %v9221_v58 }
  0xde   : > { %2083 = vmatpush.msra.mxu2 %v1473_v49  ;;  %2103 = vmatpush.msra.mxu3 %v1697_v50  ;;  %v1403_v37 = vcvt.s32.f32 %v955_v17  ;;  %v1627_v38 = vcvt.s32.f32 %v1179_v18  ;;  %v927_v39 = vunpack.c.3.s8 %v9246_v23  ;;  %v1151_v40 = vunpack.c.3.s8 %v9251_v24 }
  0xdf   : > { %2047 = vmatpush.msra.mxu0 %v1416_v31  ;;  %2067 = vmatpush.msra.mxu1 %v1640_v32  ;;  %v1346_v41 = vcvt.s32.f32 %v898_v21  ;;  %v1570_v42 = vcvt.s32.f32 %v1122_v22  ;;  %v870_v43 = vunpack.c.3.s8 %v9258_v29  ;;  %v1094_v44 = vunpack.c.3.s8 %v9263_v30 }
  0xe0   : > { %2084 = vmatpush.msra.mxu2 %v1459_v59  ;;  %2104 = vmatpush.msra.mxu3 %v1683_v60  ;;  %v1389_v45 = vcvt.s32.f32 %v941_v27  ;;  %v1613_v46 = vcvt.s32.f32 %v1165_v28  ;;  %v913_v47 = vunpack.c.2.s8 %v9246_v23  ;;  %v1137_v48 = vunpack.c.2.s8 %v9251_v24  ;;  %v9282_v59 = vld [vmem:[%s12953_s25 + $0x48] sm:$0xff] }
  0xe1   : > { %1978 = vmatmul.f32.vlgmr.msrb.gmra.mxu0 %v9233_v13  ;;  %1998 = vmatmul.f32.vlgmr.msrb.gmra.mxu1 %v9236_v14  ;;  %v1332_v49 = vcvt.s32.f32 %v884_v35  ;;  %v1556_v50 = vcvt.s32.f32 %v1108_v36  ;;  %v856_v51 = vunpack.c.2.s8 %v9258_v29  ;;  %v1080_v52 = vunpack.c.2.s8 %v9263_v30  ;;  %v9287_v60 = vld [vmem:[%s12953_s25 + $0x208] sm:$0xff] }
  0xe2   : > { %2048 = vmatpush.msra.mxu0 %v1402_v1  ;;  %2068 = vmatpush.msra.mxu1 %v1626_v2  ;;  %v1375_v53 = vcvt.s32.f32 %v927_v39  ;;  %v1599_v54 = vcvt.s32.f32 %v1151_v40  ;;  %v899_v31 = vunpack.c.1.s8 %v9246_v23  ;;  %v1123_v32 = vunpack.c.1.s8 %v9251_v24  ;;  %v9294_v1 = vld [vmem:[%s12953_s25 + $0x1a0] sm:$0xff]  ;;  %v9320_v39 = vld [vmem:[%s12953_s25 + $0x1a8] sm:$0xff] }
  0xe3   : > { %2085 = vmatpush.msra.mxu2 %v1445_v5  ;;  %2105 = vmatpush.msra.mxu3 %v1669_v6  ;;  %v1318_v55 = vcvt.s32.f32 %v870_v43  ;;  %v1542_v56 = vcvt.s32.f32 %v1094_v44  ;;  %v842_v57 = vunpack.c.1.s8 %v9258_v29  ;;  %v1066_v58 = vunpack.c.1.s8 %v9263_v30  ;;  %v9299_v2 = vld [vmem:[%s12953_s25 + $0x360] sm:$0xff]  ;;  %v9325_v40 = vld [vmem:[%s12953_s25 + $0x368] sm:$0xff]  ;;  %v9330_v43 = vld [vmem:[%s12953_s25 + $0x130] sm:$0xff] }
  0xe4   : > { %2049 = vmatpush.msra.mxu0 %v1388_v9  ;;  %2069 = vmatpush.msra.mxu1 %v1612_v10  ;;  %v1361_v61 = vcvt.s32.f32 %v913_v47  ;;  %v1585_v62 = vcvt.s32.f32 %v1137_v48  ;;  %v885_v63 = vunpack.c.0.s8 %v9246_v23  ;;  %v1109_v0 = vunpack.c.0.s8 %v9251_v24  ;;  %v9335_v44 = vld [vmem:[%s12953_s25 + $0x2f0] sm:$0xff] }
  0xe5   : > { %2086 = vmatpush.msra.mxu2 %v1431_v15  ;;  %2106 = vmatpush.msra.mxu3 %v1655_v16  ;;  %v1304_v3 = vcvt.s32.f32 %v856_v51  ;;  %v1528_v4 = vcvt.s32.f32 %v1080_v52  ;;  %v828_v5 = vunpack.c.0.s8 %v9258_v29  ;;  %v1052_v6 = vunpack.c.0.s8 %v9263_v30 }
  0xe6   : > { %2050 = vmatpush.msra.mxu0 %v1374_v19  ;;  %2070 = vmatpush.msra.mxu1 %v1598_v20  ;;  %v1347_v7 = vcvt.s32.f32 %v899_v31  ;;  %v1571_v8 = vcvt.s32.f32 %v1123_v32  ;;  %v871_v9 = vunpack.c.3.s8 %v9282_v59  ;;  %v1095_v10 = vunpack.c.3.s8 %v9287_v60 }
  0xe7   : > { %2087 = vmatpush.msra.mxu2 %v1417_v25  ;;  %2107 = vmatpush.msra.mxu3 %v1641_v26  ;;  %v1290_v11 = vcvt.s32.f32 %v842_v57  ;;  %v1514_v12 = vcvt.s32.f32 %v1066_v58  ;;  %v1040_v15 = vunpack.c.3.s8 %v9294_v1  ;;  %v1264_v16 = vunpack.c.3.s8 %v9299_v2 }
  0xe8   : > { %2051 = vmatpush.msra.mxu0 %v1360_v33  ;;  %2071 = vmatpush.msra.mxu1 %v1584_v34  ;;  %v1333_v17 = vcvt.s32.f32 %v885_v63  ;;  %v1557_v18 = vcvt.s32.f32 %v1109_v0  ;;  %v857_v19 = vunpack.c.2.s8 %v9282_v59  ;;  %v1081_v20 = vunpack.c.2.s8 %v9287_v60 }
  0xe9   : > { %2088 = vmatpush.msra.mxu2 %v1403_v37  ;;  %2108 = vmatpush.msra.mxu3 %v1627_v38  ;;  %v1276_v21 = vcvt.s32.f32 %v828_v5  ;;  %v1500_v22 = vcvt.s32.f32 %v1052_v6  ;;  %v1026_v23 = vunpack.c.2.s8 %v9294_v1  ;;  %v1250_v24 = vunpack.c.2.s8 %v9299_v2  ;;  %v9354_v5 = vld [vmem:[%s12953_s25 + $0x138] sm:$0xff] }
  0xea   : > { %2052 = vmatpush.msra.mxu0 %v1346_v41  ;;  %2072 = vmatpush.msra.mxu1 %v1570_v42  ;;  %v1319_v25 = vcvt.s32.f32 %v871_v9  ;;  %v1543_v26 = vcvt.s32.f32 %v1095_v10  ;;  %v843_v27 = vunpack.c.1.s8 %v9282_v59  ;;  %v1067_v28 = vunpack.c.1.s8 %v9287_v60  ;;  %v9359_v6 = vld [vmem:[%s12953_s25 + $0x2f8] sm:$0xff] }
  0xeb   : > { %2089 = vmatpush.msra.mxu2 %v1389_v45  ;;  %2109 = vmatpush.msra.mxu3 %v1613_v46  ;;  %v1488_v29 = vcvt.s32.f32 %v1040_v15  ;;  %v1712_v30 = vcvt.s32.f32 %v1264_v16  ;;  %v1012_v33 = vunpack.c.1.s8 %v9294_v1  ;;  %v1236_v34 = vunpack.c.1.s8 %v9299_v2 }
  0xec   : > { %2053 = vmatpush.msra.mxu0 %v1332_v49  ;;  %2073 = vmatpush.msra.mxu1 %v1556_v50  ;;  %v1305_v35 = vcvt.s32.f32 %v857_v19  ;;  %v1529_v36 = vcvt.s32.f32 %v1081_v20  ;;  %v829_v37 = vunpack.c.0.s8 %v9282_v59  ;;  %v1053_v38 = vunpack.c.0.s8 %v9287_v60 }
  0xed   : > { %2090 = vmatpush.msra.mxu2 %v1375_v53  ;;  %2110 = vmatpush.msra.mxu3 %v1599_v54  ;;  %v1474_v41 = vcvt.s32.f32 %v1026_v23  ;;  %v1698_v42 = vcvt.s32.f32 %v1250_v24  ;;  %v1291_v45 = vcvt.s32.f32 %v843_v27  ;;  %v1515_v46 = vcvt.s32.f32 %v1067_v28 }
  0xee   : > { %2054 = vmatpush.msra.mxu0 %v1318_v55  ;;  %2074 = vmatpush.msra.mxu1 %v1542_v56  ;;  %v998_v47 = vunpack.c.0.s8 %v9294_v1  ;;  %v1222_v48 = vunpack.c.0.s8 %v9299_v2  ;;  %v1460_v49 = vcvt.s32.f32 %v1012_v33  ;;  %v1684_v50 = vcvt.s32.f32 %v1236_v34 }
  0xef   : > { %2091 = vmatpush.msra.mxu2 %v1361_v61  ;;  %2111 = vmatpush.msra.mxu3 %v1585_v62  ;;  %v1041_v51 = vunpack.c.3.s8 %v9320_v39  ;;  %v1265_v52 = vunpack.c.3.s8 %v9325_v40  ;;  %v1277_v53 = vcvt.s32.f32 %v829_v37  ;;  %v1501_v54 = vcvt.s32.f32 %v1053_v38 }
  0xf0   : > { %2055 = vmatpush.msra.mxu0 %v1304_v3  ;;  %2075 = vmatpush.msra.mxu1 %v1528_v4  ;;  %v984_v31 = vunpack.c.3.s8 %v9330_v43  ;;  %v1208_v32 = vunpack.c.3.s8 %v9335_v44  ;;  %v1027_v55 = vunpack.c.2.s8 %v9320_v39  ;;  %v1251_v56 = vunpack.c.2.s8 %v9325_v40 }
  0xf1   : > { %2092 = vmatpush.msra.mxu2 %v1347_v7  ;;  %2112 = vmatpush.msra.mxu3 %v1571_v8  ;;  %v1446_v57 = vcvt.s32.f32 %v998_v47  ;;  %v1670_v58 = vcvt.s32.f32 %v1222_v48  ;;  %v970_v59 = vunpack.c.2.s8 %v9330_v43  ;;  %v1194_v60 = vunpack.c.2.s8 %v9335_v44 }
  0xf2   : > { %2056 = vmatpush.msra.mxu0 %v1290_v11  ;;  %2076 = vmatpush.msra.mxu1 %v1514_v12  ;;  %v1489_v61 = vcvt.s32.f32 %v1041_v51  ;;  %v1713_v62 = vcvt.s32.f32 %v1265_v52  ;;  %v1013_v63 = vunpack.c.1.s8 %v9320_v39  ;;  %v1237_v0 = vunpack.c.1.s8 %v9325_v40  ;;  %v9368_v11 = vld [vmem:[%s12953_s25 + $0xc0] sm:$0xff] }
  0xf3   : > { %2093 = vmatpush.msra.mxu2 %v1333_v17  ;;  %2113 = vmatpush.msra.mxu3 %v1557_v18  ;;  %v1432_v1 = vcvt.s32.f32 %v984_v31  ;;  %v1656_v2 = vcvt.s32.f32 %v1208_v32  ;;  %v956_v3 = vunpack.c.1.s8 %v9330_v43  ;;  %v1180_v4 = vunpack.c.1.s8 %v9335_v44  ;;  %v9373_v12 = vld [vmem:[%s12953_s25 + $0x280] sm:$0xff]  ;;  %v9406_v31 = vld [vmem:[%s12953_s25 + $0x50] sm:$0xff] }
  0xf4   : > { %2057 = vmatpush.msra.mxu0 %v1276_v21  ;;  %2077 = vmatpush.msra.mxu1 %v1500_v22  ;;  %v1475_v7 = vcvt.s32.f32 %v1027_v55  ;;  %v1699_v8 = vcvt.s32.f32 %v1251_v56  ;;  %v999_v9 = vunpack.c.0.s8 %v9320_v39  ;;  %v1223_v10 = vunpack.c.0.s8 %v9325_v40  ;;  %v9411_v32 = vld [vmem:[%s12953_s25 + $0x210] sm:$0xff] }
  0xf5   : > { %2094 = vmatpush.msra.mxu2 %v1319_v25  ;;  %2114 = vmatpush.msra.mxu3 %v1543_v26  ;;  %v1418_v15 = vcvt.s32.f32 %v970_v59  ;;  %v1642_v16 = vcvt.s32.f32 %v1194_v60  ;;  %v942_v17 = vunpack.c.0.s8 %v9330_v43  ;;  %v1166_v18 = vunpack.c.0.s8 %v9335_v44 }
  0xf6   : > { %2122 = vmatpush.msrb.mxu0 %v1488_v29  ;;  %2142 = vmatpush.msrb.mxu1 %v1712_v30  ;;  %v1461_v19 = vcvt.s32.f32 %v1013_v63  ;;  %v1685_v20 = vcvt.s32.f32 %v1237_v0  ;;  %v985_v21 = vunpack.c.3.s8 %v9354_v5  ;;  %v1209_v22 = vunpack.c.3.s8 %v9359_v6 }
  0xf7   : > { %2095 = vmatpush.msra.mxu2 %v1305_v35  ;;  %2115 = vmatpush.msra.mxu3 %v1529_v36  ;;  %v1404_v23 = vcvt.s32.f32 %v956_v3  ;;  %v1628_v24 = vcvt.s32.f32 %v1180_v4  ;;  %v928_v25 = vunpack.c.3.s8 %v9368_v11  ;;  %v1152_v26 = vunpack.c.3.s8 %v9373_v12 }
  0xf8   : > { %2123 = vmatpush.msrb.mxu0 %v1474_v41  ;;  %2143 = vmatpush.msrb.mxu1 %v1698_v42  ;;  %v1447_v27 = vcvt.s32.f32 %v999_v9  ;;  %v1671_v28 = vcvt.s32.f32 %v1223_v10  ;;  %v971_v29 = vunpack.c.2.s8 %v9354_v5  ;;  %v1195_v30 = vunpack.c.2.s8 %v9359_v6 }
  0xf9   : > { %2096 = vmatpush.msra.mxu2 %v1291_v45  ;;  %2116 = vmatpush.msra.mxu3 %v1515_v46  ;;  %v1390_v33 = vcvt.s32.f32 %v942_v17  ;;  %v1614_v34 = vcvt.s32.f32 %v1166_v18  ;;  %v914_v35 = vunpack.c.2.s8 %v9368_v11  ;;  %v1138_v36 = vunpack.c.2.s8 %v9373_v12  ;;  %v9392_v45 = vld [vmem:[%s12953_s25 + $0xc8] sm:$0xff] }
  0xfa   : > { %2124 = vmatpush.msrb.mxu0 %v1460_v49  ;;  %2144 = vmatpush.msrb.mxu1 %v1684_v50  ;;  %v1433_v37 = vcvt.s32.f32 %v985_v21  ;;  %v1657_v38 = vcvt.s32.f32 %v1209_v22  ;;  %v957_v39 = vunpack.c.1.s8 %v9354_v5  ;;  %v1181_v40 = vunpack.c.1.s8 %v9359_v6  ;;  %v9397_v46 = vld [vmem:[%s12953_s25 + $0x288] sm:$0xff] }
  0xfb   : > { %2097 = vmatpush.msra.mxu2 %v1277_v53  ;;  %2117 = vmatpush.msra.mxu3 %v1501_v54  ;;  %v1376_v41 = vcvt.s32.f32 %v928_v25  ;;  %v1600_v42 = vcvt.s32.f32 %v1152_v26  ;;  %v900_v43 = vunpack.c.1.s8 %v9368_v11  ;;  %v1124_v44 = vunpack.c.1.s8 %v9373_v12 }
  0xfc   : > { %2018 = vmatmul.f32.vlgmr.msrb.gmra.mxu2 %v9233_v13  ;;  %2038 = vmatmul.f32.vlgmr.msrb.gmra.mxu3 %v9236_v14  ;;  %v1419_v47 = vcvt.s32.f32 %v971_v29  ;;  %v1643_v48 = vcvt.s32.f32 %v1195_v30  ;;  %v943_v49 = vunpack.c.0.s8 %v9354_v5  ;;  %v1167_v50 = vunpack.c.0.s8 %v9359_v6 }
  0xfd   : > { %2125 = vmatpush.msrb.mxu0 %v1446_v57  ;;  %2145 = vmatpush.msrb.mxu1 %v1670_v58  ;;  %v1362_v51 = vcvt.s32.f32 %v914_v35  ;;  %v1586_v52 = vcvt.s32.f32 %v1138_v36  ;;  %v886_v53 = vunpack.c.0.s8 %v9368_v11  ;;  %v1110_v54 = vunpack.c.0.s8 %v9373_v12 }
  0xfe   : > { %2162 = vmatpush.msrb.mxu2 %v1489_v61  ;;  %2182 = vmatpush.msrb.mxu3 %v1713_v62  ;;  %v1405_v55 = vcvt.s32.f32 %v957_v39  ;;  %v1629_v56 = vcvt.s32.f32 %v1181_v40  ;;  %v929_v57 = vunpack.c.3.s8 %v9392_v45  ;;  %v1153_v58 = vunpack.c.3.s8 %v9397_v46 }
  0xff   : > { %2126 = vmatpush.msrb.mxu0 %v1432_v1  ;;  %2146 = vmatpush.msrb.mxu1 %v1656_v2  ;;  %v1348_v59 = vcvt.s32.f32 %v900_v43  ;;  %v1572_v60 = vcvt.s32.f32 %v1124_v44  ;;  %v1391_v61 = vcvt.s32.f32 %v943_v49  ;;  %v1615_v62 = vcvt.s32.f32 %v1167_v50 }
 0x100   : > { %2163 = vmatpush.msrb.mxu2 %v1475_v7  ;;  %2183 = vmatpush.msrb.mxu3 %v1699_v8  ;;  %v872_v63 = vunpack.c.3.s8 %v9406_v31  ;;  %v1096_v0 = vunpack.c.3.s8 %v9411_v32  ;;  %v1334_v1 = vcvt.s32.f32 %v886_v53  ;;  %v1558_v2 = vcvt.s32.f32 %v1110_v54 }
 0x101   : > { %2127 = vmatpush.msrb.mxu0 %v1418_v15  ;;  %2147 = vmatpush.msrb.mxu1 %v1642_v16  ;;  %v915_v3 = vunpack.c.2.s8 %v9392_v45  ;;  %v1139_v4 = vunpack.c.2.s8 %v9397_v46  ;;  %v1377_v5 = vcvt.s32.f32 %v929_v57  ;;  %v1601_v6 = vcvt.s32.f32 %v1153_v58 }
 0x102   : > { %2164 = vmatpush.msrb.mxu2 %v1461_v19  ;;  %2184 = vmatpush.msrb.mxu3 %v1685_v20  ;;  %v858_v7 = vunpack.c.2.s8 %v9406_v31  ;;  %v1082_v8 = vunpack.c.2.s8 %v9411_v32  ;;  %v1320_v9 = vcvt.s32.f32 %v872_v63  ;;  %v1544_v10 = vcvt.s32.f32 %v1096_v0  ;;  %v9428_v19 = vld [vmem:[%s12953_s25 + $0x58] sm:$0xff] }
 0x103   : > { %2128 = vmatpush.msrb.mxu0 %v1404_v23  ;;  %2148 = vmatpush.msrb.mxu1 %v1628_v24  ;;  %v901_v11 = vunpack.c.1.s8 %v9392_v45  ;;  %v1125_v12 = vunpack.c.1.s8 %v9397_v46  ;;  %v1363_v15 = vcvt.s32.f32 %v915_v3  ;;  %v1587_v16 = vcvt.s32.f32 %v1139_v4  ;;  %v9433_v20 = vld [vmem:[%s12953_s25 + $0x218] sm:$0xff] }
 0x104   : > { %2165 = vmatpush.msrb.mxu2 %v1447_v27  ;;  %2185 = vmatpush.msrb.mxu3 %v1671_v28  ;;  %v844_v17 = vunpack.c.1.s8 %v9406_v31  ;;  %v1068_v18 = vunpack.c.1.s8 %v9411_v32  ;;  %v887_v21 = vunpack.c.0.s8 %v9392_v45  ;;  %v1111_v22 = vunpack.c.0.s8 %v9397_v46  ;;  %v9444_v27 = vld [vmem:[%s12953_s25 + $0x1b0] sm:$0xff] }
 0x105   : > { %2129 = vmatpush.msrb.mxu0 %v1390_v33  ;;  %2149 = vmatpush.msrb.mxu1 %v1614_v34  ;;  %v1306_v23 = vcvt.s32.f32 %v858_v7  ;;  %v1530_v24 = vcvt.s32.f32 %v1082_v8  ;;  %v830_v25 = vunpack.c.0.s8 %v9406_v31  ;;  %v1054_v26 = vunpack.c.0.s8 %v9411_v32  ;;  %v9449_v28 = vld [vmem:[%s12953_s25 + $0x370] sm:$0xff]  ;;  %v9468_v31 = vld [vmem:[%s12953_s25 + $0x1b8] sm:$0xff] }
 0x106   : > { %2166 = vmatpush.msrb.mxu2 %v1433_v37  ;;  %2186 = vmatpush.msrb.mxu3 %v1657_v38  ;;  %v1349_v29 = vcvt.s32.f32 %v901_v11  ;;  %v1573_v30 = vcvt.s32.f32 %v1125_v12  ;;  %v873_v33 = vunpack.c.3.s8 %v9428_v19  ;;  %v1097_v34 = vunpack.c.3.s8 %v9433_v20  ;;  %v9473_v32 = vld [vmem:[%s12953_s25 + $0x378] sm:$0xff] }
 0x107   : > { %2130 = vmatpush.msrb.mxu0 %v1376_v41  ;;  %2150 = vmatpush.msrb.mxu1 %v1600_v42  ;;  %v1292_v35 = vcvt.s32.f32 %v844_v17  ;;  %v1516_v36 = vcvt.s32.f32 %v1068_v18  ;;  %v1335_v37 = vcvt.s32.f32 %v887_v21  ;;  %v1559_v38 = vcvt.s32.f32 %v1111_v22 }
 0x108   : > { %2167 = vmatpush.msrb.mxu2 %v1419_v47  ;;  %2187 = vmatpush.msrb.mxu3 %v1643_v48  ;;  %v1042_v39 = vunpack.c.3.s8 %v9444_v27  ;;  %v1266_v40 = vunpack.c.3.s8 %v9449_v28  ;;  %v1278_v41 = vcvt.s32.f32 %v830_v25  ;;  %v1502_v42 = vcvt.s32.f32 %v1054_v26  ;;  %v9506_v25 = vld [vmem:[%s12953_s25 + $0x148] sm:$0xff] }
 0x109   : > { %2131 = vmatpush.msrb.mxu0 %v1362_v51  ;;  %2151 = vmatpush.msrb.mxu1 %v1586_v52  ;;  %v859_v43 = vunpack.c.2.s8 %v9428_v19  ;;  %v1083_v44 = vunpack.c.2.s8 %v9433_v20  ;;  %v1321_v45 = vcvt.s32.f32 %v873_v33  ;;  %v1545_v46 = vcvt.s32.f32 %v1097_v34  ;;  %v9511_v26 = vld [vmem:[%s12953_s25 + $0x308] sm:$0xff]  ;;  %v9518_v33 = vld [vmem:[%s12953_s25 + $0xd0] sm:$0xff] }
 0x10a   : > { %2168 = vmatpush.msrb.mxu2 %v1405_v55  ;;  %2188 = vmatpush.msrb.mxu3 %v1629_v56  ;;  %v1028_v47 = vunpack.c.2.s8 %v9444_v27  ;;  %v1252_v48 = vunpack.c.2.s8 %v9449_v28  ;;  %v845_v49 = vunpack.c.1.s8 %v9428_v19  ;;  %v1069_v50 = vunpack.c.1.s8 %v9433_v20  ;;  %v9523_v34 = vld [vmem:[%s12953_s25 + $0x290] sm:$0xff] }
 0x10b   : > { %2132 = vmatpush.msrb.mxu0 %v1348_v59  ;;  %2152 = vmatpush.msrb.mxu1 %v1572_v60  ;;  %v1490_v51 = vcvt.s32.f32 %v1042_v39  ;;  %v1714_v52 = vcvt.s32.f32 %v1266_v40  ;;  %v1014_v53 = vunpack.c.1.s8 %v9444_v27  ;;  %v1238_v54 = vunpack.c.1.s8 %v9449_v28  ;;  %v9480_v59 = vld [vmem:[%s12953_s25 + $0x140] sm:$0xff] }
 0x10c   : > { %2169 = vmatpush.msrb.mxu2 %v1391_v61  ;;  %2189 = vmatpush.msrb.mxu3 %v1615_v62  ;;  %v1307_v55 = vcvt.s32.f32 %v859_v43  ;;  %v1531_v56 = vcvt.s32.f32 %v1083_v44  ;;  %v831_v57 = vunpack.c.0.s8 %v9428_v19  ;;  %v1055_v58 = vunpack.c.0.s8 %v9433_v20  ;;  %v9485_v60 = vld [vmem:[%s12953_s25 + $0x300] sm:$0xff] }
 0x10d   : > { %2133 = vmatpush.msrb.mxu0 %v1334_v1  ;;  %2153 = vmatpush.msrb.mxu1 %v1558_v2  ;;  %v1476_v61 = vcvt.s32.f32 %v1028_v47  ;;  %v1700_v62 = vcvt.s32.f32 %v1252_v48  ;;  %v1000_v63 = vunpack.c.0.s8 %v9444_v27  ;;  %v1224_v0 = vunpack.c.0.s8 %v9449_v28 }
 0x10e   : > { %2170 = vmatpush.msrb.mxu2 %v1377_v5  ;;  %2190 = vmatpush.msrb.mxu3 %v1601_v6  ;;  %v1293_v1 = vcvt.s32.f32 %v845_v49  ;;  %v1517_v2 = vcvt.s32.f32 %v1069_v50  ;;  %v1043_v3 = vunpack.c.3.s8 %v9468_v31  ;;  %v1267_v4 = vunpack.c.3.s8 %v9473_v32 }
 0x10f   : > { %2058 = vmatmul.f32.vlgmr.msra.gmra.mxu0 %v9233_v13  ;;  %2078 = vmatmul.f32.vlgmr.msra.gmra.mxu1 %v9236_v14  ;;  %v1462_v5 = vcvt.s32.f32 %v1014_v53  ;;  %v1686_v6 = vcvt.s32.f32 %v1238_v54  ;;  %v986_v7 = vunpack.c.3.s8 %v9480_v59  ;;  %v1210_v8 = vunpack.c.3.s8 %v9485_v60 }
 0x110   : > { %2134 = vmatpush.msrb.mxu0 %v1320_v9  ;;  %2154 = vmatpush.msrb.mxu1 %v1544_v10  ;;  %v1279_v9 = vcvt.s32.f32 %v831_v57  ;;  %v1253_v10 = vunpack.c.2.s8 %v9473_v32  ;;  %v1448_v11 = vcvt.s32.f32 %v1000_v63  ;;  %v1672_v12 = vcvt.s32.f32 %v1224_v0 }
 0x111   : > { %2171 = vmatpush.msrb.mxu2 %v1363_v15  ;;  %2191 = vmatpush.msrb.mxu3 %v1587_v16  ;;  %v972_v15 = vunpack.c.2.s8 %v9480_v59  ;;  %v1196_v16 = vunpack.c.2.s8 %v9485_v60  ;;  %v1491_v17 = vcvt.s32.f32 %v1043_v3  ;;  %v1715_v18 = vcvt.s32.f32 %v1267_v4  ;;  %v9554_v3 = vld [vmem:[%s12953_s25 + $0x60] sm:$0xff] }
 0x112   : > { %2098 = vmatmul.f32.vlgmr.msra.gmra.mxu2 %v9233_v13  ;;  %2118 = vmatmul.f32.vlgmr.msra.gmra.mxu3 %v9236_v14  ;;  %v1015_v19 = vunpack.c.1.s8 %v9468_v31  ;;  %v1239_v20 = vunpack.c.1.s8 %v9473_v32  ;;  %v1434_v21 = vcvt.s32.f32 %v986_v7  ;;  %v1658_v22 = vcvt.s32.f32 %v1210_v8  ;;  %v9559_v4 = vld [vmem:[%s12953_s25 + $0x220] sm:$0xff] }
 0x113   : > { %2135 = vmatpush.msrb.mxu0 %v1306_v23  ;;  %2155 = vmatpush.msrb.mxu1 %v1530_v24  ;;  %v958_v23 = vunpack.c.1.s8 %v9480_v59  ;;  %v1182_v24 = vunpack.c.1.s8 %v9485_v60  ;;  %v1701_v28 = vcvt.s32.f32 %v1253_v10  ;;  %v973_v49 = vunpack.c.2.s8 %v9506_v25 }
 0x114   : > { %2172 = vmatpush.msrb.mxu2 %v1349_v29  ;;  %2192 = vmatpush.msrb.mxu3 %v1573_v30  ;;  %v1001_v29 = vunpack.c.0.s8 %v9468_v31  ;;  %v1225_v30 = vunpack.c.0.s8 %v9473_v32  ;;  %v1463_v39 = vcvt.s32.f32 %v1015_v19  ;;  %v1687_v40 = vcvt.s32.f32 %v1239_v20 }
 0x115   : > { %2136 = vmatpush.msrb.mxu0 %v1292_v35  ;;  %2156 = vmatpush.msrb.mxu1 %v1516_v36  ;;  %v1420_v35 = vcvt.s32.f32 %v972_v15  ;;  %v1644_v36 = vcvt.s32.f32 %v1196_v16  ;;  %v1406_v43 = vcvt.s32.f32 %v958_v23  ;;  %v1630_v44 = vcvt.s32.f32 %v1182_v24 }
 0x116   : > { %2173 = vmatpush.msrb.mxu2 %v1335_v37  ;;  %2193 = vmatpush.msrb.mxu3 %v1559_v38  ;;  %v944_v37 = vunpack.c.0.s8 %v9480_v59  ;;  %v1168_v38 = vunpack.c.0.s8 %v9485_v60  ;;  %v1449_v47 = vcvt.s32.f32 %v1001_v29  ;;  %v1673_v48 = vcvt.s32.f32 %v1225_v30 }
 0x117   : > { %2137 = vmatpush.msrb.mxu0 %v1278_v41  ;;  %2157 = vmatpush.msrb.mxu1 %v1502_v42  ;;  %v987_v41 = vunpack.c.3.s8 %v9506_v25  ;;  %v1211_v42 = vunpack.c.3.s8 %v9511_v26  ;;  %v1197_v50 = vunpack.c.2.s8 %v9511_v26  ;;  %v916_v53 = vunpack.c.2.s8 %v9518_v33 }
 0x118   : > { %2174 = vmatpush.msrb.mxu2 %v1321_v45  ;;  %2194 = vmatpush.msrb.mxu3 %v1545_v46  ;;  %v930_v45 = vunpack.c.3.s8 %v9518_v33  ;;  %v1154_v46 = vunpack.c.3.s8 %v9523_v34  ;;  %v1140_v54 = vunpack.c.2.s8 %v9523_v34  ;;  %v902_v59 = vunpack.c.1.s8 %v9518_v33 }
 0x119   : > { %2138 = vmatmul.f32.vlgmr.msrb.gmra.mxu0 %v9233_v13  ;;  %2158 = vmatmul.f32.vlgmr.msrb.gmra.mxu1 %v9236_v14  ;;  %v1503_v13 = vcvt.s32.f32 %v1055_v58  ;;  %v1029_v14 = vunpack.c.2.s8 %v9468_v31  ;;  %v1435_v31 = vcvt.s32.f32 %v987_v41  ;;  %v1659_v32 = vcvt.s32.f32 %v1211_v42 }
 0x11a   : > { %2202 = vmatpush.msra.mxu0 %v1490_v51  ;;  %2222 = vmatpush.msra.mxu1 %v1714_v52  ;;  %v1392_v51 = vcvt.s32.f32 %v944_v37  ;;  %v1616_v52 = vcvt.s32.f32 %v1168_v38  ;;  %v1378_v57 = vcvt.s32.f32 %v930_v45  ;;  %v1602_v58 = vcvt.s32.f32 %v1154_v46  ;;  %v721_v37 = vld [vmem:[%s12953_s25 + $0x68] sm:$0xff] }
 0x11b   : > { %2175 = vmatpush.msrb.mxu2 %v1307_v55  ;;  %2195 = vmatpush.msrb.mxu3 %v1531_v56  ;;  %v1477_v27 = vcvt.s32.f32 %v1029_v14  ;;  %v959_v55 = vunpack.c.1.s8 %v9506_v25  ;;  %v1183_v56 = vunpack.c.1.s8 %v9511_v26  ;;  %v1126_v60 = vunpack.c.1.s8 %v9523_v34  ;;  %v777_v38 = vld [vmem:[%s12953_s25 + $0x228] sm:$0xff] }
 0x11c   : > { %2203 = vmatpush.msra.mxu0 %v1476_v61  ;;  %2223 = vmatpush.msra.mxu1 %v1700_v62  ;;  %v9542_v61 = vld [vmem:[%s12953_s25 + $0xd8] sm:$0xff]  ;;  %v1421_v63 = vcvt.s32.f32 %v973_v49  ;;  %v1645_v0 = vcvt.s32.f32 %v1197_v50  ;;  %v888_v7 = vunpack.c.0.s8 %v9518_v33  ;;  %v1112_v8 = vunpack.c.0.s8 %v9523_v34 }
 0x11d   : > { %2176 = vmatpush.msrb.mxu2 %v1293_v1  ;;  %2196 = vmatpush.msrb.mxu3 %v1517_v2  ;;  %v9547_v62 = vld [vmem:[%s12953_s25 + $0x298] sm:$0xff]  ;;  %v945_v1 = vunpack.c.0.s8 %v9506_v25  ;;  %v1169_v2 = vunpack.c.0.s8 %v9511_v26  ;;  %v931_v14 = vunpack.c.3.s8 %v9542_v61  ;;  %v874_v15 = vunpack.c.3.s8 %v9554_v3 }
 0x11e   : > { %2204 = vmatpush.msra.mxu0 %v1462_v5  ;;  %2224 = vmatpush.msra.mxu1 %v1686_v6  ;;  %v1364_v5 = vcvt.s32.f32 %v916_v53  ;;  %v1588_v6 = vcvt.s32.f32 %v1140_v54  ;;  %v1155_v10 = vunpack.c.3.s8 %v9547_v62  ;;  %v1098_v16 = vunpack.c.3.s8 %v9559_v4 }
 0x11f   : > { %2177 = vmatpush.msrb.mxu2 %v1279_v9  ;;  %2197 = vmatpush.msrb.mxu3 %v1503_v13  ;;  %v1407_v9 = vcvt.s32.f32 %v959_v55  ;;  %v1631_v13 = vcvt.s32.f32 %v1183_v56  ;;  %v917_v19 = vunpack.c.2.s8 %v9542_v61  ;;  %v1141_v20 = vunpack.c.2.s8 %v9547_v62 }
 0x120   : > { %2205 = vmatpush.msra.mxu0 %v1448_v11  ;;  %2225 = vmatpush.msra.mxu1 %v1672_v12  ;;  %v1350_v11 = vcvt.s32.f32 %v902_v59  ;;  %v1574_v12 = vcvt.s32.f32 %v1126_v60  ;;  %v1379_v23 = vcvt.s32.f32 %v931_v14  ;;  %v1603_v24 = vcvt.s32.f32 %v1155_v10  ;;  %v9591_v10 = vpop.f32.mrf.mxu2 }
 0x121   : > { %2242 = vmatpush.msra.mxu2 %v1491_v17  ;;  %2262 = vmatpush.msra.mxu3 %v1715_v18  ;;  %v1393_v17 = vcvt.s32.f32 %v945_v1  ;;  %v1617_v18 = vcvt.s32.f32 %v1169_v2  ;;  %v860_v25 = vunpack.c.2.s8 %v9554_v3  ;;  %v1084_v26 = vunpack.c.2.s8 %v9559_v4  ;;  %v9585_v1 = vpop.f32.mrf.mxu0  ;;  %v9587_v2 = vpop.f32.mrf.mxu1 }
 0x122   : > { %2206 = vmatpush.msra.mxu0 %v1434_v21  ;;  %2226 = vmatpush.msra.mxu1 %v1658_v22  ;;  %v1336_v21 = vcvt.s32.f32 %v888_v7  ;;  %v1560_v22 = vcvt.s32.f32 %v1112_v8  ;;  %v903_v29 = vunpack.c.1.s8 %v9542_v61  ;;  %v1127_v30 = vunpack.c.1.s8 %v9547_v62 }
 0x123   : > { %2243 = vmatpush.msra.mxu2 %v1477_v27  ;;  %2263 = vmatpush.msra.mxu3 %v1701_v28  ;;  %v1322_v27 = vcvt.s32.f32 %v874_v15  ;;  %v1546_v28 = vcvt.s32.f32 %v1098_v16  ;;  %v1365_v33 = vcvt.s32.f32 %v917_v19  ;;  %v1589_v34 = vcvt.s32.f32 %v1141_v20 }
 0x124   : > { %2207 = vmatpush.msra.mxu0 %v1420_v35  ;;  %2227 = vmatpush.msra.mxu1 %v1644_v36  ;;  %v846_v35 = vunpack.c.1.s8 %v9554_v3  ;;  %v1070_v36 = vunpack.c.1.s8 %v9559_v4  ;;  %v1308_v41 = vcvt.s32.f32 %v860_v25  ;;  %v1532_v42 = vcvt.s32.f32 %v1084_v26 }
 0x125   : > { %2244 = vmatpush.msra.mxu2 %v1463_v39  ;;  %2264 = vmatpush.msra.mxu3 %v1687_v40  ;;  %v889_v39 = vunpack.c.0.s8 %v9542_v61  ;;  %v1113_v40 = vunpack.c.0.s8 %v9547_v62  ;;  %v1351_v45 = vcvt.s32.f32 %v903_v29  ;;  %v1575_v46 = vcvt.s32.f32 %v1127_v30 }
 0x126   : > { %2208 = vmatpush.msra.mxu0 %v1406_v43  ;;  %2228 = vmatpush.msra.mxu1 %v1630_v44  ;;  %v832_v43 = vunpack.c.0.s8 %v9554_v3  ;;  %v1056_v44 = vunpack.c.0.s8 %v9559_v4  ;;  %v1294_v49 = vcvt.s32.f32 %v846_v35  ;;  %v1518_v50 = vcvt.s32.f32 %v1070_v36 }
 0x127   : > { %2245 = vmatpush.msra.mxu2 %v1449_v47  ;;  %2265 = vmatpush.msra.mxu3 %v1673_v48  ;;  %v875_v47 = vunpack.c.3.s8 %v721_v37  ;;  %v1099_v48 = vunpack.c.3.s8 %v777_v38  ;;  %v1337_v53 = vcvt.s32.f32 %v889_v39  ;;  %v1561_v54 = vcvt.s32.f32 %v1113_v40 }
 0x128   : > { %2209 = vmatpush.msra.mxu0 %v1392_v51  ;;  %2229 = vmatpush.msra.mxu1 %v1616_v52  ;;  %v8152_v51 = vld.sshfl [vmem:[#allocation1] sm:$0xff pattern:$0x75316420]  ;;  %v8153_v52 = vld.sshfl [vmem:[#allocation1 + $0x8] sm:$0xff pattern:$0x75316420]  ;;  %v1280_v55 = vcvt.s32.f32 %v832_v43  ;;  %v1504_v56 = vcvt.s32.f32 %v1056_v44  ;;  %v847_v59 = vunpack.c.1.s8 %v721_v37  ;;  %v1071_v60 = vunpack.c.1.s8 %v777_v38 }
 0x129   : > { %2246 = vmatpush.msra.mxu2 %v1435_v31  ;;  %2266 = vmatpush.msra.mxu3 %v1659_v32  ;;  %v861_v31 = vunpack.c.2.s8 %v721_v37  ;;  %v1085_v32 = vunpack.c.2.s8 %v777_v38 }
 0x12a   : > { %2210 = vmatpush.msra.mxu0 %v1378_v57  ;;  %2230 = vmatpush.msra.mxu1 %v1602_v58  ;;  %v1323_v57 = vcvt.s32.f32 %v875_v47  ;;  %v1547_v58 = vcvt.s32.f32 %v1099_v48  ;;  %v1295_v3 = vcvt.s32.f32 %v847_v59  ;;  %v1519_v4 = vcvt.s32.f32 %v1071_v60 }
 0x12b   : > { %2247 = vmatpush.msra.mxu2 %v1421_v63  ;;  %2267 = vmatpush.msra.mxu3 %v1645_v0  ;;  %v1309_v61 = vcvt.s32.f32 %v861_v31  ;;  %v1533_v62 = vcvt.s32.f32 %v1085_v32  ;;  %v833_v63 = vunpack.c.0.s8 %v721_v37  ;;  %v1057_v0 = vunpack.c.0.s8 %v777_v38 }
 0x12c   : > { %2211 = vmatpush.msra.mxu0 %v1364_v5  ;;  %2231 = vmatpush.msra.mxu1 %v1588_v6 }
 0x12d   : > { %2248 = vmatpush.msra.mxu2 %v1407_v9  ;;  %2268 = vmatpush.msra.mxu3 %v1631_v13  ;;  %v1281_v5 = vcvt.s32.f32 %v833_v63  ;;  %v1505_v6 = vcvt.s32.f32 %v1057_v0 }
 0x12e   : > { %2212 = vmatpush.msra.mxu0 %v1350_v11  ;;  %2232 = vmatpush.msra.mxu1 %v1574_v12  ;;  %v9593_v11 = vpop.f32.mrf.mxu3  ;;  %v1859_v12 = vpop.f32.mrf.mxu2 }
 0x12f   : > { %2249 = vmatpush.msra.mxu2 %v1393_v17  ;;  %2269 = vmatpush.msra.mxu3 %v1617_v18  ;;  %v1819_v7 = vpop.f32.mrf.mxu0  ;;  %v1839_v8 = vpop.f32.mrf.mxu1  ;;  %v1800_v60 = vadd.f32 %v9593_v11, %v9591_v10 }
 0x130   : > { %2213 = vmatpush.msra.mxu0 %v1336_v21  ;;  %2233 = vmatpush.msra.mxu1 %v1560_v22 }
 0x131   : > { %2250 = vmatpush.msra.mxu2 %v1379_v23  ;;  %2270 = vmatpush.msra.mxu3 %v1603_v24 }
 0x132   : > { %2214 = vmatpush.msra.mxu0 %v1322_v27  ;;  %2234 = vmatpush.msra.mxu1 %v1546_v28 }
 0x133   : > { %2251 = vmatpush.msra.mxu2 %v1365_v33  ;;  %2271 = vmatpush.msra.mxu3 %v1589_v34 }
 0x134   : > { %2178 = vmatmul.f32.vlgmr.msrb.gmra.mxu2 %v8152_v51  ;;  %2198 = vmatmul.f32.vlgmr.msrb.gmra.mxu3 %v8153_v52 }
 0x135   : > { %2215 = vmatpush.msra.mxu0 %v1308_v41  ;;  %2235 = vmatpush.msra.mxu1 %v1532_v42  ;;  %v1840_v41 = vadd.f32 %v1839_v8, %v1819_v7 }
 0x136   : > { %2252 = vmatpush.msra.mxu2 %v1351_v45  ;;  %2272 = vmatpush.msra.mxu3 %v1575_v46  ;;  %v1879_v15 = vpop.f32.mrf.mxu3 }
 0x137   : > { %2216 = vmatpush.msra.mxu0 %v1294_v49  ;;  %2236 = vmatpush.msra.mxu1 %v1518_v50  ;;  %v1880_v42 = vadd.f32 %v1879_v15, %v1859_v12  ;;  %v2286_v44 = vrot.slane %v1840_v41, 4 }
 0x138   : > { %2253 = vmatpush.msra.mxu2 %v1337_v53  ;;  %2273 = vmatpush.msra.mxu3 %v1561_v54 }
 0x139   : > { %2217 = vmatpush.msra.mxu0 %v1280_v55  ;;  %2237 = vmatpush.msra.mxu1 %v1504_v56  ;;  %v2287_v45 = vrot.slane %v1880_v42, 4 }
 0x13a   : > { %2254 = vmatpush.msra.mxu2 %v1323_v57  ;;  %2274 = vmatpush.msra.mxu3 %v1547_v58 }
 0x13b   : > { %2218 = vmatmul.f32.vlgmr.msra.gmra.mxu0 %v8152_v51  ;;  %2238 = vmatmul.f32.vlgmr.msra.gmra.mxu1 %v8153_v52  ;;  %v8017_v46 = vpack.i.bf16 %v2287_v45, %v2286_v44  ;;  %v9699_v44 = vld [vmem:[%s12955_s3 + $0x11e] sm:$0xff] }
 0x13c   : > { %2255 = vmatpush.msra.mxu2 %v1309_v61  ;;  %2275 = vmatpush.msra.mxu3 %v1533_v62  ;;  %v2285_v61 = vrot.slane %v1800_v60, 4  ;;  %v9704_v45 = vld [vmem:[%s12955_s3 + $0x1b8] sm:$0xff] }
 0x13e   : > { %2256 = vmatpush.msra.mxu2 %v1295_v3  ;;  %2276 = vmatpush.msra.mxu3 %v1519_v4 }
 0x140   : > { %2257 = vmatpush.msra.mxu2 %v1281_v5  ;;  %2277 = vmatpush.msra.mxu3 %v1505_v6  ;;  %v2392_v5 = vld [vmem:[%s12899_s7] sm:$0xff]  ;;  %v8362_v6 = vmov 0  }
 0x141   : > { %2258 = vmatmul.f32.vlgmr.msra.gmra.mxu2 %v8152_v51  ;;  %2278 = vmatmul.f32.vlgmr.msra.gmra.mxu3 %v8153_v52 }
 0x142   : > { %8027 = vset.pattern.permute.xlu1 %v8362_v6  ;;  %8028 = vset.pattern.permute.xlu2 %v8362_v6 }
 0x143   : > { %8139 = vset.pattern.permute.xlu0 %v8362_v6  ;;  %v9744_v6 = vld [vmem:[%s12955_s3 + $0xdc] sm:$0xff] }
 0x14a   : > { %v1899_v9 = vpop.f32.mrf.mxu0  ;;  %v1919_v13 = vpop.f32.mrf.mxu1 }
 0x14b   : > { %v9589_v14 = vadd.f32 %v1919_v13, %v1899_v9 }
 0x14d   : > { %2302 = vrot.lane.b32.xlu0 %v9589_v14, %s12925_s2  ;;  %v2310_v58 = vrot.slane %v9589_v14, 4 }
 0x15d   : > { %v1939_v16 = vpop.f32.mrf.mxu2  ;;  %v1959_v17 = vpop.f32.mrf.mxu3 }
 0x15e   : > { %v1960_v18 = vadd.f32 %v1959_v17, %v1939_v16  ;;  %v1979_v19 = vpop.f32.mrf.mxu0  ;;  %v1999_v20 = vpop.f32.mrf.mxu1 }
 0x15f   : > { %v2000_v21 = vadd.f32 %v1999_v20, %v1979_v19 }
 0x160   : > { %v2311_v22 = vrot.slane %v1960_v18, 4 }
 0x161   : > { %v2312_v23 = vrot.slane %v2000_v21, 4 }
 0x163   : > { %v8007_v24 = vpack.i.bf16 %v2312_v23, %v2311_v22 }
 0x165   : > { %8008 = vrot.lane.b32.xlu2 %v8007_v24, %s12916_s29 }
 0x17f   : > { %v2019_v25 = vpop.f32.mrf.mxu2  ;;  %v2039_v26 = vpop.f32.mrf.mxu3 }
 0x180   : > { %v2040_v27 = vadd.f32 %v2039_v26, %v2019_v25 }
 0x182   : > { %2327 = vrot.lane.b32.xlu2 %v2040_v27, %s12928_s16  ;;  %v2335_v59 = vrot.slane %v2040_v27, 4 }
 0x18c   : > { %v2059_v28 = vpop.f32.mrf.mxu0  ;;  %v2079_v29 = vpop.f32.mrf.mxu1 }
 0x18d   : > { %v2080_v36 = vadd.f32 %v2079_v29, %v2059_v28  ;;  %v2393_v29 = vld [vmem:[%s12899_s7 + $0x8] sm:$0xf] }
 0x18f   : > { %v2336_v39 = vrot.slane %v2080_v36, 4 }
 0x195   : > { %v2099_v30 = vpop.f32.mrf.mxu2  ;;  %v2119_v33 = vpop.f32.mrf.mxu3 }
 0x196   : > { %v2139_v34 = vpop.f32.mrf.mxu0  ;;  %v2159_v35 = vpop.f32.mrf.mxu1  ;;  %v2120_v37 = vadd.f32 %v2119_v33, %v2099_v30  ;;  %v9663_v30 = vld [vmem:[%s12955_s3 + $0x210] sm:$0x55]  ;;  %v9668_v33 = vld [vmem:[%s12955_s3 + $0x1fa] sm:$0xff] }
 0x197   : > { %v2160_v38 = vadd.f32 %v2159_v35, %v2139_v34  ;;  %v2803_v35 = vunpack.c.0.s8 %v9663_v30  ;;  %v2792_v36 = vunpack.c.0.s8 %v9668_v33 }
 0x198   : > { %v2337_v40 = vrot.slane %v2120_v37, 4 }
 0x199   : > { %2352 = vrot.lane.b32.xlu1 %v2160_v38, %s12922_s24  ;;  %v2360_v47 = vrot.slane %v2160_v38, 4  ;;  %v9681_v38 = vld [vmem:[%s12955_s3 + $0x1e4] sm:$0xff] }
 0x19a   : > { %v8012_v43 = vpack.i.bf16 %v2337_v40, %v2336_v39  ;;  %v9686_v39 = vld [vmem:[%s12955_s3 + $0x134] sm:$0xff]  ;;  %v2781_v41 = vunpack.c.0.s8 %v9681_v38 }
 0x1a1   : > { %8013 = vrot.lane.b32.xlu1 %v8012_v43, %s12923_s0  ;;  %v9694_v43 = vld [vmem:[%s12955_s3 + $0x1ce] sm:$0xff] }
 0x1a9   : > { %8018 = vrot.lane.b32.xlu1 %v8017_v46, %s12918_s12  ;;  %v2804_v46 = vunpack.c.1.s8 %v9663_v30 }
 0x1b1   : > { %2363 = vrot.lane.b32.xlu1 %v2360_v47, %s12920_s18  ;;  %v9710_v47 = vld [vmem:[%s12898_s6] sm:$0xff] }
 0x1b7   : > { %v2179_v48 = vpop.f32.mrf.mxu2  ;;  %v2199_v49 = vpop.f32.mrf.mxu3 }
 0x1b8   : > { %v2200_v50 = vadd.f32 %v2199_v49, %v2179_v48  ;;  %v2219_v51 = vpop.f32.mrf.mxu0  ;;  %v2239_v52 = vpop.f32.mrf.mxu1  ;;  %v3078_v48 = vcvt.s32.f32 %v2803_v35  ;;  %v3067_v49 = vcvt.s32.f32 %v2792_v36  ;;  %v9779_v35 = vld [vmem:[%s12955_s3 + $0x160] sm:$0xff] }
 0x1b9   : > { %v2240_v53 = vadd.f32 %v2239_v52, %v2219_v51  ;;  %2300 = vrot.lane.b32.xlu1 %v1880_v42, %s12925_s2  ;;  %v2693_v42 = vunpack.c.0.s8 %v9686_v39  ;;  %v2682_v51 = vunpack.c.0.s8 %v9699_v44  ;;  %v9717_v52 = vld [vmem:[%s12955_s3 + $0x108] sm:$0xff]  ;;  %s12957_s2 = smov 96  }
 0x1ba   : > { %v2361_v54 = vrot.slane %v2200_v50, 4  ;;  %v2770_v50 = vunpack.c.0.s8 %v9694_v43  ;;  %7784 = vmatpush.msk.msrb.mxu3 %vm2381_vm5, %v3078_v48  ;;  %v2771_v48 = vunpack.c.1.s8 %v9694_v43 }
 0x1bb   : > { %v2362_v31 = vrot.slane %v2240_v53, 4  ;;  %2375 = vrot.lane.b32.xlu2 %v2240_v53, %s12930_s13  ;;  %v9722_v53 = vld [vmem:[%s12955_s3 + $0xf2] sm:$0xff] }
 0x1bc   : > { %3160 = vmatpush.msrb.mxu3 %v3067_v49 }
 0x1bd   : > { %v8022_v32 = vpack.i.bf16 %v2362_v31, %v2361_v54 }
 0x1bf   : > { %8023 = vrot.lane.b32.xlu0 %v8022_v32, %s12920_s18  ;;  %v9617_v63 = vpop.permute.xlu2 %8008  ;;  %v9623_v4 = vpop.permute.xlu0 %2302  ;;  %s8363_s18 = smov 64  }
 0x1c0   : > { %v8011_v10 = vunpack.i.h.bf16 %v9617_v63  ;;  %v8010_v11 = vunpack.i.l.bf16 %v9617_v63 }
 0x1c1   : > { %2396 = vperm.xlu1 %8027, %v2392_v5   ;;  %v9739_v5 = vld [vmem:[%s12955_s3 + $0x18c] sm:$0xff] }
 0x1c2   : > { %v2321_v23 = vsel %vm2319_vm0, %v8010_v11, %v8011_v10  ;;  %v3045_v10 = vcvt.s32.f32 %v2770_v50 }
 0x1c3   : > { %2325 = vrot.lane.b32.xlu2 %v2000_v21, %s12928_s16  ;;  %v2385_v28 = vsel %vm2381_vm5, %v9623_v4, %v2321_v23  ;;  %v9761_v23 = vld [vmem:[%s12955_s3 + $0x176] sm:$0xff] }
 0x1c4   : > { %v2259_v55 = vpop.f32.mrf.mxu2  ;;  %v2279_v56 = vpop.f32.mrf.mxu3  ;;  %v2726_v63 = vunpack.c.0.s8 %v9761_v23 }
 0x1c5   : > { %v2280_v57 = vadd.f32 %v2279_v56, %v2259_v55  ;;  %v2968_v55 = vcvt.s32.f32 %v2693_v42  ;;  %v9728_v56 = vld [vmem:[%s12955_s3 + $0x1a2] sm:$0xff] }
 0x1c7   : > { %2377 = vrot.lane.b32.xlu0 %v2280_v57, %s12930_s13  ;;  %v2793_v57 = vunpack.c.1.s8 %v9668_v33 }
 0x1cb   : > { %2313 = vrot.lane.b32.xlu2 %v2310_v58, %s12916_s29  ;;  %s12966_s29 = sshll.u32 %s12974_s23, 3 }
 0x1cf   : > { %2350 = vrot.lane.b32.xlu0 %v2120_v37, %s12922_s24  ;;  %v9676_v37 = vld [vmem:[%s12955_s3 + $0x14a] sm:$0xff]  ;;  %s12926_s24 = smov 80  }
 0x1d0   : > { %v2704_v40 = vunpack.c.0.s8 %v9676_v37 }
 0x1d2   : > { %v2979_v32 = vcvt.s32.f32 %v2704_v40  ;;  %v9786_v40 = vld [vmem:[%s12898_s6 + $0x8] sm:$0xf] }
 0x1d3   : > { %2401 = vperm.xlu2 %8028, %v2393_v29  }
 0x1d4   : > { %3129 = vmatpush.msrb.mxu2 %v2979_v32  ;;  %v2706_v32 = vunpack.c.2.s8 %v9676_v37 }
 0x1d6   : > { %3130 = vmatpush.msrb.mxu2 %v2968_v55 }
 0x1d7   : > { %2338 = vrot.lane.b32.xlu0 %v2335_v59, %s12923_s0  ;;  %v3056_v59 = vcvt.s32.f32 %v2781_v41 }
 0x1d9   : > { %3161 = vmatpush.msrb.mxu3 %v3056_v59  ;;  %v2760_v59 = vunpack.c.1.s8 %v9704_v45 }
 0x1db   : > { %3162 = vmatpush.msrb.mxu3 %v3045_v10 }
 0x1dc   : > { %v9621_v3 = vpop.permute.xlu2 %2327 }
 0x1df   : > { %2288 = vrot.lane.b32.xlu0 %v2285_v61, %s12918_s12  ;;  %v2671_v61 = vunpack.c.0.s8 %v9717_v52  ;;  %s12958_s12 = smov 112  }
 0x20b   : > { %v9615_v62 = vpop.permute.xlu1 %2352 }
 0x213   : > { %v9619_v0 = vpop.permute.xlu1 %8013 }
 0x214   : > { %v8016_v12 = vunpack.i.h.bf16 %v9619_v0  ;;  %v8015_v15 = vunpack.i.l.bf16 %v9619_v0  ;;  %v9809_v0 = vld [vmem:[%s12955_s3 + $0x84] sm:$0xff] }
 0x215   : > { %v2376_v7 = vpop.permute.xlu2 %2375  ;;  %v2605_v10 = vunpack.c.0.s8 %v9809_v0 }
 0x216   : > { %v2346_v22 = vsel %vm2344_vm3, %v8015_v15, %v8016_v12  ;;  %v2748_v12 = vunpack.c.0.s8 %v9728_v56 }
 0x217   : > { %v2387_v27 = vsel %vm2381_vm5, %v9621_v3, %v2346_v22  ;;  %v2649_v22 = vunpack.c.0.s8 %v9744_v6 }
 0x219   : > { %v2924_v42 = vcvt.s32.f32 %v2649_v22  ;;  %v9828_v22 = vld [vmem:[%s12955_s3 + $0x58] sm:$0xff] }
 0x21b   : > { %v9628_v8 = vpop.permute.xlu1 %8018 }
 0x21c   : > { %v8021_v16 = vunpack.i.h.bf16 %v9628_v8  ;;  %v8020_v17 = vunpack.i.l.bf16 %v9628_v8  ;;  %v9850_v8 = vld [vmem:[%s12955_s3 + $0x2c] sm:$0xff] }
 0x21d   : > { %v9637_v20 = vpop.permute.xlu2 %2325 }
 0x21e   : > { %v2296_v26 = vsel %vm2294_vm4, %v8020_v17, %v8021_v16  ;;  %v3079_v16 = vcvt.s32.f32 %v2804_v46 }
 0x21f   : > { %v2383_v34 = vsel %vm2381_vm5, %v1800_v60, %v2296_v26  ;;  %v2759_v60 = vunpack.c.0.s8 %v9704_v45  ;;  %v3068_v26 = vcvt.s32.f32 %v2793_v57  ;;  %v3046_v57 = vcvt.s32.f32 %v2771_v48 }
 0x223   : > { %v2364_v24 = vpop.permute.xlu1 %2363 }
 0x231   : > { %v8024_v9 = vpop.permute.xlu0 %8023 }
 0x232   : > { %v8026_v13 = vunpack.i.h.bf16 %v8024_v9  ;;  %v8025_v14 = vunpack.i.l.bf16 %v8024_v9  ;;  %v2660_v9 = vunpack.c.0.s8 %v9722_v53 }
 0x234   : > { %v2371_v18 = vsel %vm2369_vm1, %v8025_v14, %v8026_v13  ;;  %v2370_v31 = vsel %vm2369_vm1, %v2364_v24, %v8025_v14  ;;  %v9753_v13 = vld [vmem:[%s12955_s3 + $0xc6] sm:$0xff]  ;;  %v2314_v14 = vpop.permute.xlu2 %2313  ;;  %v3034_v24 = vcvt.s32.f32 %v2759_v60 }
 0x235   : > { %v2389_v25 = vsel %vm2381_vm5, %v9615_v62, %v2371_v18  ;;  %v2301_v18 = vpop.permute.xlu1 %2300  ;;  %v2320_v29 = vsel %vm2319_vm0, %v2314_v14, %v8010_v11  ;;  %v2782_v11 = vunpack.c.1.s8 %v9681_v38 }
 0x236   : > { %v2305_v36 = vsel %vm2304_vm8, %v2301_v18, %v9623_v4  ;;  %3163 = vmatpush.msrb.mxu3 %v3034_v24  ;;  %v2981_v18 = vcvt.s32.f32 %v2706_v32  ;;  %v2694_v24 = vunpack.c.1.s8 %v9686_v39 }
 0x239   : > { %v2378_v19 = vpop.permute.xlu0 %2377 }
 0x23a   : > { %v2380_v21 = vsel %vm2379_vm2, %v2376_v7, %v2378_v19  ;;  %7781 = vmatpush.msk.msrb.mxu1 %vm2381_vm5, %v2378_v19  ;;  %v2957_v7 = vcvt.s32.f32 %v2682_v51  ;;  %v2946_v19 = vcvt.s32.f32 %v2671_v61  ;;  %v2715_v51 = vunpack.c.0.s8 %v9779_v35 }
 0x23b   : > { %7778 = vmatpush.msk.msrb.mxu0 %vm2381_vm5, %v2380_v21  ;;  %v2737_v21 = vunpack.c.0.s8 %v9739_v5  ;;  %v2705_v61 = vunpack.c.1.s8 %v9676_v37 }
 0x23c   : > { %2449 = vmatpush.msrb.mxu1 %v2389_v25  ;;  %v2638_v25 = vunpack.c.0.s8 %v9753_v13  ;;  %3131 = vmatpush.msrb.mxu2 %v2957_v7  ;;  %v9818_v7 = vld [vmem:[%s12955_s3 + $0x6e] sm:$0xff]  ;;  %v2990_v14 = vcvt.s32.f32 %v2715_v51  ;;  %v2672_v51 = vunpack.c.1.s8 %v9717_v52 }
 0x23d   : > { %v3012_v4 = vcvt.s32.f32 %v2737_v21  ;;  %v2684_v21 = vunpack.c.2.s8 %v9699_v44 }
 0x23e   : > { %2450 = vmatpush.msrb.mxu1 %v2387_v27  ;;  %v9768_v27 = vld [vmem:[%s12955_s3 + $0xb0] sm:$0xff]  ;;  %3132 = vmatpush.msrb.mxu2 %v2946_v19  ;;  %v2913_v50 = vcvt.s32.f32 %v2638_v25  ;;  %v2594_v25 = vunpack.c.0.s8 %v9818_v7 }
 0x23f   : > { %v2627_v46 = vunpack.c.0.s8 %v9768_v27 }
 0x240   : > { %2451 = vmatpush.msrb.mxu1 %v2385_v28  ;;  %v2330_v28 = vsel %vm2329_vm7, %v9637_v20, %v9621_v3  ;;  %v3023_v3 = vcvt.s32.f32 %v2748_v12  ;;  %v9793_v20 = vld [vmem:[%s12955_s3 + $0x9a] sm:$0xff]  ;;  %v3035_v12 = vcvt.s32.f32 %v2760_v59 }
 0x241   : > { %v2351_v54 = vpop.permute.xlu0 %2350  ;;  %v2616_v55 = vunpack.c.0.s8 %v9793_v20  ;;  %v2902_v60 = vcvt.s32.f32 %v2627_v46  ;;  %v2959_v46 = vcvt.s32.f32 %v2684_v21 }
 0x242   : > { %v2355_v58 = vsel %vm2354_vm6, %v2351_v54, %v9615_v62  ;;  %2452 = vmatpush.msrb.mxu1 %v2383_v34  ;;  %v2935_v34 = vcvt.s32.f32 %v2660_v9  ;;  %v3057_v54 = vcvt.s32.f32 %v2782_v11  ;;  %3164 = vmatpush.msrb.mxu3 %v3023_v3  ;;  %v2749_v9 = vunpack.c.1.s8 %v9728_v56 }
 0x243   : > { %7782 = vmatmul.msk.f32.vlgmr.msrb.gmra.mxu1 %vm2369_vm1, %v9710_v47  ;;  %v2388_v62 = vsel %vm2381_vm5, %v2355_v58, %v2370_v31  ;;  %v3001_v58 = vcvt.s32.f32 %v2726_v63  ;;  %v2891_v19 = vcvt.s32.f32 %v2616_v55  ;;  %v2727_v3 = vunpack.c.1.s8 %v9761_v23 }
 0x244   : > { %2426 = vmatpush.msrb.mxu0 %v2388_v62  ;;  %7787 = vmatpush.msk.msra.mxu1 %vm2381_vm5, %v3079_v16  ;;  %v2695_v62 = vunpack.c.2.s8 %v9686_v39  ;;  %v1760_v16 = vadd.f32 %v9587_v2, %v9585_v1  ;;  %v2980_v2 = vcvt.s32.f32 %v2705_v61  ;;  %v2880_v11 = vcvt.s32.f32 %v2605_v10  ;;  %v9870_v10 = vld [vmem:[%s12955_s3] sm:$0xff] }
 0x245   : > { %3133 = vmatpush.msrb.mxu2 %v2935_v34  ;;  %3165 = vmatpush.msrb.mxu3 %v3012_v4  ;;  %v2673_v34 = vunpack.c.2.s8 %v9717_v52  ;;  %v2583_v4 = vunpack.c.0.s8 %v9828_v22  ;;  %v3002_v32 = vcvt.s32.f32 %v2727_v3  ;;  %v2651_v55 = vunpack.c.2.s8 %v9744_v6 }
 0x246   : > { %3206 = vmatpush.msra.mxu1 %v3068_v26  ;;  %v3024_v26 = vcvt.s32.f32 %v2749_v9  ;;  %v2640_v9 = vunpack.c.2.s8 %v9753_v13  ;;  %v2618_v3 = vunpack.c.2.s8 %v9793_v20 }
 0x247   : > { %3134 = vmatpush.msrb.mxu2 %v2924_v42  ;;  %3166 = vmatpush.msrb.mxu3 %v3001_v58  ;;  %v2858_v59 = vcvt.s32.f32 %v2583_v4  ;;  %v2926_v21 = vcvt.s32.f32 %v2651_v55  ;;  %v2628_v4 = vunpack.c.1.s8 %v9768_v27  ;;  %v2761_v55 = vunpack.c.2.s8 %v9704_v45 }
 0x248   : > { %3207 = vmatpush.msra.mxu1 %v3057_v54 }
 0x249   : > { %v2339_v41 = vpop.permute.xlu0 %2338  ;;  %3135 = vmatpush.msrb.mxu2 %v2913_v50  ;;  %3167 = vmatpush.msrb.mxu3 %v2990_v14  ;;  %v2869_v50 = vcvt.s32.f32 %v2594_v25  ;;  %v2805_v14 = vunpack.c.2.s8 %v9663_v30  ;;  %v2794_v25 = vunpack.c.2.s8 %v9668_v33 }
 0x24a   : > { %v2345_v49 = vsel %vm2344_vm3, %v2339_v41, %v8015_v15  ;;  %v2384_v15 = vsel %vm2381_vm5, %v2305_v36, %v2320_v29  ;;  %3208 = vmatpush.msra.mxu1 %v3046_v57  ;;  %v2970_v29 = vcvt.s32.f32 %v2695_v62  ;;  %v9837_v36 = vld [vmem:[%s12955_s3 + $0x42] sm:$0xff]  ;;  %v2683_v41 = vunpack.c.1.s8 %v9699_v44 }
 0x24b   : > { %7783 = vmatmul.msk.f32.gmra.mxu1 %vm2369_vm1, %v9786_v40  ;;  %v2386_v31 = vsel %vm2381_vm5, %v2330_v28, %v2345_v49  ;;  %v2738_v28 = vunpack.c.1.s8 %v9739_v5  ;;  %3136 = vmatpush.msrb.mxu2 %v2902_v60  ;;  %v2662_v49 = vunpack.c.2.s8 %v9722_v53  ;;  %v2572_v54 = vunpack.c.0.s8 %v9837_v36 }
 0x24c   : > { %2427 = vmatpush.msrb.mxu0 %v2386_v31  ;;  %3209 = vmatpush.msra.mxu1 %v3035_v12  ;;  %v2948_v31 = vcvt.s32.f32 %v2673_v34  ;;  %v2716_v57 = vunpack.c.1.s8 %v9779_v35  ;;  %v2958_v58 = vcvt.s32.f32 %v2683_v41  ;;  %v2661_v60 = vunpack.c.1.s8 %v9722_v53 }
 0x24d   : > { %3221 = vmatpush.msra.mxu3 %v2981_v18  ;;  %3137 = vmatpush.msrb.mxu2 %v2891_v19  ;;  %v3013_v48 = vcvt.s32.f32 %v2738_v28  ;;  %v2937_v61 = vcvt.s32.f32 %v2662_v49  ;;  %v2947_v12 = vcvt.s32.f32 %v2672_v51  ;;  %v2650_v18 = vunpack.c.1.s8 %v9744_v6 }
 0x24e   : > { %2428 = vmatpush.msrb.mxu0 %v2384_v15  ;;  %3210 = vmatpush.msra.mxu1 %v3024_v26  ;;  %v9861_v15 = vld [vmem:[%s12955_s3 + $0x16] sm:$0xff]  ;;  %v2991_v62 = vcvt.s32.f32 %v2716_v57  ;;  %v2936_v26 = vcvt.s32.f32 %v2661_v60  ;;  %v3080_v34 = vcvt.s32.f32 %v2805_v14  ;;  %v2607_v49 = vunpack.c.2.s8 %v9809_v0 }
 0x24f   : > { %3222 = vmatpush.msra.mxu3 %v2970_v29  ;;  %3138 = vmatpush.msrb.mxu2 %v2880_v11  ;;  %v2550_v19 = vunpack.c.0.s8 %v9861_v15  ;;  %v2915_v29 = vcvt.s32.f32 %v2640_v9  ;;  %v2925_v11 = vcvt.s32.f32 %v2650_v18  ;;  %v2903_v57 = vcvt.s32.f32 %v2628_v4 }
 0x250   : > { %3211 = vmatpush.msra.mxu1 %v3013_v48  ;;  %v3069_v48 = vcvt.s32.f32 %v2794_v25  ;;  %v2685_v60 = vunpack.c.3.s8 %v9699_v44  ;;  %v3036_v44 = vcvt.s32.f32 %v2761_v55  ;;  %v2584_v25 = vunpack.c.1.s8 %v9828_v22 }
 0x251   : > { %v2289_v1 = vpop.permute.xlu0 %2288  ;;  %3223 = vmatpush.msra.mxu3 %v2959_v46  ;;  %3139 = vmatpush.msrb.mxu2 %v2869_v50  ;;  %v2825_v41 = vcvt.s32.f32 %v2550_v19  ;;  %v2574_v19 = vunpack.c.2.s8 %v9837_v36  ;;  %v2563_v4 = vunpack.c.2.s8 %v9850_v8 }
 0x252   : > { %v2295_v63 = vsel %vm2294_vm4, %v2289_v1, %v8020_v17  ;;  %v2969_v17 = vcvt.s32.f32 %v2694_v24  ;;  %3212 = vmatpush.msra.mxu1 %v3002_v32  ;;  %v2629_v24 = vunpack.c.2.s8 %v9768_v27  ;;  %v2639_v1 = vunpack.c.1.s8 %v9753_v13 }
 0x253   : > { %v2382_v42 = vsel %vm2381_vm5, %v1760_v16, %v2295_v63  ;;  %v2847_v16 = vcvt.s32.f32 %v2572_v54  ;;  %3224 = vmatpush.msra.mxu3 %v2948_v31  ;;  %3140 = vmatpush.msrb.mxu2 %v2858_v59  ;;  %v2783_v63 = vunpack.c.2.s8 %v9681_v38  ;;  %v2617_v54 = vunpack.c.1.s8 %v9793_v20 }
 0x254   : > { %2429 = vmatpush.msrb.mxu0 %v2382_v42  ;;  %3213 = vmatpush.msra.mxu1 %v2991_v62  ;;  %v2707_v42 = vunpack.c.3.s8 %v9676_v37  ;;  %v2904_v46 = vcvt.s32.f32 %v2629_v24  ;;  %v2914_v50 = vcvt.s32.f32 %v2639_v1  ;;  %v2696_v31 = vunpack.c.3.s8 %v9686_v39 }
 0x255   : > { %7779 = vmatmul.msk.f32.vlgmr.msrb.gmra.mxu0 %vm2369_vm1, %v9710_v47  ;;  %v2561_v47 = vunpack.c.0.s8 %v9850_v8  ;;  %3225 = vmatpush.msra.mxu3 %v2937_v61  ;;  %v2893_v37 = vcvt.s32.f32 %v2618_v3  ;;  %v2596_v32 = vunpack.c.2.s8 %v9818_v7  ;;  %v2606_v59 = vunpack.c.1.s8 %v9809_v0 }
 0x256   : > { %3175 = vmatpush.msra.mxu0 %v2980_v2  ;;  %v2539_v2 = vunpack.c.0.s8 %v9870_v10  ;;  %3141 = vmatpush.msrb.mxu2 %v2847_v16  ;;  %v2882_v39 = vcvt.s32.f32 %v2607_v49  ;;  %v2585_v61 = vunpack.c.2.s8 %v9828_v22  ;;  %v2750_v62 = vunpack.c.2.s8 %v9728_v56 }
 0x257   : > { %v2836_v28 = vcvt.s32.f32 %v2561_v47  ;;  %3226 = vmatpush.msra.mxu3 %v2926_v21  ;;  %7790 = vmatpush.msk.msrb.mxu1 %vm2381_vm5, %v3080_v34  ;;  %v2892_v9 = vcvt.s32.f32 %v2617_v54  ;;  %v2971_v14 = vcvt.s32.f32 %v2696_v31  ;;  %v2674_v16 = vunpack.c.3.s8 %v9717_v52 }
 0x258   : > { %3176 = vmatpush.msra.mxu0 %v2969_v17  ;;  %v2772_v17 = vunpack.c.2.s8 %v9694_v43  ;;  %v2814_v51 = vcvt.s32.f32 %v2539_v2  ;;  %v2871_v18 = vcvt.s32.f32 %v2596_v32  ;;  %v2881_v21 = vcvt.s32.f32 %v2606_v59 }
 0x259   : > { %3142 = vmatpush.msrb.mxu2 %v2836_v28  ;;  %3227 = vmatpush.msra.mxu3 %v2915_v29  ;;  %v2960_v24 = vcvt.s32.f32 %v2685_v60  ;;  %v2860_v28 = vcvt.s32.f32 %v2585_v61  ;;  %v3025_v1 = vcvt.s32.f32 %v2750_v62  ;;  %v2949_v2 = vcvt.s32.f32 %v2674_v16 }
 0x25a   : > { %3177 = vmatpush.msra.mxu0 %v2958_v58  ;;  %v2982_v58 = vcvt.s32.f32 %v2707_v42  ;;  %3252 = vmatpush.msrb.mxu1 %v3069_v48  ;;  %v3047_v47 = vcvt.s32.f32 %v2772_v17  ;;  %v2573_v29 = vunpack.c.1.s8 %v9837_v36  ;;  %v2849_v34 = vcvt.s32.f32 %v2574_v19 }
 0x25b   : > { %3143 = vmatpush.msrb.mxu2 %v2825_v41  ;;  %3228 = vmatpush.msra.mxu3 %v2904_v46  ;;  %v2859_v3 = vcvt.s32.f32 %v2584_v25  ;;  %v2562_v41 = vunpack.c.1.s8 %v9850_v8  ;;  %v2728_v46 = vunpack.c.2.s8 %v9761_v23  ;;  %v2652_v48 = vunpack.c.3.s8 %v9744_v6 }
 0x25c   : > { %3178 = vmatpush.msra.mxu0 %v2947_v12  ;;  %v2595_v12 = vunpack.c.1.s8 %v9818_v7  ;;  %v2838_v17 = vcvt.s32.f32 %v2563_v4  ;;  %v2541_v6 = vunpack.c.2.s8 %v9870_v10  ;;  %v2619_v62 = vunpack.c.3.s8 %v9793_v20  ;;  %v9963_v4 = vld [vmem:[%s12955_s3 + $0x1ec] sm:$0xff] }
 0x25d   : > { %7780 = vmatmul.msk.f32.gmra.mxu0 %vm2369_vm1, %v9786_v40  ;;  %v3058_v40 = vcvt.s32.f32 %v2783_v63  ;;  %3144 = vmatpush.msrb.mxu2 %v2814_v51  ;;  %v2837_v49 = vcvt.s32.f32 %v2562_v41  ;;  %v2552_v51 = vunpack.c.2.s8 %v9861_v15  ;;  %v3003_v54 = vcvt.s32.f32 %v2728_v46  ;;  %v9958_v41 = vld [vmem:[%s12955_s3 + $0x126] sm:$0xff] }
 0x25e   : > { %3179 = vmatpush.msra.mxu0 %v2936_v26  ;;  %3229 = vmatpush.msra.mxu3 %v2893_v37  ;;  %v2663_v26 = vunpack.c.3.s8 %v9722_v53  ;;  %v2870_v52 = vcvt.s32.f32 %v2595_v12  ;;  %v2848_v53 = vcvt.s32.f32 %v2573_v29  ;;  %v2927_v31 = vcvt.s32.f32 %v2652_v48 }
 0x25f   : > { %3253 = vmatpush.msrb.mxu1 %v3058_v40  ;;  %3267 = vmatpush.msra.mxu2 %v2982_v58  ;;  %v2717_v37 = vunpack.c.2.s8 %v9779_v35  ;;  %v2641_v40 = vunpack.c.3.s8 %v9753_v13  ;;  %v2827_v55 = vcvt.s32.f32 %v2552_v51  ;;  %v2806_v13 = vunpack.c.3.s8 %v9663_v30 }
 0x260   : > { %3180 = vmatpush.msra.mxu0 %v2925_v11  ;;  %3230 = vmatpush.msra.mxu3 %v2882_v39  ;;  %v2938_v63 = vcvt.s32.f32 %v2663_v26  ;;  %v2739_v11 = vunpack.c.2.s8 %v9739_v5  ;;  %v2816_v39 = vcvt.s32.f32 %v2541_v6  ;;  %v2894_v12 = vcvt.s32.f32 %v2619_v62 }
 0x261   : > { %3254 = vmatpush.msrb.mxu1 %v3047_v47  ;;  %3268 = vmatpush.msra.mxu2 %v2971_v14  ;;  %v2992_v58 = vcvt.s32.f32 %v2717_v37  ;;  %v2916_v59 = vcvt.s32.f32 %v2641_v40  ;;  %v2630_v47 = vunpack.c.3.s8 %v9768_v27  ;;  %v3081_v14 = vcvt.s32.f32 %v2806_v13 }
 0x262   : > { %3181 = vmatpush.msra.mxu0 %v2914_v50  ;;  %3231 = vmatpush.msra.mxu3 %v2871_v18  ;;  %v3014_v42 = vcvt.s32.f32 %v2739_v11  ;;  %v2551_v50 = vunpack.c.1.s8 %v9861_v15  ;;  %v2608_v18 = vunpack.c.3.s8 %v9809_v0  ;;  %v2784_v27 = vunpack.c.3.s8 %v9681_v38 }
 0x263   : > { %3255 = vmatpush.msrb.mxu1 %v3036_v44  ;;  %3269 = vmatpush.msra.mxu2 %v2960_v24  ;;  %v2905_v61 = vcvt.s32.f32 %v2630_v47  ;;  %v2597_v30 = vunpack.c.3.s8 %v9818_v7  ;;  %v2773_v19 = vunpack.c.3.s8 %v9694_v43  ;;  %v2586_v24 = vunpack.c.3.s8 %v9828_v22  ;;  %v10009_v47 = vpop.permute.xlu2 %2401 }
 0x264   : > { %3182 = vmatpush.msra.mxu0 %v2903_v57  ;;  %3232 = vmatpush.msra.mxu3 %v2860_v28  ;;  %v2826_v32 = vcvt.s32.f32 %v2551_v50  ;;  %v2540_v57 = vunpack.c.1.s8 %v9870_v10  ;;  %v2883_v44 = vcvt.s32.f32 %v2608_v18  ;;  %v3059_v20 = vcvt.s32.f32 %v2784_v27  ;;  %v9976_v50 = vld [vmem:[%s12955_s3 + $0x1d6] sm:$0xff] }
 0x265   : > { %3256 = vmatpush.msrb.mxu1 %v3025_v1  ;;  %3270 = vmatpush.msra.mxu2 %v2949_v2  ;;  %v2762_v0 = vunpack.c.3.s8 %v9704_v45  ;;  %v2861_v25 = vcvt.s32.f32 %v2586_v24  ;;  %v2575_v38 = vunpack.c.3.s8 %v9837_v36  ;;  %v2751_v26 = vunpack.c.3.s8 %v9728_v56 }
 0x266   : > { %3183 = vmatpush.msra.mxu0 %v2892_v9  ;;  %3233 = vmatpush.msra.mxu3 %v2849_v34  ;;  %v2815_v60 = vcvt.s32.f32 %v2540_v57  ;;  %v2795_v9 = vunpack.c.3.s8 %v9668_v33  ;;  %v2872_v33 = vcvt.s32.f32 %v2597_v30  ;;  %v2564_v1 = vunpack.c.3.s8 %v9850_v8 }
 0x267   : > { %3271 = vmatpush.msra.mxu2 %v2938_v63  ;;  %3257 = vmatpush.msrb.mxu1 %v3014_v42  ;;  %v3037_v7 = vcvt.s32.f32 %v2762_v0  ;;  %v2850_v43 = vcvt.s32.f32 %v2575_v38  ;;  %v3026_v28 = vcvt.s32.f32 %v2751_v26  ;;  %v2553_v45 = vunpack.c.3.s8 %v9861_v15  ;;  %v9939_v15 = vld [vmem:[%s12955_s3 + $0x218] sm:$0x55]  ;;  %v9951_v63 = vpop.permute.xlu1 %2396  ;;  %v10043_v26 = vld [vmem:[%s12955_s3 + $0xa2] sm:$0xff] }
 0x268   : > { %3184 = vmatpush.msra.mxu0 %v2881_v21  ;;  %3234 = vmatpush.msra.mxu3 %v2838_v17  ;;  %v3070_v16 = vcvt.s32.f32 %v2795_v9  ;;  %v3048_v21 = vcvt.s32.f32 %v2773_v19  ;;  %v2839_v22 = vcvt.s32.f32 %v2564_v1  ;;  %v2729_v2 = vunpack.c.3.s8 %v9761_v23  ;;  %v9934_v23 = vld [vmem:[%s12955_s3 + $0x152] sm:$0xff] }
 0x269   : > { %3258 = vmatpush.msrb.mxu1 %v3003_v54  ;;  %3272 = vmatpush.msra.mxu2 %v2927_v31  ;;  %v2828_v56 = vcvt.s32.f32 %v2553_v45  ;;  %v2542_v34 = vunpack.c.3.s8 %v9870_v10  ;;  %v9949_v10 = vld [vmem:[%s12955_s3 + $0x202] sm:$0xff]  ;;  %v2807_v11 = vunpack.c.0.s8 %v9939_v15  ;;  %v9971_v17 = vld [vmem:[%s12955_s3 + $0x110] sm:$0xff]  ;;  %v2686_v31 = vunpack.c.0.s8 %v9958_v41 }
 0x26a   : > { %3185 = vmatpush.msra.mxu0 %v2870_v52  ;;  %3235 = vmatpush.msra.mxu3 %v2827_v55  ;;  %v2740_v52 = vunpack.c.3.s8 %v9739_v5  ;;  %v3004_v29 = vcvt.s32.f32 %v2729_v2  ;;  %v2796_v48 = vunpack.c.0.s8 %v9949_v10  ;;  %v2785_v37 = vunpack.c.0.s8 %v9963_v4  ;;  %v9990_v55 = vld [vmem:[%s12955_s3 + $0x1c0] sm:$0xff] }
 0x26b   : > { %3259 = vmatpush.msrb.mxu1 %v2992_v58  ;;  %3273 = vmatpush.msra.mxu2 %v2916_v59  ;;  %v2817_v8 = vcvt.s32.f32 %v2542_v34  ;;  %v3082_v54 = vcvt.s32.f32 %v2807_v11  ;;  %v2675_v58 = vunpack.c.0.s8 %v9971_v17  ;;  %v2774_v59 = vunpack.c.0.s8 %v9976_v50  ;;  %v10074_v11 = vld [vmem:[%s12955_s3 + $0x60] sm:$0xff] }
 0x26c   : > { %3186 = vmatpush.msra.mxu0 %v2859_v3  ;;  %3236 = vmatpush.msra.mxu3 %v2816_v39  ;;  %v3015_v36 = vcvt.s32.f32 %v2740_v52  ;;  %v2718_v3 = vunpack.c.3.s8 %v9779_v35  ;;  %v9944_v35 = vld [vmem:[%s12955_s3 + $0x13c] sm:$0xff]  ;;  %v3071_v6 = vcvt.s32.f32 %v2796_v48  ;;  %v10006_v39 = vld [vmem:[%s12955_s3 + $0x1aa] sm:$0xff]  ;;  %v2961_v13 = vcvt.s32.f32 %v2686_v31 }
 0x26d   : > { %3274 = vmatpush.msra.mxu2 %v2905_v61  ;;  %v2697_v46 = vunpack.c.0.s8 %v9944_v35  ;;  %v3060_v61 = vcvt.s32.f32 %v2785_v37  ;;  %v2763_v9 = vunpack.c.0.s8 %v9990_v55  ;;  %v2950_v18 = vcvt.s32.f32 %v2675_v58 }
 0x26e   : > { %3187 = vmatpush.msra.mxu0 %v2848_v53  ;;  %v2993_v5 = vcvt.s32.f32 %v2718_v3  ;;  %v2708_v53 = vunpack.c.0.s8 %v9934_v23  ;;  %v3049_v27 = vcvt.s32.f32 %v2774_v59  ;;  %v2752_v30 = vunpack.c.0.s8 %v10006_v39 }
 0x26f   : > { %3275 = vmatpush.msra.mxu2 %v2894_v12  ;;  %v2972_v57 = vcvt.s32.f32 %v2697_v46  ;;  %v10021_v12 = vld [vmem:[%s12955_s3 + $0x194] sm:$0xff]  ;;  %v3038_v24 = vcvt.s32.f32 %v2763_v9  ;;  %v2698_v31 = vunpack.c.1.s8 %v9944_v35  ;;  %v2797_v37 = vunpack.c.1.s8 %v9949_v10 }
 0x270   : > { %3188 = vmatpush.msra.mxu0 %v2837_v49  ;;  %v2983_v51 = vcvt.s32.f32 %v2708_v53  ;;  %v2808_v53 = vunpack.c.1.s8 %v9939_v15  ;;  %v2699_v59 = vunpack.c.2.s8 %v9944_v35  ;;  %v2786_v9 = vunpack.c.1.s8 %v9963_v4 }
 0x271   : > { %3276 = vmatpush.msra.mxu2 %v2883_v44 }
 0x272   : > { %3189 = vmatpush.msra.mxu0 %v2826_v32  ;;  %v9985_v32 = vld [vmem:[%s12955_s3 + $0xfa] sm:$0xff] }
 0x273   : > { %3277 = vmatpush.msra.mxu2 %v2872_v33  ;;  %v2664_v62 = vunpack.c.0.s8 %v9985_v32  ;;  %v10034_v33 = vld [vmem:[%s12955_s3 + $0x17e] sm:$0xff] }
 0x274   : > { %3190 = vmatpush.msra.mxu0 %v2815_v60  ;;  %v10001_v60 = vld [vmem:[%s12955_s3 + $0xe4] sm:$0xff]  ;;  %v2730_v52 = vunpack.c.0.s8 %v10034_v33 }
 0x275   : > { %3278 = vmatpush.msra.mxu2 %v2861_v25  ;;  %v2653_v44 = vunpack.c.0.s8 %v10001_v60  ;;  %v2741_v25 = vunpack.c.0.s8 %v10021_v12 }
 0x276   : > { %7793 = vmatpush.msk.msrb.mxu0 %vm2381_vm5, %v3081_v14  ;;  %v10016_v14 = vld [vmem:[%s12955_s3 + $0xce] sm:$0xff]  ;;  %v3005_v3 = vcvt.s32.f32 %v2730_v52  ;;  %v3061_v52 = vcvt.s32.f32 %v2786_v9 }
 0x277   : > { %3279 = vmatpush.msra.mxu2 %v2850_v43  ;;  %v2642_v0 = vunpack.c.0.s8 %v10016_v14  ;;  %v2928_v43 = vcvt.s32.f32 %v2653_v44  ;;  %v3016_v2 = vcvt.s32.f32 %v2741_v25 }
 0x278   : > { %3298 = vmatpush.msrb.mxu0 %v3070_v16 }
 0x279   : > { %3280 = vmatpush.msra.mxu2 %v2839_v22  ;;  %v10059_v22 = vld [vmem:[%s12955_s3 + $0x8c] sm:$0xff]  ;;  %v2917_v45 = vcvt.s32.f32 %v2642_v0  ;;  %v2974_v0 = vcvt.s32.f32 %v2699_v59 }
 0x27a   : > { %3299 = vmatpush.msrb.mxu0 %v3059_v20  ;;  %v10029_v20 = vld [vmem:[%s12955_s3 + $0xb8] sm:$0xff] }
 0x27b   : > { %3281 = vmatpush.msra.mxu2 %v2828_v56  ;;  %v2631_v1 = vunpack.c.0.s8 %v10029_v20 }
 0x27c   : > { %3300 = vmatpush.msrb.mxu0 %v3048_v21  ;;  %v2939_v21 = vcvt.s32.f32 %v2664_v62  ;;  %v2687_v62 = vunpack.c.1.s8 %v9958_v41 }
 0x27d   : > { %3282 = vmatpush.msra.mxu2 %v2817_v8  ;;  %v2906_v34 = vcvt.s32.f32 %v2631_v1  ;;  %v2609_v8 = vunpack.c.0.s8 %v10059_v22 }
 0x27e   : > { %3301 = vmatpush.msrb.mxu0 %v3037_v7  ;;  %v10048_v7 = vld [vmem:[%s12955_s3 + $0x168] sm:$0xff]  ;;  %v2962_v1 = vcvt.s32.f32 %v2687_v62  ;;  %v2742_v62 = vunpack.c.1.s8 %v10021_v12 }
 0x27f   : > { %v2719_v56 = vunpack.c.0.s8 %v10048_v7 }
 0x280   : > { %3302 = vmatpush.msrb.mxu0 %v3026_v28  ;;  %v3027_v28 = vcvt.s32.f32 %v2752_v30  ;;  %v2973_v30 = vcvt.s32.f32 %v2698_v31  ;;  %v2753_v31 = vunpack.c.1.s8 %v10006_v39 }
 0x281   : > { %v2994_v48 = vcvt.s32.f32 %v2719_v56 }
 0x282   : > { %3303 = vmatpush.msrb.mxu0 %v3015_v36  ;;  %v2620_v36 = vunpack.c.0.s8 %v10043_v26 }
 0x284   : > { %3304 = vmatpush.msrb.mxu0 %v3004_v29  ;;  %v10066_v29 = vld [vmem:[%s12955_s3 + $0x76] sm:$0xff]  ;;  %v2895_v46 = vcvt.s32.f32 %v2620_v36 }
 0x286   : > { %3305 = vmatpush.msrb.mxu0 %v2993_v5  ;;  %v2709_v5 = vunpack.c.1.s8 %v9934_v23 }
 0x288   : > { %v2984_v58 = vcvt.s32.f32 %v2709_v5  ;;  %v2665_v5 = vunpack.c.1.s8 %v9985_v32 }
 0x28a   : > { %v2940_v59 = vcvt.s32.f32 %v2665_v5 }
 0x2c0   : > { %v2454_v42 = vpop.f32.mrf.mxu1 }
 0x2c1   : > { %v2455_v49 = vadd.f32 %v2454_v42, %v9951_v63 }
 0x2c3   : > { %v9980_v40 = vmax.f32 %v2455_v49, 0.0  ;;  %v2710_v49 = vunpack.c.2.s8 %v9934_v23 }
 0x2c5   : > { %7785 = vmatmul.msk.f32.vlgmr.msrb.gmra.mxu3 %vm3089_vm9, %v9980_v40  ;;  %7788 = vmatmul.msk.f32.vlgmr.msra.gmra.mxu1 %vm3089_vm9, %v9980_v40 }
 0x2c6   : > { %3313 = vmatpush.msra.mxu1 %v2983_v51  ;;  %7796 = vmatpush.msk.msrb.mxu3 %vm2381_vm5, %v3082_v54  ;;  %v2598_v51 = vunpack.c.0.s8 %v10066_v29 }
 0x2c8   : > { %3314 = vmatpush.msra.mxu1 %v2972_v57  ;;  %v2457_v16 = vpop.f32.mrf.mxu1  ;;  %3344 = vmatpush.msrb.mxu3 %v3071_v6  ;;  %v10084_v57 = vld [vmem:[%s12955_s3 + $0x4a] sm:$0xff]  ;;  %v2884_v6 = vcvt.s32.f32 %v2609_v8 }
 0x2c9   : > { %v2458_v19 = vadd.f32 %v2457_v16, %v10009_v47  ;;  %v2985_v16 = vcvt.s32.f32 %v2710_v49  ;;  %v2576_v44 = vunpack.c.0.s8 %v10084_v57  ;;  %v2666_v49 = vunpack.c.2.s8 %v9985_v32 }
 0x2ca   : > { %3315 = vmatpush.msra.mxu1 %v2961_v13  ;;  %3345 = vmatpush.msrb.mxu3 %v3060_v61  ;;  %v2587_v13 = vunpack.c.0.s8 %v10074_v11 }
 0x2cb   : > { %v10038_v38 = vmax.f32 %v2458_v19, 0.0  ;;  %v3072_v19 = vcvt.s32.f32 %v2797_v37  ;;  %v2851_v56 = vcvt.s32.f32 %v2576_v44  ;;  %v2941_v9 = vcvt.s32.f32 %v2666_v49 }
 0x2cc   : > { %3316 = vmatpush.msra.mxu1 %v2950_v18  ;;  %3346 = vmatpush.msrb.mxu3 %v3049_v27  ;;  %v2873_v18 = vcvt.s32.f32 %v2598_v51  ;;  %v2688_v27 = vunpack.c.2.s8 %v9958_v41  ;;  %v2862_v25 = vcvt.s32.f32 %v2587_v13  ;;  %v2711_v49 = vunpack.c.3.s8 %v9934_v23 }
 0x2cd   : > { %7789 = vmatmul.msk.f32.gmra.mxu1 %vm3089_vm9, %v10038_v38  ;;  %7786 = vmatmul.msk.f32.gmra.mxu3 %vm3089_vm9, %v10038_v38 }
 0x2ce   : > { %3317 = vmatpush.msra.mxu1 %v2939_v21  ;;  %3347 = vmatpush.msrb.mxu3 %v3038_v24  ;;  %v2676_v21 = vunpack.c.1.s8 %v9971_v17  ;;  %v10102_v24 = vld [vmem:[%s12955_s3 + $0x34] sm:$0xff]  ;;  %v2963_v36 = vcvt.s32.f32 %v2688_v27  ;;  %v2809_v27 = vunpack.c.2.s8 %v9939_v15 }
 0x2d0   : > { %3318 = vmatpush.msra.mxu1 %v2928_v43  ;;  %3348 = vmatpush.msrb.mxu3 %v3027_v28  ;;  %v2775_v43 = vunpack.c.1.s8 %v9976_v50  ;;  %v2677_v28 = vunpack.c.2.s8 %v9971_v17  ;;  %v2951_v8 = vcvt.s32.f32 %v2676_v21 }
 0x2d2   : > { %3319 = vmatpush.msra.mxu1 %v2917_v45  ;;  %v2431_v42 = vpop.f32.mrf.mxu0  ;;  %3349 = vmatpush.msrb.mxu3 %v3016_v2  ;;  %v10111_v45 = vld [vmem:[%s12955_s3 + $0x1e] sm:$0xff] }
 0x2d3   : > { %v2432_v54 = vadd.f32 %v2431_v42, %v9951_v63  ;;  %v3083_v63 = vcvt.s32.f32 %v2808_v53  ;;  %v2764_v53 = vunpack.c.1.s8 %v9990_v55  ;;  %v10120_v42 = vld [vmem:[%s12955_s3 + $0x8] sm:$0xff]  ;;  %v2554_v51 = vunpack.c.0.s8 %v10111_v45 }
 0x2d4   : > { %3320 = vmatpush.msra.mxu1 %v2906_v34  ;;  %3350 = vmatpush.msrb.mxu3 %v3005_v3  ;;  %v2565_v34 = vunpack.c.0.s8 %v10102_v24 }
 0x2d5   : > { %v10088_v61 = vmax.f32 %v2432_v54, 0.0  ;;  %7791 = vmatmul.msk.f32.vlgmr.msrb.gmra.mxu1 %vm3089_vm9, %v9980_v40  ;;  %v3039_v13 = vcvt.s32.f32 %v2764_v53  ;;  %v2622_v53 = vunpack.c.2.s8 %v10043_v26 }
 0x2d6   : > { %3321 = vmatpush.msra.mxu1 %v2895_v46  ;;  %3351 = vmatpush.msrb.mxu3 %v2994_v48  ;;  %v3050_v46 = vcvt.s32.f32 %v2775_v43  ;;  %v2952_v48 = vcvt.s32.f32 %v2677_v28  ;;  %v2840_v37 = vcvt.s32.f32 %v2565_v34  ;;  %v2633_v43 = vunpack.c.2.s8 %v10029_v20 }
 0x2d7   : > { %3145 = vmatmul.f32.vlgmr.msrb.gmra.mxu2 %v10088_v61  ;;  %3191 = vmatmul.f32.vlgmr.msra.gmra.mxu0 %v10088_v61  ;;  %v2621_v34 = vunpack.c.1.s8 %v10043_v26  ;;  %v2897_v23 = vcvt.s32.f32 %v2622_v53  ;;  %v2732_v53 = vunpack.c.2.s8 %v10034_v33 }
 0x2d8   : > { %3237 = vmatmul.f32.vlgmr.msra.gmra.mxu3 %v10088_v61  ;;  %3322 = vmatpush.msra.mxu1 %v2884_v6  ;;  %v2655_v6 = vunpack.c.2.s8 %v10001_v60  ;;  %v2908_v5 = vcvt.s32.f32 %v2633_v43 }
 0x2d9   : > { %3359 = vmatpush.msra.mxu0 %v2984_v58  ;;  %7799 = vmatpush.msk.msrb.mxu2 %vm2381_vm5, %v3083_v63  ;;  %v2543_v58 = vunpack.c.0.s8 %v10120_v42  ;;  %v2643_v63 = vunpack.c.1.s8 %v10016_v14 }
 0x2da   : > { %3405 = vmatpush.msra.mxu3 %v2985_v16  ;;  %3323 = vmatpush.msra.mxu1 %v2873_v18  ;;  %v2434_v2 = vpop.f32.mrf.mxu0  ;;  %v2829_v16 = vcvt.s32.f32 %v2554_v51  ;;  %v2644_v18 = vunpack.c.2.s8 %v10016_v14  ;;  %v2930_v21 = vcvt.s32.f32 %v2655_v6  ;;  %v2610_v51 = vunpack.c.1.s8 %v10059_v22 }
 0x2db   : > { %3360 = vmatpush.msra.mxu0 %v2973_v30  ;;  %3390 = vmatpush.msrb.mxu2 %v3072_v19  ;;  %v2435_v3 = vadd.f32 %v2434_v2, %v10009_v47  ;;  %v2654_v47 = vunpack.c.1.s8 %v10001_v60  ;;  %v3028_v30 = vcvt.s32.f32 %v2753_v31  ;;  %v2632_v19 = vunpack.c.1.s8 %v10029_v20 }
 0x2dc   : > { %3406 = vmatpush.msra.mxu3 %v2974_v0  ;;  %3324 = vmatpush.msra.mxu1 %v2862_v25  ;;  %v2818_v0 = vcvt.s32.f32 %v2543_v58  ;;  %v2731_v25 = vunpack.c.1.s8 %v10034_v33  ;;  %v2918_v28 = vcvt.s32.f32 %v2643_v63  ;;  %v2919_v2 = vcvt.s32.f32 %v2644_v18 }
 0x2dd   : > { %v10124_v54 = vmax.f32 %v2435_v3, 0.0  ;;  %3361 = vmatpush.msra.mxu0 %v2962_v1  ;;  %3391 = vmatpush.msrb.mxu2 %v3061_v52  ;;  %v2929_v44 = vcvt.s32.f32 %v2654_v47  ;;  %v3017_v1 = vcvt.s32.f32 %v2742_v62  ;;  %v2798_v52 = vunpack.c.2.s8 %v9949_v10 }
 0x2de   : > { %3407 = vmatpush.msra.mxu3 %v2963_v36  ;;  %7792 = vmatmul.msk.f32.gmra.mxu1 %vm3089_vm9, %v10038_v38  ;;  %v3084_v36 = vcvt.s32.f32 %v2809_v27  ;;  %v2720_v3 = vunpack.c.1.s8 %v10048_v7  ;;  %v2611_v47 = vunpack.c.2.s8 %v10059_v22  ;;  %v2776_v31 = vunpack.c.2.s8 %v9976_v50 }
 0x2df   : > { %3325 = vmatpush.msra.mxu1 %v2851_v56  ;;  %3362 = vmatpush.msra.mxu0 %v2951_v8  ;;  %v2907_v56 = vcvt.s32.f32 %v2632_v19  ;;  %v3006_v8 = vcvt.s32.f32 %v2731_v25  ;;  %v2700_v58 = vunpack.c.3.s8 %v9944_v35  ;;  %v2600_v63 = vunpack.c.2.s8 %v10066_v29 }
 0x2e0   : > { %3392 = vmatpush.msrb.mxu2 %v3050_v46  ;;  %3408 = vmatpush.msra.mxu3 %v2952_v48  ;;  %v2787_v46 = vunpack.c.2.s8 %v9963_v4  ;;  %v3073_v48 = vcvt.s32.f32 %v2798_v52  ;;  %v2995_v6 = vcvt.s32.f32 %v2720_v3  ;;  %v2765_v62 = vunpack.c.2.s8 %v9990_v55 }
 0x2e1   : > { %3148 = vmatmul.f32.gmra.mxu2 %v10124_v54  ;;  %3194 = vmatmul.f32.gmra.mxu0 %v10124_v54  ;;  %v2689_v18 = vunpack.c.3.s8 %v9958_v41  ;;  %v2886_v35 = vcvt.s32.f32 %v2611_v47  ;;  %v3051_v27 = vcvt.s32.f32 %v2776_v31  ;;  %v2975_v19 = vcvt.s32.f32 %v2700_v58 }
 0x2e2   : > { %3240 = vmatmul.f32.gmra.mxu3 %v10124_v54  ;;  %3326 = vmatpush.msra.mxu1 %v2840_v37  ;;  %v2896_v37 = vcvt.s32.f32 %v2621_v34  ;;  %v2678_v41 = vunpack.c.3.s8 %v9971_v17  ;;  %v2875_v25 = vcvt.s32.f32 %v2600_v63  ;;  %v3040_v43 = vcvt.s32.f32 %v2765_v62 }
 0x2e3   : > { %3363 = vmatpush.msra.mxu0 %v2940_v59  ;;  %3393 = vmatpush.msrb.mxu2 %v3039_v13  ;;  %v2599_v59 = vunpack.c.1.s8 %v10066_v29  ;;  %v3062_v13 = vcvt.s32.f32 %v2787_v46  ;;  %v2667_v3 = vunpack.c.3.s8 %v9985_v32  ;;  %v2556_v47 = vunpack.c.2.s8 %v10111_v45 }
 0x2e4   : > { %3409 = vmatpush.msra.mxu3 %v2941_v9  ;;  %3327 = vmatpush.msra.mxu1 %v2829_v16  ;;  %v2986_v9 = vcvt.s32.f32 %v2711_v49  ;;  %v2885_v16 = vcvt.s32.f32 %v2610_v51  ;;  %v2953_v34 = vcvt.s32.f32 %v2678_v41  ;;  %v2555_v49 = vunpack.c.1.s8 %v10111_v45  ;;  %v10214_v41 = vld [vmem:[%s12955_s3 + $0x12e] sm:$0x3f] }
 0x2e5   : > { %3364 = vmatpush.msra.mxu0 %v2929_v44  ;;  %3394 = vmatpush.msrb.mxu2 %v3028_v30  ;;  %v2588_v44 = vunpack.c.1.s8 %v10074_v11  ;;  %v2589_v30 = vunpack.c.2.s8 %v10074_v11  ;;  %v2721_v31 = vunpack.c.2.s8 %v10048_v7  ;;  %v3007_v63 = vcvt.s32.f32 %v2732_v53 }
 0x2e6   : > { %3410 = vmatpush.msra.mxu3 %v2930_v21  ;;  %3328 = vmatpush.msra.mxu1 %v2818_v0  ;;  %v2874_v21 = vcvt.s32.f32 %v2599_v59  ;;  %v2754_v0 = vunpack.c.2.s8 %v10006_v39  ;;  %v2544_v59 = vunpack.c.1.s8 %v10120_v42  ;;  %v2545_v62 = vunpack.c.2.s8 %v10120_v42 }
 0x2e7   : > { %3365 = vmatpush.msra.mxu0 %v2918_v28  ;;  %3395 = vmatpush.msrb.mxu2 %v3017_v1  ;;  %v2964_v28 = vcvt.s32.f32 %v2689_v18  ;;  %v2577_v1 = vunpack.c.1.s8 %v10084_v57  ;;  %v2863_v52 = vcvt.s32.f32 %v2588_v44  ;;  %v2634_v18 = vunpack.c.3.s8 %v10029_v20  ;;  %v10209_v20 = vld [vmem:[%s12955_s3 + $0x20a] sm:$0x3f] }
 0x2e8   : > { %3411 = vmatpush.msra.mxu3 %v2919_v2  ;;  %7802 = vmatpush.msk.msrb.mxu1 %vm2381_vm5, %v3084_v36  ;;  %v2864_v2 = vcvt.s32.f32 %v2589_v30  ;;  %v2578_v36 = vunpack.c.2.s8 %v10084_v57  ;;  %v3029_v17 = vcvt.s32.f32 %v2754_v0  ;;  %v2996_v44 = vcvt.s32.f32 %v2721_v31 }
 0x2e9   : > { %3329 = vmatmul.f32.vlgmr.msra.gmra.mxu1 %v10088_v61  ;;  %3366 = vmatpush.msra.mxu0 %v2907_v56  ;;  %v2743_v56 = vunpack.c.2.s8 %v10021_v12  ;;  %v2852_v46 = vcvt.s32.f32 %v2577_v1  ;;  %v2810_v30 = vunpack.c.3.s8 %v9939_v15  ;;  %v2819_v0 = vcvt.s32.f32 %v2544_v59  ;;  %v10265_v59 = vld [vmem:[%s12955_s3 + $0xec] sm:$0x3f] }
 0x2ea   : > { %3396 = vmatpush.msrb.mxu2 %v3006_v8  ;;  %3412 = vmatpush.msra.mxu3 %v2908_v5  ;;  %v2566_v8 = vunpack.c.1.s8 %v10102_v24  ;;  %v2567_v5 = vunpack.c.2.s8 %v10102_v24  ;;  %v2853_v51 = vcvt.s32.f32 %v2578_v36  ;;  %v2623_v1 = vunpack.c.3.s8 %v10043_v26  ;;  %v10227_v36 = vld [vmem:[%s12955_s3 + $0x118] sm:$0x3f] }
 0x2eb   : > { %3436 = vmatpush.msrb.mxu1 %v3073_v48  ;;  %3283 = vmatmul.f32.vlgmr.msra.gmra.mxu2 %v10088_v61  ;;  %v2656_v48 = vunpack.c.3.s8 %v10001_v60  ;;  %v3018_v32 = vcvt.s32.f32 %v2743_v56  ;;  %v2645_v60 = vunpack.c.3.s8 %v10016_v14  ;;  %v3085_v56 = vcvt.s32.f32 %v2810_v30 }
 0x2ec   : > { %7794 = vmatmul.msk.f32.vlgmr.msrb.gmra.mxu0 %vm3089_vm9, %v9980_v40  ;;  %7797 = vmatmul.msk.f32.vlgmr.msrb.gmra.mxu3 %vm3089_vm9, %v9980_v40  ;;  %v2841_v58 = vcvt.s32.f32 %v2566_v8  ;;  %v2690_v26 = vunpack.c.0.s8 %v10214_v41  ;;  %v10236_v8 = vld [vmem:[%s12955_s3 + $0x1de] sm:$0x3f] }
 0x2ed   : > { %3367 = vmatpush.msra.mxu0 %v2896_v37  ;;  %3397 = vmatpush.msrb.mxu2 %v2995_v6  ;;  %v10182_v37 = vld [vmem:[%s12955_s3 + $0x15a] sm:$0x3f]  ;;  %v2942_v6 = vcvt.s32.f32 %v2667_v3  ;;  %v2931_v14 = vcvt.s32.f32 %v2656_v48  ;;  %v2788_v3 = vunpack.c.3.s8 %v9963_v4  ;;  %v2898_v4 = vcvt.s32.f32 %v2623_v1 }
 0x2ee   : > { %3413 = vmatpush.msra.mxu3 %v2897_v23  ;;  %3437 = vmatpush.msrb.mxu1 %v3062_v13  ;;  %v10189_v23 = vld [vmem:[%s12955_s3 + $0x220] sm:$0x15]  ;;  %v2842_v13 = vcvt.s32.f32 %v2567_v5  ;;  %v2965_v31 = vcvt.s32.f32 %v2690_v26  ;;  %v2744_v1 = vunpack.c.3.s8 %v10021_v12 }
 0x2ef   : > { %3451 = vmatpush.msra.mxu2 %v2986_v9  ;;  %3368 = vmatpush.msra.mxu0 %v2885_v16  ;;  %v2830_v9 = vcvt.s32.f32 %v2555_v49  ;;  %v2712_v16 = vunpack.c.0.s8 %v10182_v37  ;;  %v2601_v49 = vunpack.c.3.s8 %v10066_v29 }
 0x2f0   : > { %3414 = vmatpush.msra.mxu3 %v2886_v35  ;;  %3438 = vmatpush.msrb.mxu1 %v3051_v27  ;;  %v10202_v35 = vld [vmem:[%s12955_s3 + $0x144] sm:$0x3f]  ;;  %v2831_v27 = vcvt.s32.f32 %v2556_v47 }
 0x2f1   : > { %3452 = vmatpush.msra.mxu2 %v2975_v19  ;;  %3369 = vmatpush.msra.mxu0 %v2874_v21  ;;  %v2811_v19 = vunpack.c.0.s8 %v10189_v23  ;;  %v2920_v21 = vcvt.s32.f32 %v2645_v60  ;;  %v2701_v15 = vunpack.c.0.s8 %v10202_v35  ;;  %v2590_v60 = vunpack.c.3.s8 %v10074_v11  ;;  %v10273_v11 = vld [vmem:[%s12955_s3 + $0x1b2] sm:$0x3f] }
 0x2f2   : > { %3415 = vmatpush.msra.mxu3 %v2875_v25  ;;  %3439 = vmatpush.msrb.mxu1 %v3040_v43  ;;  %v2820_v25 = vcvt.s32.f32 %v2545_v62  ;;  %v2987_v43 = vcvt.s32.f32 %v2712_v16  ;;  %v2766_v62 = vunpack.c.3.s8 %v9990_v55  ;;  %v2657_v55 = vunpack.c.0.s8 %v10265_v59 }
 0x2f3   : > { %3453 = vmatpush.msra.mxu2 %v2964_v28  ;;  %3332 = vmatmul.f32.gmra.mxu1 %v10124_v54  ;;  %v2909_v28 = vcvt.s32.f32 %v2634_v18  ;;  %v2976_v5 = vcvt.s32.f32 %v2701_v15  ;;  %v10278_v18 = vld [vmem:[%s12955_s3 + $0xd6] sm:$0x3f]  ;;  %v2865_v30 = vcvt.s32.f32 %v2590_v60 }
 0x2f4   : > { %3370 = vmatpush.msra.mxu0 %v2863_v52  ;;  %3416 = vmatpush.msra.mxu3 %v2864_v2  ;;  %v2799_v52 = vunpack.c.3.s8 %v9949_v10  ;;  %v10222_v2 = vld [vmem:[%s12955_s3 + $0x1f4] sm:$0x3f]  ;;  %v2612_v10 = vunpack.c.3.s8 %v10059_v22  ;;  %v10245_v22 = vld [vmem:[%s12955_s3 + $0x102] sm:$0x3f]  ;;  %v3041_v15 = vcvt.s32.f32 %v2766_v62 }
 0x2f5   : > { %3440 = vmatpush.msrb.mxu1 %v3029_v17  ;;  %3454 = vmatpush.msra.mxu2 %v2953_v34  ;;  %v3086_v17 = vcvt.s32.f32 %v2811_v19  ;;  %v2800_v34 = vunpack.c.0.s8 %v10209_v20  ;;  %v2789_v53 = vunpack.c.0.s8 %v10222_v2  ;;  %v2579_v19 = vunpack.c.3.s8 %v10084_v57 }
 0x2f6   : > { %3286 = vmatmul.f32.gmra.mxu2 %v10124_v54  ;;  %7795 = vmatmul.msk.f32.gmra.mxu0 %vm3089_vm9, %v10038_v38  ;;  %v3074_v48 = vcvt.s32.f32 %v2799_v52  ;;  %v2887_v29 = vcvt.s32.f32 %v2612_v10  ;;  %v2646_v57 = vunpack.c.0.s8 %v10278_v18  ;;  %v10300_v52 = vld [vmem:[%s12955_s3 + $0x186] sm:$0x3f]  ;;  %v2557_v10 = vunpack.c.3.s8 %v10111_v45 }
 0x2f7   : > { %7798 = vmatmul.msk.f32.gmra.mxu3 %vm3089_vm9, %v10038_v38  ;;  %3371 = vmatpush.msra.mxu0 %v2852_v46  ;;  %v2679_v46 = vunpack.c.0.s8 %v10227_v36  ;;  %v3075_v47 = vcvt.s32.f32 %v2800_v34  ;;  %v2854_v12 = vcvt.s32.f32 %v2579_v19  ;;  %v3019_v45 = vcvt.s32.f32 %v2744_v1 }
 0x2f8   : > { %3417 = vmatpush.msra.mxu3 %v2853_v51  ;;  %3441 = vmatpush.msrb.mxu1 %v3018_v32  ;;  %v2777_v51 = vunpack.c.3.s8 %v9976_v50  ;;  %v10252_v32 = vld [vmem:[%s12955_s3 + $0x1c8] sm:$0x3f]  ;;  %v3063_v50 = vcvt.s32.f32 %v2788_v3  ;;  %v2733_v3 = vunpack.c.3.s8 %v10034_v33 }
 0x2f9   : > { %3455 = vmatpush.msra.mxu2 %v2942_v6  ;;  %3372 = vmatpush.msra.mxu0 %v2841_v58  ;;  %v2778_v6 = vunpack.c.0.s8 %v10236_v8  ;;  %v2668_v58 = vunpack.c.0.s8 %v10245_v22 }
 0x2fa   : > { %3418 = vmatpush.msra.mxu3 %v2842_v13  ;;  %3442 = vmatpush.msrb.mxu1 %v3007_v63  ;;  %v3064_v13 = vcvt.s32.f32 %v2789_v53  ;;  %v2954_v63 = vcvt.s32.f32 %v2679_v46  ;;  %v3052_v16 = vcvt.s32.f32 %v2777_v51  ;;  %v2921_v46 = vcvt.s32.f32 %v2646_v57 }
 0x2fb   : > { %3456 = vmatpush.msra.mxu2 %v2931_v14  ;;  %3373 = vmatpush.msra.mxu0 %v2830_v9  ;;  %v2767_v14 = vunpack.c.0.s8 %v10252_v32  ;;  %v2876_v9 = vcvt.s32.f32 %v2601_v49  ;;  %v10323_v49 = vld [vmem:[%s12955_s3 + $0x94] sm:$0x3f]  ;;  %v2546_v51 = vunpack.c.3.s8 %v10120_v42  ;;  %v2691_v57 = vunpack.c.1.s8 %v10214_v41 }
 0x2fc   : > { %3419 = vmatpush.msra.mxu3 %v2831_v27  ;;  %3443 = vmatpush.msrb.mxu1 %v2996_v44  ;;  %v3053_v27 = vcvt.s32.f32 %v2778_v6  ;;  %v2943_v44 = vcvt.s32.f32 %v2668_v58  ;;  %v3008_v58 = vcvt.s32.f32 %v2733_v3  ;;  %v2613_v60 = vunpack.c.0.s8 %v10323_v49 }
 0x2fd   : > { %3457 = vmatpush.msra.mxu2 %v2920_v21  ;;  %3374 = vmatpush.msra.mxu0 %v2819_v0  ;;  %v2755_v21 = vunpack.c.3.s8 %v10006_v39  ;;  %v10286_v0 = vld [vmem:[%s12955_s3 + $0x19c] sm:$0x3f]  ;;  %v2568_v39 = vunpack.c.3.s8 %v10102_v24  ;;  %v2821_v62 = vcvt.s32.f32 %v2546_v51 }
 0x2fe   : > { %3420 = vmatpush.msra.mxu3 %v2820_v25  ;;  %7803 = vmatmul.msk.f32.vlgmr.msrb.gmra.mxu1 %vm3089_vm9, %v9980_v40  ;;  %v10291_v25 = vld [vmem:[%s12955_s3 + $0xc0] sm:$0x3f]  ;;  %v2745_v34 = vunpack.c.0.s8 %v10286_v0  ;;  %v2888_v19 = vcvt.s32.f32 %v2613_v60 }
 0x2ff   : > { %3497 = vmatpush.msra.mxu1 %v2987_v43  ;;  %3458 = vmatpush.msra.mxu2 %v2909_v28  ;;  %v3042_v43 = vcvt.s32.f32 %v2767_v14  ;;  %v2756_v28 = vunpack.c.0.s8 %v10273_v11  ;;  %v2635_v24 = vunpack.c.0.s8 %v10291_v25  ;;  %v3030_v26 = vcvt.s32.f32 %v2755_v21 }
 0x300   : > { %7805 = vmatpush.msk.msrb.mxu0 %vm2381_vm5, %v3085_v56  ;;  %7808 = vmatpush.msk.msrb.mxu3 %vm2381_vm5, %v3086_v17  ;;  %v10305_v56 = vld [vmem:[%s12955_s3 + $0xaa] sm:$0x3f]  ;;  %v2932_v17 = vcvt.s32.f32 %v2657_v55  ;;  %v2843_v33 = vcvt.s32.f32 %v2568_v39  ;;  %v2801_v21 = vunpack.c.1.s8 %v10209_v20 }
 0x301   : > { %3375 = vmatmul.f32.vlgmr.msra.gmra.mxu0 %v10088_v61  ;;  %7800 = vmatmul.msk.f32.vlgmr.msrb.gmra.mxu2 %vm3089_vm9, %v9980_v40  ;;  %v3031_v53 = vcvt.s32.f32 %v2756_v28  ;;  %v2910_v6 = vcvt.s32.f32 %v2635_v24 }
 0x302   : > { %3421 = vmatmul.f32.vlgmr.msra.gmra.mxu3 %v10088_v61  ;;  %3498 = vmatpush.msra.mxu1 %v2976_v5  ;;  %v10316_v5 = vld [vmem:[%s12955_s3 + $0x170] sm:$0x3f]  ;;  %v3076_v3 = vcvt.s32.f32 %v2801_v21 }
 0x303   : > { %3459 = vmatpush.msra.mxu2 %v2898_v4  ;;  %3482 = vmatpush.msrb.mxu0 %v3074_v48  ;;  %v2734_v4 = vunpack.c.0.s8 %v10300_v52  ;;  %v2624_v48 = vunpack.c.0.s8 %v10305_v56 }
 0x304   : > { %3528 = vmatpush.msrb.mxu3 %v3075_v47  ;;  %3499 = vmatpush.msra.mxu1 %v2965_v31  ;;  %v2722_v47 = vunpack.c.3.s8 %v10048_v7  ;;  %v3020_v31 = vcvt.s32.f32 %v2745_v34 }
 0x305   : > { %3460 = vmatpush.msra.mxu2 %v2887_v29  ;;  %3483 = vmatpush.msrb.mxu0 %v3063_v50  ;;  %v2723_v29 = vunpack.c.0.s8 %v10316_v5  ;;  %v2832_v50 = vcvt.s32.f32 %v2557_v10  ;;  %v3009_v7 = vcvt.s32.f32 %v2734_v4  ;;  %v2899_v42 = vcvt.s32.f32 %v2624_v48  ;;  %v10365_v10 = vld [vmem:[%s12955_s3 + $0x3c] sm:$0x3f] }
 0x306   : > { %3529 = vmatpush.msrb.mxu3 %v3064_v13  ;;  %3500 = vmatpush.msra.mxu1 %v2954_v63  ;;  %v10336_v13 = vld [vmem:[%s12955_s3 + $0x7e] sm:$0x3f]  ;;  %v2713_v63 = vunpack.c.1.s8 %v10182_v37  ;;  %v2997_v14 = vcvt.s32.f32 %v2722_v47  ;;  %v2966_v48 = vcvt.s32.f32 %v2691_v57  ;;  %v2569_v47 = vunpack.c.0.s8 %v10365_v10 }
 0x307   : > { %3461 = vmatpush.msra.mxu2 %v2876_v9  ;;  %3484 = vmatpush.msrb.mxu0 %v3052_v16  ;;  %v2812_v9 = vunpack.c.1.s8 %v10189_v23  ;;  %v2714_v16 = vunpack.c.2.s8 %v10182_v37  ;;  %v2998_v55 = vcvt.s32.f32 %v2723_v29  ;;  %v10353_v37 = vld [vmem:[%s12955_s3 + $0x52] sm:$0x3f]  ;;  %v2768_v29 = vunpack.c.1.s8 %v10252_v32 }
 0x308   : > { %3530 = vmatpush.msrb.mxu3 %v3053_v27  ;;  %7804 = vmatmul.msk.f32.gmra.mxu1 %vm3089_vm9, %v10038_v38  ;;  %v10344_v27 = vld [vmem:[%s12955_s3 + $0x68] sm:$0x3f]  ;;  %v2636_v57 = vunpack.c.1.s8 %v10291_v25 }
 0x309   : > { %3501 = vmatpush.msra.mxu1 %v2943_v44  ;;  %3462 = vmatpush.msra.mxu2 %v2865_v30  ;;  %v2602_v44 = vunpack.c.0.s8 %v10336_v13  ;;  %v2702_v30 = vunpack.c.1.s8 %v10202_v35  ;;  %v2591_v28 = vunpack.c.0.s8 %v10344_v27  ;;  %v3087_v39 = vcvt.s32.f32 %v2812_v9 }
 0x30a   : > { %3485 = vmatpush.msrb.mxu0 %v3041_v15  ;;  %3531 = vmatpush.msrb.mxu3 %v3042_v43  ;;  %v2703_v15 = vunpack.c.2.s8 %v10202_v35  ;;  %v2988_v43 = vcvt.s32.f32 %v2713_v63  ;;  %v2989_v1 = vcvt.s32.f32 %v2714_v16  ;;  %v2692_v35 = vunpack.c.2.s8 %v10214_v41 }
 0x30b   : > { %3378 = vmatmul.f32.gmra.mxu0 %v10124_v54  ;;  %7801 = vmatmul.msk.f32.gmra.mxu2 %vm3089_vm9, %v10038_v38  ;;  %v2877_v34 = vcvt.s32.f32 %v2602_v44  ;;  %v2977_v24 = vcvt.s32.f32 %v2702_v30  ;;  %v2866_v4 = vcvt.s32.f32 %v2591_v28  ;;  %v2658_v63 = vunpack.c.1.s8 %v10265_v59 }
 0x30c   : > { %3424 = vmatmul.f32.gmra.mxu3 %v10124_v54  ;;  %3502 = vmatpush.msra.mxu1 %v2932_v17  ;;  %v2790_v17 = vunpack.c.1.s8 %v10222_v2  ;;  %v2978_v41 = vcvt.s32.f32 %v2703_v15  ;;  %v2967_v51 = vcvt.s32.f32 %v2692_v35  ;;  %v2659_v9 = vunpack.c.2.s8 %v10265_v59 }
 0x30d   : > { %3463 = vmatpush.msra.mxu2 %v2854_v12  ;;  %3486 = vmatpush.msrb.mxu0 %v3030_v26  ;;  %v2580_v12 = vunpack.c.0.s8 %v10353_v37  ;;  %v2680_v26 = vunpack.c.1.s8 %v10227_v36  ;;  %v3043_v44 = vcvt.s32.f32 %v2768_v29  ;;  %v2746_v30 = vunpack.c.1.s8 %v10286_v0 }
 0x30e   : > { %3532 = vmatpush.msrb.mxu3 %v3031_v53  ;;  %3503 = vmatpush.msra.mxu1 %v2921_v46  ;;  %v2779_v53 = vunpack.c.1.s8 %v10236_v8  ;;  %v2681_v46 = vunpack.c.2.s8 %v10227_v36  ;;  %v2648_v15 = vunpack.c.2.s8 %v10278_v18  ;;  %v2933_v59 = vcvt.s32.f32 %v2658_v63 }
 0x30f   : > { %3464 = vmatpush.msra.mxu2 %v2843_v33  ;;  %3487 = vmatpush.msrb.mxu0 %v3019_v45  ;;  %v10376_v33 = vld [vmem:[%s12955_s3 + $0x26] sm:$0x3f]  ;;  %v3065_v45 = vcvt.s32.f32 %v2790_v17  ;;  %v2855_v36 = vcvt.s32.f32 %v2580_v12  ;;  %v2813_v28 = vunpack.c.2.s8 %v10189_v23  ;;  %v2735_v17 = vunpack.c.1.s8 %v10300_v52 }
 0x310   : > { %3533 = vmatpush.msrb.mxu3 %v3020_v31  ;;  %3504 = vmatpush.msra.mxu1 %v2910_v6  ;;  %v2955_v31 = vcvt.s32.f32 %v2680_v26  ;;  %v2669_v6 = vunpack.c.1.s8 %v10245_v22  ;;  %v2956_v60 = vcvt.s32.f32 %v2681_v46  ;;  %v2625_v23 = vunpack.c.1.s8 %v10305_v56 }
 0x311   : > { %3465 = vmatpush.msra.mxu2 %v2832_v50  ;;  %3488 = vmatpush.msrb.mxu0 %v3008_v58  ;;  %v10385_v50 = vld [vmem:[%s12955_s3 + $0x10] sm:$0x3f]  ;;  %v3054_v58 = vcvt.s32.f32 %v2779_v53  ;;  %v2923_v12 = vcvt.s32.f32 %v2648_v15  ;;  %v2724_v26 = vunpack.c.1.s8 %v10316_v5  ;;  %v2911_v53 = vcvt.s32.f32 %v2636_v57 }
 0x312   : > { %3534 = vmatpush.msrb.mxu3 %v3009_v7  ;;  %3505 = vmatpush.msra.mxu1 %v2899_v42  ;;  %v2670_v7 = vunpack.c.2.s8 %v10245_v22  ;;  %v2558_v42 = vunpack.c.0.s8 %v10376_v33  ;;  %v2547_v16 = vunpack.c.0.s8 %v10385_v50  ;;  %v2647_v22 = vunpack.c.1.s8 %v10278_v18 }
 0x313   : > { %3466 = vmatpush.msra.mxu2 %v2821_v62  ;;  %3489 = vmatpush.msrb.mxu0 %v2997_v14  ;;  %v2757_v62 = vunpack.c.1.s8 %v10273_v11  ;;  %v2844_v14 = vcvt.s32.f32 %v2569_v47  ;;  %v2637_v18 = vunpack.c.2.s8 %v10291_v25  ;;  %v2791_v25 = vunpack.c.2.s8 %v10222_v2 }
 0x314   : > { %3535 = vmatpush.msrb.mxu3 %v2998_v55  ;;  %3467 = vmatmul.f32.vlgmr.msra.gmra.mxu2 %v10088_v61  ;;  %v2944_v55 = vcvt.s32.f32 %v2669_v6  ;;  %v2833_v21 = vcvt.s32.f32 %v2558_v42  ;;  %v2922_v35 = vcvt.s32.f32 %v2647_v22  ;;  %v3010_v46 = vcvt.s32.f32 %v2735_v17 }
 0x315   : > { %7806 = vmatmul.msk.f32.vlgmr.msrb.gmra.mxu0 %vm3089_vm9, %v9980_v40  ;;  %3506 = vmatpush.msra.mxu1 %v2888_v19  ;;  %v2945_v19 = vcvt.s32.f32 %v2670_v7  ;;  %v2999_v47 = vcvt.s32.f32 %v2724_v26  ;;  %v2603_v2 = vunpack.c.1.s8 %v10336_v13  ;;  %v3066_v6 = vcvt.s32.f32 %v2791_v25 }
 0x316   : > { %7809 = vmatmul.msk.f32.vlgmr.msrb.gmra.mxu3 %vm3089_vm9, %v9980_v40  ;;  %3543 = vmatpush.msra.mxu0 %v2988_v43  ;;  %v3032_v43 = vcvt.s32.f32 %v2757_v62  ;;  %v2593_v7 = vunpack.c.2.s8 %v10344_v27  ;;  %v2758_v63 = vunpack.c.2.s8 %v10273_v11  ;;  %v2581_v62 = vunpack.c.1.s8 %v10353_v37 }
 0x317   : > { %7811 = vmatpush.msk.msrb.mxu2 %vm2381_vm5, %v3087_v39  ;;  %3589 = vmatpush.msra.mxu3 %v2989_v1  ;;  %v2934_v39 = vcvt.s32.f32 %v2659_v9  ;;  %v2822_v1 = vcvt.s32.f32 %v2547_v16  ;;  %v2570_v16 = vunpack.c.1.s8 %v10365_v10  ;;  %v2571_v11 = vunpack.c.2.s8 %v10365_v10 }
 0x318   : > { %3507 = vmatpush.msra.mxu1 %v2877_v34  ;;  %3544 = vmatpush.msra.mxu0 %v2977_v24  ;;  %v3021_v34 = vcvt.s32.f32 %v2746_v30  ;;  %v2802_v24 = vunpack.c.2.s8 %v10209_v20  ;;  %v2614_v20 = vunpack.c.1.s8 %v10323_v49  ;;  %v2856_v22 = vcvt.s32.f32 %v2581_v62 }
 0x319   : > { %3574 = vmatpush.msrb.mxu2 %v3076_v3  ;;  %3590 = vmatpush.msra.mxu3 %v2978_v41  ;;  %v2626_v3 = vunpack.c.2.s8 %v10305_v56  ;;  %v3088_v41 = vcvt.s32.f32 %v2813_v28  ;;  %v2780_v56 = vunpack.c.2.s8 %v10236_v8  ;;  %v2592_v8 = vunpack.c.1.s8 %v10344_v27 }
 0x31a   : > { %3508 = vmatpush.msra.mxu1 %v2866_v4  ;;  %3545 = vmatpush.msra.mxu0 %v2966_v48  ;;  %v2912_v4 = vcvt.s32.f32 %v2637_v18  ;;  %v2615_v48 = vunpack.c.2.s8 %v10323_v49  ;;  %v2889_v49 = vcvt.s32.f32 %v2614_v20  ;;  %v2747_v27 = vunpack.c.2.s8 %v10286_v0 }
 0x31b   : > { %3575 = vmatpush.msrb.mxu2 %v3065_v45  ;;  %3591 = vmatpush.msra.mxu3 %v2967_v51  ;;  %v3077_v45 = vcvt.s32.f32 %v2802_v24  ;;  %v2900_v51 = vcvt.s32.f32 %v2625_v23  ;;  %v2867_v9 = vcvt.s32.f32 %v2592_v8  ;;  %v2736_v30 = vunpack.c.2.s8 %v10300_v52 }
 0x31c   : > { %3509 = vmatpush.msra.mxu1 %v2855_v36  ;;  %3546 = vmatpush.msra.mxu0 %v2955_v31  ;;  %v2901_v36 = vcvt.s32.f32 %v2626_v3  ;;  %v2604_v31 = vunpack.c.2.s8 %v10336_v13  ;;  %v2890_v29 = vcvt.s32.f32 %v2615_v48  ;;  %v2878_v13 = vcvt.s32.f32 %v2603_v2 }
 0x31d   : > { %3576 = vmatpush.msrb.mxu2 %v3054_v58  ;;  %3592 = vmatpush.msra.mxu3 %v2956_v60  ;;  %v2769_v58 = vunpack.c.2.s8 %v10252_v32  ;;  %v3055_v60 = vcvt.s32.f32 %v2780_v56  ;;  %v2582_v32 = vunpack.c.2.s8 %v10353_v37  ;;  %v2559_v37 = vunpack.c.1.s8 %v10376_v33 }
 0x31e   : > { %3470 = vmatmul.f32.gmra.mxu2 %v10124_v54  ;;  %7807 = vmatmul.msk.f32.gmra.mxu0 %vm3089_vm9, %v10038_v38  ;;  %v2879_v42 = vcvt.s32.f32 %v2604_v31  ;;  %v3022_v0 = vcvt.s32.f32 %v2747_v27  ;;  %v2845_v15 = vcvt.s32.f32 %v2570_v16  ;;  %v2548_v10 = vunpack.c.1.s8 %v10385_v50 }
 0x31f   : > { %3510 = vmatpush.msra.mxu1 %v2844_v14  ;;  %7810 = vmatmul.msk.f32.gmra.mxu3 %vm3089_vm9, %v10038_v38  ;;  %v3044_v14 = vcvt.s32.f32 %v2769_v58  ;;  %v2549_v28 = vunpack.c.2.s8 %v10385_v50  ;;  %v3011_v52 = vcvt.s32.f32 %v2736_v30  ;;  %v2834_v57 = vcvt.s32.f32 %v2559_v37 }
 0x320   : > { %3547 = vmatpush.msra.mxu0 %v2944_v55  ;;  %3577 = vmatpush.msrb.mxu2 %v3043_v44  ;;  %v2868_v55 = vcvt.s32.f32 %v2593_v7  ;;  %v3033_v44 = vcvt.s32.f32 %v2758_v63 }
 0x321   : > { %3593 = vmatpush.msra.mxu3 %v2945_v19  ;;  %3511 = vmatpush.msra.mxu1 %v2833_v21  ;;  %v2857_v19 = vcvt.s32.f32 %v2582_v32  ;;  %v2560_v21 = vunpack.c.2.s8 %v10376_v33 }
 0x322   : > { %3548 = vmatpush.msra.mxu0 %v2933_v59  ;;  %3578 = vmatpush.msrb.mxu2 %v3032_v43  ;;  %v2725_v59 = vunpack.c.2.s8 %v10316_v5  ;;  %v2846_v43 = vcvt.s32.f32 %v2571_v11  ;;  %v2824_v5 = vcvt.s32.f32 %v2549_v28 }
 0x323   : > { %3594 = vmatpush.msra.mxu3 %v2934_v39  ;;  %3512 = vmatpush.msra.mxu1 %v2822_v1  ;;  %v2835_v33 = vcvt.s32.f32 %v2560_v21  ;;  %v2823_v1 = vcvt.s32.f32 %v2548_v10 }
 0x324   : > { %3549 = vmatpush.msra.mxu0 %v2922_v35  ;;  %3579 = vmatpush.msrb.mxu2 %v3021_v34  ;;  %v3000_v39 = vcvt.s32.f32 %v2725_v59 }
 0x325   : > { %3595 = vmatpush.msra.mxu3 %v2923_v12  ;;  %3513 = vmatmul.f32.vlgmr.msra.gmra.mxu1 %v10088_v61 }
 0x326   : > { %7814 = vmatpush.msk.msrb.mxu1 %vm2381_vm5, %v3088_v41  ;;  %3550 = vmatpush.msra.mxu0 %v2911_v53 }
 0x327   : > { %3580 = vmatpush.msrb.mxu2 %v3010_v46  ;;  %3596 = vmatpush.msra.mxu3 %v2912_v4 }
 0x328   : > { %3620 = vmatpush.msrb.mxu1 %v3077_v45  ;;  %3551 = vmatpush.msra.mxu0 %v2900_v51 }
 0x329   : > { %3581 = vmatpush.msrb.mxu2 %v2999_v47  ;;  %3597 = vmatpush.msra.mxu3 %v2901_v36 }
 0x32a   : > { %7812 = vmatmul.msk.f32.vlgmr.msrb.gmra.mxu2 %vm3089_vm9, %v9980_v40  ;;  %3621 = vmatpush.msrb.mxu1 %v3066_v6 }
 0x32b   : > { %3552 = vmatpush.msra.mxu0 %v2889_v49  ;;  %3598 = vmatpush.msra.mxu3 %v2890_v29 }
 0x32c   : > { %3622 = vmatpush.msrb.mxu1 %v3055_v60 }
 0x32d   : > { %3553 = vmatpush.msra.mxu0 %v2878_v13  ;;  %3599 = vmatpush.msra.mxu3 %v2879_v42 }
 0x32e   : > { %3516 = vmatmul.f32.gmra.mxu1 %v10124_v54 }
 0x32f   : > { %3623 = vmatpush.msrb.mxu1 %v3044_v14  ;;  %3554 = vmatpush.msra.mxu0 %v2867_v9 }
 0x330   : > { %3600 = vmatpush.msra.mxu3 %v2868_v55 }
 0x331   : > { %3624 = vmatpush.msrb.mxu1 %v3033_v44  ;;  %3555 = vmatpush.msra.mxu0 %v2856_v22 }
 0x332   : > { %3601 = vmatpush.msra.mxu3 %v2857_v19  ;;  %7813 = vmatmul.msk.f32.gmra.mxu2 %vm3089_vm9, %v10038_v38 }
 0x333   : > { %3625 = vmatpush.msrb.mxu1 %v3022_v0  ;;  %3556 = vmatpush.msra.mxu0 %v2845_v15 }
 0x334   : > { %3602 = vmatpush.msra.mxu3 %v2846_v43 }
 0x335   : > { %3626 = vmatpush.msrb.mxu1 %v3011_v52  ;;  %3557 = vmatpush.msra.mxu0 %v2834_v57 }
 0x336   : > { %3603 = vmatpush.msra.mxu3 %v2835_v33 }
 0x337   : > { %3627 = vmatpush.msrb.mxu1 %v3000_v39  ;;  %3558 = vmatpush.msra.mxu0 %v2823_v1 }
 0x338   : > { %3604 = vmatpush.msra.mxu3 %v2824_v5  ;;  %7815 = vmatmul.msk.f32.vlgmr.msrb.gmra.mxu1 %vm3089_vm9, %v9980_v40 }
 0x339   : > { %3559 = vmatmul.f32.vlgmr.msra.gmra.mxu0 %v10088_v61  ;;  %3605 = vmatmul.f32.vlgmr.msra.gmra.mxu3 %v10088_v61 }
 0x340   : > { %7816 = vmatmul.msk.f32.gmra.mxu1 %vm3089_vm9, %v10038_v38 }
 0x341   : > { %3562 = vmatmul.f32.gmra.mxu0 %v10124_v54  ;;  %3608 = vmatmul.f32.gmra.mxu3 %v10124_v54 }
 0x342   : > { %v10447_v17 = vpop.f32.mrf.mxu1 }
 0x348   : > { %v10445_v50 = vpop.f32.mrf.mxu3 }
 0x34a   : > { %v10455_v34 = vpop.f32.mrf.mxu1 }
 0x350   : > { %v10449_v18 = vpop.f32.mrf.mxu3 }
 0x352   : > { %v10463_v23 = vpop.f32.mrf.mxu1 }
 0x354   : > { %v10451_v35 = vpop.f32.mrf.mxu0 }
 0x35a   : > { %v10453_v40 = vpop.f32.mrf.mxu2 }
 0x35b   : > { %v10457_v61 = vpop.f32.mrf.mxu3  ;;  %v10467_v3 = vpop.f32.mrf.mxu1 }
 0x35e   : > { %v10459_v24 = vpop.f32.mrf.mxu0 }
 0x364   : > { %v10461_v38 = vpop.f32.mrf.mxu2 }
 0x365   : > { %v10465_v54 = vpop.f32.mrf.mxu3 }
 0x366   : > { %v3330_v46 = vpop.f32.mrf.mxu1 }
 0x369   : > { %v3307_v12 = vpop.f32.mrf.mxu0 }
 0x36e   : > { %v3284_v26 = vpop.f32.mrf.mxu2 }
 0x36f   : > { %v3353_v41 = vpop.f32.mrf.mxu3  ;;  %v3308_v11 = vadd.f32 %v3307_v12, %v3284_v26 }
 0x370   : > { %v3333_v45 = vpop.f32.mrf.mxu1  ;;  %v3354_v21 = vadd.f32 %v3353_v41, %v3330_v46 }
 0x371   : > { %v3677_v28 = vrot.slane %v3308_v11, 4 }
 0x372   : > { %v3678_v33 = vrot.slane %v3354_v21, 4 }
 0x373   : > { %v3310_v53 = vpop.f32.mrf.mxu0 }
 0x379   : > { %v3287_v25 = vpop.f32.mrf.mxu2 }
 0x37a   : > { %v3356_v4 = vpop.f32.mrf.mxu3  ;;  %v10471_v27 = vadd.f32 %v3310_v53, %v3287_v25 }
 0x37b   : > { %v3357_v36 = vadd.f32 %v3356_v4, %v3333_v45  ;;  %v3445_v31 = vpop.f32.mrf.mxu1 }
 0x37c   : > { %v3679_v0 = vrot.slane %v10471_v27, 4 }
 0x37d   : > { %v3681_v43 = vrot.slane %v3357_v36, 4 }
 0x37e   : > { %v3376_v20 = vpop.f32.mrf.mxu0  ;;  %v3680_v5 = vsel %vm2381_vm5, %v3677_v28, %v3679_v0 }
 0x37f   : > { %v3682_v53 = vsel %vm2381_vm5, %v3678_v33, %v3681_v43  ;;  %v3890_v43 = vld [vmem:[%s12902_s10 + $0x70] sm:$0xff] }
 0x380   : > { %v8069_v46 = vpack.i.bf16 %v3682_v53, %v3680_v5 }
 0x384   : > { %v3399_v48 = vpop.f32.mrf.mxu2 }
 0x385   : > { %v3422_v51 = vpop.f32.mrf.mxu3  ;;  %v3448_v7 = vpop.f32.mrf.mxu1  ;;  %v3400_v16 = vadd.f32 %v3399_v48, %v3376_v20 }
 0x386   : > { %v3446_v8 = vadd.f32 %v3445_v31, %v3422_v51 }
 0x387   : > { %v3717_v15 = vrot.slane %v3400_v16, 4  ;;  %v8064_v45 = vpack.i.bf16 %v3400_v16, %v3354_v21 }
 0x388   : > { %v3379_v56 = vpop.f32.mrf.mxu0  ;;  %v3718_v59 = vrot.slane %v3446_v8, 4 }
 0x38e   : > { %v3402_v47 = vpop.f32.mrf.mxu2 }
 0x38f   : > { %v3403_v2 = vadd.f32 %v3402_v47, %v3379_v56  ;;  %v3425_v49 = vpop.f32.mrf.mxu3  ;;  %v3262_v56 = vadd.f32 %v10463_v23, %v10457_v61 }
 0x390   : > { %v3449_v63 = vadd.f32 %v3448_v7, %v3425_v49  ;;  %v8079_v49 = vpack.i.bf16 %v3678_v33, %v3677_v28 }
 0x391   : > { %v8029_v6 = vpack.i.bf16 %v3403_v2, %v3357_v36  ;;  %v3719_v22 = vrot.slane %v3403_v2, 4  ;;  %v8084_v36 = vpack.i.bf16 %v3308_v11, %v3262_v56  ;;  %v8059_v2 = vpack.i.bf16 %v3718_v59, %v3717_v15 }
 0x392   : > { %v3491_v29 = vpop.f32.mrf.mxu0  ;;  %v3721_v30 = vrot.slane %v3449_v63, 4  ;;  %v3640_v7 = vrot.slane %v3262_v56, 4 }
 0x393   : > { %8030 = vrot.lane.b32.xlu2 %v8029_v6, %s8363_s18  ;;  %v3720_v52 = vsel %vm2381_vm5, %v3717_v15, %v3719_v22 }
 0x394   : > { %v3722_v57 = vsel %vm2381_vm5, %v3718_v59, %v3721_v30 }
 0x395   : > { %v8044_v41 = vpack.i.bf16 %v3722_v57, %v3720_v52 }
 0x397   : > { %v3468_v58 = vpop.f32.mrf.mxu2 }
 0x398   : > { %v3492_v60 = vadd.f32 %v3491_v29, %v3468_v58  ;;  %v10492_v29 = vadd.f32 %v10447_v17, %v10451_v35  ;;  %v3265_v58 = vadd.f32 %v10467_v3, %v10465_v54 }
 0x399   : > { %v3537_v42 = vpop.f32.mrf.mxu3 }
 0x39a   : > { %v8034_v13 = vpack.i.bf16 %v3492_v60, %v3446_v8  ;;  %v3757_v37 = vrot.slane %v3492_v60, 4  ;;  %v3787_v8 = vld [vmem:[%s12901_s9] sm:$0xf]  ;;  %v8074_v17 = vpack.i.bf16 %v10471_v27, %v3265_v58  ;;  %v3639_v54 = vrot.slane %v10492_v29, 4 }
 0x39b   : > { %v3494_v62 = vpop.f32.mrf.mxu0  ;;  %v3643_v3 = vrot.slane %v3265_v58, 4 }
 0x39c   : > { %8035 = vrot.lane.b32.xlu0 %v8034_v13, %s8364_s27  ;;  %v10502_v13 = vadd.f32 %v10455_v34, %v10459_v24 }
 0x39d   : > { %v3644_v34 = vsel %vm2381_vm5, %v3640_v7, %v3643_v3 }
 0x3a1   : > { %v3471_v32 = vpop.f32.mrf.mxu2 }
 0x3a2   : > { %v3514_v14 = vpop.f32.mrf.mxu1  ;;  %v3495_v9 = vadd.f32 %v3494_v62, %v3471_v32  ;;  %v3540_v39 = vpop.f32.mrf.mxu3  ;;  %v8094_v32 = vpack.i.bf16 %v3640_v7, %v3639_v54 }
 0x3a3   : > { %v3538_v55 = vadd.f32 %v3537_v42, %v3514_v14  ;;  %v3641_v42 = vrot.slane %v10502_v13, 4 }
 0x3a4   : > { %v8039_v44 = vpack.i.bf16 %v3495_v9, %v3449_v63  ;;  %v3759_v12 = vrot.slane %v3495_v9, 4 }
 0x3a5   : > { %v3758_v19 = vrot.slane %v3538_v55, 4  ;;  %v3642_v9 = vsel %vm2381_vm5, %v3639_v54, %v3641_v42 }
 0x3a6   : > { %8040 = vrot.lane.b32.xlu1 %v8039_v44, %s8364_s27  ;;  %v3760_v4 = vsel %vm2381_vm5, %v3757_v37, %v3759_v12  ;;  %v8089_v27 = vpack.i.bf16 %v3644_v34, %v3642_v9  ;;  %v3882_v9 = vld [vmem:[%s12902_s10 + $0x30] sm:$0xff] }
 0x3a7   : > { %v8049_v10 = vpack.i.bf16 %v3758_v19, %v3757_v37 }
 0x3a9   : > { %8050 = vrot.lane.b32.xlu2 %v8049_v10, %s8365_s8  ;;  %v3891_v10 = vld [vmem:[%s12902_s10 + $0x78] sm:$0xff] }
 0x3aa   : > { %3951 = vmatpush.msra.mxu1 %v3891_v10 }
 0x3ab   : > { %v3517_v1 = vpop.f32.mrf.mxu1 }
 0x3ac   : > { %v3541_v26 = vadd.f32 %v3540_v39, %v3517_v1  ;;  %v3889_v1 = vld [vmem:[%s12902_s10 + $0x68] sm:$0xff]  ;;  %3952 = vmatpush.msra.mxu1 %v3890_v43  ;;  %v3173_v43 = vadd.f32 %v10449_v18, %v10461_v38  ;;  %v3880_v38 = vld [vmem:[%s12902_s10 + $0x20] sm:$0xff] }
 0x3ad   : > { %v3583_v51 = vpop.f32.mrf.mxu2  ;;  %v3881_v18 = vld [vmem:[%s12902_s10 + $0x28] sm:$0xff] }
 0x3ae   : > { %v3761_v25 = vrot.slane %v3541_v26, 4  ;;  %8045 = vrot.lane.b32.xlu1 %v8044_v41, %s12932_s22  ;;  %3953 = vmatpush.msra.mxu1 %v3889_v1 }
 0x3b0   : > { %v3762_v20 = vsel %vm2381_vm5, %v3758_v19, %v3761_v25 }
 0x3b1   : > { %8070 = vrot.lane.b32.xlu2 %v8069_v46, %s12926_s24  ;;  %v8054_v48 = vpack.i.bf16 %v3762_v20, %v3760_v4  ;;  %v3888_v46 = vld [vmem:[%s12902_s10 + $0x60] sm:$0xff] }
 0x3b2   : > { %3954 = vmatpush.msra.mxu1 %v3888_v46 }
 0x3b3   : > { %8055 = vrot.lane.b32.xlu0 %v8054_v48, %s8365_s8 }
 0x3b5   : > { %v3629_v31 = vpop.f32.mrf.mxu1  ;;  %v3586_v61 = vpop.f32.mrf.mxu2 }
 0x3b6   : > { %v3560_v47 = vpop.f32.mrf.mxu0  ;;  %8065 = vrot.lane.b32.xlu1 %v8064_v45, %s8363_s18  ;;  %v3887_v45 = vld [vmem:[%s12902_s10 + $0x58] sm:$0xff]  ;;  %s706_s18 = scalar_lea.vmem %s12911_s19, %s12974_s23 }
 0x3b7   : > { %v3584_v35 = vadd.f32 %v3583_v51, %v3560_v47  ;;  %3955 = vmatpush.msra.mxu1 %v3887_v45 }
 0x3b9   : > { %8085 = vrot.lane.b32.xlu2 %v8084_v36, %s12930_s13 }
 0x3bb   : > { %8060 = vrot.lane.b32.xlu0 %v8059_v2, %s12932_s22  ;;  %v3886_v2 = vld [vmem:[%s12902_s10 + $0x50] sm:$0xff]  ;;  %s12963_s22 = smov 36  }
 0x3bc   : > { %v3606_v6 = vpop.f32.mrf.mxu3  ;;  %3956 = vmatpush.msra.mxu1 %v3886_v2  ;;  %v3906_v2 = vld [vmem:[%s12902_s10 + $0xf0] sm:$0xff] }
 0x3bd   : > { %v3632_v63 = vpop.f32.mrf.mxu1  ;;  %v3630_v24 = vadd.f32 %v3629_v31, %v3606_v6 }
 0x3be   : > { %v3563_v23 = vpop.f32.mrf.mxu0  ;;  %8080 = vrot.lane.b32.xlu1 %v8079_v49, %s12926_s24  ;;  %s12964_s24 = smov 60  }
 0x3bf   : > { %v3587_v60 = vadd.f32 %v3586_v61, %v3563_v23 }
 0x3c1   : > { %7817 = vmatpush.msk.msra.mxu2 %vm2381_vm5, %v3587_v60  ;;  %3790 = vperm.xlu2 %8028, %v3787_v8   ;;  %v3885_v8 = vld [vmem:[%s12902_s10 + $0x48] sm:$0xff] }
 0x3c2   : > { %3957 = vmatpush.msra.mxu1 %v3885_v8  ;;  %v3920_v8 = vld [vmem:[%s12902_s10 + $0x160] sm:$0xff] }
 0x3c3   : > { %3806 = vmatpush.msra.mxu2 %v3584_v35  ;;  %8075 = vrot.lane.b32.xlu0 %v8074_v17, %s12930_s13  ;;  %v3884_v35 = vld [vmem:[%s12902_s10 + $0x40] sm:$0xff]  ;;  %s12961_s13 = smov 44  }
 0x3c4   : > { %v3609_v62 = vpop.f32.mrf.mxu3  ;;  %3958 = vmatpush.msra.mxu1 %v3884_v35  ;;  %v3936_v35 = vld [vmem:[%s12902_s10 + $0x1e0] sm:$0xff] }
 0x3c5   : > { %v3633_v14 = vadd.f32 %v3632_v63, %v3609_v62  ;;  %v3883_v62 = vld [vmem:[%s12902_s10 + $0x38] sm:$0xff] }
 0x3c6   : > { %8095 = vrot.lane.b32.xlu1 %v8094_v32, %s12928_s16  ;;  %3959 = vmatpush.msra.mxu1 %v3883_v62  ;;  %v3917_v62 = vld [vmem:[%s12902_s10 + $0x148] sm:$0xff] }
 0x3c7   : > { %7819 = vmatpush.msk.msrb.mxu0 %vm2381_vm5, %v3633_v14 }
 0x3c8   : > { %3960 = vmatpush.msra.mxu1 %v3882_v9  ;;  %v3946_v9 = vld [vmem:[%s12902_s10 + $0x230] sm:$0xff] }
 0x3c9   : > { %3826 = vmatpush.msrb.mxu0 %v3630_v24 }
 0x3ca   : > { %3961 = vmatpush.msra.mxu1 %v3881_v18  ;;  %v3944_v18 = vld [vmem:[%s12902_s10 + $0x220] sm:$0xff] }
 0x3cb   : > { %8090 = vrot.lane.b32.xlu0 %v8089_v27, %s12928_s16  ;;  %s12956_s16 = smov 48  }
 0x3cc   : > { %3962 = vmatpush.msra.mxu1 %v3880_v38  ;;  %v3909_v38 = vld [vmem:[%s12902_s10 + $0x108] sm:$0xff] }
 0x3ed   : > { %v8031_v16 = vpop.permute.xlu2 %8030 }
 0x3ee   : > { %v8033_v4 = vunpack.i.h.bf16 %v8031_v16  ;;  %v8032_v20 = vunpack.i.l.bf16 %v8031_v16 }
 0x3f0   : > { %v3710_v58 = vsel %vm3708_vm13, %v8032_v20, %v8033_v4 }
 0x403   : > { %v8051_v44 = vpop.permute.xlu2 %8050 }
 0x404   : > { %v8053_v19 = vunpack.i.h.bf16 %v8051_v44  ;;  %v8052_v21 = vunpack.i.l.bf16 %v8051_v44 }
 0x406   : > { %v3772_v12 = vsel %vm3771_vm10, %v8052_v21, %v8053_v19 }
 0x40b   : > { %v8071_v26 = vpop.permute.xlu2 %8070 }
 0x40c   : > { %v8073_v60 = vunpack.i.h.bf16 %v8071_v26  ;;  %v8072_v7 = vunpack.i.l.bf16 %v8071_v26 }
 0x40e   : > { %v8036_v11 = vpop.permute.xlu0 %8035  ;;  %v3693_v14 = vsel %vm3691_vm14, %v8072_v7, %v8073_v60  ;;  %v3903_v7 = vld [vmem:[%s12902_s10 + $0xd8] sm:$0xff] }
 0x40f   : > { %v8038_v52 = vunpack.i.h.bf16 %v8036_v11  ;;  %v8037_v57 = vunpack.i.l.bf16 %v8036_v11 }
 0x411   : > { %v3749_v48 = vsel %vm3748_vm11, %v8037_v57, %v8038_v52 }
 0x413   : > { %v8086_v3 = vpop.permute.xlu2 %8085 }
 0x414   : > { %v8088_v27 = vunpack.i.h.bf16 %v8086_v3  ;;  %v8087_v16 = vunpack.i.l.bf16 %v8086_v3  ;;  %v3918_v3 = vld [vmem:[%s12902_s10 + $0x150] sm:$0xff] }
 0x416   : > { %v3669_v21 = vsel %vm2379_vm2, %v8087_v16, %v8088_v27  ;;  %v3899_v16 = vld [vmem:[%s12902_s10 + $0xb8] sm:$0xff] }
 0x418   : > { %v8041_v55 = vpop.permute.xlu1 %8040 }
 0x419   : > { %v8043_v30 = vunpack.i.h.bf16 %v8041_v55  ;;  %v8042_v37 = vunpack.i.l.bf16 %v8041_v55 }
 0x41b   : > { %v3750_v28 = vsel %vm3748_vm11, %v8042_v37, %v8043_v30  ;;  %v3785_v5 = vsel %vm2381_vm5, %v8043_v30, %v8053_v19  ;;  %v3791_v1 = vpop.permute.xlu2 %3790 }
 0x41c   : > { %v3784_v25 = vsel %vm2381_vm5, %v3750_v28, %v3772_v12 }
 0x420   : > { %v8046_v22 = vpop.permute.xlu1 %8045 }
 0x421   : > { %v8048_v41 = vunpack.i.h.bf16 %v8046_v22  ;;  %v8047_v53 = vunpack.i.l.bf16 %v8046_v22 }
 0x423   : > { %v3733_v36 = vsel %vm3731_vm12, %v8047_v53, %v8048_v41 }
 0x425   : > { %v8056_v0 = vpop.permute.xlu0 %8055 }
 0x426   : > { %v8058_v15 = vunpack.i.h.bf16 %v8056_v0  ;;  %v8057_v59 = vunpack.i.l.bf16 %v8056_v0 }
 0x428   : > { %3827 = vmatpush.msrb.mxu0 %v8058_v15  ;;  %v3773_v33 = vsel %vm3771_vm10, %v8057_v59, %v8058_v15  ;;  %v8066_v39 = vpop.permute.xlu1 %8065 }
 0x429   : > { %3807 = vmatpush.msra.mxu2 %v3773_v33  ;;  %v8068_v31 = vunpack.i.h.bf16 %v8066_v39  ;;  %v8067_v6 = vunpack.i.l.bf16 %v8066_v39  ;;  %v3786_v33 = vld [vmem:[#allocation4] sm:$0xf]  ;;  %v3170_v39 = vadd.f32 %v10445_v50, %v10453_v40  ;;  %v3879_v50 = vld [vmem:[%s12902_s10 + $0x18] sm:$0xff]  ;;  %v3878_v40 = vld [vmem:[%s12902_s10 + $0x10] sm:$0xff] }
 0x42a   : > { %3828 = vmatpush.msrb.mxu0 %v3785_v5  ;;  %3963 = vmatpush.msra.mxu1 %v3879_v50  ;;  %v3892_v50 = vld [vmem:[%s12902_s10 + $0x80] sm:$0xff] }
 0x42b   : > { %3808 = vmatpush.msra.mxu2 %v3784_v25  ;;  %v3709_v54 = vsel %vm3708_vm13, %v8067_v6, %v8068_v31  ;;  %v3905_v6 = vld [vmem:[%s12902_s10 + $0xe8] sm:$0xff] }
 0x42c   : > { %3829 = vmatpush.msrb.mxu0 %v8038_v52  ;;  %3964 = vmatpush.msra.mxu1 %v3878_v40  ;;  %v3927_v40 = vld [vmem:[%s12902_s10 + $0x198] sm:$0xff] }
 0x42d   : > { %3809 = vmatpush.msra.mxu2 %v3749_v48  ;;  %v8061_v51 = vpop.permute.xlu0 %8060 }
 0x42e   : > { %v8063_v56 = vunpack.i.h.bf16 %v8061_v51  ;;  %v8062_v47 = vunpack.i.l.bf16 %v8061_v51  ;;  %3830 = vmatpush.msrb.mxu0 %v8048_v41 }
 0x42f   : > { %3810 = vmatpush.msra.mxu2 %v3733_v36  ;;  %v3923_v36 = vld [vmem:[%s12902_s10 + $0x178] sm:$0xff] }
 0x430   : > { %v3783_v49 = vsel %vm2381_vm5, %v8033_v4, %v8063_v56  ;;  %v3732_v61 = vsel %vm3731_vm12, %v8062_v47, %v8063_v56  ;;  %v8081_v23 = vpop.permute.xlu1 %8080  ;;  %v3907_v47 = vld [vmem:[%s12902_s10 + $0xf8] sm:$0xff] }
 0x431   : > { %3831 = vmatpush.msrb.mxu0 %v3783_v49  ;;  %v3782_v17 = vsel %vm2381_vm5, %v3710_v58, %v3732_v61  ;;  %v8083_v42 = vunpack.i.h.bf16 %v8081_v23  ;;  %v8082_v63 = vunpack.i.l.bf16 %v8081_v23  ;;  %3971 = vmatpush.msrb.mxu3 %v3907_v47  ;;  %v3921_v49 = vld [vmem:[%s12902_s10 + $0x168] sm:$0xff]  ;;  %v3939_v58 = vld [vmem:[%s12902_s10 + $0x1f8] sm:$0xff]  ;;  %v3938_v61 = vld [vmem:[%s12902_s10 + $0x1f0] sm:$0xff] }
 0x432   : > { %3811 = vmatpush.msra.mxu2 %v3782_v17  ;;  %v3904_v23 = vld [vmem:[%s12902_s10 + $0xe0] sm:$0xff]  ;;  %v3919_v17 = vld [vmem:[%s12902_s10 + $0x158] sm:$0xff] }
 0x433   : > { %3832 = vmatpush.msrb.mxu0 %v8068_v31  ;;  %v3692_v44 = vsel %vm3691_vm14, %v8082_v63, %v8083_v42  ;;  %v3922_v31 = vld [vmem:[%s12902_s10 + $0x170] sm:$0xff]  ;;  %3972 = vmatpush.msrb.mxu3 %v3906_v2  ;;  %v3901_v63 = vld [vmem:[%s12902_s10 + $0xc8] sm:$0xff] }
 0x434   : > { %3812 = vmatpush.msra.mxu2 %v3709_v54  ;;  %v3902_v54 = vld [vmem:[%s12902_s10 + $0xd0] sm:$0xff] }
 0x435   : > { %v8076_v32 = vpop.permute.xlu0 %8075  ;;  %3833 = vmatpush.msrb.mxu0 %v8073_v60  ;;  %3973 = vmatpush.msrb.mxu3 %v3905_v6  ;;  %v3937_v60 = vld [vmem:[%s12902_s10 + $0x1e8] sm:$0xff] }
 0x436   : > { %v8078_v34 = vunpack.i.h.bf16 %v8076_v32  ;;  %v8077_v24 = vunpack.i.l.bf16 %v8076_v32  ;;  %3813 = vmatpush.msra.mxu2 %v3693_v14  ;;  %v3947_v32 = vld [vmem:[%s12902_s10 + $0x238] sm:$0xff]  ;;  %v3934_v14 = vld [vmem:[%s12902_s10 + $0x1d0] sm:$0xff] }
 0x437   : > { %3974 = vmatpush.msrb.mxu3 %v3904_v23  ;;  %v4073_v23 = vld [vmem:[#allocation6 + $0x60] sm:$0xff] }
 0x438   : > { %v3781_v55 = vsel %vm2381_vm5, %v8078_v34, %v8083_v42  ;;  %v3670_v11 = vsel %vm2379_vm2, %v8077_v24, %v8078_v34  ;;  %v8096_v22 = vpop.permute.xlu1 %8095  ;;  %v3935_v42 = vld [vmem:[%s12902_s10 + $0x1d8] sm:$0xff]  ;;  %v3900_v34 = vld [vmem:[%s12902_s10 + $0xc0] sm:$0xff] }
 0x439   : > { %3834 = vmatpush.msrb.mxu0 %v3781_v55  ;;  %v3780_v30 = vsel %vm2381_vm5, %v3670_v11, %v3692_v44  ;;  %v8098_v37 = vunpack.i.h.bf16 %v8096_v22  ;;  %v8097_v19 = vunpack.i.l.bf16 %v8096_v22  ;;  %3975 = vmatpush.msrb.mxu3 %v3903_v7  ;;  %v3916_v24 = vld [vmem:[%s12902_s10 + $0x140] sm:$0xff]  ;;  %v3915_v55 = vld [vmem:[%s12902_s10 + $0x138] sm:$0xff]  ;;  %v3898_v44 = vld [vmem:[%s12902_s10 + $0xb0] sm:$0xff] }
 0x43a   : > { %3814 = vmatpush.msra.mxu2 %v3780_v30  ;;  %v3932_v11 = vld [vmem:[%s12902_s10 + $0x1c0] sm:$0xff]  ;;  %v3914_v22 = vld [vmem:[%s12902_s10 + $0x130] sm:$0xff]  ;;  %v3931_v30 = vld [vmem:[%s12902_s10 + $0x1b8] sm:$0xff] }
 0x43b   : > { %3835 = vmatpush.msrb.mxu0 %v8088_v27  ;;  %v3653_v10 = vsel %vm2329_vm7, %v8097_v19, %v8098_v37  ;;  %v3779_v52 = vsel %vm2381_vm5, %v10502_v13, %v8098_v37  ;;  %v3876_v13 = vld [vmem:[%s12902_s10] sm:$0xff]  ;;  %3976 = vmatpush.msrb.mxu3 %v3902_v54  ;;  %v3933_v27 = vld [vmem:[%s12902_s10 + $0x1c8] sm:$0xff] }
 0x43c   : > { %3815 = vmatpush.msra.mxu2 %v3669_v21  ;;  %v3778_v57 = vsel %vm2381_vm5, %v3173_v43, %v3653_v10  ;;  %v3897_v37 = vld [vmem:[%s12902_s10 + $0xa8] sm:$0xff]  ;;  %v3930_v21 = vld [vmem:[%s12902_s10 + $0x1b0] sm:$0xff]  ;;  %v3911_v10 = vld [vmem:[%s12902_s10 + $0x118] sm:$0xff] }
 0x43d   : > { %v8091_v0 = vpop.permute.xlu0 %8090  ;;  %3977 = vmatpush.msrb.mxu3 %v3901_v63  ;;  %v3913_v19 = vld [vmem:[%s12902_s10 + $0x128] sm:$0xff]  ;;  %v3894_v43 = vld [vmem:[%s12902_s10 + $0x90] sm:$0xff] }
 0x43e   : > { %v8093_v15 = vunpack.i.h.bf16 %v8091_v0  ;;  %v8092_v59 = vunpack.i.l.bf16 %v8091_v0  ;;  %v3896_v0 = vld [vmem:[%s12902_s10 + $0xa0] sm:$0xff] }
 0x43f   : > { %3978 = vmatpush.msrb.mxu3 %v3900_v34 }
 0x440   : > { %3836 = vmatpush.msrb.mxu0 %v8093_v15  ;;  %v3654_v28 = vsel %vm2329_vm7, %v8092_v59, %v8093_v15  ;;  %v3912_v15 = vld [vmem:[%s12902_s10 + $0x120] sm:$0xff]  ;;  %v3895_v59 = vld [vmem:[%s12902_s10 + $0x98] sm:$0xff] }
 0x441   : > { %3816 = vmatpush.msra.mxu2 %v3654_v28  ;;  %3979 = vmatpush.msrb.mxu3 %v3899_v16  ;;  %v3929_v28 = vld [vmem:[%s12902_s10 + $0x1a8] sm:$0xff] }
 0x442   : > { %3837 = vmatpush.msrb.mxu0 %v3779_v52  ;;  %v3945_v52 = vld [vmem:[%s12902_s10 + $0x228] sm:$0xff] }
 0x443   : > { %3817 = vmatpush.msra.mxu2 %v3778_v57  ;;  %3980 = vmatpush.msrb.mxu3 %v3898_v44  ;;  %v3910_v57 = vld [vmem:[%s12902_s10 + $0x110] sm:$0xff]  ;;  %v4072_v44 = vld [vmem:[#allocation6 + $0x58] sm:$0xff] }
 0x444   : > { %3838 = vmatpush.msrb.mxu0 %v10492_v29  ;;  %v3877_v29 = vld [vmem:[%s12902_s10 + $0x8] sm:$0xff] }
 0x445   : > { %3818 = vmatpush.msra.mxu2 %v3170_v39  ;;  %7820 = vmatmul.msk.f32.vlgmr.msrb.gmra.mxu0 %vm3793_vm15, %v3786_v33  ;;  %v3928_v39 = vld [vmem:[%s12902_s10 + $0x1a0] sm:$0xff]  ;;  %v4061_v16 = vld [vmem:[#allocation6] sm:$0xff] }
 0x446   : > { %7818 = vmatmul.msk.f32.vlgmr.msra.gmra.mxu2 %vm3793_vm15, %v3786_v33  ;;  %3965 = vmatpush.msra.mxu1 %v3877_v29  ;;  %v3893_v33 = vld [vmem:[%s12902_s10 + $0x88] sm:$0xff]  ;;  %v3943_v29 = vld [vmem:[%s12902_s10 + $0x218] sm:$0xff] }
 0x447   : > { %3991 = vmatpush.msrb.mxu2 %v3923_v36  ;;  %4011 = vmatpush.msra.mxu0 %v3939_v58  ;;  %v4076_v58 = vld [vmem:[#allocation6 + $0x78] sm:$0xff] }
 0x448   : > { %3966 = vmatpush.msra.mxu1 %v3876_v13  ;;  %3981 = vmatpush.msrb.mxu3 %v3897_v37  ;;  %v3908_v13 = vld [vmem:[%s12902_s10 + $0x100] sm:$0xff] }
 0x449   : > { %3992 = vmatpush.msrb.mxu2 %v3922_v31  ;;  %4012 = vmatpush.msra.mxu0 %v3938_v61  ;;  %v4071_v61 = vld [vmem:[#allocation6 + $0x50] sm:$0xff] }
 0x44a   : > { %4039 = vmatpush.msrb.mxu1 %v3947_v32  ;;  %3982 = vmatpush.msrb.mxu3 %v3896_v0  ;;  %v4051_v37 = vld [vmem:[%s8569_s21] sm:$0x1] }
 0x44b   : > { %3993 = vmatpush.msrb.mxu2 %v3921_v49  ;;  %4013 = vmatpush.msra.mxu0 %v3937_v60 }
 0x44c   : > { %4040 = vmatpush.msrb.mxu1 %v3946_v9  ;;  %3983 = vmatpush.msrb.mxu3 %v3895_v59  ;;  %v4066_v9 = vld [vmem:[#allocation6 + $0x28] sm:$0xff] }
 0x44d   : > { %3994 = vmatpush.msrb.mxu2 %v3920_v8  ;;  %4014 = vmatpush.msra.mxu0 %v3936_v35  ;;  %v3948_v8 = vld [vmem:[%s12903_s11] sm:$0x1]  ;;  %v4074_v59 = vld [vmem:[#allocation6 + $0x68] sm:$0xff] }
 0x44e   : > { %3984 = vmatpush.msrb.mxu3 %v3894_v43  ;;  %4041 = vmatpush.msrb.mxu1 %v3945_v52  ;;  %v4064_v43 = vld [vmem:[#allocation6 + $0x18] sm:$0xff]  ;;  %v4075_v52 = vld [vmem:[#allocation6 + $0x70] sm:$0xff] }
 0x44f   : > { %3995 = vmatpush.msrb.mxu2 %v3919_v17  ;;  %4015 = vmatpush.msra.mxu0 %v3935_v42 }
 0x450   : > { %3985 = vmatpush.msrb.mxu3 %v3893_v33  ;;  %4042 = vmatpush.msrb.mxu1 %v3944_v18  ;;  %v4065_v33 = vld [vmem:[#allocation6 + $0x20] sm:$0xff] }
 0x451   : > { %3996 = vmatpush.msrb.mxu2 %v3918_v3  ;;  %4016 = vmatpush.msra.mxu0 %v3934_v14  ;;  %v10800_v18 = vld [vmem:[%s12896_s4 + $0x188] sm:$0xff] }
 0x452   : > { %3986 = vmatpush.msrb.mxu3 %v3892_v50  ;;  %4043 = vmatpush.msrb.mxu1 %v3943_v29 }
 0x453   : > { %3997 = vmatpush.msrb.mxu2 %v3917_v62  ;;  %4017 = vmatpush.msra.mxu0 %v3933_v27  ;;  %v4068_v27 = vld [vmem:[#allocation6 + $0x38] sm:$0xff] }
 0x454   : > { %4096 = vmatpush.msra.mxu3 %v4076_v58  ;;  %v10836_v58 = vld [vmem:[%s12896_s4 + $0x118] sm:$0xff] }
 0x455   : > { %3998 = vmatpush.msrb.mxu2 %v3916_v24  ;;  %4018 = vmatpush.msra.mxu0 %v3932_v11  ;;  %v4077_v11 = vld [vmem:[#allocation6 + $0x80] sm:$0xff] }
 0x456   : > { %4097 = vmatpush.msra.mxu3 %v4071_v61  ;;  %v10842_v61 = vld [vmem:[%s12896_s4 + $0xfc] sm:$0xff] }
 0x457   : > { %3999 = vmatpush.msrb.mxu2 %v3915_v55  ;;  %4019 = vmatpush.msra.mxu0 %v3931_v30  ;;  %v4063_v55 = vld [vmem:[#allocation6 + $0x10] sm:$0xff]  ;;  %v4062_v30 = vld [vmem:[#allocation6 + $0x8] sm:$0xff] }
 0x458   : > { %4098 = vmatpush.msra.mxu3 %v4066_v9 }
 0x459   : > { %4000 = vmatpush.msrb.mxu2 %v3914_v22  ;;  %4020 = vmatpush.msra.mxu0 %v3930_v21  ;;  %v4067_v22 = vld [vmem:[#allocation6 + $0x30] sm:$0xff] }
 0x45a   : > { %4099 = vmatpush.msra.mxu3 %v4061_v16 }
 0x45b   : > { %4001 = vmatpush.msrb.mxu2 %v3913_v19  ;;  %4021 = vmatpush.msra.mxu0 %v3929_v28  ;;  %v4080_v28 = vld [vmem:[#allocation6 + $0x98] sm:$0xff] }
 0x45d   : > { %4002 = vmatpush.msrb.mxu2 %v3912_v15  ;;  %4022 = vmatpush.msra.mxu0 %v3928_v39  ;;  %v4079_v15 = vld [vmem:[#allocation6 + $0x90] sm:$0xff] }
 0x45e   : > { %v10795_v39 = vld [vmem:[%s12896_s4 + $0x1a4] sm:$0xff] }
 0x45f   : > { %4003 = vmatpush.msrb.mxu2 %v3911_v10  ;;  %4023 = vmatpush.msra.mxu0 %v3927_v40  ;;  %v4069_v10 = vld [vmem:[#allocation6 + $0x40] sm:$0xff]  ;;  %v4516_v50 = vunpack.c.1.s8 %v10795_v39  ;;  %v4502_v40 = vunpack.c.1.s8 %v10800_v18 }
 0x461   : > { %4004 = vmatpush.msrb.mxu2 %v3910_v57  ;;  %v4070_v57 = vld [vmem:[#allocation6 + $0x48] sm:$0xff] }
 0x463   : > { %4005 = vmatpush.msrb.mxu2 %v3909_v38  ;;  %v10805_v38 = vld [vmem:[%s12896_s4 + $0x16c] sm:$0xff] }
 0x464   : > { %v4488_v29 = vunpack.c.1.s8 %v10805_v38 }
 0x465   : > { %4006 = vmatpush.msrb.mxu2 %v3908_v13  ;;  %v10813_v13 = vld [vmem:[%s12896_s4 + $0x150] sm:$0xff] }
 0x4c2   : > { %v3840_v5 = vpop.f32.mrf.mxu0 }
 0x4c3   : > { %v3841_v12 = vadd.f32 %v3840_v5, %v3791_v1  ;;  %v3942_v5 = vld [vmem:[%s12902_s10 + $0x210] sm:$0xff] }
 0x4c4   : > { %4044 = vmatpush.msrb.mxu1 %v3942_v5  ;;  %v4768_v5 = vcvt.s32.f32 %v4516_v50  ;;  %v10902_v50 = vld [vmem:[%s12896_s4 + $0x38] sm:$0xff] }
 0x4c5   : > { %v10592_v26 = vmax.f32 %v3841_v12, 0.0  ;;  %v3925_v12 = vld [vmem:[%s12902_s10 + $0x188] sm:$0xff] }
 0x4c7   : > { %v3857_v41 = vrot.slane %v10592_v26, 2  ;;  %v3848_v48 = vrot.slane %v10592_v26, 1  ;;  %v3866_v51 = vrot.slane %v10592_v26, 3 }
 0x4c9   : > { %3860 = vrot.lane.b32.xlu2 %v3857_v41, %s8364_s27  ;;  %v3820_v53 = vpop.f32.mrf.mxu2  ;;  %v3941_v41 = vld [vmem:[%s12902_s10 + $0x208] sm:$0xff] }
 0x4ca   : > { %v3821_v25 = vadd.f32 %v3820_v53, %v3791_v1  ;;  %v3926_v1 = vld [vmem:[%s12902_s10 + $0x190] sm:$0xff]  ;;  %4045 = vmatpush.msrb.mxu1 %v3941_v41  ;;  %v3924_v53 = vld [vmem:[%s12902_s10 + $0x180] sm:$0xff]  ;;  %v4474_v41 = vunpack.c.1.s8 %v10813_v13 }
 0x4cb   : > { %4024 = vmatpush.msra.mxu0 %v3926_v1  ;;  %v10818_v1 = vld [vmem:[%s12896_s4 + $0x134] sm:$0xff] }
 0x4cc   : > { %v3843_v46 = vmax.f32 %v3821_v25, 0.0  ;;  %v3940_v25 = vld [vmem:[%s12902_s10 + $0x200] sm:$0xff] }
 0x4cd   : > { %4025 = vmatpush.msra.mxu0 %v3925_v12  ;;  %4046 = vmatpush.msrb.mxu1 %v3940_v25  ;;  %v4754_v12 = vcvt.s32.f32 %v4502_v40  ;;  %v4473_v40 = vunpack.c.0.s8 %v10813_v13 }
 0x4ce   : > { %3967 = vmatmul.f32.vlgmr.msra.gmra.mxu1 %v3843_v46  ;;  %v3856_v4 = vrot.slane %v3843_v46, 2  ;;  %v3847_v20 = vrot.slane %v3843_v46, 1  ;;  %v3865_v56 = vrot.slane %v3843_v46, 3 }
 0x4cf   : > { %4026 = vmatpush.msra.mxu0 %v3924_v53  ;;  %4852 = vmatpush.msra.mxu1 %v4768_v5 }
 0x4d0   : > { %3858 = vrot.lane.b32.xlu1 %v3856_v4, %s8364_s27  ;;  %v8099_v45 = vpack.i.bf16 %v3848_v48, %v3847_v20 }
 0x4d1   : > { %4853 = vmatpush.msra.mxu1 %v4754_v12 }
 0x4d2   : > { %8100 = vrot.lane.b32.xlu0 %v8099_v45, %s8365_s8  ;;  %s12967_s8 = sld [smem:[#allocation22_spill]] }
 0x4d8   : > { %3869 = vrot.lane.b32.xlu1 %v3866_v51, %s12956_s16 }
 0x4da   : > { %3867 = vrot.lane.b32.xlu0 %v3865_v56, %s12956_s16  ;;  %s12960_s16 = smov 120  }
 0x523   : > { %v3861_v47 = vpop.permute.xlu2 %3860 }
 0x542   : > { %v3859_v46 = vpop.permute.xlu1 %3858 }
 0x543   : > { %v3862_v36 = vsel %vm3748_vm11, %v3859_v46, %v3861_v47 }
 0x544   : > { %v8101_v4 = vpop.permute.xlu0 %8100 }
 0x545   : > { %v8103_v20 = vunpack.i.h.bf16 %v8101_v4  ;;  %v8102_v48 = vunpack.i.l.bf16 %v8101_v4  ;;  %v4460_v4 = vunpack.c.1.s8 %v10818_v1 }
 0x547   : > { %v3873_v45 = vsel %vm3771_vm10, %v10592_v26, %v8102_v48  ;;  %v3853_v51 = vsel %vm3771_vm10, %v8102_v48, %v8103_v20  ;;  %v4078_v26 = vld [vmem:[#allocation6 + $0x88] sm:$0xff] }
 0x548   : > { %3987 = vmatmul.f32.vlgmr.msrb.gmra.mxu3 %v3873_v45  ;;  %v3874_v56 = vsel %vm3748_vm11, %v3853_v51, %v3859_v46  ;;  %4136 = vmatpush.msra.mxu2 %v4078_v26  ;;  %v4740_v46 = vcvt.s32.f32 %v4488_v29  ;;  %v4726_v45 = vcvt.s32.f32 %v4474_v41  ;;  %v4712_v51 = vcvt.s32.f32 %v4460_v4 }
 0x549   : > { %4007 = vmatmul.f32.vlgmr.msrb.gmra.mxu2 %v3874_v56  ;;  %4116 = vmatpush.msrb.mxu3 %v4077_v11  ;;  %v4446_v26 = vunpack.c.1.s8 %v10836_v58  ;;  %v4461_v41 = vunpack.c.2.s8 %v10818_v1  ;;  %v4459_v4 = vunpack.c.0.s8 %v10818_v1 }
 0x54a   : > { %v3870_v2 = vpop.permute.xlu1 %3869  ;;  %4137 = vmatpush.msra.mxu2 %v4073_v23  ;;  %4854 = vmatpush.msra.mxu1 %v4740_v46  ;;  %v10847_v23 = vld [vmem:[%s12896_s4 + $0xe0] sm:$0xff]  ;;  %v4725_v46 = vcvt.s32.f32 %v4473_v40 }
 0x54b   : > { %v3968_v60 = vpop.f32.mrf.mxu1  ;;  %4117 = vmatpush.msrb.mxu3 %v4072_v44 }
 0x54c   : > { %v3868_v31 = vpop.permute.xlu0 %3867  ;;  %v3969_v7 = vadd.f32 %v3968_v60, %v3948_v8  ;;  %4138 = vmatpush.msra.mxu2 %v4068_v27  ;;  %4855 = vmatpush.msra.mxu1 %v4726_v45  ;;  %v10852_v8 = vld [vmem:[%s12896_s4 + $0xc4] sm:$0xff]  ;;  %v4517_v60 = vunpack.c.2.s8 %v10795_v39 }
 0x54d   : > { %v3871_v6 = vsel %vm3731_vm12, %v3868_v31, %v3870_v2  ;;  %v3875_v49 = vsel %vm3731_vm12, %v3862_v36, %v3868_v31  ;;  %vm7622_vm12 = vcmask 516096   ;;  %4118 = vmatpush.msrb.mxu3 %v4067_v22  ;;  %v10888_v22 = vld [vmem:[%s12896_s4 + $0x70] sm:$0xff] }
 0x54e   : > { %4027 = vmatmul.f32.vlgmr.msra.gmra.mxu0 %v3875_v49  ;;  %7821 = vmatmul.msk.f32.vlgmr.msrb.gmra.mxu1 %vm3708_vm13, %v3871_v6  ;;  %vm4218_vm13 = vcmask 1041408  }
 0x54f   : > { %4139 = vmatpush.msra.mxu2 %v4063_v55  ;;  %4119 = vmatpush.msrb.mxu3 %v4062_v30  ;;  %v4503_v55 = vunpack.c.2.s8 %v10800_v18 }
 0x550   : > { %4856 = vmatpush.msra.mxu1 %v4712_v51  ;;  %v4447_v51 = vunpack.c.2.s8 %v10836_v58 }
 0x5cb   : > { %v3988_v17 = vpop.f32.mrf.mxu3  ;;  %v4028_v42 = vpop.f32.mrf.mxu0 }
 0x5cc   : > { %v3989_v35 = vadd.f32 %v3988_v17, %v3969_v7  ;;  %v4008_v54 = vpop.f32.mrf.mxu2  ;;  %v4048_v62 = vpop.f32.mrf.mxu1  ;;  %v4515_v7 = vunpack.c.0.s8 %v10795_v39  ;;  %v4698_v17 = vcvt.s32.f32 %v4446_v26 }
 0x5ce   : > { %v4009_v3 = vadd.f32 %v4008_v54, %v3989_v35  ;;  %v4432_v35 = vunpack.c.1.s8 %v10842_v61  ;;  %v4418_v54 = vunpack.c.1.s8 %v10847_v23  ;;  %4857 = vmatpush.msra.mxu1 %v4698_v17 }
 0x5d0   : > { %v4029_v63 = vadd.f32 %v4028_v42, %v4009_v3  ;;  %v4404_v3 = vunpack.c.1.s8 %v10852_v8  ;;  %v10862_v42 = vld [vmem:[%s12896_s4 + $0xa8] sm:$0xff]  ;;  %v4684_v9 = vcvt.s32.f32 %v4432_v35  ;;  %v4670_v27 = vcvt.s32.f32 %v4418_v54 }
 0x5d2   : > { %v4049_v32 = vadd.f32 %v4048_v62, %v4029_v63  ;;  %v10867_v63 = vld [vmem:[%s12896_s4 + $0x1dc] sm:$0xff]  ;;  %v10872_v62 = vld [vmem:[%s12896_s4 + $0x8c] sm:$0xff]  ;;  %4858 = vmatpush.msra.mxu1 %v4684_v9  ;;  %v4656_v30 = vcvt.s32.f32 %v4404_v3  ;;  %v4433_v9 = vunpack.c.2.s8 %v10842_v61 }
 0x5d3   : > { %v4376_v44 = vunpack.c.1.s8 %v10872_v62 }
 0x5d4   : > { %v4052_v14 = vmul.f32 0.5, %v4049_v32  ;;  %7623 = vst.msk [vmem:[%s706_s18] sm:$0x1] %vm7622_vm12, %v4049_v32  ;;  %s12959_s18 = smov 80   ;;  %4859 = vmatpush.msra.mxu1 %v4670_v27  ;;  %v10939_v27 = vld [vmem:[%s12896_s4 + $0x174] sm:$0xff]  ;;  %vm4221_vm12 = vcmask 1042432  }
 0x5d6   : > { %v4053_v34 = vmul.f32 1.442695, %v4052_v14  ;;  %v4543_v14 = vunpack.c.0.s8 %v10867_v63  ;;  %4860 = vmatpush.msra.mxu1 %v4656_v30  ;;  %v4685_v30 = vcvt.s32.f32 %v4433_v9 }
 0x5d8   : > { %8140 = vpow2.f32 %v4053_v34  ;;  %v10879_v34 = vld [vmem:[%s12896_s4 + $0x1c0] sm:$0xff]  ;;  %v4795_v11 = vcvt.s32.f32 %v4543_v14  ;;  %v4445_v14 = vunpack.c.0.s8 %v10836_v58 }
 0x5d9   : > { %v4529_v16 = vunpack.c.0.s8 %v10879_v34 }
 0x5da   : > { %4846 = vmatpush.msrb.mxu0 %v4795_v11  ;;  %v4431_v11 = vunpack.c.0.s8 %v10842_v61 }
 0x5de   : > { %v8141_v24 = vpop.eup %8140 }
 0x5df   : > { %4056 = vrot.lane.b32.xlu2 %v8141_v24, %s12957_s2  ;;  %v4501_v24 = vunpack.c.0.s8 %v10800_v18 }
 0x639   : > { %v4057_v19 = vpop.permute.xlu2 %4056 }
 0x63a   : > { %v4059_v21 = vmul.f32 %v4057_v19, %v4051_v37  ;;  %v4781_v37 = vcvt.s32.f32 %v4529_v16  ;;  %v4769_v19 = vcvt.s32.f32 %v4517_v60  ;;  %v4697_v16 = vcvt.s32.f32 %v4445_v14 }
 0x63c   : > { %v4060_v0 = vadd.f32 %v4059_v21, %v4049_v32  ;;  %v4390_v32 = vunpack.c.1.s8 %v10862_v42  ;;  %v4767_v21 = vcvt.s32.f32 %v4515_v7  ;;  %4847 = vmatpush.msrb.mxu0 %v4781_v37  ;;  %v4699_v7 = vcvt.s32.f32 %v4447_v51 }
 0x63d   : > { %v4419_v37 = vunpack.c.2.s8 %v10847_v23  ;;  %v4377_v51 = vunpack.c.2.s8 %v10872_v62 }
 0x63e   : > { %7822 = vmatmul.msk.f32.vlgmr.msra.gmra.mxu3 %vm3748_vm11, %v4060_v0  ;;  %7824 = vmatmul.msk.f32.vlgmr.msra.gmra.mxu2 %vm3748_vm11, %v4060_v0 }
 0x63f   : > { %4156 = vmatpush.msra.mxu3 %v4079_v15  ;;  %v10893_v15 = vld [vmem:[%s12896_s4 + $0x54] sm:$0xff]  ;;  %4812 = vmatpush.msrb.mxu2 %v4767_v21 }
 0x640   : > { %4892 = vmatpush.msra.mxu0 %v4769_v19  ;;  %v4348_v29 = vunpack.c.1.s8 %v10893_v15  ;;  %v4417_v19 = vunpack.c.0.s8 %v10847_v23  ;;  %v10948_v21 = vld [vmem:[%s12896_s4 + $0x158] sm:$0xff] }
 0x641   : > { %4157 = vmatpush.msra.mxu3 %v4074_v59  ;;  %v4753_v59 = vcvt.s32.f32 %v4501_v24 }
 0x643   : > { %4158 = vmatpush.msra.mxu3 %v4069_v10  ;;  %v4489_v10 = vunpack.c.2.s8 %v10805_v38  ;;  %4813 = vmatpush.msrb.mxu2 %v4753_v59  ;;  %v10954_v59 = vld [vmem:[%s12896_s4 + $0x13c] sm:$0xff] }
 0x645   : > { %4159 = vmatpush.msra.mxu3 %v4064_v43  ;;  %v4362_v43 = vunpack.c.1.s8 %v10888_v22  ;;  %v4741_v5 = vcvt.s32.f32 %v4489_v10  ;;  %v4683_v10 = vcvt.s32.f32 %v4431_v11  ;;  %v4544_v11 = vunpack.c.1.s8 %v10867_v63 }
 0x646   : > { %7823 = vmatmul.msk.f32.vlgmr.msrb.gmra.mxu3 %vm3748_vm11, %v4060_v0 }
 0x647   : > { %4176 = vmatpush.msrb.mxu3 %v4080_v28  ;;  %v4755_v28 = vcvt.s32.f32 %v4503_v55 }
 0x649   : > { %4177 = vmatpush.msrb.mxu3 %v4075_v52  ;;  %v4487_v52 = vunpack.c.0.s8 %v10805_v38  ;;  %4893 = vmatpush.msra.mxu0 %v4755_v28  ;;  %v4477_v28 = vunpack.c.0.s8 %v10948_v21 }
 0x64b   : > { %4178 = vmatpush.msrb.mxu3 %v4070_v57  ;;  %v4475_v57 = vunpack.c.2.s8 %v10813_v13  ;;  %v4739_v12 = vcvt.s32.f32 %v4487_v52  ;;  %4894 = vmatpush.msra.mxu0 %v4741_v5  ;;  %v4403_v52 = vunpack.c.0.s8 %v10852_v8  ;;  %v4729_v5 = vcvt.s32.f32 %v4477_v28 }
 0x64c   : > { %v4796_v28 = vcvt.s32.f32 %v4544_v11 }
 0x64d   : > { %4179 = vmatpush.msrb.mxu3 %v4065_v33  ;;  %v4628_v33 = vcvt.s32.f32 %v4376_v44  ;;  %v4727_v45 = vcvt.s32.f32 %v4475_v57  ;;  %4814 = vmatpush.msrb.mxu2 %v4739_v12  ;;  %v4491_v44 = vunpack.c.0.s8 %v10939_v27  ;;  %v4671_v57 = vcvt.s32.f32 %v4419_v37 }
 0x64e   : > { %7825 = vmatmul.msk.f32.vlgmr.msra.gmra.mxu3 %vm3748_vm11, %v4060_v0  ;;  %v4655_v12 = vcvt.s32.f32 %v4403_v52  ;;  %v10996_v52 = vld [vmem:[%s12896_s4 + $0xb0] sm:$0xff] }
 0x64f   : > { %4815 = vmatpush.msrb.mxu2 %v4725_v46  ;;  %4895 = vmatpush.msra.mxu0 %v4727_v45 }
 0x650   : > { %4886 = vmatpush.msra.mxu3 %v4796_v28 }
 0x656   : > { %7826 = vmatmul.msk.f32.vlgmr.msrb.gmra.mxu3 %vm3748_vm11, %v4060_v0  ;;  %v4642_v0 = vcvt.s32.f32 %v4390_v32  ;;  %v10931_v32 = vld [vmem:[%s12896_s4 + $0x190] sm:$0xff]  ;;  %vm4215_vm11 = vcmask 1040384  }
 0x657   : > { %v4505_v24 = vunpack.c.0.s8 %v10931_v32 }
 0x658   : > { %4861 = vmatpush.msra.mxu1 %v4642_v0  ;;  %v4405_v0 = vunpack.c.2.s8 %v10852_v8 }
 0x659   : > { %v4757_v55 = vcvt.s32.f32 %v4505_v24  ;;  %v10986_v24 = vld [vmem:[%s12896_s4 + $0xcc] sm:$0xff] }
 0x65a   : > { %4862 = vmatpush.msra.mxu1 %v4628_v33  ;;  %v4669_v33 = vcvt.s32.f32 %v4417_v19  ;;  %v4657_v40 = vcvt.s32.f32 %v4405_v0  ;;  %v4407_v19 = vunpack.c.0.s8 %v10986_v24  ;;  %v4335_v0 = vunpack.c.2.s8 %v10902_v50 }
 0x6c1   : > { %v10821_v53 = vpop.f32.mrf.mxu3  ;;  %v4141_v25 = vpop.f32.mrf.mxu2 }
 0x6c2   : > { %v4187_v20 = vrot.slane %v4141_v25, 7  ;;  %v4196_v48 = vrot.slane %v4141_v25, 6  ;;  %v10910_v25 = vld [vmem:[%s12896_s4 + $0x1c] sm:$0xff] }
 0x6c4   : > { %4198 = vrot.lane.b32.xlu2 %v4196_v48, %s12957_s2  ;;  %4190 = vrot.lane.b32.xlu1 %v4187_v20, %s12958_s12  ;;  %v4614_v20 = vcvt.s32.f32 %v4362_v43  ;;  %v4334_v48 = vunpack.c.1.s8 %v10902_v50  ;;  %v4743_v43 = vcvt.s32.f32 %v4491_v44  ;;  %v4224_v44 = vld [vmem:[#allocation7] sm:$0xff] }
 0x6c5   : > { %4226 = vst [vmem:[#allocation1] ss:$2 sm:$0xff] %v4224_v44 }
 0x6c6   : > { %4863 = vmatpush.msra.mxu1 %v4614_v20  ;;  %v4586_v26 = vcvt.s32.f32 %v4334_v48  ;;  %v4389_v48 = vunpack.c.0.s8 %v10862_v42 }
 0x6c9   : > { %v10826_v56 = vpop.f32.mrf.mxu3 }
 0x6ca   : > { %v4186_v47 = vrot.slane %v10826_v56, 7 }
 0x6cc   : > { %4188 = vrot.lane.b32.xlu0 %v4186_v47, %s12958_s12  ;;  %v10918_v47 = vld [vmem:[%s12896_s4] sm:$0xff] }
 0x6cd   : > { %v4306_v60 = vunpack.c.1.s8 %v10918_v47 }
 0x6cf   : > { %v4558_v54 = vcvt.s32.f32 %v4306_v60  ;;  %v4629_v60 = vcvt.s32.f32 %v4377_v51 }
 0x6d1   : > { %v4161_v36 = vpop.f32.mrf.mxu3 }
 0x6d2   : > { %v4197_v2 = vrot.slane %v4161_v36, 6  ;;  %v4206_v31 = vrot.slane %v4161_v36, 5  ;;  %v4711_v36 = vcvt.s32.f32 %v4459_v4  ;;  %v10963_v4 = vld [vmem:[%s12896_s4 + $0x120] sm:$0xff] }
 0x6d3   : > { %v4449_v45 = vunpack.c.0.s8 %v10963_v4 }
 0x6d4   : > { %4208 = vrot.lane.b32.xlu1 %v4206_v31, %s12959_s18  ;;  %4200 = vrot.lane.b32.xlu0 %v4197_v2, %s12957_s2  ;;  %v4600_v2 = vcvt.s32.f32 %v4348_v29  ;;  %v4320_v31 = vunpack.c.1.s8 %v10910_v25  ;;  %v4463_v29 = vunpack.c.0.s8 %v10954_v59 }
 0x6d5   : > { %4816 = vmatpush.msrb.mxu2 %v4711_v36  ;;  %v10971_v36 = vld [vmem:[%s12896_s4 + $0x104] sm:$0xff] }
 0x6d6   : > { %4864 = vmatpush.msra.mxu1 %v4600_v2  ;;  %v4572_v35 = vcvt.s32.f32 %v4320_v31  ;;  %v4715_v46 = vcvt.s32.f32 %v4463_v29  ;;  %v4641_v2 = vcvt.s32.f32 %v4389_v48  ;;  %v4701_v31 = vcvt.s32.f32 %v4449_v45 }
 0x6d7   : > { %4817 = vmatpush.msrb.mxu2 %v4697_v16  ;;  %v4349_v16 = vunpack.c.2.s8 %v10893_v15  ;;  %v4530_v29 = vunpack.c.1.s8 %v10879_v34  ;;  %v4319_v45 = vunpack.c.0.s8 %v10910_v25 }
 0x6d8   : > { %4865 = vmatpush.msra.mxu1 %v4586_v26  ;;  %v4435_v26 = vunpack.c.0.s8 %v10971_v36 }
 0x6d9   : > { %v4181_v6 = vpop.f32.mrf.mxu3  ;;  %4818 = vmatpush.msrb.mxu2 %v4683_v10  ;;  %v4601_v10 = vcvt.s32.f32 %v4349_v16  ;;  %v4782_v48 = vcvt.s32.f32 %v4530_v29  ;;  %v11022_v16 = vld [vmem:[%s12896_s4 + $0x5c] sm:$0xff] }
 0x6da   : > { %v4207_v49 = vrot.slane %v4181_v6, 5  ;;  %v4713_v6 = vcvt.s32.f32 %v4461_v41  ;;  %4866 = vmatpush.msra.mxu1 %v4572_v35  ;;  %v4391_v41 = vunpack.c.2.s8 %v10862_v42 }
 0x6db   : > { %4819 = vmatpush.msrb.mxu2 %v4669_v33  ;;  %v4587_v33 = vcvt.s32.f32 %v4335_v0  ;;  %4887 = vmatpush.msra.mxu3 %v4782_v48  ;;  %v11034_v0 = vld [vmem:[%s12896_s4 + $0x24] sm:$0xff] }
 0x6dc   : > { %4210 = vrot.lane.b32.xlu2 %v4207_v49, %s12959_s18  ;;  %v10924_v49 = vld [vmem:[%s12896_s4 + $0x1ac] sm:$0xff]  ;;  %4896 = vmatpush.msra.mxu0 %v4713_v6  ;;  %v4643_v20 = vcvt.s32.f32 %v4391_v41  ;;  %v4375_v6 = vunpack.c.0.s8 %v10872_v62  ;;  %v4545_v41 = vunpack.c.2.s8 %v10867_v63  ;;  %v4323_v28 = vunpack.c.0.s8 %v11034_v0  ;;  %s703_s18 = scalar_lea.vmem %s12967_s8, %s12966_s29 }
 0x6dd   : > { %v4519_v17 = vunpack.c.0.s8 %v10924_v49  ;;  %4867 = vmatpush.msra.mxu1 %v4558_v54  ;;  %4820 = vmatpush.msrb.mxu2 %v4655_v12  ;;  %v4687_v54 = vcvt.s32.f32 %v4435_v26  ;;  %v4321_v12 = vunpack.c.2.s8 %v10910_v25 }
 0x6de   : > { %4897 = vmatpush.msra.mxu0 %v4699_v7  ;;  %v4363_v7 = vunpack.c.2.s8 %v10888_v22  ;;  %v4627_v35 = vcvt.s32.f32 %v4375_v6  ;;  %v11013_v6 = vld [vmem:[%s12896_s4 + $0x78] sm:$0xff]  ;;  %v4797_v26 = vcvt.s32.f32 %v4545_v41  ;;  %v4575_v29 = vcvt.s32.f32 %v4323_v28 }
 0x6df   : > { %v4771_v3 = vcvt.s32.f32 %v4519_v17  ;;  %v10979_v17 = vld [vmem:[%s12896_s4 + $0xe8] sm:$0xff]  ;;  %4821 = vmatpush.msrb.mxu2 %v4641_v2 }
 0x6e0   : > { %4898 = vmatpush.msra.mxu0 %v4685_v30  ;;  %v4421_v14 = vunpack.c.0.s8 %v10979_v17  ;;  %v4615_v9 = vcvt.s32.f32 %v4363_v7  ;;  %4926 = vmatpush.msrb.mxu3 %v4797_v26 }
 0x6e1   : > { %4972 = vmatpush.msrb.mxu1 %v4771_v3  ;;  %v4361_v3 = vunpack.c.0.s8 %v10888_v22  ;;  %4822 = vmatpush.msrb.mxu2 %v4627_v35  ;;  %v4307_v35 = vunpack.c.2.s8 %v10918_v47 }
 0x6e2   : > { %4899 = vmatpush.msra.mxu0 %v4671_v57  ;;  %v4673_v37 = vcvt.s32.f32 %v4421_v14  ;;  %v4659_v57 = vcvt.s32.f32 %v4407_v19  ;;  %v4365_v14 = vunpack.c.0.s8 %v11013_v6 }
 0x6e3   : > { %4973 = vmatpush.msrb.mxu1 %v4757_v55  ;;  %v4347_v55 = vunpack.c.0.s8 %v10893_v15  ;;  %v4613_v30 = vcvt.s32.f32 %v4361_v3  ;;  %v4305_v3 = vunpack.c.0.s8 %v10918_v47 }
 0x6e4   : > { %4900 = vmatpush.msra.mxu0 %v4657_v40  ;;  %v4333_v40 = vunpack.c.0.s8 %v10902_v50  ;;  %v4617_v44 = vcvt.s32.f32 %v4365_v14 }
 0x6e5   : > { %4974 = vmatpush.msrb.mxu1 %v4743_v43  ;;  %v4599_v43 = vcvt.s32.f32 %v4347_v55  ;;  %4823 = vmatpush.msrb.mxu2 %v4613_v30  ;;  %v4557_v11 = vcvt.s32.f32 %v4305_v3  ;;  %v11027_v30 = vld [vmem:[%s12896_s4 + $0x40] sm:$0xff] }
 0x6e6   : > { %4901 = vmatpush.msra.mxu0 %v4643_v20  ;;  %v4585_v20 = vcvt.s32.f32 %v4333_v40  ;;  %v4337_v19 = vunpack.c.0.s8 %v11027_v30 }
 0x6e7   : > { %4975 = vmatpush.msrb.mxu1 %v4729_v5  ;;  %v4393_v5 = vunpack.c.0.s8 %v10996_v52  ;;  %4824 = vmatpush.msrb.mxu2 %v4599_v43  ;;  %v4546_v43 = vunpack.c.3.s8 %v10867_v63 }
 0x6e8   : > { %4902 = vmatpush.msra.mxu0 %v4629_v60  ;;  %v4571_v60 = vcvt.s32.f32 %v4319_v45 }
 0x6e9   : > { %4976 = vmatpush.msrb.mxu1 %v4715_v46  ;;  %v11006_v46 = vld [vmem:[%s12896_s4 + $0x94] sm:$0xff]  ;;  %v4645_v2 = vcvt.s32.f32 %v4393_v5  ;;  %4825 = vmatpush.msrb.mxu2 %v4585_v20  ;;  %v4798_v40 = vcvt.s32.f32 %v4546_v43  ;;  %v4532_v5 = vunpack.c.3.s8 %v10879_v34 }
 0x6ea   : > { %4903 = vmatpush.msra.mxu0 %v4615_v9  ;;  %v4379_v51 = vunpack.c.0.s8 %v11006_v46  ;;  %v4559_v9 = vcvt.s32.f32 %v4307_v35 }
 0x6eb   : > { %4977 = vmatpush.msrb.mxu1 %v4701_v31  ;;  %v4573_v31 = vcvt.s32.f32 %v4321_v12  ;;  %4826 = vmatpush.msrb.mxu2 %v4571_v60  ;;  %v4784_v41 = vcvt.s32.f32 %v4532_v5 }
 0x6ec   : > { %4904 = vmatpush.msra.mxu0 %v4601_v10  ;;  %v4631_v7 = vcvt.s32.f32 %v4379_v51  ;;  %v4518_v51 = vunpack.c.3.s8 %v10795_v39 }
 0x6ed   : > { %4978 = vmatpush.msrb.mxu1 %v4687_v54  ;;  %v4531_v54 = vunpack.c.2.s8 %v10879_v34  ;;  %4827 = vmatpush.msrb.mxu2 %v4557_v11  ;;  %v11051_v34 = vld [vmem:[%s12896_s4 + $0x1e4] sm:$0xff] }
 0x6ee   : > { %4905 = vmatpush.msra.mxu0 %v4587_v33  ;;  %v11041_v33 = vld [vmem:[%s12896_s4 + $0x8] sm:$0xff] }
 0x6ef   : > { %4979 = vmatpush.msrb.mxu1 %v4673_v37  ;;  %v4783_v55 = vcvt.s32.f32 %v4531_v54  ;;  %v4351_v37 = vunpack.c.0.s8 %v11022_v16  ;;  %v4309_v12 = vunpack.c.0.s8 %v11041_v33  ;;  %4966 = vmatpush.msra.mxu2 %v4798_v40  ;;  %v4506_v54 = vunpack.c.1.s8 %v10931_v32  ;;  %v11061_v11 = vld [vmem:[%s12896_s4 + $0x1c8] sm:$0xff] }
 0x6f0   : > { %4906 = vmatpush.msra.mxu0 %v4573_v31  ;;  %v4504_v31 = vunpack.c.3.s8 %v10800_v18  ;;  %v4228_v18 = vld.sshfl [vmem:[#allocation1 + $0x8] sm:$0xff pattern:$0x75316420]  ;;  %v4490_v40 = vunpack.c.3.s8 %v10805_v38 }
 0x6f1   : > { %4980 = vmatpush.msrb.mxu1 %v4659_v57  ;;  %4927 = vmatpush.msrb.mxu3 %v4783_v55  ;;  %v4603_v10 = vcvt.s32.f32 %v4351_v37  ;;  %v4589_v57 = vcvt.s32.f32 %v4337_v19  ;;  %v4561_v20 = vcvt.s32.f32 %v4309_v12  ;;  %v4550_v55 = vunpack.c.3.s8 %v11051_v34 }
 0x6f2   : > { %4907 = vmatpush.msra.mxu0 %v4559_v9  ;;  %4967 = vmatpush.msra.mxu2 %v4784_v41  ;;  %v4756_v9 = vcvt.s32.f32 %v4504_v31  ;;  %v4533_v41 = vunpack.c.0.s8 %v11061_v11 }
 0x6f3   : > { %4981 = vmatpush.msrb.mxu1 %v4645_v2  ;;  %v4520_v2 = vunpack.c.1.s8 %v10924_v49  ;;  %v4802_v38 = vcvt.s32.f32 %v4550_v55  ;;  %v4548_v55 = vunpack.c.1.s8 %v11051_v34 }
 0x6f5   : > { %4982 = vmatpush.msrb.mxu1 %v4631_v7  ;;  %v4770_v7 = vcvt.s32.f32 %v4518_v51  ;;  %v4772_v35 = vcvt.s32.f32 %v4520_v2  ;;  %v4742_v2 = vcvt.s32.f32 %v4490_v40  ;;  %v11116_v40 = vld [vmem:[%s12896_s4 + $0x1b4] sm:$0xff] }
 0x6f7   : > { %4983 = vmatpush.msrb.mxu1 %v4617_v44  ;;  %v4547_v44 = vunpack.c.0.s8 %v11051_v34 }
 0x6f9   : > { %4984 = vmatpush.msrb.mxu1 %v4603_v10  ;;  %v4227_v10 = vld.sshfl [vmem:[#allocation1] sm:$0xff pattern:$0x75316420]  ;;  %v4799_v51 = vcvt.s32.f32 %v4547_v44 }
 0x6fb   : > { %4985 = vmatpush.msrb.mxu1 %v4589_v57 }
 0x6fd   : > { %4986 = vmatpush.msrb.mxu1 %v4575_v29  ;;  %v4492_v29 = vunpack.c.1.s8 %v10939_v27 }
 0x6ff   : > { %4987 = vmatpush.msrb.mxu1 %v4561_v20  ;;  %v4744_v31 = vcvt.s32.f32 %v4492_v29  ;;  %v4800_v29 = vcvt.s32.f32 %v4548_v55 }
 0x71e   : > { %v4199_v63 = vpop.permute.xlu2 %4198 }
 0x736   : > { %v4191_v48 = vpop.permute.xlu1 %4190  ;;  %v4211_v60 = vpop.permute.xlu2 %4210 }
 0x737   : > { %v4217_v39 = vsel %vm4215_vm11, %v10826_v56, %v4191_v48 }
 0x73e   : > { %v4189_v45 = vpop.permute.xlu0 %4188 }
 0x73f   : > { %v4192_v26 = vsel %vm2329_vm7, %v4189_v45, %v4191_v48  ;;  %v4476_v48 = vunpack.c.3.s8 %v10813_v13  ;;  %v4478_v45 = vunpack.c.1.s8 %v10948_v21  ;;  %v11091_v13 = vld [vmem:[%s12896_s4 + $0x1ec] sm:$0xff] }
 0x740   : > { %v4216_v37 = vsel %vm4215_vm11, %v10821_v53, %v4192_v26  ;;  %v4536_v53 = vunpack.c.3.s8 %v11061_v11  ;;  %v4462_v26 = vunpack.c.3.s8 %v10818_v1  ;;  %v4450_v1 = vunpack.c.1.s8 %v10963_v4 }
 0x746   : > { %v4209_v3 = vpop.permute.xlu1 %4208  ;;  %v4201_v14 = vpop.permute.xlu0 %4200 }
 0x747   : > { %v4212_v19 = vsel %vm3691_vm14, %v4209_v3, %v4211_v60  ;;  %v4202_v56 = vsel %vm2379_vm2, %v4199_v63, %v4201_v14  ;;  %v4220_v43 = vsel %vm4218_vm13, %v4217_v39, %v4201_v14  ;;  %v4758_v63 = vcvt.s32.f32 %v4506_v54 }
 0x748   : > { %v4219_v28 = vsel %vm4218_vm13, %v4216_v37, %v4202_v56  ;;  %v4223_v57 = vsel %vm4221_vm12, %v4220_v43, %v4211_v60  ;;  %v4464_v60 = vunpack.c.1.s8 %v10954_v59  ;;  %v4788_v54 = vcvt.s32.f32 %v4536_v53 }
 0x749   : > { %v4222_v5 = vsel %vm4221_vm12, %v4219_v28, %v4212_v19  ;;  %v11074_v12 = vadd.f32 %v4228_v18, %v4223_v57  ;;  %v4785_v39 = vcvt.s32.f32 %v4533_v41  ;;  %v4448_v3 = vunpack.c.3.s8 %v10836_v58  ;;  %v11100_v18 = vld [vmem:[%s12896_s4 + $0x1d0] sm:$0xff] }
 0x74a   : > { %v11078_v20 = vadd.f32 %v4227_v10, %v4222_v5  ;;  %v4551_v14 = vunpack.c.0.s8 %v11091_v13  ;;  %v4716_v44 = vcvt.s32.f32 %v4464_v60  ;;  %v4434_v37 = vunpack.c.3.s8 %v10842_v61 }
 0x74b   : > { %7827 = vmatmul.msk.f32.vlgmr.msrb.gmra.mxu0 %vm3771_vm10, %v11074_v12  ;;  %7828 = vmatmul.msk.f32.vlgmr.msra.gmra.mxu3 %vm3771_vm10, %v11074_v12  ;;  %v4436_v58 = vunpack.c.1.s8 %v10971_v36  ;;  %v4537_v19 = vunpack.c.0.s8 %v11100_v18  ;;  %v4534_v10 = vunpack.c.1.s8 %v11061_v11  ;;  %v4700_v56 = vcvt.s32.f32 %v4448_v3  ;;  %v11143_v3 = vld [vmem:[%s12896_s4 + $0x160] sm:$0xff] }
 0x74c   : > { %4932 = vmatpush.msra.mxu3 %v4770_v7  ;;  %5012 = vmatpush.msrb.mxu0 %v4772_v35  ;;  %v4728_v7 = vcvt.s32.f32 %v4476_v48  ;;  %v4730_v35 = vcvt.s32.f32 %v4478_v45  ;;  %v4702_v43 = vcvt.s32.f32 %v4450_v1  ;;  %v4420_v28 = vunpack.c.3.s8 %v10847_v23  ;;  %v11126_v48 = vld [vmem:[%s12896_s4 + $0x198] sm:$0xff] }
 0x74d   : > { %4828 = vmatmul.f32.vlgmr.msrb.gmra.mxu2 %v11078_v20  ;;  %4868 = vmatmul.f32.vlgmr.msra.gmra.mxu1 %v11078_v20  ;;  %v4422_v57 = vunpack.c.1.s8 %v10979_v17  ;;  %v4803_v61 = vcvt.s32.f32 %v4551_v14  ;;  %v4686_v5 = vcvt.s32.f32 %v4434_v37  ;;  %v4688_v53 = vcvt.s32.f32 %v4436_v58 }
 0x74e   : > { %4933 = vmatpush.msra.mxu3 %v4756_v9  ;;  %5013 = vmatpush.msrb.mxu0 %v4758_v63  ;;  %v4714_v9 = vcvt.s32.f32 %v4462_v26  ;;  %v4406_v23 = vunpack.c.3.s8 %v10852_v8  ;;  %v4408_v41 = vunpack.c.1.s8 %v10986_v24  ;;  %v4789_v63 = vcvt.s32.f32 %v4537_v19  ;;  %v11134_v26 = vld [vmem:[%s12896_s4 + $0x17c] sm:$0xff] }
 0x74f   : > { %5126 = vmatpush.msra.mxu1 %v4802_v38  ;;  %5006 = vmatpush.msrb.mxu2 %v4799_v51  ;;  %v4786_v45 = vcvt.s32.f32 %v4534_v10  ;;  %v4672_v38 = vcvt.s32.f32 %v4420_v28  ;;  %v4674_v51 = vcvt.s32.f32 %v4422_v57  ;;  %v4524_v8 = vunpack.c.1.s8 %v11116_v40 }
 0x750   : > { %4934 = vmatpush.msra.mxu3 %v4742_v2  ;;  %5014 = vmatpush.msrb.mxu0 %v4744_v31  ;;  %v4392_v2 = vunpack.c.3.s8 %v10862_v42  ;;  %v4394_v31 = vunpack.c.1.s8 %v10996_v52  ;;  %v4549_v60 = vunpack.c.2.s8 %v11051_v34  ;;  %v4380_v42 = vunpack.c.1.s8 %v11006_v46 }
 0x751   : > { %5127 = vmatpush.msra.mxu1 %v4788_v54  ;;  %5007 = vmatpush.msrb.mxu2 %v4785_v39  ;;  %v4658_v54 = vcvt.s32.f32 %v4406_v23  ;;  %v4660_v39 = vcvt.s32.f32 %v4408_v41  ;;  %v4535_v1 = vunpack.c.2.s8 %v11061_v11  ;;  %v4776_v34 = vcvt.s32.f32 %v4524_v8 }
 0x752   : > { %4935 = vmatpush.msra.mxu3 %v4728_v7  ;;  %5015 = vmatpush.msrb.mxu0 %v4730_v35  ;;  %v4510_v7 = vunpack.c.1.s8 %v11126_v48  ;;  %v4378_v35 = vunpack.c.3.s8 %v10872_v62  ;;  %v4644_v14 = vcvt.s32.f32 %v4392_v2  ;;  %v4496_v55 = vunpack.c.1.s8 %v11134_v26 }
 0x753   : > { %4908 = vmatmul.f32.vlgmr.msra.gmra.mxu0 %v11078_v20  ;;  %7829 = vmatmul.msk.f32.vlgmr.msrb.gmra.mxu3 %vm3771_vm10, %v11074_v12  ;;  %v4646_v62 = vcvt.s32.f32 %v4394_v31  ;;  %v4801_v37 = vcvt.s32.f32 %v4549_v60  ;;  %v4482_v10 = vunpack.c.1.s8 %v11143_v3  ;;  %v4350_v11 = vunpack.c.3.s8 %v10893_v15 }
 0x754   : > { %4936 = vmatpush.msra.mxu3 %v4714_v9  ;;  %5016 = vmatpush.msrb.mxu0 %v4716_v44  ;;  %v4364_v9 = vunpack.c.3.s8 %v10888_v22  ;;  %v4366_v44 = vunpack.c.1.s8 %v11013_v6  ;;  %v4762_v58 = vcvt.s32.f32 %v4510_v7  ;;  %v4630_v19 = vcvt.s32.f32 %v4378_v35 }
 0x755   : > { %7830 = vmatmul.msk.f32.vlgmr.msra.gmra.mxu2 %vm3771_vm10, %v11074_v12  ;;  %4988 = vmatmul.f32.vlgmr.msrb.gmra.mxu1 %v11078_v20  ;;  %v4632_v22 = vcvt.s32.f32 %v4380_v42  ;;  %v4787_v28 = vcvt.s32.f32 %v4535_v1  ;;  %v4748_v57 = vcvt.s32.f32 %v4496_v55  ;;  %v4522_v15 = vunpack.c.3.s8 %v10924_v49 }
 0x756   : > { %4937 = vmatpush.msra.mxu3 %v4700_v56  ;;  %5017 = vmatpush.msrb.mxu0 %v4702_v43  ;;  %v11154_v56 = vld [vmem:[%s12896_s4 + $0x144] sm:$0xff]  ;;  %v4352_v43 = vunpack.c.1.s8 %v11022_v16  ;;  %v4336_v23 = vunpack.c.3.s8 %v10902_v50  ;;  %v4734_v41 = vcvt.s32.f32 %v4482_v10  ;;  %v4322_v50 = vunpack.c.3.s8 %v10910_v25 }
 0x757   : > { %5166 = vmatpush.msrb.mxu1 %v4803_v61  ;;  %5046 = vmatpush.msra.mxu2 %v4800_v29  ;;  %v4616_v61 = vcvt.s32.f32 %v4364_v9  ;;  %v11165_v29 = vld [vmem:[%s12896_s4 + $0x128] sm:$0xff]  ;;  %v4774_v31 = vcvt.s32.f32 %v4522_v15  ;;  %v4324_v60 = vunpack.c.1.s8 %v11034_v0  ;;  %v4308_v42 = vunpack.c.3.s8 %v10918_v47 }
 0x758   : > { %4938 = vmatpush.msra.mxu3 %v4686_v5  ;;  %5018 = vmatpush.msrb.mxu0 %v4688_v53  ;;  %v4618_v5 = vcvt.s32.f32 %v4366_v44  ;;  %v4468_v53 = vunpack.c.1.s8 %v11154_v56  ;;  %v4604_v8 = vcvt.s32.f32 %v4352_v43  ;;  %v4454_v2 = vunpack.c.1.s8 %v11165_v29 }
 0x759   : > { %5167 = vmatpush.msrb.mxu1 %v4789_v63  ;;  %5047 = vmatpush.msra.mxu2 %v4786_v45  ;;  %v4602_v63 = vcvt.s32.f32 %v4350_v11  ;;  %v4338_v45 = vunpack.c.1.s8 %v11027_v30  ;;  %v4588_v7 = vcvt.s32.f32 %v4336_v23  ;;  %v4310_v25 = vunpack.c.1.s8 %v11041_v33 }
 0x75a   : > { %4939 = vmatpush.msra.mxu3 %v4672_v38  ;;  %5019 = vmatpush.msrb.mxu0 %v4674_v51  ;;  %v4508_v38 = vunpack.c.3.s8 %v10931_v32  ;;  %v11174_v51 = vld [vmem:[%s12896_s4 + $0x10c] sm:$0xff]  ;;  %v4706_v55 = vcvt.s32.f32 %v4454_v2  ;;  %v4574_v9 = vcvt.s32.f32 %v4322_v50  ;;  %v4576_v47 = vcvt.s32.f32 %v4324_v60  ;;  %v11225_v60 = vld [vmem:[%s12896_s4 + $0x80] sm:$0xff] }
 0x75b   : > { %v4440_v35 = vunpack.c.1.s8 %v11174_v51  ;;  %v4590_v1 = vcvt.s32.f32 %v4338_v45  ;;  %v4560_v11 = vcvt.s32.f32 %v4308_v42  ;;  %v4562_v43 = vcvt.s32.f32 %v4310_v25  ;;  %v11235_v25 = vld [vmem:[%s12896_s4 + $0x64] sm:$0xff] }
 0x75c   : > { %4940 = vmatpush.msra.mxu3 %v4658_v54  ;;  %5020 = vmatpush.msrb.mxu0 %v4660_v39  ;;  %v4494_v54 = vunpack.c.3.s8 %v10939_v27  ;;  %v4720_v39 = vcvt.s32.f32 %v4468_v53  ;;  %v4466_v15 = vunpack.c.3.s8 %v10954_v59  ;;  %v4493_v23 = vunpack.c.2.s8 %v10939_v27 }
 0x75d   : > { %7831 = vmatmul.msk.f32.vlgmr.msrb.gmra.mxu2 %vm3771_vm10, %v11074_v12  ;;  %7834 = vmatmul.msk.f32.vlgmr.msra.gmra.mxu1 %vm3771_vm10, %v11074_v12  ;;  %v4692_v10 = vcvt.s32.f32 %v4440_v35  ;;  %v4479_v27 = vunpack.c.2.s8 %v10948_v21 }
 0x75e   : > { %5172 = vmatpush.msra.mxu1 %v4776_v34  ;;  %4941 = vmatpush.msra.mxu3 %v4644_v14  ;;  %v4760_v34 = vcvt.s32.f32 %v4508_v38  ;;  %v11186_v14 = vld [vmem:[%s12896_s4 + $0xf0] sm:$0xff]  ;;  %v4746_v44 = vcvt.s32.f32 %v4494_v54  ;;  %v4718_v54 = vcvt.s32.f32 %v4466_v15  ;;  %v4745_v42 = vcvt.s32.f32 %v4493_v23 }
 0x75f   : > { %5021 = vmatpush.msrb.mxu0 %v4646_v62  ;;  %5086 = vmatpush.msrb.mxu2 %v4801_v37  ;;  %v4521_v62 = vunpack.c.2.s8 %v10924_v49  ;;  %v4480_v37 = vunpack.c.3.s8 %v10948_v21  ;;  %v4426_v49 = vunpack.c.1.s8 %v11186_v14  ;;  %v4439_v15 = vunpack.c.0.s8 %v11174_v51 }
 0x760   : > { %5173 = vmatpush.msra.mxu1 %v4762_v58  ;;  %4942 = vmatpush.msra.mxu3 %v4630_v19  ;;  %v4523_v58 = vunpack.c.0.s8 %v11116_v40  ;;  %v11198_v19 = vld [vmem:[%s12896_s4 + $0xd4] sm:$0xff]  ;;  %v4396_v23 = vunpack.c.3.s8 %v10996_v52 }
 0x761   : > { %5022 = vmatpush.msrb.mxu0 %v4632_v22  ;;  %5087 = vmatpush.msrb.mxu2 %v4787_v28  ;;  %v4507_v22 = vunpack.c.2.s8 %v10931_v32  ;;  %v4509_v28 = vunpack.c.0.s8 %v11126_v48  ;;  %v4732_v32 = vcvt.s32.f32 %v4480_v37  ;;  %v4678_v45 = vcvt.s32.f32 %v4426_v49 }
 0x762   : > { %5174 = vmatpush.msra.mxu1 %v4748_v57  ;;  %4943 = vmatpush.msra.mxu3 %v4616_v61  ;;  %v11206_v57 = vld [vmem:[%s12896_s4 + $0xb8] sm:$0xff]  ;;  %v4773_v61 = vcvt.s32.f32 %v4521_v62  ;;  %v4775_v53 = vcvt.s32.f32 %v4523_v58  ;;  %v4424_v62 = vunpack.c.3.s8 %v10979_v17  ;;  %v4451_v37 = vunpack.c.2.s8 %v10963_v4 }
 0x763   : > { %5023 = vmatpush.msrb.mxu0 %v4618_v5  ;;  %v4412_v5 = vunpack.c.1.s8 %v11198_v19  ;;  %v4759_v38 = vcvt.s32.f32 %v4507_v22  ;;  %v4398_v2 = vunpack.c.1.s8 %v11206_v57  ;;  %v4761_v50 = vcvt.s32.f32 %v4509_v28 }
 0x764   : > { %5175 = vmatpush.msra.mxu1 %v4734_v41  ;;  %4944 = vmatpush.msra.mxu3 %v4602_v63  ;;  %v4495_v41 = vunpack.c.0.s8 %v11134_v26  ;;  %v11215_v63 = vld [vmem:[%s12896_s4 + $0x9c] sm:$0xff]  ;;  %v4453_v58 = vunpack.c.0.s8 %v11165_v29  ;;  %v4410_v22 = vunpack.c.3.s8 %v10986_v24 }
 0x765   : > { %5024 = vmatpush.msrb.mxu0 %v4604_v8  ;;  %7832 = vmatmul.msk.f32.vlgmr.msra.gmra.mxu2 %vm3771_vm10, %v11074_v12  ;;  %v4452_v8 = vunpack.c.3.s8 %v10963_v4  ;;  %v4384_v35 = vunpack.c.1.s8 %v11215_v63  ;;  %v4437_v4 = vunpack.c.2.s8 %v10971_v36 }
 0x766   : > { %5092 = vmatpush.msra.mxu2 %v4774_v31  ;;  %7835 = vmatmul.msk.f32.vlgmr.msrb.gmra.mxu1 %vm3771_vm10, %v11074_v12  ;;  %v4481_v31 = vunpack.c.0.s8 %v11143_v3  ;;  %v4747_v21 = vcvt.s32.f32 %v4495_v41 }
 0x767   : > { %5176 = vmatpush.msra.mxu1 %v4720_v39  ;;  %4945 = vmatpush.msra.mxu3 %v4588_v7  ;;  %v4664_v39 = vcvt.s32.f32 %v4412_v5  ;;  %v4438_v7 = vunpack.c.3.s8 %v10971_v36  ;;  %v4636_v49 = vcvt.s32.f32 %v4384_v35  ;;  %v11255_v5 = vld [vmem:[%s12896_s4 + $0x2c] sm:$0xff]  ;;  %v4423_v36 = vunpack.c.2.s8 %v10979_v17 }
 0x768   : > { %5025 = vmatpush.msrb.mxu0 %v4590_v1  ;;  %5093 = vmatpush.msra.mxu2 %v4760_v34  ;;  %v4465_v1 = vunpack.c.2.s8 %v10954_v59  ;;  %v4467_v34 = vunpack.c.0.s8 %v11154_v56  ;;  %v4731_v59 = vcvt.s32.f32 %v4479_v27  ;;  %v4409_v17 = vunpack.c.2.s8 %v10986_v24 }
 0x769   : > { %5177 = vmatpush.msra.mxu1 %v4706_v55  ;;  %4946 = vmatpush.msra.mxu3 %v4574_v9  ;;  %v4704_v55 = vcvt.s32.f32 %v4452_v8  ;;  %v4650_v9 = vcvt.s32.f32 %v4398_v2  ;;  %v4425_v8 = vunpack.c.0.s8 %v11186_v14  ;;  %v11264_v2 = vld [vmem:[%s12896_s4 + $0x10] sm:$0xff]  ;;  %v4411_v35 = vunpack.c.0.s8 %v11198_v19 }
 0x76a   : > { %5026 = vmatpush.msrb.mxu0 %v4576_v47  ;;  %5094 = vmatpush.msra.mxu2 %v4746_v44  ;;  %v4370_v47 = vunpack.c.1.s8 %v11225_v60  ;;  %v4733_v44 = vcvt.s32.f32 %v4481_v31  ;;  %v4717_v28 = vcvt.s32.f32 %v4465_v1  ;;  %v4382_v31 = vunpack.c.3.s8 %v11006_v46 }
 0x76b   : > { %5178 = vmatpush.msra.mxu1 %v4692_v10  ;;  %4947 = vmatpush.msra.mxu3 %v4560_v11  ;;  %v11246_v10 = vld [vmem:[%s12896_s4 + $0x48] sm:$0xff]  ;;  %v4690_v11 = vcvt.s32.f32 %v4438_v7  ;;  %v4691_v7 = vcvt.s32.f32 %v4439_v15  ;;  %v4395_v24 = vunpack.c.2.s8 %v10996_v52  ;;  %v4661_v52 = vcvt.s32.f32 %v4409_v17 }
 0x76c   : > { %5027 = vmatpush.msrb.mxu0 %v4562_v43  ;;  %4948 = vmatmul.f32.vlgmr.msra.gmra.mxu3 %v11078_v20  ;;  %v4356_v43 = vunpack.c.1.s8 %v11235_v25  ;;  %v4342_v41 = vunpack.c.1.s8 %v11246_v10  ;;  %v4340_v15 = vunpack.c.3.s8 %v11027_v30  ;;  %v4312_v17 = vunpack.c.3.s8 %v11041_v33 }
 0x76d   : > { %5028 = vmatmul.f32.vlgmr.msrb.gmra.mxu0 %v11078_v20  ;;  %5052 = vmatpush.msrb.mxu3 %v4773_v61  ;;  %v4719_v61 = vcvt.s32.f32 %v4467_v34  ;;  %v4368_v34 = vunpack.c.3.s8 %v11013_v6 }
 0x76e   : > { %5095 = vmatpush.msra.mxu2 %v4732_v32  ;;  %5132 = vmatpush.msra.mxu0 %v4775_v53  ;;  %v4676_v32 = vcvt.s32.f32 %v4424_v62  ;;  %v4622_v53 = vcvt.s32.f32 %v4370_v47  ;;  %v4608_v27 = vcvt.s32.f32 %v4356_v43  ;;  %v4594_v1 = vcvt.s32.f32 %v4342_v41  ;;  %v11281_v47 = vld [vmem:[%s12896_s4 + $0x1d8] sm:$0xf] }
 0x76f   : > { %5179 = vmatpush.msra.mxu1 %v4678_v45  ;;  %5053 = vmatpush.msrb.mxu3 %v4759_v38  ;;  %v4703_v45 = vcvt.s32.f32 %v4451_v37  ;;  %v4705_v38 = vcvt.s32.f32 %v4453_v58  ;;  %v4677_v62 = vcvt.s32.f32 %v4425_v8  ;;  %v4354_v58 = vunpack.c.3.s8 %v11022_v16  ;;  %v11306_v8 = vld [vmem:[%s12896_s4 + $0x184] sm:$0xf] }
 0x770   : > { %7833 = vmatmul.msk.f32.vlgmr.msrb.gmra.mxu2 %vm3771_vm10, %v11074_v12  ;;  %5133 = vmatpush.msra.mxu0 %v4761_v50  ;;  %v4662_v50 = vcvt.s32.f32 %v4410_v22  ;;  %v4397_v22 = vunpack.c.0.s8 %v11206_v57  ;;  %v4381_v43 = vunpack.c.2.s8 %v11006_v46 }
 0x771   : > { %5096 = vmatpush.msra.mxu2 %v4718_v54  ;;  %5180 = vmatpush.msra.mxu1 %v4664_v39  ;;  %v4328_v54 = vunpack.c.1.s8 %v11255_v5  ;;  %v4689_v39 = vcvt.s32.f32 %v4437_v4  ;;  %v4541_v4 = vunpack.c.0.s8 %v11281_v47 }
 0x772   : > { %5054 = vmatpush.msrb.mxu3 %v4745_v42  ;;  %5134 = vmatpush.msra.mxu0 %v4747_v21  ;;  %v11273_v42 = vld [vmem:[%s12896_s4 + $0x1f4] sm:$0xf]  ;;  %v4648_v21 = vcvt.s32.f32 %v4396_v23  ;;  %v4383_v23 = vunpack.c.0.s8 %v11215_v63 }
 0x773   : > { %5097 = vmatpush.msra.mxu2 %v4704_v55  ;;  %5181 = vmatpush.msra.mxu1 %v4650_v9  ;;  %v4314_v55 = vunpack.c.1.s8 %v11264_v2  ;;  %v4675_v9 = vcvt.s32.f32 %v4423_v36  ;;  %v4555_v37 = vunpack.c.0.s8 %v11273_v42  ;;  %v4326_v36 = vunpack.c.3.s8 %v11034_v0 }
 0x774   : > { %5055 = vmatpush.msrb.mxu3 %v4731_v59  ;;  %5135 = vmatpush.msra.mxu0 %v4733_v44  ;;  %v4634_v59 = vcvt.s32.f32 %v4382_v31  ;;  %v4580_v44 = vcvt.s32.f32 %v4328_v54  ;;  %v4369_v31 = vunpack.c.0.s8 %v11225_v60 }
 0x775   : > { %5098 = vmatpush.msra.mxu2 %v4690_v11  ;;  %5182 = vmatpush.msra.mxu1 %v4636_v49  ;;  %v11288_v11 = vld [vmem:[%s12896_s4 + $0x1bc] sm:$0xf]  ;;  %v4663_v49 = vcvt.s32.f32 %v4411_v35  ;;  %v4807_v41 = vcvt.s32.f32 %v4555_v37  ;;  %v4635_v35 = vcvt.s32.f32 %v4383_v23 }
 0x776   : > { %5056 = vmatpush.msrb.mxu3 %v4717_v28  ;;  %5136 = vmatpush.msra.mxu0 %v4719_v61  ;;  %v4620_v28 = vcvt.s32.f32 %v4368_v34  ;;  %v4566_v61 = vcvt.s32.f32 %v4314_v55  ;;  %v4528_v46 = vunpack.c.1.s8 %v11288_v11  ;;  %v4500_v34 = vunpack.c.1.s8 %v11306_v8  ;;  %v11318_v55 = vld [vmem:[%s12896_s4 + $0x168] sm:$0xf] }
 0x777   : > { %5099 = vmatpush.msra.mxu2 %v4676_v32  ;;  %5183 = vmatpush.msra.mxu1 %v4622_v53  ;;  %v11297_v32 = vld [vmem:[%s12896_s4 + $0x1a0] sm:$0xf]  ;;  %v4647_v53 = vcvt.s32.f32 %v4395_v24 }
 0x778   : > { %5057 = vmatpush.msrb.mxu3 %v4703_v45  ;;  %5137 = vmatpush.msra.mxu0 %v4705_v38  ;;  %v4606_v45 = vcvt.s32.f32 %v4354_v58  ;;  %v4367_v38 = vunpack.c.2.s8 %v11013_v6  ;;  %v4514_v54 = vunpack.c.1.s8 %v11297_v32  ;;  %v4353_v6 = vunpack.c.2.s8 %v11022_v16 }
 0x779   : > { %5100 = vmatpush.msra.mxu2 %v4662_v50  ;;  %5184 = vmatpush.msra.mxu1 %v4608_v27  ;;  %v4649_v50 = vcvt.s32.f32 %v4397_v22  ;;  %v4633_v27 = vcvt.s32.f32 %v4381_v43  ;;  %v4578_v16 = vcvt.s32.f32 %v4326_v36  ;;  %v4564_v58 = vcvt.s32.f32 %v4312_v17  ;;  %v11327_v22 = vld [vmem:[%s12896_s4 + $0x14c] sm:$0xf] }
 0x77a   : > { %5058 = vmatpush.msrb.mxu3 %v4689_v39  ;;  %5138 = vmatpush.msra.mxu0 %v4691_v7  ;;  %v4793_v39 = vcvt.s32.f32 %v4541_v4  ;;  %v4592_v7 = vcvt.s32.f32 %v4340_v15  ;;  %v4766_v24 = vcvt.s32.f32 %v4514_v54  ;;  %v4605_v37 = vcvt.s32.f32 %v4353_v6 }
 0x77b   : > { %5101 = vmatpush.msra.mxu2 %v4648_v21  ;;  %5185 = vmatpush.msra.mxu1 %v4594_v1  ;;  %v4780_v21 = vcvt.s32.f32 %v4528_v46  ;;  %v4355_v1 = vunpack.c.0.s8 %v11235_v25  ;;  %v4327_v4 = vunpack.c.0.s8 %v11255_v5  ;;  %v4526_v15 = vunpack.c.3.s8 %v11116_v40 }
 0x77c   : > { %5059 = vmatpush.msrb.mxu3 %v4675_v9  ;;  %5139 = vmatpush.msra.mxu0 %v4677_v62  ;;  %v4619_v9 = vcvt.s32.f32 %v4367_v38  ;;  %v4621_v62 = vcvt.s32.f32 %v4369_v31  ;;  %v4313_v36 = vunpack.c.0.s8 %v11264_v2  ;;  %v4552_v6 = vunpack.c.1.s8 %v11091_v13 }
 0x77d   : > { %5102 = vmatpush.msra.mxu2 %v4634_v59  ;;  %5186 = vmatpush.msra.mxu1 %v4580_v44  ;;  %v4553_v59 = vunpack.c.2.s8 %v11091_v13  ;;  %v4339_v44 = vunpack.c.2.s8 %v11027_v30  ;;  %v4607_v43 = vcvt.s32.f32 %v4355_v1  ;;  %v4325_v30 = vunpack.c.2.s8 %v11034_v0 }
 0x77e   : > { %5060 = vmatpush.msrb.mxu3 %v4661_v52  ;;  %5140 = vmatpush.msra.mxu0 %v4663_v49  ;;  %v4341_v52 = vunpack.c.0.s8 %v11246_v10  ;;  %v4486_v49 = vunpack.c.1.s8 %v11318_v55  ;;  %v4498_v1 = vunpack.c.3.s8 %v11134_v26 }
 0x77f   : > { %5103 = vmatpush.msra.mxu2 %v4620_v28  ;;  %5187 = vmatpush.msra.mxu1 %v4566_v61  ;;  %v4752_v28 = vcvt.s32.f32 %v4500_v34  ;;  %v4539_v61 = vunpack.c.2.s8 %v11100_v18  ;;  %v4805_v23 = vcvt.s32.f32 %v4553_v59  ;;  %v4591_v46 = vcvt.s32.f32 %v4339_v44 }
 0x780   : > { %5188 = vmatmul.f32.vlgmr.msra.gmra.mxu1 %v11078_v20  ;;  %5061 = vmatpush.msrb.mxu3 %v4647_v53  ;;  %v11336_v53 = vld [vmem:[%s12896_s4 + $0x130] sm:$0xf]  ;;  %v4593_v0 = vcvt.s32.f32 %v4341_v52  ;;  %v4738_v38 = vcvt.s32.f32 %v4486_v49  ;;  %v4577_v31 = vcvt.s32.f32 %v4325_v30  ;;  %v4565_v34 = vcvt.s32.f32 %v4313_v36  ;;  %v11367_v52 = vld [vmem:[%s12896_s4 + $0xdc] sm:$0xf] }
 0x781   : > { %5326 = vmatpush.msrb.mxu1 %v4807_v41  ;;  %5104 = vmatpush.msra.mxu2 %v4606_v45  ;;  %v4472_v41 = vunpack.c.1.s8 %v11327_v22  ;;  %v4311_v45 = vunpack.c.2.s8 %v11041_v33  ;;  %v4458_v54 = vunpack.c.1.s8 %v11336_v53  ;;  %v4579_v33 = vcvt.s32.f32 %v4327_v4 }
 0x782   : > { %5141 = vmatpush.msra.mxu0 %v4649_v50  ;;  %5062 = vmatpush.msrb.mxu3 %v4633_v27  ;;  %v4512_v50 = vunpack.c.3.s8 %v11126_v48  ;;  %v4791_v27 = vcvt.s32.f32 %v4539_v61  ;;  %v4804_v44 = vcvt.s32.f32 %v4552_v6  ;;  %v4470_v4 = vunpack.c.3.s8 %v11154_v56  ;;  %v11398_v6 = vld [vmem:[%s12896_s4 + $0x88] sm:$0xf] }
 0x783   : > { %5327 = vmatpush.msrb.mxu1 %v4793_v39  ;;  %5105 = vmatpush.msra.mxu2 %v4592_v7  ;;  %v11346_v39 = vld [vmem:[%s12896_s4 + $0x114] sm:$0xf]  ;;  %v4778_v7 = vcvt.s32.f32 %v4526_v15  ;;  %v4724_v17 = vcvt.s32.f32 %v4472_v41  ;;  %v4710_v59 = vcvt.s32.f32 %v4458_v54  ;;  %v11376_v15 = vld [vmem:[%s12896_s4 + $0xc0] sm:$0xf] }
 0x784   : > { %5142 = vmatpush.msra.mxu0 %v4635_v35  ;;  %5063 = vmatpush.msrb.mxu3 %v4619_v9  ;;  %v4563_v35 = vcvt.s32.f32 %v4311_v45  ;;  %v4764_v9 = vcvt.s32.f32 %v4512_v50  ;;  %v4497_v45 = vunpack.c.2.s8 %v11134_v26  ;;  %v4499_v50 = vunpack.c.0.s8 %v11306_v8 }
 0x785   : > { %5332 = vmatpush.msra.mxu1 %v4780_v21  ;;  %5106 = vmatpush.msra.mxu2 %v4578_v16  ;;  %v4554_v21 = vunpack.c.3.s8 %v11091_v13  ;;  %v4444_v16 = vunpack.c.1.s8 %v11346_v39  ;;  %v4540_v13 = vunpack.c.3.s8 %v11100_v18  ;;  %v4722_v54 = vcvt.s32.f32 %v4470_v4 }
 0x786   : > { %5143 = vmatpush.msra.mxu0 %v4621_v62  ;;  %5064 = vmatpush.msrb.mxu3 %v4605_v37  ;;  %v4538_v62 = vunpack.c.1.s8 %v11100_v18  ;;  %v4525_v37 = vunpack.c.2.s8 %v11116_v40  ;;  %v4511_v40 = vunpack.c.2.s8 %v11126_v48  ;;  %v4442_v8 = vunpack.c.3.s8 %v11174_v51 }
 0x787   : > { %5333 = vmatpush.msra.mxu1 %v4766_v24  ;;  %5107 = vmatpush.msra.mxu2 %v4564_v58  ;;  %v11359_v24 = vld [vmem:[%s12896_s4 + $0xf8] sm:$0xf]  ;;  %v4484_v58 = vunpack.c.3.s8 %v11143_v3  ;;  %v4806_v49 = vcvt.s32.f32 %v4554_v21  ;;  %v4696_v61 = vcvt.s32.f32 %v4444_v16  ;;  %v4485_v21 = vunpack.c.0.s8 %v11318_v55 }
 0x788   : > { %5144 = vmatpush.msra.mxu0 %v4607_v43  ;;  %5108 = vmatmul.f32.vlgmr.msra.gmra.mxu2 %v11078_v20  ;;  %v4750_v43 = vcvt.s32.f32 %v4498_v1  ;;  %v4430_v18 = vunpack.c.1.s8 %v11359_v24  ;;  %v4790_v30 = vcvt.s32.f32 %v4538_v62  ;;  %v4777_v41 = vcvt.s32.f32 %v4525_v37  ;;  %v11407_v62 = vld [vmem:[%s12896_s4 + $0x6c] sm:$0xf] }
 0x789   : > { %5334 = vmatpush.msra.mxu1 %v4752_v28  ;;  %5246 = vmatpush.msrb.mxu2 %v4805_v23  ;;  %v4527_v28 = vunpack.c.0.s8 %v11288_v11  ;;  %v4792_v23 = vcvt.s32.f32 %v4540_v13  ;;  %v4513_v11 = vunpack.c.0.s8 %v11297_v32  ;;  %v4736_v48 = vcvt.s32.f32 %v4484_v58  ;;  %v11389_v32 = vld [vmem:[%s12896_s4 + $0xa4] sm:$0xf]  ;;  %v11416_v58 = vld [vmem:[%s12896_s4 + $0x50] sm:$0xf] }
 0x78a   : > { %7839 = vmatmul.msk.f32.vlgmr.msrb.gmra.mxu1 %vm3771_vm10, %v11074_v12  ;;  %5065 = vmatpush.msrb.mxu3 %v4591_v46  ;;  %v4416_v46 = vunpack.c.1.s8 %v11367_v52  ;;  %v4682_v36 = vcvt.s32.f32 %v4430_v18  ;;  %v4388_v1 = vunpack.c.1.s8 %v11389_v32  ;;  %v4428_v16 = vunpack.c.3.s8 %v11186_v14 }
 0x78b   : > { %5145 = vmatpush.msra.mxu0 %v4593_v0  ;;  %5335 = vmatpush.msra.mxu1 %v4738_v38  ;;  %v4456_v0 = vunpack.c.3.s8 %v11165_v29  ;;  %v4779_v38 = vcvt.s32.f32 %v4527_v28  ;;  %v4765_v26 = vcvt.s32.f32 %v4513_v11  ;;  %v4374_v55 = vunpack.c.1.s8 %v11398_v6 }
 0x78c   : > { %5247 = vmatpush.msrb.mxu2 %v4791_v27  ;;  %5066 = vmatpush.msrb.mxu3 %v4577_v31  ;;  %v4402_v27 = vunpack.c.1.s8 %v11376_v15  ;;  %v4763_v31 = vcvt.s32.f32 %v4511_v40  ;;  %v4455_v37 = vunpack.c.2.s8 %v11165_v29  ;;  %v4360_v28 = vunpack.c.1.s8 %v11407_v62  ;;  %v11425_v40 = vld [vmem:[%s12896_s4 + $0x34] sm:$0xf] }
 0x78d   : > { %5146 = vmatpush.msra.mxu0 %v4579_v33  ;;  %5336 = vmatpush.msra.mxu1 %v4724_v17  ;;  %v4668_v33 = vcvt.s32.f32 %v4416_v46  ;;  %v4749_v17 = vcvt.s32.f32 %v4497_v45  ;;  %v4441_v29 = vunpack.c.2.s8 %v11174_v51  ;;  %v4626_v4 = vcvt.s32.f32 %v4374_v55  ;;  %v11438_v45 = vld [vmem:[%s12896_s4 + $0x18] sm:$0xf] }
 0x78e   : > { %5252 = vmatpush.msra.mxu2 %v4778_v7  ;;  %5067 = vmatpush.msrb.mxu3 %v4563_v35  ;;  %v4483_v7 = vunpack.c.2.s8 %v11143_v3  ;;  %v4708_v35 = vcvt.s32.f32 %v4456_v0  ;;  %v4469_v3 = vunpack.c.2.s8 %v11154_v56  ;;  %v4414_v56 = vunpack.c.3.s8 %v11198_v19 }
 0x78f   : > { %5147 = vmatpush.msra.mxu0 %v4565_v34  ;;  %5337 = vmatpush.msra.mxu1 %v4710_v59  ;;  %v4751_v34 = vcvt.s32.f32 %v4499_v50  ;;  %v4471_v59 = vunpack.c.0.s8 %v11327_v22  ;;  %v4457_v22 = vunpack.c.0.s8 %v11336_v53  ;;  %v4346_v11 = vunpack.c.1.s8 %v11416_v58 }
 0x790   : > { %5253 = vmatpush.msra.mxu2 %v4764_v9  ;;  %5068 = vmatmul.f32.vlgmr.msrb.gmra.mxu3 %v11078_v20  ;;  %v4654_v9 = vcvt.s32.f32 %v4402_v27  ;;  %v4735_v13 = vcvt.s32.f32 %v4483_v7  ;;  %v4721_v18 = vcvt.s32.f32 %v4469_v3  ;;  %v4707_v51 = vcvt.s32.f32 %v4455_v37 }
 0x791   : > { %5148 = vmatmul.f32.vlgmr.msra.gmra.mxu0 %v11078_v20  ;;  %5206 = vmatpush.msra.mxu3 %v4804_v44  ;;  %v4694_v44 = vcvt.s32.f32 %v4442_v8  ;;  %v4723_v53 = vcvt.s32.f32 %v4471_v59  ;;  %v4666_v46 = vcvt.s32.f32 %v4414_v56  ;;  %v4709_v0 = vcvt.s32.f32 %v4457_v22 }
 0x792   : > { %5286 = vmatpush.msrb.mxu0 %v4806_v49  ;;  %5254 = vmatpush.msra.mxu2 %v4750_v43  ;;  %v4737_v49 = vcvt.s32.f32 %v4485_v21  ;;  %v4640_v43 = vcvt.s32.f32 %v4388_v1  ;;  %v4693_v50 = vcvt.s32.f32 %v4441_v29  ;;  %v4318_v7 = vunpack.c.1.s8 %v11438_v45 }
 0x793   : > { %5338 = vmatpush.msra.mxu1 %v4696_v61  ;;  %5207 = vmatpush.msra.mxu3 %v4790_v30  ;;  %v4680_v61 = vcvt.s32.f32 %v4428_v16  ;;  %v4400_v30 = vunpack.c.3.s8 %v11206_v57  ;;  %v4358_v21 = vunpack.c.3.s8 %v11235_v25  ;;  %v4401_v1 = vunpack.c.0.s8 %v11376_v15 }
 0x794   : > { %7837 = vmatmul.msk.f32.vlgmr.msrb.gmra.mxu2 %vm3771_vm10, %v11074_v12  ;;  %5287 = vmatpush.msrb.mxu0 %v4792_v23  ;;  %v4443_v23 = vunpack.c.0.s8 %v11346_v39  ;;  %v4429_v39 = vunpack.c.0.s8 %v11359_v24  ;;  %v4570_v16 = vcvt.s32.f32 %v4318_v7  ;;  %v4387_v59 = vunpack.c.0.s8 %v11389_v32 }
 0x795   : > { %5212 = vmatpush.msrb.mxu3 %v4777_v41  ;;  %5255 = vmatpush.msra.mxu2 %v4736_v48  ;;  %v4427_v41 = vunpack.c.2.s8 %v11186_v14  ;;  %v4386_v48 = vunpack.c.3.s8 %v11215_v63  ;;  %v4652_v27 = vcvt.s32.f32 %v4400_v30  ;;  %v4413_v14 = vunpack.c.2.s8 %v11198_v19 }
 0x796   : > { %5292 = vmatpush.msra.mxu0 %v4779_v38  ;;  %5339 = vmatpush.msra.mxu1 %v4682_v36  ;;  %v4612_v38 = vcvt.s32.f32 %v4360_v28  ;;  %v4332_v36 = vunpack.c.1.s8 %v11425_v40  ;;  %v4610_v15 = vcvt.s32.f32 %v4358_v21  ;;  %v4330_v37 = vunpack.c.3.s8 %v11255_v5 }
 0x797   : > { %5213 = vmatpush.msrb.mxu3 %v4763_v31  ;;  %5256 = vmatpush.msra.mxu2 %v4722_v54  ;;  %v4372_v31 = vunpack.c.3.s8 %v11225_v60  ;;  %v4695_v54 = vcvt.s32.f32 %v4443_v23  ;;  %v4679_v24 = vcvt.s32.f32 %v4427_v41  ;;  %v4638_v8 = vcvt.s32.f32 %v4386_v48 }
 0x798   : > { %5293 = vmatpush.msra.mxu0 %v4765_v26  ;;  %5340 = vmatpush.msra.mxu1 %v4668_v33  ;;  %v4598_v26 = vcvt.s32.f32 %v4346_v11  ;;  %v4415_v33 = vunpack.c.0.s8 %v11367_v52  ;;  %v4584_v19 = vcvt.s32.f32 %v4332_v36  ;;  %v4316_v22 = vunpack.c.3.s8 %v11264_v2 }
 0x799   : > { %5214 = vmatpush.msrb.mxu3 %v4749_v17  ;;  %5257 = vmatpush.msra.mxu2 %v4708_v35  ;;  %v4399_v17 = vunpack.c.2.s8 %v11206_v57  ;;  %v4681_v35 = vcvt.s32.f32 %v4429_v39  ;;  %v4624_v52 = vcvt.s32.f32 %v4372_v31  ;;  %v4344_v57 = vunpack.c.3.s8 %v11246_v10 }
 0x79a   : > { %5294 = vmatpush.msra.mxu0 %v4751_v34  ;;  %5341 = vmatpush.msra.mxu1 %v4654_v9  ;;  %v4665_v34 = vcvt.s32.f32 %v4413_v14  ;;  %v4385_v9 = vunpack.c.2.s8 %v11215_v63  ;;  %v4667_v3 = vcvt.s32.f32 %v4415_v33  ;;  %v4373_v63 = vunpack.c.0.s8 %v11398_v6 }
 0x79b   : > { %7836 = vmatmul.msk.f32.vlgmr.msra.gmra.mxu3 %vm3771_vm10, %v11074_v12  ;;  %7838 = vmatmul.msk.f32.vlgmr.msrb.gmra.mxu0 %vm3771_vm10, %v11074_v12  ;;  %v4651_v55 = vcvt.s32.f32 %v4399_v17  ;;  %v4596_v32 = vcvt.s32.f32 %v4344_v57  ;;  %v4582_v6 = vcvt.s32.f32 %v4330_v37  ;;  %v4329_v30 = vunpack.c.2.s8 %v11255_v5 }
 0x79c   : > { %5215 = vmatpush.msrb.mxu3 %v4735_v13  ;;  %5258 = vmatpush.msra.mxu2 %v4694_v44  ;;  %v4371_v13 = vunpack.c.2.s8 %v11225_v60  ;;  %v4653_v44 = vcvt.s32.f32 %v4401_v1  ;;  %v4637_v56 = vcvt.s32.f32 %v4385_v9  ;;  %v4359_v60 = vunpack.c.0.s8 %v11407_v62 }
 0x79d   : > { %5295 = vmatpush.msra.mxu0 %v4737_v49  ;;  %5342 = vmatpush.msra.mxu1 %v4640_v43  ;;  %v4357_v49 = vunpack.c.2.s8 %v11235_v25  ;;  %v4639_v43 = vcvt.s32.f32 %v4387_v59  ;;  %v4345_v25 = vunpack.c.0.s8 %v11416_v58  ;;  %v4581_v58 = vcvt.s32.f32 %v4329_v30 }
 0x79e   : > { %5216 = vmatpush.msrb.mxu3 %v4721_v18  ;;  %5259 = vmatpush.msra.mxu2 %v4680_v61  ;;  %v4623_v28 = vcvt.s32.f32 %v4371_v13  ;;  %v4343_v18 = vunpack.c.2.s8 %v11246_v10  ;;  %v4625_v61 = vcvt.s32.f32 %v4373_v63  ;;  %v4611_v62 = vcvt.s32.f32 %v4359_v60 }
 0x79f   : > { %5296 = vmatpush.msra.mxu0 %v4723_v53  ;;  %5343 = vmatpush.msra.mxu1 %v4626_v4  ;;  %v4609_v29 = vcvt.s32.f32 %v4357_v49  ;;  %v4568_v53 = vcvt.s32.f32 %v4316_v22  ;;  %v4331_v4 = vunpack.c.0.s8 %v11425_v40  ;;  %v4315_v10 = vunpack.c.2.s8 %v11264_v2 }
 0x7a0   : > { %5217 = vmatpush.msrb.mxu3 %v4707_v51  ;;  %5260 = vmatpush.msra.mxu2 %v4666_v46  ;;  %v4595_v23 = vcvt.s32.f32 %v4343_v18  ;;  %v4597_v11 = vcvt.s32.f32 %v4345_v25  ;;  %v4317_v51 = vunpack.c.0.s8 %v11438_v45  ;;  %v4556_v46 = vunpack.c.1.s8 %v11273_v42 }
 0x7a1   : > { %5297 = vmatpush.msra.mxu0 %v4709_v0  ;;  %5344 = vmatpush.msra.mxu1 %v4612_v38  ;;  %v4583_v5 = vcvt.s32.f32 %v4331_v4  ;;  %v4567_v40 = vcvt.s32.f32 %v4315_v10  ;;  %v4542_v41 = vunpack.c.1.s8 %v11281_v47 }
 0x7a2   : > { %5218 = vmatpush.msrb.mxu3 %v4693_v50  ;;  %5261 = vmatpush.msra.mxu2 %v4652_v27  ;;  %v4569_v2 = vcvt.s32.f32 %v4317_v51  ;;  %v4808_v48 = vcvt.s32.f32 %v4556_v46 }
 0x7a3   : > { %5298 = vmatpush.msra.mxu0 %v4695_v54  ;;  %5345 = vmatpush.msra.mxu1 %v4598_v26  ;;  %v4794_v45 = vcvt.s32.f32 %v4542_v41  ;;  %v5474_v41 = vld [vmem:[%s12907_s15 + $0x8] sm:$0xf] }
 0x7a4   : > { %5219 = vmatpush.msrb.mxu3 %v4679_v24  ;;  %5262 = vmatpush.msra.mxu2 %v4638_v8 }
 0x7a5   : > { %5299 = vmatpush.msra.mxu0 %v4681_v35  ;;  %5346 = vmatpush.msra.mxu1 %v4584_v19 }
 0x7a6   : > { %5220 = vmatpush.msrb.mxu3 %v4665_v34  ;;  %5263 = vmatpush.msra.mxu2 %v4624_v52 }
 0x7a7   : > { %5300 = vmatpush.msra.mxu0 %v4667_v3  ;;  %5347 = vmatpush.msra.mxu1 %v4570_v16 }
 0x7a8   : > { %5348 = vmatmul.f32.vlgmr.msra.gmra.mxu1 %v11078_v20  ;;  %5221 = vmatpush.msrb.mxu3 %v4651_v55 }
 0x7a9   : > { %5264 = vmatpush.msra.mxu2 %v4610_v15  ;;  %5301 = vmatpush.msra.mxu0 %v4653_v44 }
 0x7aa   : > { %5222 = vmatpush.msrb.mxu3 %v4637_v56 }
 0x7ab   : > { %5265 = vmatpush.msra.mxu2 %v4596_v32  ;;  %5302 = vmatpush.msra.mxu0 %v4639_v43 }
 0x7ac   : > { %5223 = vmatpush.msrb.mxu3 %v4623_v28 }
 0x7ad   : > { %5266 = vmatpush.msra.mxu2 %v4582_v6  ;;  %5303 = vmatpush.msra.mxu0 %v4625_v61 }
 0x7ae   : > { %5224 = vmatpush.msrb.mxu3 %v4609_v29 }
 0x7af   : > { %5267 = vmatpush.msra.mxu2 %v4568_v53  ;;  %5304 = vmatpush.msra.mxu0 %v4611_v62 }
 0x7b0   : > { %5268 = vmatmul.f32.vlgmr.msra.gmra.mxu2 %v11078_v20  ;;  %5225 = vmatpush.msrb.mxu3 %v4595_v23 }
 0x7b1   : > { %5305 = vmatpush.msra.mxu0 %v4597_v11 }
 0x7b2   : > { %5226 = vmatpush.msrb.mxu3 %v4581_v58 }
 0x7b3   : > { %5306 = vmatpush.msra.mxu0 %v4583_v5 }
 0x7b4   : > { %5227 = vmatpush.msrb.mxu3 %v4567_v40 }
 0x7b5   : > { %5307 = vmatpush.msra.mxu0 %v4569_v2  ;;  %5228 = vmatmul.f32.vlgmr.msrb.gmra.mxu3 %v11078_v20  ;;  %v5473_v2 = vld [vmem:[%s12907_s15] sm:$0xff] }
 0x7b6   : > { %5308 = vmatmul.f32.vlgmr.msra.gmra.mxu0 %v11078_v20  ;;  %5366 = vmatpush.msra.mxu3 %v4808_v48 }
 0x7b8   : > { %5367 = vmatpush.msra.mxu3 %v4794_v45 }
 0x7bd   : > { %7840 = vmatmul.msk.f32.vlgmr.msra.gmra.mxu3 %vm3771_vm10, %v11074_v12 }
 0x7c8   : > { %v11474_v26 = vpop.f32.mrf.mxu0 }
 0x7ca   : > { %v4869_v38 = vpop.f32.mrf.mxu1 }
 0x7ce   : > { %v4889_v47 = vpop.f32.mrf.mxu3 }
 0x7cf   : > { %v11480_v6 = vadd.f32 %v4889_v47, %v4869_v38 }
 0x7d0   : > { %v11472_v42 = vpop.f32.mrf.mxu2  ;;  %v4909_v33 = vpop.f32.mrf.mxu0 }
 0x7d1   : > { %v5375_v53 = vrot.slane %v11480_v6, 4 }
 0x7d2   : > { %v4989_v50 = vpop.f32.mrf.mxu1 }
 0x7d6   : > { %v4929_v39 = vpop.f32.mrf.mxu3 }
 0x7d7   : > { %v4930_v22 = vadd.f32 %v4929_v39, %v4909_v33 }
 0x7d8   : > { %v4969_v0 = vpop.f32.mrf.mxu2 }
 0x7d9   : > { %v5376_v25 = vrot.slane %v4930_v22, 4  ;;  %v11557_v22 = vld [vmem:[%s12897_s5 + $0x1d4] sm:$0xff] }
 0x7da   : > { %v5129_v7 = vpop.f32.mrf.mxu1 }
 0x7db   : > { %v8129_v23 = vpack.i.bf16 %v5376_v25, %v5375_v53 }
 0x7e0   : > { %v5009_v36 = vpop.f32.mrf.mxu2 }
 0x7e1   : > { %v5010_v14 = vadd.f32 %v5009_v36, %v4989_v50 }
 0x7e3   : > { %v5169_v35 = vpop.f32.mrf.mxu1  ;;  %v5398_v51 = vrot.slane %v5010_v14, 4 }
 0x7e8   : > { %v5049_v20 = vpop.f32.mrf.mxu2 }
 0x7ea   : > { %v5029_v24 = vpop.f32.mrf.mxu0 }
 0x7eb   : > { %v5050_v62 = vadd.f32 %v5049_v20, %v5029_v24 }
 0x7ed   : > { %v5399_v10 = vrot.slane %v5050_v62, 4  ;;  %v11574_v62 = vld [vmem:[%s12897_s5 + $0x1b0] sm:$0xff] }
 0x7ef   : > { %v4949_v27 = vpop.f32.mrf.mxu3  ;;  %v8124_v58 = vpack.i.bf16 %v5399_v10, %v5398_v51  ;;  %v5904_v10 = vunpack.c.0.s8 %v11557_v22 }
 0x7f0   : > { %v4970_v31 = vadd.f32 %v4969_v0, %v4949_v27 }
 0x7f2   : > { %v8104_v54 = vpack.i.bf16 %v5010_v14, %v4970_v31  ;;  %v5377_v5 = vrot.slane %v4970_v31, 4 }
 0x7f3   : > { %v5089_v12 = vpop.f32.mrf.mxu2 }
 0x7f4   : > { %8105 = vrot.lane.b32.xlu0 %v8104_v54, %s12960_s16 }
 0x7fd   : > { %v5189_v57 = vpop.f32.mrf.mxu1 }
 0x807   : > { %v5329_v15 = vpop.f32.mrf.mxu1 }
 0x80b   : > { %v5109_v8 = vpop.f32.mrf.mxu2 }
 0x80c   : > { %v5130_v17 = vadd.f32 %v5129_v7, %v5109_v8 }
 0x80e   : > { %v5149_v19 = vpop.f32.mrf.mxu0  ;;  %v5421_v21 = vrot.slane %v5130_v17, 4 }
 0x80f   : > { %v5170_v1 = vadd.f32 %v5169_v35, %v5149_v19 }
 0x811   : > { %v5422_v34 = vrot.slane %v5170_v1, 4 }
 0x813   : > { %v8114_v52 = vpack.i.bf16 %v5422_v34, %v5421_v21  ;;  %v5069_v9 = vpop.f32.mrf.mxu3 }
 0x814   : > { %v5090_v3 = vadd.f32 %v5089_v12, %v5069_v9 }
 0x815   : > { %8115 = vrot.lane.b32.xlu2 %v8114_v52, %s12961_s13 }
 0x816   : > { %v8109_v16 = vpack.i.bf16 %v5130_v17, %v5090_v3  ;;  %v5400_v46 = vrot.slane %v5090_v3, 4 }
 0x817   : > { %v5249_v55 = vpop.f32.mrf.mxu2 }
 0x818   : > { %8110 = vrot.lane.b32.xlu1 %v8109_v16, %s12958_s12  ;;  %v5289_v59 = vpop.f32.mrf.mxu0  ;;  %s12962_s12 = smov 104  }
 0x81e   : > { %v5209_v13 = vpop.f32.mrf.mxu3 }
 0x81f   : > { %v5210_v32 = vadd.f32 %v5209_v13, %v5189_v57  ;;  %v11530_v57 = vld [vmem:[%s12897_s5 + $0x21c] sm:$0xff] }
 0x820   : > { %v11537_v13 = vld [vmem:[%s12897_s5 + $0x360] sm:$0x55] }
 0x821   : > { %v5423_v40 = vrot.slane %v5210_v32, 4 }
 0x825   : > { %v5349_v29 = vpop.f32.mrf.mxu1 }
 0x833   : > { %v5309_v44 = vpop.f32.mrf.mxu0  ;;  %v5269_v37 = vpop.f32.mrf.mxu2 }
 0x834   : > { %v5330_v63 = vadd.f32 %v5329_v15, %v5309_v44  ;;  %v5290_v56 = vadd.f32 %v5289_v59, %v5269_v37  ;;  %v11542_v44 = vld [vmem:[%s12897_s5 + $0x1f8] sm:$0xff]  ;;  %v6102_v37 = vunpack.c.0.s8 %v11537_v13 }
 0x836   : > { %5458 = vrot.lane.b32.xlu0 %v5330_v63, %s12957_s2  ;;  %v5445_v60 = vrot.slane %v5290_v56, 4  ;;  %v5446_v11 = vrot.slane %v5330_v63, 4 }
 0x838   : > { %v5229_v49 = vpop.f32.mrf.mxu3 }
 0x839   : > { %v5250_v43 = vadd.f32 %v5249_v55, %v5229_v49  ;;  %v5940_v49 = vunpack.c.0.s8 %v11530_v57 }
 0x83b   : > { %v8119_v28 = vpack.i.bf16 %v5250_v43, %v5210_v32  ;;  %v5444_v18 = vrot.slane %v5250_v43, 4  ;;  %v11549_v32 = vld [vmem:[%s12897_s5 + $0x33c] sm:$0xff] }
 0x83c   : > { %v6084_v25 = vunpack.c.0.s8 %v11549_v32 }
 0x83d   : > { %8120 = vrot.lane.b32.xlu2 %v8119_v28, %s12962_s12  ;;  %v8134_v61 = vpack.i.bf16 %v5445_v60, %v5444_v18  ;;  %v6552_v60 = vcvt.s32.f32 %v6102_v37 }
 0x83f   : > { %8135 = vrot.lane.b32.xlu0 %v8134_v61, %s12963_s22  ;;  %v5922_v61 = vunpack.c.0.s8 %v11542_v44  ;;  %7847 = vmatpush.msk.msrb.mxu0 %vm2381_vm5, %v6552_v60 }
 0x840   : > { %v5369_v30 = vpop.f32.mrf.mxu3 }
 0x841   : > { %v5370_v4 = vadd.f32 %v5369_v30, %v5349_v29  ;;  %v11566_v29 = vld [vmem:[%s12897_s5 + $0x318] sm:$0xff]  ;;  %v4850_v30 = vadd.f32 %v11474_v26, %v11472_v42  ;;  %v11586_v42 = vld [vmem:[%s12897_s5 + $0x18c] sm:$0xff]  ;;  %v6534_v26 = vcvt.s32.f32 %v6084_v25 }
 0x843   : > { %5460 = vrot.lane.b32.xlu1 %v5370_v4, %s12957_s2  ;;  %v11580_v4 = vld [vmem:[%s12906_s14] sm:$0xff]  ;;  %6661 = vmatpush.msrb.mxu0 %v6534_v26 }
 0x845   : > { %8130 = vrot.lane.b32.xlu2 %v8129_v23, %s12964_s24  ;;  %v6390_v23 = vcvt.s32.f32 %v5940_v49 }
 0x847   : > { %5451 = vrot.lane.b32.xlu0 %v5446_v11, %s12963_s22  ;;  %v11591_v11 = vld [vmem:[%s12897_s5 + $0x2f4] sm:$0xff] }
 0x84b   : > { %8125 = vrot.lane.b32.xlu1 %v8124_v58, %s12965_s26  ;;  %v6066_v58 = vunpack.c.0.s8 %v11566_v29 }
 0x84d   : > { %5405 = vrot.lane.b32.xlu2 %v5400_v46, %s12965_s26 }
 0x84f   : > { %5382 = vrot.lane.b32.xlu0 %v5377_v5, %s12964_s24  ;;  %v6372_v5 = vcvt.s32.f32 %v5922_v61  ;;  %v6103_v61 = vunpack.c.1.s8 %v11537_v13 }
 0x853   : > { %5428 = vrot.lane.b32.xlu1 %v5423_v40, %s12961_s13  ;;  %v5886_v40 = vunpack.c.0.s8 %v11574_v62 }
 0x855   : > { %5482 = vperm.xlu2 %8028, %v5474_v41   ;;  %v11599_v41 = vld [vmem:[%s12897_s5 + $0x168] sm:$0xff] }
 0x85b   : > { %5477 = vperm.xlu1 %8027, %v5473_v2   ;;  %v6048_v2 = vunpack.c.0.s8 %v11591_v11 }
 0x866   : > { %v11498_v48 = vpop.permute.xlu0 %8105 }
 0x867   : > { %v8108_v9 = vunpack.i.h.bf16 %v11498_v48  ;;  %v8107_v3 = vunpack.i.l.bf16 %v11498_v48  ;;  %v11656_v48 = vld [vmem:[%s12906_s14 + $0x8] sm:$0xf] }
 0x869   : > { %v5393_v43 = vsel %vm2304_vm8, %v8107_v3, %v8108_v9 }
 0x86f   : > { %v11500_v45 = vpop.permute.xlu2 %8115 }
 0x870   : > { %v8118_v20 = vunpack.i.h.bf16 %v11500_v45  ;;  %v8117_v33 = vunpack.i.l.bf16 %v11500_v45 }
 0x872   : > { %v5430_v1 = vsel %vm2344_vm3, %v8117_v33, %v8118_v20 }
 0x88a   : > { %v11502_v0 = vpop.permute.xlu1 %8110 }
 0x88b   : > { %v8113_v27 = vunpack.i.h.bf16 %v11502_v0  ;;  %v8112_v14 = vunpack.i.l.bf16 %v11502_v0 }
 0x88d   : > { %v5416_v17 = vsel %vm2329_vm7, %v8112_v14, %v8113_v27  ;;  %v6516_v14 = vcvt.s32.f32 %v6066_v58  ;;  %v6553_v58 = vcvt.s32.f32 %v6103_v61 }
 0x88e   : > { %v5467_v52 = vsel %vm2381_vm5, %v5416_v17, %v5430_v1  ;;  %v5923_v1 = vunpack.c.1.s8 %v11542_v44 }
 0x88f   : > { %6662 = vmatpush.msrb.mxu0 %v6516_v14  ;;  %v11700_v14 = vld [vmem:[%s12897_s5 + $0x90] sm:$0xff]  ;;  %7850 = vmatpush.msk.msrb.mxu1 %vm2381_vm5, %v6553_v58  ;;  %v11739_v58 = vld [vmem:[%s12897_s5] sm:$0xff] }
 0x897   : > { %v8121_v38 = vpop.permute.xlu2 %8120 }
 0x898   : > { %v8123_v31 = vunpack.i.h.bf16 %v8121_v38  ;;  %v8122_v54 = vunpack.i.l.bf16 %v8121_v38 }
 0x89a   : > { %v5439_v8 = vsel %vm2354_vm6, %v8122_v54, %v8123_v31  ;;  %v11615_v54 = vld [vmem:[%s12897_s5 + $0x2ac] sm:$0xff] }
 0x89b   : > { %v6012_v0 = vunpack.c.0.s8 %v11615_v54 }
 0x89f   : > { %v11517_v19 = vpop.permute.xlu2 %8130 }
 0x8a0   : > { %v8133_v59 = vunpack.i.h.bf16 %v11517_v19  ;;  %v8132_v55 = vunpack.i.l.bf16 %v11517_v19 }
 0x8a2   : > { %v5384_v18 = vsel %vm2294_vm4, %v8132_v55, %v8133_v59  ;;  %v5905_v55 = vunpack.c.1.s8 %v11557_v22 }
 0x8a3   : > { %v5463_v51 = vsel %vm2381_vm5, %v4850_v30, %v5384_v18  ;;  %v5887_v18 = vunpack.c.1.s8 %v11574_v62 }
 0x8a4   : > { %v6355_v26 = vcvt.s32.f32 %v5905_v55 }
 0x8a7   : > { %v5406_v46 = vpop.permute.xlu2 %5405 }
 0x8a8   : > { %v5459_v47 = vpop.permute.xlu0 %5458 }
 0x8b1   : > { %v8136_v39 = vpop.permute.xlu0 %8135 }
 0x8b2   : > { %v8138_v36 = vunpack.i.h.bf16 %v8136_v39  ;;  %v8137_v50 = vunpack.i.l.bf16 %v8136_v39 }
 0x8b4   : > { %v5453_v12 = vsel %vm2369_vm1, %v8137_v50, %v8138_v36  ;;  %v5941_v50 = vunpack.c.1.s8 %v11530_v57 }
 0x8b5   : > { %v5461_v7 = vpop.permute.xlu1 %5460  ;;  %v5469_v35 = vsel %vm2381_vm5, %v5439_v8, %v5453_v12  ;;  %v6354_v12 = vcvt.s32.f32 %v5904_v10  ;;  %v6498_v8 = vcvt.s32.f32 %v6048_v2  ;;  %v5942_v2 = vunpack.c.2.s8 %v11530_v57 }
 0x8b6   : > { %v5462_v24 = vsel %vm2379_vm2, %v5459_v47, %v5461_v7  ;;  %7844 = vmatpush.msk.msrb.mxu2 %vm2381_vm5, %v5461_v7  ;;  %v11605_v47 = vld [vmem:[%s12897_s5 + $0x2d0] sm:$0xff] }
 0x8b7   : > { %7841 = vmatpush.msk.msrb.mxu3 %vm2381_vm5, %v5462_v24  ;;  %v11624_v24 = vld [vmem:[%s12897_s5 + $0x144] sm:$0xff]  ;;  %6663 = vmatpush.msrb.mxu0 %v6498_v8 }
 0x8b9   : > { %v5452_v21 = vpop.permute.xlu0 %5451  ;;  %5507 = vmatpush.msrb.mxu3 %v5469_v35  ;;  %v5850_v35 = vunpack.c.0.s8 %v11599_v41 }
 0x8ba   : > { %v5454_v34 = vsel %vm2369_vm1, %v8138_v36, %v5452_v21  ;;  %v5868_v36 = vunpack.c.0.s8 %v11586_v42  ;;  %v6336_v21 = vcvt.s32.f32 %v5886_v40 }
 0x8bb   : > { %5508 = vmatpush.msrb.mxu3 %v5467_v52  ;;  %v5470_v16 = vsel %vm2381_vm5, %v8123_v31, %v5454_v34  ;;  %v6030_v31 = vunpack.c.0.s8 %v11605_v47  ;;  %v5832_v34 = vunpack.c.0.s8 %v11624_v24  ;;  %v11645_v52 = vld [vmem:[%s12897_s5 + $0x120] sm:$0xff]  ;;  %v6300_v37 = vcvt.s32.f32 %v5850_v35 }
 0x8bc   : > { %5530 = vmatpush.msrb.mxu2 %v5470_v16  ;;  %v11651_v16 = vld [vmem:[%s12897_s5 + $0x264] sm:$0xff]  ;;  %v5814_v60 = vunpack.c.0.s8 %v11645_v52  ;;  %v5833_v35 = vunpack.c.1.s8 %v11624_v24 }
 0x8bd   : > { %v8126_v15 = vpop.permute.xlu1 %8125  ;;  %v6480_v45 = vcvt.s32.f32 %v6030_v31  ;;  %v5976_v49 = vunpack.c.0.s8 %v11651_v16  ;;  %v6282_v25 = vcvt.s32.f32 %v5832_v34 }
 0x8be   : > { %v8128_v63 = vunpack.i.h.bf16 %v8126_v15  ;;  %v8127_v56 = vunpack.i.l.bf16 %v8126_v15 }
 0x8bf   : > { %6664 = vmatpush.msrb.mxu0 %v6480_v45 }
 0x8c0   : > { %v5407_v28 = vsel %vm2319_vm0, %v8127_v56, %v8128_v63  ;;  %v5408_v7 = vsel %vm2319_vm0, %v8128_v63, %v5406_v46  ;;  %v11664_v63 = vld [vmem:[%s12897_s5 + $0xfc] sm:$0xff]  ;;  %v6462_v56 = vcvt.s32.f32 %v6012_v0  ;;  %v5906_v0 = vunpack.c.2.s8 %v11557_v22 }
 0x8c1   : > { %v5465_v53 = vsel %vm2381_vm5, %v5393_v43, %v5407_v28  ;;  %v5383_v38 = vpop.permute.xlu0 %5382  ;;  %v11670_v43 = vld [vmem:[%s12897_s5 + $0x240] sm:$0xff]  ;;  %v11676_v28 = vld [vmem:[%s12897_s5 + $0xd8] sm:$0xff]  ;;  %v5796_v10 = vunpack.c.0.s8 %v11664_v63 }
 0x8c2   : > { %5509 = vmatpush.msrb.mxu3 %v5465_v53  ;;  %v5385_v19 = vsel %vm2294_vm4, %v8133_v59, %v5383_v38  ;;  %v6391_v59 = vcvt.s32.f32 %v5941_v50  ;;  %v5958_v53 = vunpack.c.0.s8 %v11670_v43  ;;  %v5778_v46 = vunpack.c.0.s8 %v11676_v28  ;;  %6665 = vmatpush.msrb.mxu0 %v6462_v56 }
 0x8c3   : > { %v5464_v15 = vsel %vm2381_vm5, %v11480_v6, %v5385_v19  ;;  %v6373_v6 = vcvt.s32.f32 %v5923_v1  ;;  %v6264_v38 = vcvt.s32.f32 %v5814_v60  ;;  %v6067_v50 = vunpack.c.1.s8 %v11566_v29  ;;  %v11710_v19 = vld [vmem:[%s12897_s5 + $0x6c] sm:$0xff] }
 0x8c4   : > { %5510 = vmatpush.msrb.mxu3 %v5463_v51  ;;  %v5869_v51 = vunpack.c.1.s8 %v11586_v42  ;;  %v6408_v31 = vcvt.s32.f32 %v5958_v53  ;;  %v6228_v45 = vcvt.s32.f32 %v5778_v46  ;;  %v6013_v56 = vunpack.c.1.s8 %v11615_v54 }
 0x8c5   : > { %v5429_v39 = vpop.permute.xlu1 %5428  ;;  %7842 = vmatmul.msk.f32.vlgmr.msrb.gmra.mxu3 %vm2369_vm1, %v11580_v4  ;;  %v6517_v1 = vcvt.s32.f32 %v6067_v50  ;;  %v5724_v60 = vunpack.c.0.s8 %v11710_v19  ;;  %v5870_v53 = vunpack.c.2.s8 %v11586_v42 }
 0x8c6   : > { %v5431_v33 = vsel %vm2344_vm3, %v8118_v20, %v5429_v39  ;;  %6630 = vmatpush.msra.mxu3 %v6390_v23  ;;  %v11633_v20 = vld [vmem:[%s12897_s5 + $0x288] sm:$0xff]  ;;  %v6085_v23 = vunpack.c.1.s8 %v11549_v32  ;;  %v6337_v39 = vcvt.s32.f32 %v5887_v18  ;;  %v5797_v18 = vunpack.c.1.s8 %v11664_v63 }
 0x8c7   : > { %v5468_v17 = vsel %vm2381_vm5, %v8113_v27, %v5431_v33  ;;  %v5466_v27 = vsel %vm2381_vm5, %v8108_v9, %v5408_v7  ;;  %v5994_v3 = vunpack.c.0.s8 %v11633_v20  ;;  %v6318_v9 = vcvt.s32.f32 %v5868_v36 }
 0x8c8   : > { %5531 = vmatpush.msrb.mxu2 %v5468_v17  ;;  %6631 = vmatpush.msra.mxu3 %v6372_v5  ;;  %v6426_v5 = vcvt.s32.f32 %v5976_v49  ;;  %v6535_v40 = vcvt.s32.f32 %v6085_v23  ;;  %v5851_v36 = vunpack.c.1.s8 %v11599_v41  ;;  %v5924_v33 = vunpack.c.2.s8 %v11542_v44 }
 0x8c9   : > { %v6444_v30 = vcvt.s32.f32 %v5994_v3  ;;  %v6049_v7 = vunpack.c.1.s8 %v11591_v11  ;;  %v6319_v17 = vcvt.s32.f32 %v5869_v51  ;;  %v11717_v3 = vld [vmem:[%s12897_s5 + $0x48] sm:$0xff]  ;;  %v5995_v51 = vunpack.c.1.s8 %v11633_v20 }
 0x8ca   : > { %5532 = vmatpush.msrb.mxu2 %v5466_v27  ;;  %6632 = vmatpush.msra.mxu3 %v6354_v12  ;;  %v6246_v12 = vcvt.s32.f32 %v5796_v10  ;;  %v5742_v27 = vunpack.c.0.s8 %v11700_v14  ;;  %v6301_v34 = vcvt.s32.f32 %v5851_v36  ;;  %v6374_v55 = vcvt.s32.f32 %v5924_v33 }
 0x8cb   : > { %6666 = vmatpush.msrb.mxu0 %v6444_v30  ;;  %6707 = vmatpush.msrb.mxu1 %v6535_v40  ;;  %v5706_v61 = vunpack.c.0.s8 %v11717_v3  ;;  %v5852_v40 = vunpack.c.2.s8 %v11599_v41  ;;  %v6247_v36 = vcvt.s32.f32 %v5797_v18  ;;  %v6320_v33 = vcvt.s32.f32 %v5870_v53 }
 0x8cc   : > { %5533 = vmatpush.msrb.mxu2 %v5464_v15  ;;  %6633 = vmatpush.msra.mxu3 %v6336_v21  ;;  %v6392_v21 = vcvt.s32.f32 %v5942_v2  ;;  %v6499_v15 = vcvt.s32.f32 %v6049_v7  ;;  %v6192_v23 = vcvt.s32.f32 %v5742_v27  ;;  %v5977_v2 = vunpack.c.1.s8 %v11651_v16 }
 0x8cd   : > { %7843 = vmatmul.msk.f32.gmra.mxu3 %vm2369_vm1, %v11656_v48  ;;  %7845 = vmatmul.msk.f32.vlgmr.msrb.gmra.mxu2 %vm2369_vm1, %v11580_v4  ;;  %v11692_v4 = vld [vmem:[%s12897_s5 + $0xb4] sm:$0xff]  ;;  %v6445_v7 = vcvt.s32.f32 %v5995_v51  ;;  %v5816_v27 = vunpack.c.2.s8 %v11645_v52  ;;  %v6086_v18 = vunpack.c.2.s8 %v11549_v32 }
 0x8ce   : > { %6634 = vmatpush.msra.mxu3 %v6318_v9  ;;  %6676 = vmatpush.msra.mxu2 %v6391_v59  ;;  %v5760_v8 = vunpack.c.0.s8 %v11692_v4  ;;  %v5815_v9 = vunpack.c.1.s8 %v11645_v52  ;;  %v6031_v59 = vunpack.c.1.s8 %v11605_v47  ;;  %v5761_v50 = vunpack.c.1.s8 %v11692_v4 }
 0x8cf   : > { %6667 = vmatpush.msrb.mxu0 %v6426_v5  ;;  %6708 = vmatpush.msrb.mxu1 %v6517_v1  ;;  %v6463_v5 = vcvt.s32.f32 %v6013_v56  ;;  %v6302_v1 = vcvt.s32.f32 %v5852_v40  ;;  %v5798_v56 = vunpack.c.2.s8 %v11664_v63 }
 0x8d0   : > { %6635 = vmatpush.msra.mxu3 %v6300_v37  ;;  %6677 = vmatpush.msra.mxu2 %v6373_v6  ;;  %v5888_v37 = vunpack.c.2.s8 %v11574_v62  ;;  %v6210_v49 = vcvt.s32.f32 %v5760_v8  ;;  %v6283_v6 = vcvt.s32.f32 %v5833_v35  ;;  %v6481_v30 = vcvt.s32.f32 %v6031_v59 }
 0x8d1   : > { %6668 = vmatpush.msrb.mxu0 %v6408_v31  ;;  %v6265_v10 = vcvt.s32.f32 %v5815_v9  ;;  %6709 = vmatpush.msrb.mxu1 %v6499_v15  ;;  %v6156_v31 = vcvt.s32.f32 %v5706_v61  ;;  %v5670_v8 = vunpack.c.0.s8 %v11739_v58  ;;  %v5743_v35 = vunpack.c.1.s8 %v11700_v14 }
 0x8d2   : > { %6636 = vmatpush.msra.mxu3 %v6282_v25  ;;  %6678 = vmatpush.msra.mxu2 %v6355_v26  ;;  %v6356_v25 = vcvt.s32.f32 %v5906_v0  ;;  %v5779_v26 = vunpack.c.1.s8 %v11676_v28  ;;  %v6338_v46 = vcvt.s32.f32 %v5888_v37  ;;  %v6427_v0 = vcvt.s32.f32 %v5977_v2 }
 0x8d3   : > { %6722 = vmatpush.msra.mxu0 %v6392_v21  ;;  %6710 = vmatpush.msrb.mxu1 %v6481_v30  ;;  %v5943_v21 = vunpack.c.3.s8 %v11530_v57  ;;  %v6211_v9 = vcvt.s32.f32 %v5761_v50  ;;  %v5725_v59 = vunpack.c.1.s8 %v11710_v19  ;;  %v5925_v15 = vunpack.c.3.s8 %v11542_v44 }
 0x8d4   : > { %6637 = vmatpush.msra.mxu3 %v6264_v38  ;;  %6679 = vmatpush.msra.mxu2 %v6337_v39  ;;  %v6174_v38 = vcvt.s32.f32 %v5724_v60  ;;  %v6193_v60 = vcvt.s32.f32 %v5743_v35  ;;  %v6266_v44 = vcvt.s32.f32 %v5816_v27  ;;  %v6248_v51 = vcvt.s32.f32 %v5798_v56 }
 0x8d5   : > { %7846 = vmatmul.msk.f32.gmra.mxu2 %vm2369_vm1, %v11656_v48  ;;  %v11731_v48 = vld [vmem:[%s12897_s5 + $0x24] sm:$0xff]  ;;  %6723 = vmatpush.msra.mxu0 %v6374_v55  ;;  %v6104_v55 = vunpack.c.2.s8 %v11537_v13  ;;  %v6393_v61 = vcvt.s32.f32 %v5943_v21  ;;  %v6175_v30 = vcvt.s32.f32 %v5725_v59  ;;  %v5871_v2 = vunpack.c.3.s8 %v11586_v42 }
 0x8d6   : > { %6638 = vmatpush.msra.mxu3 %v6246_v12  ;;  %6680 = vmatpush.msra.mxu2 %v6319_v17  ;;  %v5688_v39 = vunpack.c.0.s8 %v11731_v48  ;;  %v5834_v12 = vunpack.c.2.s8 %v11624_v24  ;;  %v6229_v17 = vcvt.s32.f32 %v5779_v26  ;;  %v5689_v53 = vunpack.c.1.s8 %v11731_v48 }
 0x8d7   : > { %6724 = vmatpush.msra.mxu0 %v6356_v25  ;;  %6711 = vmatpush.msrb.mxu1 %v6463_v5  ;;  %v5907_v25 = vunpack.c.3.s8 %v11557_v22  ;;  %v5889_v26 = vunpack.c.3.s8 %v11574_v62  ;;  %v5671_v22 = vunpack.c.1.s8 %v11739_v58  ;;  %v6536_v5 = vcvt.s32.f32 %v6086_v18 }
 0x8d8   : > { %6639 = vmatpush.msra.mxu3 %v6228_v45  ;;  %6681 = vmatpush.msra.mxu2 %v6301_v34  ;;  %v5959_v45 = vunpack.c.1.s8 %v11670_v43  ;;  %v6138_v34 = vcvt.s32.f32 %v5688_v39  ;;  %v6284_v37 = vcvt.s32.f32 %v5834_v12  ;;  %v6139_v39 = vcvt.s32.f32 %v5689_v53 }
 0x8d9   : > { %6725 = vmatpush.msra.mxu0 %v6338_v46  ;;  %6712 = vmatpush.msrb.mxu1 %v6445_v7  ;;  %v6357_v40 = vcvt.s32.f32 %v5907_v25  ;;  %v6339_v62 = vcvt.s32.f32 %v5889_v26  ;;  %v6087_v50 = vunpack.c.3.s8 %v11549_v32  ;;  %v5835_v42 = vunpack.c.3.s8 %v11624_v24 }
 0x8da   : > { %6640 = vmatpush.msra.mxu3 %v6210_v49  ;;  %6682 = vmatpush.msra.mxu2 %v6283_v6  ;;  %v6409_v57 = vcvt.s32.f32 %v5959_v45  ;;  %v6120_v49 = vcvt.s32.f32 %v5670_v8  ;;  %v5707_v6 = vunpack.c.1.s8 %v11717_v3  ;;  %v6069_v7 = vunpack.c.3.s8 %v11566_v29 }
 0x8db   : > { %6726 = vmatpush.msra.mxu0 %v6320_v33  ;;  %6713 = vmatpush.msrb.mxu1 %v6427_v0  ;;  %v6321_v33 = vcvt.s32.f32 %v5871_v2  ;;  %v5817_v8 = vunpack.c.3.s8 %v11645_v52  ;;  %v6285_v32 = vcvt.s32.f32 %v5835_v42  ;;  %v5799_v35 = vunpack.c.3.s8 %v11664_v63 }
 0x8dc   : > { %6641 = vmatpush.msra.mxu3 %v6192_v23  ;;  %6683 = vmatpush.msra.mxu2 %v6265_v10  ;;  %v6554_v23 = vcvt.s32.f32 %v6104_v55  ;;  %v6375_v10 = vcvt.s32.f32 %v5925_v15  ;;  %v6157_v46 = vcvt.s32.f32 %v5707_v6  ;;  %v6519_v45 = vcvt.s32.f32 %v6069_v7 }
 0x8dd   : > { %6727 = vmatpush.msra.mxu0 %v6302_v1  ;;  %6714 = vmatpush.msrb.mxu1 %v6409_v57  ;;  %v6033_v24 = vunpack.c.3.s8 %v11605_v47  ;;  %v6267_v21 = vcvt.s32.f32 %v5817_v8  ;;  %v5781_v1 = vunpack.c.3.s8 %v11676_v28  ;;  %v6015_v52 = vunpack.c.3.s8 %v11615_v54 }
 0x8de   : > { %6642 = vmatpush.msra.mxu3 %v6174_v38  ;;  %6684 = vmatpush.msra.mxu2 %v6247_v36  ;;  %v6105_v38 = vunpack.c.3.s8 %v11537_v13  ;;  %v5853_v36 = vunpack.c.3.s8 %v11599_v41  ;;  %v6051_v41 = vunpack.c.3.s8 %v11591_v11  ;;  %v6249_v27 = vcvt.s32.f32 %v5799_v35  ;;  %v11828_v35 = vld [vmem:[%s12897_s5 + $0x320] sm:$0xff] }
 0x8df   : > { %6728 = vmatpush.msra.mxu0 %v6284_v37  ;;  %7853 = vmatpush.msk.msra.mxu1 %vm2381_vm5, %v6554_v23  ;;  %v6231_v59 = vcvt.s32.f32 %v5781_v1  ;;  %v5745_v63 = vunpack.c.3.s8 %v11700_v14  ;;  %v6465_v55 = vcvt.s32.f32 %v6015_v52  ;;  %v5727_v37 = vunpack.c.3.s8 %v11710_v19  ;;  %v11835_v52 = vld [vmem:[%s12897_s5 + $0x1b8] sm:$0xff] }
 0x8e0   : > { %6643 = vmatpush.msra.mxu3 %v6156_v31  ;;  %6685 = vmatpush.msra.mxu2 %v6229_v17  ;;  %v6121_v31 = vcvt.s32.f32 %v5671_v22  ;;  %v6555_v13 = vcvt.s32.f32 %v6105_v38  ;;  %v6303_v12 = vcvt.s32.f32 %v5853_v36  ;;  %v6537_v17 = vcvt.s32.f32 %v6087_v50 }
 0x8e1   : > { %6729 = vmatpush.msra.mxu0 %v6266_v44  ;;  %6753 = vmatpush.msra.mxu1 %v6536_v5  ;;  %v6501_v0 = vcvt.s32.f32 %v6051_v41  ;;  %v6195_v57 = vcvt.s32.f32 %v5745_v63  ;;  %v6177_v56 = vcvt.s32.f32 %v5727_v37  ;;  %v5709_v6 = vunpack.c.3.s8 %v11717_v3 }
 0x8e2   : > { %6644 = vmatpush.msra.mxu3 %v6138_v34  ;;  %6686 = vmatpush.msra.mxu2 %v6211_v9  ;;  %v5763_v34 = vunpack.c.3.s8 %v11692_v4  ;;  %v6483_v9 = vcvt.s32.f32 %v6033_v24  ;;  %v5997_v18 = vunpack.c.3.s8 %v11633_v20  ;;  %v5762_v53 = vunpack.c.2.s8 %v11692_v4 }
 0x8e3   : > { %6730 = vmatpush.msra.mxu0 %v6248_v51  ;;  %v6159_v44 = vcvt.s32.f32 %v5709_v6  ;;  %v6050_v23 = vunpack.c.2.s8 %v11591_v11  ;;  %v5979_v26 = vunpack.c.3.s8 %v11651_v16  ;;  %v5673_v51 = vunpack.c.3.s8 %v11739_v58 }
 0x8e4   : > { %6645 = vmatpush.msra.mxu3 %v6120_v49  ;;  %6687 = vmatpush.msra.mxu2 %v6193_v60  ;;  %v6213_v15 = vcvt.s32.f32 %v5763_v34  ;;  %v5780_v49 = vunpack.c.2.s8 %v11676_v28  ;;  %v6068_v60 = vunpack.c.2.s8 %v11566_v29  ;;  %v5744_v29 = vunpack.c.2.s8 %v11700_v14 }
 0x8e5   : > { %v6032_v28 = vunpack.c.2.s8 %v11605_v47  ;;  %v6212_v22 = vcvt.s32.f32 %v5762_v53  ;;  %v6500_v4 = vcvt.s32.f32 %v6050_v23  ;;  %v6429_v11 = vcvt.s32.f32 %v5979_v26  ;;  %v11871_v53 = vld [vmem:[%s12897_s5 + $0x2b4] sm:$0xff] }
 0x8e6   : > { %6768 = vmatpush.msrb.mxu3 %v6393_v61  ;;  %6688 = vmatpush.msra.mxu2 %v6175_v30  ;;  %v6230_v61 = vcvt.s32.f32 %v5780_v49  ;;  %v6518_v25 = vcvt.s32.f32 %v6068_v60  ;;  %v6447_v30 = vcvt.s32.f32 %v5997_v18  ;;  %v6123_v38 = vcvt.s32.f32 %v5673_v51  ;;  %v11853_v49 = vld [vmem:[%s12897_s5 + $0x194] sm:$0xff] }
 0x8e7   : > { %v6482_v2 = vcvt.s32.f32 %v6032_v28  ;;  %v5726_v14 = vunpack.c.2.s8 %v11710_v19  ;;  %v6014_v47 = vunpack.c.2.s8 %v11615_v54  ;;  %v5996_v36 = vunpack.c.2.s8 %v11633_v20  ;;  %v11858_v60 = vld [vmem:[%s12897_s5 + $0x2d8] sm:$0xff] }
 0x8e8   : > { %6769 = vmatpush.msrb.mxu3 %v6375_v10  ;;  %6689 = vmatpush.msra.mxu2 %v6157_v46  ;;  %v5691_v10 = vunpack.c.3.s8 %v11731_v48  ;;  %v5961_v46 = vunpack.c.3.s8 %v11670_v43  ;;  %v5690_v19 = vunpack.c.2.s8 %v11731_v48  ;;  %v5978_v54 = vunpack.c.2.s8 %v11651_v16  ;;  %v11801_v48 = vld [vmem:[%s12897_s5 + $0x224] sm:$0xff] }
 0x8e9   : > { %6731 = vmatpush.msra.mxu0 %v6230_v61  ;;  %6754 = vmatpush.msra.mxu1 %v6518_v25  ;;  %v6176_v50 = vcvt.s32.f32 %v5726_v14  ;;  %v6446_v42 = vcvt.s32.f32 %v5996_v36  ;;  %v11806_v16 = vld [vmem:[%s12897_s5 + $0x368] sm:$0x55]  ;;  %v6071_v63 = vunpack.c.1.s8 %v11828_v35  ;;  %v5944_v61 = vunpack.c.0.s8 %v11801_v48 }
 0x8ea   : > { %6770 = vmatpush.msrb.mxu3 %v6357_v40  ;;  %6690 = vmatpush.msra.mxu2 %v6139_v39  ;;  %v6141_v5 = vcvt.s32.f32 %v5691_v10  ;;  %v6194_v40 = vcvt.s32.f32 %v5744_v29  ;;  %v6411_v39 = vcvt.s32.f32 %v5961_v46  ;;  %v6140_v20 = vcvt.s32.f32 %v5690_v19 }
 0x8eb   : > { %6732 = vmatpush.msra.mxu0 %v6212_v22  ;;  %6755 = vmatpush.msra.mxu1 %v6500_v4  ;;  %v6428_v7 = vcvt.s32.f32 %v5978_v54  ;;  %v6107_v41 = vunpack.c.1.s8 %v11806_v16  ;;  %v6521_v18 = vcvt.s32.f32 %v6071_v63  ;;  %v6106_v25 = vunpack.c.0.s8 %v11806_v16 }
 0x8ec   : > { %6771 = vmatpush.msrb.mxu3 %v6339_v62  ;;  %6691 = vmatpush.msra.mxu2 %v6121_v31  ;;  %v5708_v62 = vunpack.c.2.s8 %v11717_v3  ;;  %v6464_v31 = vcvt.s32.f32 %v6014_v47  ;;  %v5960_v3 = vunpack.c.2.s8 %v11670_v43  ;;  %v11811_v43 = vld [vmem:[%s12897_s5 + $0x200] sm:$0xff]  ;;  %v5873_v28 = vunpack.c.1.s8 %v11853_v49 }
 0x8ed   : > { %6733 = vmatpush.msra.mxu0 %v6194_v40  ;;  %6756 = vmatpush.msra.mxu1 %v6482_v2  ;;  %v6035_v51 = vunpack.c.1.s8 %v11858_v60  ;;  %v5926_v4 = vunpack.c.0.s8 %v11811_v43  ;;  %v11885_v40 = vld [vmem:[%s12897_s5 + $0x290] sm:$0xff]  ;;  %v6394_v2 = vcvt.s32.f32 %v5944_v61  ;;  %v6017_v14 = vunpack.c.1.s8 %v11871_v53 }
 0x8ee   : > { %6772 = vmatpush.msrb.mxu3 %v6321_v33  ;;  %7856 = vmatpush.msk.msrb.mxu2 %vm2381_vm5, %v6555_v13  ;;  %v6158_v33 = vcvt.s32.f32 %v5708_v62  ;;  %v5672_v13 = vunpack.c.2.s8 %v11739_v58  ;;  %v6410_v8 = vcvt.s32.f32 %v5960_v3  ;;  %v11816_v58 = vld [vmem:[%s12897_s5 + $0x344] sm:$0xff]  ;;  %v5872_v63 = vunpack.c.0.s8 %v11853_v49 }
 0x8ef   : > { %6734 = vmatpush.msra.mxu0 %v6176_v50  ;;  %6757 = vmatpush.msra.mxu1 %v6464_v31  ;;  %v6089_v1 = vunpack.c.1.s8 %v11816_v58  ;;  %v6070_v50 = vunpack.c.0.s8 %v11828_v35  ;;  %v11898_v31 = vld [vmem:[%s12897_s5 + $0x128] sm:$0xff]  ;;  %v6485_v19 = vcvt.s32.f32 %v6035_v51  ;;  %v6376_v3 = vcvt.s32.f32 %v5926_v4 }
 0x8f0   : > { %6773 = vmatpush.msrb.mxu3 %v6303_v12  ;;  %6799 = vmatpush.msrb.mxu2 %v6537_v17  ;;  %v6122_v12 = vcvt.s32.f32 %v5672_v13  ;;  %v5945_v17 = vunpack.c.1.s8 %v11801_v48  ;;  %v5999_v13 = vunpack.c.1.s8 %v11885_v40  ;;  %v5929_v4 = vunpack.c.3.s8 %v11811_v43 }
 0x8f1   : > { %6735 = vmatpush.msra.mxu0 %v6158_v33  ;;  %6758 = vmatpush.msra.mxu1 %v6446_v42  ;;  %v6539_v37 = vcvt.s32.f32 %v6089_v1  ;;  %v11903_v33 = vld [vmem:[%s12897_s5 + $0x26c] sm:$0xff]  ;;  %v6323_v42 = vcvt.s32.f32 %v5873_v28  ;;  %v11921_v1 = vld [vmem:[%s12897_s5 + $0x104] sm:$0xff]  ;;  %v6016_v28 = vunpack.c.0.s8 %v11871_v53 }
 0x8f2   : > { %6774 = vmatpush.msrb.mxu3 %v6285_v32  ;;  %6800 = vmatpush.msrb.mxu2 %v6519_v45  ;;  %v11823_v32 = vld [vmem:[%s12897_s5 + $0x1dc] sm:$0xff]  ;;  %v5478_v45 = vpop.permute.xlu1 %5477  ;;  %v6395_v34 = vcvt.s32.f32 %v5945_v17  ;;  %v6467_v17 = vcvt.s32.f32 %v6017_v14  ;;  %v5998_v14 = vunpack.c.0.s8 %v11885_v40 }
 0x8f3   : > { %6736 = vmatpush.msra.mxu0 %v6140_v20  ;;  %6759 = vmatpush.msra.mxu1 %v6428_v7  ;;  %v5908_v36 = vunpack.c.0.s8 %v11823_v32  ;;  %v5890_v7 = vunpack.c.0.s8 %v11835_v52 }
 0x8f4   : > { %6775 = vmatpush.msrb.mxu3 %v6267_v21  ;;  %6801 = vmatpush.msrb.mxu2 %v6501_v0  ;;  %v5927_v21 = vunpack.c.1.s8 %v11811_v43 }
 0x8f5   : > { %6737 = vmatpush.msra.mxu0 %v6122_v12  ;;  %6760 = vmatpush.msra.mxu1 %v6410_v8 }
 0x8f6   : > { %6776 = vmatpush.msrb.mxu3 %v6249_v27  ;;  %6802 = vmatpush.msrb.mxu2 %v6483_v9  ;;  %v11840_v27 = vld [vmem:[%s12897_s5 + $0x2fc] sm:$0xff]  ;;  %v6557_v9 = vcvt.s32.f32 %v6107_v41  ;;  %v5819_v41 = vunpack.c.1.s8 %v11898_v31 }
 0x8f7   : > { %v6052_v12 = vunpack.c.0.s8 %v11840_v27 }
 0x8f8   : > { %6777 = vmatpush.msrb.mxu3 %v6231_v59  ;;  %6803 = vmatpush.msrb.mxu2 %v6465_v55  ;;  %v5909_v59 = vunpack.c.1.s8 %v11823_v32 }
 0x8fa   : > { %6778 = vmatpush.msrb.mxu3 %v6213_v15  ;;  %6804 = vmatpush.msrb.mxu2 %v6447_v30  ;;  %v6377_v15 = vcvt.s32.f32 %v5927_v21  ;;  %v6359_v6 = vcvt.s32.f32 %v5909_v59  ;;  %v11866_v30 = vld [vmem:[%s12897_s5 + $0x170] sm:$0xff]  ;;  %v6520_v21 = vcvt.s32.f32 %v6070_v50  ;;  %v6449_v59 = vcvt.s32.f32 %v5999_v13 }
 0x8fb   : > { %v6466_v13 = vcvt.s32.f32 %v6016_v28  ;;  %v5928_v28 = vunpack.c.2.s8 %v11811_v43 }
 0x8fc   : > { %6779 = vmatpush.msrb.mxu3 %v6195_v57  ;;  %6805 = vmatpush.msrb.mxu2 %v6429_v11  ;;  %v5891_v57 = vunpack.c.1.s8 %v11835_v52  ;;  %v11880_v11 = vld [vmem:[%s12897_s5 + $0x14c] sm:$0xff] }
 0x8fd   : > { %v5837_v54 = vunpack.c.1.s8 %v11880_v11 }
 0x8fe   : > { %6780 = vmatpush.msrb.mxu3 %v6177_v56  ;;  %6806 = vmatpush.msrb.mxu2 %v6411_v39  ;;  %v6053_v56 = vunpack.c.1.s8 %v11840_v27  ;;  %v6341_v26 = vcvt.s32.f32 %v5891_v57  ;;  %v5855_v39 = vunpack.c.1.s8 %v11866_v30  ;;  %v6502_v57 = vcvt.s32.f32 %v6052_v12 }
 0x8ff   : > { %v6379_v12 = vcvt.s32.f32 %v5929_v4 }
 0x900   : > { %6781 = vmatpush.msrb.mxu3 %v6159_v44  ;;  %v5483_v44 = vpop.permute.xlu2 %5482  ;;  %v6503_v29 = vcvt.s32.f32 %v6053_v56  ;;  %v6305_v8 = vcvt.s32.f32 %v5855_v39  ;;  %v6034_v56 = vunpack.c.0.s8 %v11858_v60 }
 0x902   : > { %6782 = vmatpush.msrb.mxu3 %v6141_v5  ;;  %v6088_v5 = vunpack.c.0.s8 %v11816_v58 }
 0x904   : > { %6783 = vmatpush.msrb.mxu3 %v6123_v38  ;;  %v6556_v38 = vcvt.s32.f32 %v6106_v25  ;;  %v6538_v20 = vcvt.s32.f32 %v6088_v5  ;;  %v5801_v25 = vunpack.c.1.s8 %v11921_v1  ;;  %v5836_v5 = vunpack.c.0.s8 %v11880_v11 }
 0x948   : > { %v5512_v24 = vpop.f32.mrf.mxu3 }
 0x949   : > { %v5513_v0 = vadd.f32 %v5512_v24, %v5478_v45  ;;  %v6358_v24 = vcvt.s32.f32 %v5908_v36 }
 0x94b   : > { %v11844_v55 = vmax.f32 %v5513_v0, 0.0  ;;  %v11926_v0 = vld [vmem:[%s12897_s5 + $0x248] sm:$0xff] }
 0x94d   : > { %6646 = vmatmul.f32.vlgmr.msra.gmra.mxu3 %v11844_v55  ;;  %6692 = vmatmul.f32.vlgmr.msra.gmra.mxu2 %v11844_v55 }
 0x94e   : > { %6860 = vmatpush.msra.mxu2 %v6395_v34  ;;  %7862 = vmatpush.msk.msra.mxu3 %vm2381_vm5, %v6557_v9  ;;  %v6287_v9 = vcvt.s32.f32 %v5837_v54  ;;  %v5818_v54 = vunpack.c.0.s8 %v11898_v31 }
 0x950   : > { %6861 = vmatpush.msra.mxu2 %v6377_v15  ;;  %6891 = vmatpush.msra.mxu3 %v6539_v37  ;;  %v5515_v23 = vpop.f32.mrf.mxu3  ;;  %v5535_v10 = vpop.f32.mrf.mxu2  ;;  %v6340_v37 = vcvt.s32.f32 %v5890_v7 }
 0x951   : > { %v5516_v46 = vadd.f32 %v5515_v23, %v5483_v44  ;;  %v5536_v22 = vadd.f32 %v5535_v10, %v5478_v45  ;;  %v5981_v45 = vunpack.c.1.s8 %v11903_v33  ;;  %v5963_v23 = vunpack.c.1.s8 %v11926_v0 }
 0x952   : > { %6862 = vmatpush.msra.mxu2 %v6359_v6  ;;  %6892 = vmatpush.msra.mxu3 %v6521_v18  ;;  %v11933_v6 = vld [vmem:[%s12897_s5 + $0xe0] sm:$0xff]  ;;  %v6269_v18 = vcvt.s32.f32 %v5819_v41  ;;  %v11972_v41 = vld [vmem:[%s12897_s5 + $0x74] sm:$0xff] }
 0x953   : > { %v11889_v47 = vmax.f32 %v5516_v46, 0.0  ;;  %v11891_v62 = vmax.f32 %v5536_v22, 0.0  ;;  %v6431_v61 = vcvt.s32.f32 %v5981_v45  ;;  %v5783_v51 = vunpack.c.1.s8 %v11933_v6 }
 0x954   : > { %6863 = vmatpush.msra.mxu2 %v6341_v26  ;;  %6893 = vmatpush.msra.mxu3 %v6503_v29  ;;  %v5854_v26 = vunpack.c.0.s8 %v11866_v30  ;;  %v11944_v29 = vld [vmem:[%s12897_s5 + $0xbc] sm:$0xff]  ;;  %v6322_v46 = vcvt.s32.f32 %v5872_v63  ;;  %v6484_v22 = vcvt.s32.f32 %v6034_v56  ;;  %v6413_v39 = vcvt.s32.f32 %v5963_v23 }
 0x955   : > { %6649 = vmatmul.f32.gmra.mxu3 %v11889_v47  ;;  %7848 = vmatmul.msk.f32.vlgmr.msrb.gmra.mxu0 %vm3089_vm9, %v11891_v62  ;;  %v5765_v36 = vunpack.c.1.s8 %v11944_v29  ;;  %v6448_v45 = vcvt.s32.f32 %v5998_v14  ;;  %v5782_v23 = vunpack.c.0.s8 %v11933_v6  ;;  %v5764_v4 = vunpack.c.0.s8 %v11944_v29 }
 0x956   : > { %6695 = vmatmul.f32.gmra.mxu2 %v11889_v47  ;;  %7851 = vmatmul.msk.f32.vlgmr.msrb.gmra.mxu1 %vm3089_vm9, %v11891_v62  ;;  %v5839_v14 = vunpack.c.3.s8 %v11880_v11 }
 0x957   : > { %6814 = vmatpush.msrb.mxu1 %v6394_v2  ;;  %7859 = vmatpush.msk.msrb.mxu0 %vm2381_vm5, %v6556_v38  ;;  %v11953_v2 = vld [vmem:[%s12897_s5 + $0x98] sm:$0xff]  ;;  %v6251_v38 = vcvt.s32.f32 %v5801_v25  ;;  %v11987_v25 = vld [vmem:[%s12897_s5 + $0x2c] sm:$0xff] }
 0x958   : > { %6864 = vmatpush.msra.mxu2 %v6323_v42  ;;  %6894 = vmatpush.msra.mxu3 %v6485_v19  ;;  %v5538_v34 = vpop.f32.mrf.mxu2  ;;  %v6304_v42 = vcvt.s32.f32 %v5854_v26  ;;  %v5911_v19 = vunpack.c.3.s8 %v11823_v32  ;;  %v5747_v7 = vunpack.c.1.s8 %v11953_v2 }
 0x959   : > { %6815 = vmatpush.msrb.mxu1 %v6376_v3  ;;  %6845 = vmatpush.msrb.mxu0 %v6538_v20  ;;  %v5539_v15 = vadd.f32 %v5538_v34, %v5483_v44  ;;  %v5947_v44 = vunpack.c.3.s8 %v11801_v48  ;;  %v6233_v3 = vcvt.s32.f32 %v5783_v51  ;;  %v5980_v20 = vunpack.c.0.s8 %v11903_v33  ;;  %v11996_v51 = vld [vmem:[%s12897_s5 + $0x8] sm:$0xff] }
 0x95a   : > { %6865 = vmatpush.msra.mxu2 %v6305_v8  ;;  %6895 = vmatpush.msra.mxu3 %v6467_v17  ;;  %v6286_v8 = vcvt.s32.f32 %v5836_v5  ;;  %v5893_v17 = vunpack.c.3.s8 %v11835_v52  ;;  %v6268_v34 = vcvt.s32.f32 %v5818_v54  ;;  %v5693_v5 = vunpack.c.1.s8 %v11987_v25 }
 0x95b   : > { %v11937_v10 = vmax.f32 %v5539_v15, 0.0  ;;  %6816 = vmatpush.msrb.mxu1 %v6358_v24  ;;  %6846 = vmatpush.msrb.mxu0 %v6520_v21  ;;  %v6397_v50 = vcvt.s32.f32 %v5947_v44  ;;  %v6215_v24 = vcvt.s32.f32 %v5765_v36  ;;  %v6361_v21 = vcvt.s32.f32 %v5911_v19 }
 0x95c   : > { %6866 = vmatpush.msra.mxu2 %v6287_v9  ;;  %6896 = vmatpush.msra.mxu3 %v6449_v59  ;;  %v5800_v9 = vunpack.c.0.s8 %v11921_v1  ;;  %v11978_v59 = vld [vmem:[%s12897_s5 + $0x50] sm:$0xff]  ;;  %v6430_v63 = vcvt.s32.f32 %v5980_v20  ;;  %v6197_v15 = vcvt.s32.f32 %v5747_v7  ;;  %v6343_v56 = vcvt.s32.f32 %v5893_v17 }
 0x95d   : > { %6817 = vmatpush.msrb.mxu1 %v6340_v37  ;;  %6847 = vmatpush.msrb.mxu0 %v6502_v57  ;;  %v5962_v37 = vunpack.c.0.s8 %v11926_v0  ;;  %v5729_v57 = vunpack.c.1.s8 %v11972_v41  ;;  %v5711_v44 = vunpack.c.1.s8 %v11978_v59  ;;  %v6232_v36 = vcvt.s32.f32 %v5782_v23 }
 0x95e   : > { %6867 = vmatpush.msra.mxu2 %v6269_v18  ;;  %6897 = vmatpush.msra.mxu3 %v6431_v61  ;;  %v5946_v18 = vunpack.c.2.s8 %v11801_v48  ;;  %v5875_v61 = vunpack.c.3.s8 %v11853_v49  ;;  %v6250_v26 = vcvt.s32.f32 %v5800_v9  ;;  %v5857_v48 = vunpack.c.3.s8 %v11866_v30 }
 0x95f   : > { %7849 = vmatmul.msk.f32.gmra.mxu0 %vm3089_vm9, %v11937_v10  ;;  %7852 = vmatmul.msk.f32.gmra.mxu1 %vm3089_vm9, %v11937_v10  ;;  %v5675_v19 = vunpack.c.1.s8 %v11996_v51  ;;  %v6378_v54 = vcvt.s32.f32 %v5928_v28  ;;  %v6214_v20 = vcvt.s32.f32 %v5764_v4  ;;  %v6143_v7 = vcvt.s32.f32 %v5693_v5 }
 0x960   : > { %6784 = vmatmul.f32.vlgmr.msrb.gmra.mxu3 %v11844_v55  ;;  %7857 = vmatmul.msk.f32.vlgmr.msrb.gmra.mxu2 %vm3089_vm9, %v11891_v62  ;;  %v6325_v43 = vcvt.s32.f32 %v5875_v61  ;;  %v6289_v17 = vcvt.s32.f32 %v5839_v14  ;;  %v5874_v9 = vunpack.c.2.s8 %v11853_v49  ;;  %v6073_v49 = vunpack.c.3.s8 %v11828_v35 }
 0x961   : > { %6818 = vmatpush.msrb.mxu1 %v6322_v46  ;;  %6848 = vmatpush.msrb.mxu0 %v6484_v22  ;;  %v6412_v46 = vcvt.s32.f32 %v5962_v37  ;;  %v6179_v22 = vcvt.s32.f32 %v5729_v57  ;;  %v6091_v37 = vunpack.c.3.s8 %v11816_v58  ;;  %v5710_v57 = vunpack.c.0.s8 %v11978_v59 }
 0x962   : > { %6868 = vmatpush.msra.mxu2 %v6251_v38  ;;  %6898 = vmatpush.msra.mxu3 %v6413_v39  ;;  %v6396_v38 = vcvt.s32.f32 %v5946_v18  ;;  %v5910_v39 = vunpack.c.2.s8 %v11823_v32  ;;  %v5892_v32 = vunpack.c.2.s8 %v11835_v52  ;;  %v5785_v18 = vunpack.c.3.s8 %v11933_v6 }
 0x963   : > { %6819 = vmatpush.msrb.mxu1 %v6304_v42  ;;  %6849 = vmatpush.msrb.mxu0 %v6466_v13  ;;  %v5746_v42 = vunpack.c.0.s8 %v11953_v2  ;;  %v6307_v13 = vcvt.s32.f32 %v5857_v48  ;;  %v5692_v23 = vunpack.c.0.s8 %v11987_v25  ;;  %v5838_v28 = vunpack.c.2.s8 %v11880_v11 }
 0x964   : > { %6952 = vmatpush.msrb.mxu3 %v6397_v50  ;;  %6869 = vmatpush.msra.mxu2 %v6233_v3  ;;  %v6161_v50 = vcvt.s32.f32 %v5711_v44  ;;  %v5821_v3 = vunpack.c.3.s8 %v11898_v31  ;;  %v6342_v52 = vcvt.s32.f32 %v5892_v32  ;;  %v6324_v44 = vcvt.s32.f32 %v5874_v9 }
 0x965   : > { %6820 = vmatpush.msrb.mxu1 %v6286_v8  ;;  %6850 = vmatpush.msrb.mxu0 %v6448_v45  ;;  %v6360_v8 = vcvt.s32.f32 %v5910_v39  ;;  %v6196_v45 = vcvt.s32.f32 %v5746_v42  ;;  %v5767_v48 = vunpack.c.3.s8 %v11944_v29  ;;  %v5674_v4 = vunpack.c.0.s8 %v11996_v51 }
 0x966   : > { %6953 = vmatpush.msrb.mxu3 %v6379_v12  ;;  %6870 = vmatpush.msra.mxu2 %v6215_v24  ;;  %v6109_v12 = vunpack.c.3.s8 %v11806_v16  ;;  %v6125_v24 = vcvt.s32.f32 %v5675_v19  ;;  %v5820_v11 = vunpack.c.2.s8 %v11898_v31  ;;  %v6523_v39 = vcvt.s32.f32 %v6073_v49  ;;  %v12063_v49 = vld [vmem:[%s12897_s5 + $0x22c] sm:$0xff] }
 0x967   : > { %6821 = vmatpush.msrb.mxu1 %v6268_v34  ;;  %6851 = vmatpush.msrb.mxu0 %v6430_v63  ;;  %v6271_v34 = vcvt.s32.f32 %v5821_v3  ;;  %v5803_v63 = vunpack.c.3.s8 %v11921_v1  ;;  %v6142_v14 = vcvt.s32.f32 %v5692_v23  ;;  %v6288_v42 = vcvt.s32.f32 %v5838_v28  ;;  %v12073_v28 = vld [vmem:[%s12897_s5 + $0x208] sm:$0xff] }
 0x968   : > { %6954 = vmatpush.msrb.mxu3 %v6361_v21  ;;  %6871 = vmatpush.msra.mxu2 %v6197_v15  ;;  %v5728_v21 = vunpack.c.0.s8 %v11972_v41  ;;  %v6559_v15 = vcvt.s32.f32 %v6109_v12  ;;  %v6217_v19 = vcvt.s32.f32 %v5767_v48  ;;  %v6124_v31 = vcvt.s32.f32 %v5674_v4  ;;  %v12078_v48 = vld [vmem:[%s12897_s5 + $0x34c] sm:$0xff] }
 0x969   : > { %6738 = vmatmul.f32.vlgmr.msra.gmra.mxu0 %v11844_v55  ;;  %7854 = vmatmul.msk.f32.vlgmr.msra.gmra.mxu1 %vm3089_vm9, %v11891_v62  ;;  %v5802_v32 = vunpack.c.2.s8 %v11921_v1  ;;  %v6090_v3 = vunpack.c.2.s8 %v11816_v58  ;;  %v5731_v12 = vunpack.c.3.s8 %v11972_v41  ;;  %v5713_v1 = vunpack.c.3.s8 %v11978_v59 }
 0x96a   : > { %6955 = vmatpush.msrb.mxu3 %v6343_v56  ;;  %7858 = vmatmul.msk.f32.gmra.mxu2 %vm3089_vm9, %v11937_v10  ;;  %v5856_v56 = vunpack.c.2.s8 %v11866_v30  ;;  %v6178_v61 = vcvt.s32.f32 %v5728_v21  ;;  %v6541_v30 = vcvt.s32.f32 %v6091_v37  ;;  %v6001_v58 = vunpack.c.3.s8 %v11885_v40 }
 0x96b   : > { %6787 = vmatmul.f32.gmra.mxu3 %v11889_v47  ;;  %6822 = vmatpush.msrb.mxu1 %v6250_v26  ;;  %v6253_v26 = vcvt.s32.f32 %v5803_v63  ;;  %v6540_v21 = vcvt.s32.f32 %v6090_v3  ;;  %v5983_v63 = vunpack.c.3.s8 %v11903_v33  ;;  %v5982_v3 = vunpack.c.2.s8 %v11903_v33 }
 0x96c   : > { %6852 = vmatpush.msrb.mxu0 %v6412_v46  ;;  %6872 = vmatpush.msra.mxu2 %v6179_v22  ;;  %v6160_v46 = vcvt.s32.f32 %v5710_v57  ;;  %v6055_v22 = vunpack.c.3.s8 %v11840_v27  ;;  %v6306_v5 = vcvt.s32.f32 %v5856_v56  ;;  %v5748_v57 = vunpack.c.2.s8 %v11953_v2 }
 0x96d   : > { %6956 = vmatpush.msrb.mxu3 %v6325_v43  ;;  %6823 = vmatpush.msrb.mxu1 %v6232_v36  ;;  %v6108_v43 = vunpack.c.2.s8 %v11806_v16  ;;  %v5749_v36 = vunpack.c.3.s8 %v11953_v2  ;;  %v6270_v16 = vcvt.s32.f32 %v5820_v11  ;;  %v6451_v56 = vcvt.s32.f32 %v6001_v58 }
 0x96e   : > { %6906 = vmatpush.msra.mxu0 %v6396_v38  ;;  %6873 = vmatpush.msra.mxu2 %v6161_v50  ;;  %v6235_v38 = vcvt.s32.f32 %v5785_v18  ;;  %v6037_v50 = vunpack.c.3.s8 %v11858_v60  ;;  %v5677_v18 = vunpack.c.3.s8 %v11996_v51  ;;  %v5730_v11 = vunpack.c.2.s8 %v11972_v41 }
 0x96f   : > { %6957 = vmatpush.msrb.mxu3 %v6307_v13  ;;  %6824 = vmatpush.msrb.mxu1 %v6214_v20  ;;  %v6558_v13 = vcvt.s32.f32 %v6108_v43  ;;  %v6199_v20 = vcvt.s32.f32 %v5749_v36  ;;  %v6018_v43 = vunpack.c.2.s8 %v11871_v53  ;;  %v5931_v36 = vunpack.c.1.s8 %v12073_v28 }
 0x970   : > { %6907 = vmatpush.msra.mxu0 %v6378_v54  ;;  %6874 = vmatpush.msra.mxu2 %v6143_v7  ;;  %v6505_v54 = vcvt.s32.f32 %v6055_v22  ;;  %v6487_v7 = vcvt.s32.f32 %v6037_v50  ;;  %v5949_v22 = vunpack.c.1.s8 %v12063_v49  ;;  %v6093_v50 = vunpack.c.1.s8 %v12078_v48 }
 0x971   : > { %6958 = vmatpush.msrb.mxu3 %v6289_v17  ;;  %6825 = vmatpush.msrb.mxu1 %v6196_v45  ;;  %v5784_v17 = vunpack.c.2.s8 %v11933_v6  ;;  %v6072_v45 = vunpack.c.2.s8 %v11828_v35  ;;  %v6181_v6 = vcvt.s32.f32 %v5731_v12  ;;  %v5695_v35 = vunpack.c.3.s8 %v11987_v25 }
 0x972   : > { %6908 = vmatpush.msra.mxu0 %v6360_v8  ;;  %6875 = vmatpush.msra.mxu2 %v6125_v24  ;;  %v6019_v8 = vunpack.c.3.s8 %v11871_v53  ;;  %v6252_v24 = vcvt.s32.f32 %v5802_v32  ;;  %v5712_v53 = vunpack.c.2.s8 %v11978_v59  ;;  %v6000_v41 = vunpack.c.2.s8 %v11885_v40 }
 0x973   : > { %6959 = vmatpush.msrb.mxu3 %v6271_v34  ;;  %6741 = vmatmul.f32.gmra.mxu0 %v11889_v47  ;;  %v6054_v34 = vunpack.c.2.s8 %v11840_v27  ;;  %v6522_v37 = vcvt.s32.f32 %v6072_v45  ;;  %v6163_v27 = vcvt.s32.f32 %v5713_v1  ;;  %v6180_v40 = vcvt.s32.f32 %v5730_v11 }
 0x974   : > { %6909 = vmatpush.msra.mxu0 %v6342_v52  ;;  %7868 = vmatpush.msk.msrb.mxu2 %vm2381_vm5, %v6559_v15  ;;  %v5766_v52 = vunpack.c.2.s8 %v11944_v29  ;;  %v6469_v9 = vcvt.s32.f32 %v6019_v8  ;;  %v6234_v15 = vcvt.s32.f32 %v5784_v17  ;;  %v6036_v29 = vunpack.c.2.s8 %v11858_v60  ;;  %v12068_v60 = vld [vmem:[%s12897_s5 + $0x370] sm:$0x55] }
 0x975   : > { %7855 = vmatmul.msk.f32.gmra.mxu1 %vm3089_vm9, %v11937_v10  ;;  %6876 = vmatmul.f32.vlgmr.msra.gmra.mxu2 %v11844_v55  ;;  %v6504_v23 = vcvt.s32.f32 %v6054_v34  ;;  %v6111_v4 = vunpack.c.1.s8 %v12068_v60  ;;  %v5694_v32 = vunpack.c.2.s8 %v11987_v25  ;;  %v6162_v17 = vcvt.s32.f32 %v5712_v53 }
 0x976   : > { %6826 = vmatpush.msrb.mxu1 %v6178_v61  ;;  %7863 = vmatmul.msk.f32.vlgmr.msra.gmra.mxu3 %vm3089_vm9, %v11891_v62  ;;  %v5965_v61 = vunpack.c.3.s8 %v11926_v0  ;;  %v6216_v2 = vcvt.s32.f32 %v5766_v52  ;;  %v6450_v25 = vcvt.s32.f32 %v6000_v41  ;;  %v5676_v33 = vunpack.c.2.s8 %v11996_v51 }
 0x977   : > { %6910 = vmatpush.msra.mxu0 %v6324_v44  ;;  %6960 = vmatpush.msrb.mxu3 %v6253_v26  ;;  %v6145_v44 = vcvt.s32.f32 %v5695_v35  ;;  %v6433_v26 = vcvt.s32.f32 %v5983_v63  ;;  %v5964_v45 = vunpack.c.2.s8 %v11926_v0  ;;  %v6144_v51 = vcvt.s32.f32 %v5694_v32  ;;  %v12138_v35 = vld [vmem:[%s12897_s5 + $0x178] sm:$0xff] }
 0x978   : > { %6983 = vmatpush.msrb.mxu2 %v6541_v30  ;;  %6827 = vmatpush.msrb.mxu1 %v6160_v46  ;;  %v6198_v30 = vcvt.s32.f32 %v5748_v57  ;;  %v6486_v46 = vcvt.s32.f32 %v6036_v29  ;;  %v6432_v52 = vcvt.s32.f32 %v5982_v3  ;;  %v12143_v63 = vld [vmem:[%s12897_s5 + $0x2bc] sm:$0xff] }
 0x979   : > { %6911 = vmatpush.msra.mxu0 %v6306_v5  ;;  %6961 = vmatpush.msrb.mxu3 %v6235_v38  ;;  %v6127_v5 = vcvt.s32.f32 %v5677_v18  ;;  %v6415_v38 = vcvt.s32.f32 %v5965_v61  ;;  %v12152_v18 = vld [vmem:[%s12897_s5 + $0x154] sm:$0xff] }
 0x97a   : > { %6984 = vmatpush.msrb.mxu2 %v6523_v39  ;;  %6828 = vmatpush.msrb.mxu1 %v6142_v14  ;;  %v12087_v39 = vld [vmem:[%s12897_s5 + $0x1e4] sm:$0xff]  ;;  %v12157_v61 = vld [vmem:[%s12897_s5 + $0x298] sm:$0xff]  ;;  %v5841_v11 = vunpack.c.1.s8 %v12152_v18 }
 0x97b   : > { %6912 = vmatpush.msra.mxu0 %v6288_v42  ;;  %6962 = vmatpush.msrb.mxu3 %v6217_v19  ;;  %v12092_v14 = vld [vmem:[%s12897_s5 + $0x328] sm:$0xff]  ;;  %v12101_v42 = vld [vmem:[%s12897_s5 + $0x1c0] sm:$0xff] }
 0x97c   : > { %6985 = vmatpush.msrb.mxu2 %v6505_v54  ;;  %6829 = vmatpush.msrb.mxu1 %v6124_v31  ;;  %v12106_v19 = vld [vmem:[%s12897_s5 + $0x304] sm:$0xff]  ;;  %v6399_v54 = vcvt.s32.f32 %v5949_v22  ;;  %v6561_v31 = vcvt.s32.f32 %v6111_v4  ;;  %v6075_v59 = vunpack.c.1.s8 %v12092_v14  ;;  %v5895_v12 = vunpack.c.1.s8 %v12101_v42  ;;  %v12166_v22 = vld [vmem:[%s12897_s5 + $0x130] sm:$0xff] }
 0x97d   : > { %6913 = vmatpush.msra.mxu0 %v6270_v16  ;;  %6963 = vmatpush.msrb.mxu3 %v6199_v20  ;;  %v5913_v16 = vunpack.c.1.s8 %v12087_v39  ;;  %v6381_v20 = vcvt.s32.f32 %v5931_v36  ;;  %v6057_v8 = vunpack.c.1.s8 %v12106_v19  ;;  %v12171_v4 = vld [vmem:[%s12897_s5 + $0x274] sm:$0xff]  ;;  %v5894_v53 = vunpack.c.0.s8 %v12101_v42 }
 0x97e   : > { %7865 = vmatpush.msk.msra.mxu1 %vm2381_vm5, %v6558_v13  ;;  %6986 = vmatpush.msrb.mxu2 %v6487_v7  ;;  %v6468_v13 = vcvt.s32.f32 %v6018_v43  ;;  %v6543_v7 = vcvt.s32.f32 %v6093_v50  ;;  %v6525_v58 = vcvt.s32.f32 %v6075_v59  ;;  %v6345_v0 = vcvt.s32.f32 %v5895_v12 }
 0x97f   : > { %6830 = vmatmul.f32.vlgmr.msrb.gmra.mxu1 %v11844_v55  ;;  %7860 = vmatmul.msk.f32.vlgmr.msrb.gmra.mxu0 %vm3089_vm9, %v11891_v62  ;;  %v6363_v1 = vcvt.s32.f32 %v5913_v16  ;;  %v6507_v34 = vcvt.s32.f32 %v6057_v8  ;;  %v6003_v43 = vunpack.c.1.s8 %v12157_v61  ;;  %v6056_v41 = vunpack.c.0.s8 %v12106_v19 }
 0x980   : > { %6879 = vmatmul.f32.gmra.mxu2 %v11889_v47  ;;  %7864 = vmatmul.msk.f32.gmra.mxu3 %vm3089_vm9, %v11937_v10  ;;  %v5823_v16 = vunpack.c.1.s8 %v12166_v22  ;;  %v5985_v59 = vunpack.c.1.s8 %v12171_v4 }
 0x981   : > { %6914 = vmatpush.msra.mxu0 %v6252_v24  ;;  %6937 = vmatpush.msra.mxu1 %v6540_v21  ;;  %v12126_v24 = vld [vmem:[%s12897_s5 + $0x19c] sm:$0xff] }
 0x982   : > { %6964 = vmatpush.msrb.mxu3 %v6181_v6  ;;  %6987 = vmatpush.msrb.mxu2 %v6469_v9  ;;  %v12131_v21 = vld [vmem:[%s12897_s5 + $0x2e0] sm:$0xff]  ;;  %v5948_v6 = vunpack.c.0.s8 %v12063_v49  ;;  %v6110_v9 = vunpack.c.0.s8 %v12068_v60  ;;  %v5877_v57 = vunpack.c.1.s8 %v12126_v24  ;;  %v5876_v12 = vunpack.c.0.s8 %v12126_v24 }
 0x983   : > { %6915 = vmatpush.msra.mxu0 %v6234_v15  ;;  %6938 = vmatpush.msra.mxu1 %v6522_v37  ;;  %v6126_v15 = vcvt.s32.f32 %v5676_v33  ;;  %v6414_v37 = vcvt.s32.f32 %v5964_v45  ;;  %v6039_v29 = vunpack.c.1.s8 %v12131_v21  ;;  %v6038_v8 = vunpack.c.0.s8 %v12131_v21 }
 0x984   : > { %6965 = vmatpush.msrb.mxu3 %v6163_v27  ;;  %6988 = vmatpush.msrb.mxu2 %v6451_v56  ;;  %v5930_v27 = vunpack.c.0.s8 %v12073_v28  ;;  %v6092_v56 = vunpack.c.0.s8 %v12078_v48 }
 0x985   : > { %6916 = vmatpush.msra.mxu0 %v6216_v2  ;;  %6939 = vmatpush.msra.mxu1 %v6504_v23  ;;  %v5859_v2 = vunpack.c.1.s8 %v12138_v35  ;;  %v6021_v23 = vunpack.c.1.s8 %v12143_v63 }
 0x986   : > { %6966 = vmatpush.msrb.mxu3 %v6145_v44  ;;  %6989 = vmatpush.msrb.mxu2 %v6433_v26  ;;  %v6398_v44 = vcvt.s32.f32 %v5948_v6  ;;  %v6560_v26 = vcvt.s32.f32 %v6110_v9  ;;  %v6380_v36 = vcvt.s32.f32 %v5930_v27  ;;  %v6542_v50 = vcvt.s32.f32 %v6092_v56  ;;  %v12211_v6 = vld [vmem:[%s12897_s5 + $0xc4] sm:$0xff] }
 0x987   : > { %6917 = vmatpush.msra.mxu0 %v6198_v30  ;;  %6940 = vmatpush.msra.mxu1 %v6486_v46  ;;  %v5912_v30 = vunpack.c.0.s8 %v12087_v39  ;;  %v6074_v46 = vunpack.c.0.s8 %v12092_v14  ;;  %v6326_v9 = vcvt.s32.f32 %v5876_v12  ;;  %v5933_v56 = vunpack.c.3.s8 %v12073_v28 }
 0x988   : > { %6967 = vmatpush.msrb.mxu3 %v6127_v5  ;;  %6990 = vmatpush.msrb.mxu2 %v6415_v38  ;;  %v6327_v5 = vcvt.s32.f32 %v5877_v57  ;;  %v6489_v38 = vcvt.s32.f32 %v6039_v29  ;;  %v5840_v57 = vunpack.c.0.s8 %v12152_v18 }
 0x989   : > { %6833 = vmatmul.f32.gmra.mxu1 %v11889_v47  ;;  %7861 = vmatmul.msk.f32.gmra.mxu0 %vm3089_vm9, %v11937_v10  ;;  %v6362_v32 = vcvt.s32.f32 %v5912_v30  ;;  %v6524_v3 = vcvt.s32.f32 %v6074_v46  ;;  %v5822_v30 = vunpack.c.0.s8 %v12166_v22 }
 0x98a   : > { %6968 = vmatmul.f32.vlgmr.msrb.gmra.mxu3 %v11844_v55  ;;  %7869 = vmatmul.msk.f32.vlgmr.msrb.gmra.mxu2 %vm3089_vm9, %v11891_v62 }
 0x98b   : > { %7044 = vmatpush.msra.mxu2 %v6399_v54  ;;  %7874 = vmatpush.msk.msra.mxu3 %vm2381_vm5, %v6561_v31  ;;  %v6309_v54 = vcvt.s32.f32 %v5859_v2  ;;  %v6471_v31 = vcvt.s32.f32 %v6021_v23  ;;  %v6002_v2 = vunpack.c.0.s8 %v12157_v61  ;;  %v12220_v23 = vld [vmem:[%s12897_s5 + $0xa0] sm:$0xff] }
 0x98c   : > { %6918 = vmatpush.msra.mxu0 %v6180_v40  ;;  %6941 = vmatpush.msra.mxu1 %v6468_v13  ;;  %v12188_v40 = vld [vmem:[%s12897_s5 + $0x10c] sm:$0xff] }
 0x98d   : > { %7045 = vmatpush.msra.mxu2 %v6381_v20  ;;  %7075 = vmatpush.msra.mxu3 %v6543_v7  ;;  %v12193_v13 = vld [vmem:[%s12897_s5 + $0x250] sm:$0xff]  ;;  %v6291_v20 = vcvt.s32.f32 %v5841_v11  ;;  %v6453_v7 = vcvt.s32.f32 %v6003_v43  ;;  %v5805_v33 = vunpack.c.1.s8 %v12188_v40  ;;  %v5984_v11 = vunpack.c.0.s8 %v12171_v4  ;;  %v12232_v43 = vld [vmem:[%s12897_s5 + $0x7c] sm:$0xff] }
 0x98e   : > { %6919 = vmatpush.msra.mxu0 %v6162_v17  ;;  %6942 = vmatpush.msra.mxu1 %v6450_v25  ;;  %v6344_v17 = vcvt.s32.f32 %v5894_v53  ;;  %v6506_v25 = vcvt.s32.f32 %v6056_v41  ;;  %v5967_v45 = vunpack.c.1.s8 %v12193_v13  ;;  %v5751_v53 = vunpack.c.1.s8 %v12220_v23 }
 0x98f   : > { %7046 = vmatpush.msra.mxu2 %v6363_v1  ;;  %7076 = vmatpush.msra.mxu3 %v6525_v58  ;;  %v12203_v1 = vld [vmem:[%s12897_s5 + $0xe8] sm:$0xff]  ;;  %v6273_v58 = vcvt.s32.f32 %v5823_v16  ;;  %v6255_v29 = vcvt.s32.f32 %v5805_v33  ;;  %v5804_v41 = vunpack.c.0.s8 %v12188_v40  ;;  %v5897_v16 = vunpack.c.3.s8 %v12101_v42 }
 0x990   : > { %6920 = vmatpush.msra.mxu0 %v6144_v51  ;;  %6943 = vmatpush.msra.mxu1 %v6432_v52  ;;  %v6435_v51 = vcvt.s32.f32 %v5985_v59  ;;  %v5858_v52 = vunpack.c.0.s8 %v12138_v35  ;;  %v6417_v27 = vcvt.s32.f32 %v5967_v45  ;;  %v5966_v59 = vunpack.c.0.s8 %v12193_v13 }
 0x991   : > { %7047 = vmatpush.msra.mxu2 %v6345_v0  ;;  %7077 = vmatpush.msra.mxu3 %v6507_v34  ;;  %v5951_v0 = vunpack.c.3.s8 %v12063_v49  ;;  %v6020_v34 = vunpack.c.0.s8 %v12143_v63  ;;  %v6254_v33 = vcvt.s32.f32 %v5804_v41  ;;  %v5879_v45 = vunpack.c.3.s8 %v12126_v24 }
 0x992   : > { %6921 = vmatpush.msra.mxu0 %v6126_v15  ;;  %6944 = vmatpush.msra.mxu1 %v6414_v37  ;;  %v6488_v15 = vcvt.s32.f32 %v6038_v8  ;;  %v5787_v37 = vunpack.c.1.s8 %v12203_v1  ;;  %v6434_v8 = vcvt.s32.f32 %v5984_v11  ;;  %v6113_v41 = vunpack.c.3.s8 %v12068_v60 }
 0x993   : > { %6922 = vmatmul.f32.vlgmr.msra.gmra.mxu0 %v11844_v55  ;;  %7866 = vmatmul.msk.f32.vlgmr.msra.gmra.mxu1 %vm3089_vm9, %v11891_v62  ;;  %v6401_v46 = vcvt.s32.f32 %v5951_v0  ;;  %v6416_v0 = vcvt.s32.f32 %v5966_v59 }
 0x994   : > { %6971 = vmatmul.f32.gmra.mxu3 %v11889_v47  ;;  %7870 = vmatmul.msk.f32.gmra.mxu2 %vm3089_vm9, %v11937_v10 }
 0x995   : > { %6998 = vmatpush.msrb.mxu1 %v6398_v44  ;;  %7871 = vmatpush.msk.msrb.mxu0 %vm2381_vm5, %v6560_v26  ;;  %v6308_v44 = vcvt.s32.f32 %v5858_v52  ;;  %v5769_v26 = vunpack.c.1.s8 %v12211_v6  ;;  %v6347_v52 = vcvt.s32.f32 %v5897_v16  ;;  %v5807_v16 = vunpack.c.3.s8 %v12188_v40 }
 0x996   : > { %7048 = vmatpush.msra.mxu2 %v6327_v5  ;;  %7078 = vmatpush.msra.mxu3 %v6489_v38  ;;  %v6470_v5 = vcvt.s32.f32 %v6020_v34  ;;  %v5915_v38 = vunpack.c.3.s8 %v12087_v39 }
 0x997   : > { %6999 = vmatpush.msrb.mxu1 %v6380_v36  ;;  %7029 = vmatpush.msrb.mxu0 %v6542_v50  ;;  %v6237_v36 = vcvt.s32.f32 %v5787_v37  ;;  %v6290_v50 = vcvt.s32.f32 %v5840_v57  ;;  %v5768_v37 = vunpack.c.0.s8 %v12211_v6  ;;  %v12261_v57 = vld [vmem:[%s12897_s5 + $0x10] sm:$0xff] }
 0x998   : > { %7049 = vmatpush.msra.mxu2 %v6309_v54  ;;  %7079 = vmatpush.msra.mxu3 %v6471_v31  ;;  %v6383_v54 = vcvt.s32.f32 %v5933_v56  ;;  %v6452_v31 = vcvt.s32.f32 %v6002_v2  ;;  %v6365_v12 = vcvt.s32.f32 %v5915_v38  ;;  %v5914_v56 = vunpack.c.2.s8 %v12087_v39 }
 0x999   : > { %7000 = vmatpush.msrb.mxu1 %v6362_v32  ;;  %7030 = vmatpush.msrb.mxu0 %v6524_v3  ;;  %v6219_v32 = vcvt.s32.f32 %v5769_v26  ;;  %v6272_v3 = vcvt.s32.f32 %v5822_v30  ;;  %v5750_v26 = vunpack.c.0.s8 %v12220_v23  ;;  %v5896_v38 = vunpack.c.2.s8 %v12101_v42 }
 0x99a   : > { %7050 = vmatpush.msra.mxu2 %v6291_v20  ;;  %7080 = vmatpush.msra.mxu3 %v6453_v7  ;;  %v5733_v20 = vunpack.c.1.s8 %v12232_v43  ;;  %v12244_v7 = vld [vmem:[%s12897_s5 + $0x58] sm:$0xff]  ;;  %v6218_v11 = vcvt.s32.f32 %v5768_v37 }
 0x99b   : > { %7001 = vmatpush.msrb.mxu1 %v6344_v17  ;;  %7031 = vmatpush.msrb.mxu0 %v6506_v25  ;;  %v5950_v17 = vunpack.c.2.s8 %v12063_v49  ;;  %v6201_v25 = vcvt.s32.f32 %v5751_v53  ;;  %v5715_v34 = vunpack.c.1.s8 %v12244_v7  ;;  %v5932_v49 = vunpack.c.2.s8 %v12073_v28 }
 0x99c   : > { %7051 = vmatpush.msra.mxu2 %v6273_v58  ;;  %7081 = vmatpush.msra.mxu3 %v6435_v51  ;;  %v5786_v58 = vunpack.c.0.s8 %v12203_v1  ;;  %v12252_v51 = vld [vmem:[%s12897_s5 + $0x34] sm:$0xff]  ;;  %v6329_v28 = vcvt.s32.f32 %v5879_v45  ;;  %v6364_v53 = vcvt.s32.f32 %v5914_v56  ;;  %v5860_v45 = vunpack.c.2.s8 %v12138_v35 }
 0x99d   : > { %6925 = vmatmul.f32.gmra.mxu0 %v11889_v47  ;;  %7867 = vmatmul.msk.f32.gmra.mxu1 %vm3089_vm9, %v11937_v10  ;;  %v6165_v30 = vcvt.s32.f32 %v5715_v34 }
 0x99e   : > { %7002 = vmatpush.msrb.mxu1 %v6326_v9  ;;  %7032 = vmatpush.msrb.mxu0 %v6488_v15  ;;  %v6183_v9 = vcvt.s32.f32 %v5733_v20  ;;  %v5861_v15 = vunpack.c.3.s8 %v12138_v35  ;;  %v6236_v2 = vcvt.s32.f32 %v5786_v58  ;;  %v6095_v20 = vunpack.c.3.s8 %v12078_v48 }
 0x99f   : > { %7052 = vmatpush.msra.mxu2 %v6255_v29  ;;  %7082 = vmatpush.msra.mxu3 %v6417_v27  ;;  %v6400_v29 = vcvt.s32.f32 %v5950_v17  ;;  %v5697_v27 = vunpack.c.1.s8 %v12252_v51  ;;  %v5789_v17 = vunpack.c.3.s8 %v12203_v1  ;;  %v6077_v58 = vunpack.c.3.s8 %v12092_v14 }
 0x9a0   : > { %7875 = vmatmul.msk.f32.vlgmr.msra.gmra.mxu3 %vm3089_vm9, %v11891_v62  ;;  %7003 = vmatpush.msrb.mxu1 %v6308_v44  ;;  %v5843_v44 = vunpack.c.3.s8 %v12152_v18  ;;  %v6311_v39 = vcvt.s32.f32 %v5861_v15  ;;  %v6059_v15 = vunpack.c.3.s8 %v12106_v19 }
 0x9a1   : > { %7136 = vmatpush.msrb.mxu3 %v6401_v46  ;;  %7033 = vmatpush.msrb.mxu0 %v6470_v5  ;;  %v6382_v46 = vcvt.s32.f32 %v5932_v49  ;;  %v5679_v5 = vunpack.c.1.s8 %v12261_v57  ;;  %v6545_v49 = vcvt.s32.f32 %v6095_v20  ;;  %v6239_v37 = vcvt.s32.f32 %v5789_v17 }
 0x9a2   : > { %7053 = vmatpush.msra.mxu2 %v6237_v36  ;;  %7004 = vmatpush.msrb.mxu1 %v6290_v50  ;;  %v5825_v36 = vunpack.c.3.s8 %v12166_v22  ;;  %v6147_v50 = vcvt.s32.f32 %v5697_v27  ;;  %v6293_v42 = vcvt.s32.f32 %v5843_v44  ;;  %v6310_v27 = vcvt.s32.f32 %v5860_v45 }
 0x9a3   : > { %7137 = vmatpush.msrb.mxu3 %v6383_v54  ;;  %7034 = vmatpush.msrb.mxu0 %v6452_v31  ;;  %v5732_v54 = vunpack.c.0.s8 %v12232_v43  ;;  %v6200_v31 = vcvt.s32.f32 %v5750_v26  ;;  %v6129_v59 = vcvt.s32.f32 %v5679_v5  ;;  %v6527_v56 = vcvt.s32.f32 %v6077_v58 }
 0x9a4   : > { %7054 = vmatpush.msra.mxu2 %v6219_v32  ;;  %7005 = vmatpush.msrb.mxu1 %v6272_v3  ;;  %v6346_v32 = vcvt.s32.f32 %v5896_v38  ;;  %v5878_v3 = vunpack.c.2.s8 %v12126_v24  ;;  %v6257_v24 = vcvt.s32.f32 %v5807_v16  ;;  %v6112_v44 = vunpack.c.2.s8 %v12068_v60 }
 0x9a5   : > { %7138 = vmatpush.msrb.mxu3 %v6365_v12  ;;  %7035 = vmatpush.msrb.mxu0 %v6434_v8  ;;  %v6275_v12 = vcvt.s32.f32 %v5825_v36  ;;  %v5714_v8 = vunpack.c.0.s8 %v12244_v7  ;;  %v5753_v26 = vunpack.c.3.s8 %v12220_v23  ;;  %v6041_v5 = vunpack.c.3.s8 %v12131_v21 }
 0x9a6   : > { %7055 = vmatpush.msra.mxu2 %v6201_v25  ;;  %7006 = vmatpush.msrb.mxu1 %v6254_v33  ;;  %v6563_v25 = vcvt.s32.f32 %v6113_v41  ;;  %v6182_v33 = vcvt.s32.f32 %v5732_v54  ;;  %v6328_v34 = vcvt.s32.f32 %v5878_v3  ;;  %v5806_v38 = vunpack.c.2.s8 %v12188_v40 }
 0x9a7   : > { %7139 = vmatpush.msrb.mxu3 %v6347_v52  ;;  %7036 = vmatpush.msrb.mxu0 %v6416_v0  ;;  %v5696_v52 = vunpack.c.0.s8 %v12252_v51  ;;  %v5771_v0 = vunpack.c.3.s8 %v12211_v6  ;;  %v6164_v35 = vcvt.s32.f32 %v5714_v8  ;;  %v6023_v36 = vunpack.c.3.s8 %v12143_v63 }
 0x9a8   : > { %7056 = vmatpush.msra.mxu2 %v6183_v9  ;;  %7872 = vmatmul.msk.f32.vlgmr.msrb.gmra.mxu0 %vm3089_vm9, %v11891_v62  ;;  %v5842_v9 = vunpack.c.2.s8 %v12152_v18  ;;  %v6203_v41 = vcvt.s32.f32 %v5753_v26  ;;  %v6076_v40 = vunpack.c.2.s8 %v12092_v14  ;;  %v5717_v54 = vunpack.c.3.s8 %v12244_v7 }
 0x9a9   : > { %7876 = vmatmul.msk.f32.gmra.mxu3 %vm3089_vm9, %v11937_v10  ;;  %7090 = vmatpush.msra.mxu0 %v6400_v29  ;;  %v5678_v29 = vunpack.c.0.s8 %v12261_v57  ;;  %v6146_v18 = vcvt.s32.f32 %v5696_v52  ;;  %v5770_v16 = vunpack.c.2.s8 %v12211_v6  ;;  %v5699_v3 = vunpack.c.3.s8 %v12252_v51 }
 0x9aa   : > { %7140 = vmatpush.msrb.mxu3 %v6329_v28  ;;  %7007 = vmatpush.msrb.mxu1 %v6236_v2  ;;  %v5824_v28 = vunpack.c.2.s8 %v12166_v22  ;;  %v6221_v2 = vcvt.s32.f32 %v5771_v0  ;;  %v6473_v14 = vcvt.s32.f32 %v6023_v36  ;;  %v6526_v6 = vcvt.s32.f32 %v6076_v40  ;;  %v12328_v0 = vld [vmem:[%s12897_s5 + $0x210] sm:$0xff] }
 0x9ab   : > { %7057 = vmatpush.msra.mxu2 %v6165_v30  ;;  %7091 = vmatpush.msra.mxu0 %v6382_v46  ;;  %v6292_v30 = vcvt.s32.f32 %v5842_v9  ;;  %v6509_v46 = vcvt.s32.f32 %v6059_v15  ;;  %v6128_v22 = vcvt.s32.f32 %v5678_v29  ;;  %v6167_v8 = vcvt.s32.f32 %v5717_v54 }
 0x9ac   : > { %7141 = vmatpush.msrb.mxu3 %v6311_v39  ;;  %7008 = vmatpush.msrb.mxu1 %v6218_v11  ;;  %v6094_v39 = vunpack.c.2.s8 %v12078_v48  ;;  %v5735_v11 = vunpack.c.3.s8 %v12232_v43  ;;  %v6274_v60 = vcvt.s32.f32 %v5824_v28  ;;  %v6491_v48 = vcvt.s32.f32 %v6041_v5  ;;  %v12347_v28 = vld [vmem:[%s12897_s5 + $0x330] sm:$0xff] }
 0x9ad   : > { %7058 = vmatpush.msra.mxu2 %v6147_v50  ;;  %7092 = vmatpush.msra.mxu0 %v6364_v53  ;;  %v5788_v50 = vunpack.c.2.s8 %v12203_v1  ;;  %v6562_v53 = vcvt.s32.f32 %v6112_v44  ;;  %v5752_v17 = vunpack.c.2.s8 %v12220_v23  ;;  %v6220_v58 = vcvt.s32.f32 %v5770_v16  ;;  %v12384_v16 = vld [vmem:[%s12897_s5 + $0x2e8] sm:$0xff] }
 0x9ae   : > { %7142 = vmatpush.msrb.mxu3 %v6293_v42  ;;  %7009 = vmatpush.msrb.mxu1 %v6200_v31  ;;  %v6256_v42 = vcvt.s32.f32 %v5806_v38  ;;  %v6005_v31 = vunpack.c.3.s8 %v12157_v61  ;;  %v6544_v1 = vcvt.s32.f32 %v6094_v39  ;;  %v5969_v23 = vunpack.c.3.s8 %v12193_v13 }
 0x9af   : > { %7059 = vmatpush.msra.mxu2 %v6129_v59  ;;  %7093 = vmatpush.msra.mxu0 %v6346_v32  ;;  %v6185_v59 = vcvt.s32.f32 %v5735_v11  ;;  %v6058_v32 = vunpack.c.2.s8 %v12106_v19  ;;  %v6238_v20 = vcvt.s32.f32 %v5788_v50  ;;  %v12316_v19 = vld [vmem:[%s12897_s5 + $0x234] sm:$0xff]  ;;  %v6149_v52 = vcvt.s32.f32 %v5699_v3 }
 0x9b0   : > { %7060 = vmatmul.f32.vlgmr.msra.gmra.mxu2 %v11844_v55  ;;  %7143 = vmatpush.msrb.mxu3 %v6275_v12  ;;  %v5987_v12 = vunpack.c.3.s8 %v12171_v4  ;;  %v6455_v45 = vcvt.s32.f32 %v6005_v31  ;;  %v5953_v9 = vunpack.c.1.s8 %v12316_v19  ;;  %v5734_v29 = vunpack.c.2.s8 %v12232_v43 }
 0x9b1   : > { %7880 = vmatpush.msk.msrb.mxu2 %vm2381_vm5, %v6563_v25  ;;  %7010 = vmatpush.msrb.mxu1 %v6182_v33  ;;  %v6040_v25 = vunpack.c.2.s8 %v12131_v21  ;;  %v12321_v33 = vld [vmem:[%s12897_s5 + $0x378] sm:$0x55]  ;;  %v6508_v21 = vcvt.s32.f32 %v6058_v32  ;;  %v5935_v44 = vunpack.c.1.s8 %v12328_v0  ;;  %v6004_v26 = vunpack.c.2.s8 %v12157_v61 }
 0x9b2   : > { %7873 = vmatmul.msk.f32.gmra.mxu0 %vm3089_vm9, %v11937_v10  ;;  %7144 = vmatpush.msrb.mxu3 %v6257_v24  ;;  %v5681_v24 = vunpack.c.3.s8 %v12261_v57  ;;  %v6115_v15 = vunpack.c.1.s8 %v12321_v33  ;;  %v6403_v5 = vcvt.s32.f32 %v5953_v9  ;;  %v6184_v61 = vcvt.s32.f32 %v5734_v29  ;;  %v12424_v29 = vld [vmem:[%s12897_s5 + $0x27c] sm:$0xff] }
 0x9b3   : > { %7094 = vmatpush.msra.mxu0 %v6328_v34  ;;  %7167 = vmatpush.msrb.mxu2 %v6545_v49  ;;  %v12333_v34 = vld [vmem:[%s12897_s5 + $0x354] sm:$0xff]  ;;  %v6437_v49 = vcvt.s32.f32 %v5987_v12  ;;  %v5698_v11 = vunpack.c.2.s8 %v12252_v51  ;;  %v6385_v36 = vcvt.s32.f32 %v5935_v44  ;;  %v6454_v54 = vcvt.s32.f32 %v6004_v26  ;;  %v12397_v12 = vld [vmem:[%s12897_s5 + $0x2c4] sm:$0xff] }
 0x9b4   : > { %7011 = vmatpush.msrb.mxu1 %v6164_v35  ;;  %7145 = vmatpush.msrb.mxu3 %v6239_v37  ;;  %v6202_v35 = vcvt.s32.f32 %v5752_v17  ;;  %v6490_v37 = vcvt.s32.f32 %v6040_v25  ;;  %v6097_v43 = vunpack.c.1.s8 %v12333_v34  ;;  %v6565_v38 = vcvt.s32.f32 %v6115_v15 }
 0x9b5   : > { %7095 = vmatpush.msra.mxu0 %v6310_v27  ;;  %7168 = vmatpush.msrb.mxu2 %v6527_v56  ;;  %v6022_v27 = vunpack.c.2.s8 %v12143_v63  ;;  %v12342_v56 = vld [vmem:[%s12897_s5 + $0x1ec] sm:$0xff]  ;;  %v5716_v63 = vunpack.c.2.s8 %v12244_v7  ;;  %v6079_v7 = vunpack.c.1.s8 %v12347_v28  ;;  %v5968_v51 = vunpack.c.2.s8 %v12193_v13 }
 0x9b6   : > { %7012 = vmatpush.msrb.mxu1 %v6146_v18  ;;  %7146 = vmatpush.msrb.mxu3 %v6221_v2  ;;  %v6131_v18 = vcvt.s32.f32 %v5681_v24  ;;  %v6419_v2 = vcvt.s32.f32 %v5969_v23  ;;  %v6547_v50 = vcvt.s32.f32 %v6097_v43  ;;  %v5952_v13 = vunpack.c.0.s8 %v12316_v19  ;;  %v12406_v24 = vld [vmem:[%s12897_s5 + $0x15c] sm:$0xff] }
 0x9b7   : > { %7096 = vmatpush.msra.mxu0 %v6292_v30  ;;  %7169 = vmatpush.msrb.mxu2 %v6509_v46  ;;  %v12356_v30 = vld [vmem:[%s12897_s5 + $0x1c8] sm:$0xff]  ;;  %v6472_v39 = vcvt.s32.f32 %v6022_v27  ;;  %v6166_v40 = vcvt.s32.f32 %v5716_v63  ;;  %v6529_v31 = vcvt.s32.f32 %v6079_v7  ;;  %v6043_v17 = vunpack.c.1.s8 %v12384_v16  ;;  %v12411_v23 = vld [vmem:[%s12897_s5 + $0x2a0] sm:$0xff] }
 0x9b8   : > { %7013 = vmatpush.msrb.mxu1 %v6128_v22  ;;  %7063 = vmatmul.f32.gmra.mxu2 %v11889_v47  ;;  %v12361_v46 = vld [vmem:[%s12897_s5 + $0x30c] sm:$0xff]  ;;  %v5917_v22 = vunpack.c.1.s8 %v12342_v56  ;;  %v5934_v25 = vunpack.c.0.s8 %v12328_v0  ;;  %v5916_v15 = vunpack.c.0.s8 %v12342_v56  ;;  %v6007_v44 = vunpack.c.1.s8 %v12411_v23 }
 0x9b9   : > { %7014 = vmatmul.f32.vlgmr.msrb.gmra.mxu1 %v11844_v55  ;;  %7097 = vmatpush.msra.mxu0 %v6274_v60  ;;  %v5986_v60 = vunpack.c.2.s8 %v12171_v4  ;;  %v12378_v4 = vld [vmem:[%s12897_s5 + $0x1a4] sm:$0xff]  ;;  %v6493_v27 = vcvt.s32.f32 %v6043_v17  ;;  %v5898_v26 = vunpack.c.0.s8 %v12356_v30  ;;  %v6024_v17 = vunpack.c.0.s8 %v12397_v12 }
 0x9ba   : > { %7877 = vmatpush.msk.msra.mxu1 %vm2381_vm5, %v6562_v53  ;;  %7147 = vmatpush.msrb.mxu3 %v6203_v41  ;;  %v5899_v53 = vunpack.c.1.s8 %v12356_v30  ;;  %v6061_v41 = vunpack.c.1.s8 %v12361_v46 }
 0x9bb   : > { %7170 = vmatpush.msrb.mxu2 %v6491_v48  ;;  %7098 = vmatpush.msra.mxu0 %v6256_v42  ;;  %v5680_v48 = vunpack.c.2.s8 %v12261_v57  ;;  %v6367_v42 = vcvt.s32.f32 %v5917_v22  ;;  %v6148_v57 = vcvt.s32.f32 %v5698_v11  ;;  %v12447_v11 = vld [vmem:[%s12897_s5 + $0x258] sm:$0xff] }
 0x9bc   : > { %7121 = vmatpush.msra.mxu1 %v6544_v1  ;;  %7148 = vmatpush.msrb.mxu3 %v6185_v59  ;;  %v6436_v1 = vcvt.s32.f32 %v5986_v60  ;;  %v12390_v59 = vld [vmem:[%s12897_s5 + $0x180] sm:$0xff]  ;;  %v6349_v32 = vcvt.s32.f32 %v5899_v53  ;;  %v6511_v3 = vcvt.s32.f32 %v6061_v41  ;;  %v6366_v60 = vcvt.s32.f32 %v5916_v15 }
 0x9bd   : > { %7171 = vmatpush.msrb.mxu2 %v6473_v14  ;;  %7099 = vmatpush.msra.mxu0 %v6238_v20  ;;  %v6114_v14 = vunpack.c.0.s8 %v12321_v33  ;;  %v5881_v20 = vunpack.c.1.s8 %v12378_v4  ;;  %v6457_v41 = vcvt.s32.f32 %v6007_v44  ;;  %v5919_v44 = vunpack.c.3.s8 %v12342_v56 }
 0x9be   : > { %7122 = vmatpush.msra.mxu1 %v6526_v6  ;;  %7149 = vmatpush.msrb.mxu3 %v6167_v8  ;;  %v6130_v6 = vcvt.s32.f32 %v5680_v48  ;;  %v6418_v8 = vcvt.s32.f32 %v5968_v51  ;;  %v6348_v51 = vcvt.s32.f32 %v5898_v26 }
 0x9bf   : > { %7172 = vmatpush.msrb.mxu2 %v6455_v45  ;;  %7100 = vmatpush.msra.mxu0 %v6220_v58  ;;  %v6096_v45 = vunpack.c.0.s8 %v12333_v34  ;;  %v5863_v58 = vunpack.c.1.s8 %v12390_v59  ;;  %v6331_v9 = vcvt.s32.f32 %v5881_v20 }
 0x9c0   : > { %7123 = vmatpush.msra.mxu1 %v6508_v21  ;;  %7150 = vmatpush.msrb.mxu3 %v6149_v52  ;;  %v6402_v21 = vcvt.s32.f32 %v5952_v13  ;;  %v6025_v52 = vunpack.c.1.s8 %v12397_v12 }
 0x9c1   : > { %7173 = vmatpush.msrb.mxu2 %v6437_v49  ;;  %7017 = vmatmul.f32.gmra.mxu1 %v11889_v47  ;;  %v6564_v49 = vcvt.s32.f32 %v6114_v14  ;;  %v6546_v43 = vcvt.s32.f32 %v6096_v45  ;;  %v6313_v63 = vcvt.s32.f32 %v5863_v58  ;;  %v12462_v14 = vld [vmem:[%s12897_s5 + $0xcc] sm:$0xff] }
 0x9c2   : > { %7101 = vmatpush.msra.mxu0 %v6202_v35  ;;  %7124 = vmatpush.msra.mxu1 %v6490_v37  ;;  %v6078_v35 = vunpack.c.0.s8 %v12347_v28  ;;  %v12419_v37 = vld [vmem:[%s12897_s5 + $0x138] sm:$0xff]  ;;  %v6475_v22 = vcvt.s32.f32 %v6025_v52  ;;  %v5844_v52 = vunpack.c.0.s8 %v12406_v24 }
 0x9c3   : > { %7151 = vmatpush.msrb.mxu3 %v6131_v18  ;;  %7174 = vmatpush.msrb.mxu2 %v6419_v2  ;;  %v6384_v18 = vcvt.s32.f32 %v5934_v25  ;;  %v5845_v2 = vunpack.c.1.s8 %v12406_v24  ;;  %v5827_v7 = vunpack.c.1.s8 %v12419_v37 }
 0x9c4   : > { %7152 = vmatmul.f32.vlgmr.msrb.gmra.mxu3 %v11844_v55  ;;  %7881 = vmatmul.msk.f32.vlgmr.msrb.gmra.mxu2 %vm3089_vm9, %v11891_v62 }
 0x9c5   : > { %7228 = vmatpush.msra.mxu2 %v6403_v5  ;;  %7886 = vmatpush.msk.msra.mxu3 %vm2381_vm5, %v6565_v38  ;;  %v6060_v5 = vunpack.c.0.s8 %v12361_v46  ;;  %v12436_v38 = vld [vmem:[%s12897_s5 + $0x114] sm:$0xff]  ;;  %v6295_v53 = vcvt.s32.f32 %v5845_v2 }
 0x9c6   : > { %7102 = vmatpush.msra.mxu0 %v6184_v61  ;;  %7125 = vmatpush.msra.mxu1 %v6472_v39  ;;  %v5989_v61 = vunpack.c.1.s8 %v12424_v29  ;;  %v5880_v39 = vunpack.c.0.s8 %v12378_v4 }
 0x9c7   : > { %7229 = vmatpush.msra.mxu2 %v6385_v36  ;;  %7259 = vmatpush.msra.mxu3 %v6547_v50  ;;  %v6528_v36 = vcvt.s32.f32 %v6078_v35  ;;  %v6042_v50 = vunpack.c.0.s8 %v12384_v16  ;;  %v5937_v35 = vunpack.c.3.s8 %v12328_v0 }
 0x9c8   : > { %7103 = vmatpush.msra.mxu0 %v6166_v40  ;;  %7126 = vmatpush.msra.mxu1 %v6454_v54  ;;  %v5809_v40 = vunpack.c.1.s8 %v12436_v38  ;;  %v6439_v13 = vcvt.s32.f32 %v5989_v61  ;;  %v12491_v61 = vld [vmem:[%s12897_s5 + $0x84] sm:$0xff] }
 0x9c9   : > { %7230 = vmatpush.msra.mxu2 %v6367_v42  ;;  %7260 = vmatpush.msra.mxu3 %v6529_v31  ;;  %v6510_v42 = vcvt.s32.f32 %v6060_v5  ;;  %v5971_v31 = vunpack.c.1.s8 %v12447_v11  ;;  %v6474_v5 = vcvt.s32.f32 %v6024_v17 }
 0x9ca   : > { %7104 = vmatpush.msra.mxu0 %v6148_v57  ;;  %7127 = vmatpush.msra.mxu1 %v6436_v1  ;;  %v12456_v57 = vld [vmem:[%s12897_s5 + $0xf0] sm:$0xff]  ;;  %v6277_v1 = vcvt.s32.f32 %v5827_v7  ;;  %v6259_v58 = vcvt.s32.f32 %v5809_v40  ;;  %v5901_v7 = vunpack.c.3.s8 %v12356_v30 }
 0x9cb   : > { %7231 = vmatpush.msra.mxu2 %v6349_v32  ;;  %7261 = vmatpush.msra.mxu3 %v6511_v3  ;;  %v6330_v32 = vcvt.s32.f32 %v5880_v39  ;;  %v5862_v3 = vunpack.c.0.s8 %v12390_v59  ;;  %v6421_v15 = vcvt.s32.f32 %v5971_v31 }
 0x9cc   : > { %7105 = vmatpush.msra.mxu0 %v6130_v6  ;;  %7128 = vmatpush.msra.mxu1 %v6418_v8  ;;  %v6492_v6 = vcvt.s32.f32 %v6042_v50  ;;  %v5955_v8 = vunpack.c.3.s8 %v12316_v19  ;;  %v5970_v50 = vunpack.c.0.s8 %v12447_v11 }
 0x9cd   : > { %7106 = vmatmul.f32.vlgmr.msra.gmra.mxu0 %v11844_v55  ;;  %7878 = vmatmul.msk.f32.vlgmr.msra.gmra.mxu1 %vm3089_vm9, %v11891_v62  ;;  %v6312_v2 = vcvt.s32.f32 %v5862_v3  ;;  %v6351_v3 = vcvt.s32.f32 %v5901_v7 }
 0x9ce   : > { %7155 = vmatmul.f32.gmra.mxu3 %v11889_v47  ;;  %7882 = vmatmul.msk.f32.gmra.mxu2 %vm3089_vm9, %v11937_v10  ;;  %v6405_v26 = vcvt.s32.f32 %v5955_v8  ;;  %v12508_v8 = vld [vmem:[%s12897_s5 + $0x3c] sm:$0xff] }
 0x9cf   : > { %7182 = vmatpush.msrb.mxu1 %v6402_v21  ;;  %7883 = vmatpush.msk.msrb.mxu0 %vm2381_vm5, %v6564_v49  ;;  %v5791_v21 = vunpack.c.1.s8 %v12456_v57  ;;  %v12473_v49 = vld [vmem:[%s12897_s5 + $0xa8] sm:$0xff] }
 0x9d0   : > { %7232 = vmatpush.msra.mxu2 %v6331_v9  ;;  %7262 = vmatpush.msra.mxu3 %v6493_v27  ;;  %v6647_v54 = vpop.f32.mrf.mxu3  ;;  %v6693_v48 = vpop.f32.mrf.mxu2  ;;  %v6006_v27 = vunpack.c.0.s8 %v12411_v23 }
 0x9d1   : > { %7183 = vmatpush.msrb.mxu1 %v6384_v18  ;;  %7213 = vmatpush.msrb.mxu0 %v6546_v43  ;;  %v5773_v18 = vunpack.c.1.s8 %v12462_v14  ;;  %v5826_v43 = vunpack.c.0.s8 %v12419_v37  ;;  %v6241_v39 = vcvt.s32.f32 %v5791_v21 }
 0x9d2   : > { %7233 = vmatpush.msra.mxu2 %v6313_v63  ;;  %7263 = vmatpush.msra.mxu3 %v6475_v22  ;;  %v6670_v20 = vpop.f32.mrf.mxu0  ;;  %v5988_v63 = vunpack.c.0.s8 %v12424_v29  ;;  %v5755_v22 = vunpack.c.1.s8 %v12473_v49 }
 0x9d3   : > { %7184 = vmatpush.msrb.mxu1 %v6366_v60  ;;  %7214 = vmatpush.msrb.mxu0 %v6528_v36  ;;  %v12466_v25 = vadd.f32 %v6670_v20, %v6647_v54  ;;  %v6716_v45 = vpop.f32.mrf.mxu1  ;;  %v6294_v60 = vcvt.s32.f32 %v5844_v52  ;;  %v5808_v36 = vunpack.c.0.s8 %v12436_v38  ;;  %v6223_v40 = vcvt.s32.f32 %v5773_v18  ;;  %v12498_v54 = vld [vmem:[%s12897_s5 + $0x60] sm:$0xff] }
 0x9d4   : > { %7234 = vmatpush.msra.mxu2 %v6295_v53  ;;  %7264 = vmatpush.msra.mxu3 %v6457_v41  ;;  %v12475_v9 = vadd.f32 %v6716_v45, %v6693_v48  ;;  %v6387_v53 = vcvt.s32.f32 %v5937_v35  ;;  %v6456_v41 = vcvt.s32.f32 %v6006_v27  ;;  %v6276_v31 = vcvt.s32.f32 %v5826_v43  ;;  %v12517_v27 = vld [vmem:[%s12897_s5 + $0x18] sm:$0xff] }
 0x9d5   : > { %7185 = vmatpush.msrb.mxu1 %v6348_v51  ;;  %7215 = vmatpush.msrb.mxu0 %v6510_v42  ;;  %v6369_v42 = vcvt.s32.f32 %v5919_v44  ;;  %v5954_v20 = vunpack.c.2.s8 %v12316_v19  ;;  %v6258_v17 = vcvt.s32.f32 %v5808_v36  ;;  %v6420_v45 = vcvt.s32.f32 %v5970_v50 }
 0x9d6   : > { %7235 = vmatpush.msra.mxu2 %v6277_v1  ;;  %7265 = vmatpush.msra.mxu3 %v6439_v13  ;;  %v6438_v1 = vcvt.s32.f32 %v5988_v63  ;;  %v5737_v13 = vunpack.c.1.s8 %v12491_v61  ;;  %v5719_v21 = vunpack.c.1.s8 %v12498_v54  ;;  %v5936_v19 = vunpack.c.2.s8 %v12328_v0 }
 0x9d7   : > { %7109 = vmatmul.f32.gmra.mxu0 %v11889_v47  ;;  %7879 = vmatmul.msk.f32.gmra.mxu1 %vm3089_vm9, %v11937_v10  ;;  %v5865_v35 = vunpack.c.3.s8 %v12390_v59  ;;  %v5772_v43 = vunpack.c.0.s8 %v12462_v14  ;;  %v5701_v63 = vunpack.c.1.s8 %v12508_v8  ;;  %v6404_v0 = vcvt.s32.f32 %v5954_v20 }
 0x9d8   : > { %7186 = vmatpush.msrb.mxu1 %v6330_v32  ;;  %7216 = vmatpush.msrb.mxu0 %v6492_v6  ;;  %v6650_v48 = vpop.f32.mrf.mxu3  ;;  %v6205_v32 = vcvt.s32.f32 %v5755_v22  ;;  %v5883_v6 = vunpack.c.3.s8 %v12378_v4  ;;  %v6187_v44 = vcvt.s32.f32 %v5737_v13  ;;  %v5847_v22 = vunpack.c.3.s8 %v12406_v24 }
 0x9d9   : > { %7236 = vmatpush.msra.mxu2 %v6259_v58  ;;  %7266 = vmatpush.msra.mxu3 %v6421_v15  ;;  %v6696_v51 = vpop.f32.mrf.mxu2  ;;  %v5790_v58 = vunpack.c.0.s8 %v12456_v57  ;;  %v5683_v36 = vunpack.c.1.s8 %v12517_v27  ;;  %v6386_v50 = vcvt.s32.f32 %v5936_v19  ;;  %v5811_v13 = vunpack.c.3.s8 %v12436_v38 }
 0x9da   : > { %7887 = vmatmul.msk.f32.vlgmr.msra.gmra.mxu3 %vm3089_vm9, %v11891_v62  ;;  %7187 = vmatpush.msrb.mxu1 %v6312_v2 }
 0x9db   : > { %7320 = vmatpush.msrb.mxu3 %v6405_v26  ;;  %7217 = vmatpush.msrb.mxu0 %v6474_v5  ;;  %v6333_v26 = vcvt.s32.f32 %v5883_v6  ;;  %v5918_v5 = vunpack.c.2.s8 %v12342_v56  ;;  %v6240_v7 = vcvt.s32.f32 %v5790_v58  ;;  %v6222_v56 = vcvt.s32.f32 %v5772_v43 }
 0x9dc   : > { %7237 = vmatpush.msra.mxu2 %v6241_v39  ;;  %7188 = vmatpush.msrb.mxu1 %v6294_v60  ;;  %v6673_v52 = vpop.f32.mrf.mxu0  ;;  %v6719_v15 = vpop.f32.mrf.mxu1  ;;  %v6169_v39 = vcvt.s32.f32 %v5719_v21  ;;  %v5754_v60 = vunpack.c.0.s8 %v12473_v49  ;;  %v6133_v6 = vcvt.s32.f32 %v5683_v36 }
 0x9dd   : > { %7321 = vmatpush.msrb.mxu3 %v6387_v53  ;;  %7218 = vmatpush.msrb.mxu0 %v6456_v41  ;;  %v12519_v18 = vadd.f32 %v6673_v52, %v6650_v48  ;;  %v12521_v2 = vadd.f32 %v6719_v15, %v6696_v51  ;;  %v6315_v53 = vcvt.s32.f32 %v5865_v35  ;;  %v5900_v41 = vunpack.c.2.s8 %v12356_v30 }
 0x9de   : > { %7238 = vmatpush.msra.mxu2 %v6223_v40  ;;  %7189 = vmatpush.msrb.mxu1 %v6276_v31  ;;  %v5829_v40 = vunpack.c.3.s8 %v12419_v37  ;;  %v6151_v48 = vcvt.s32.f32 %v5701_v63  ;;  %v6117_v51 = vunpack.c.3.s8 %v12321_v33  ;;  %v6368_v31 = vcvt.s32.f32 %v5918_v5 }
 0x9df   : > { %7322 = vmatpush.msrb.mxu3 %v6369_v42  ;;  %7219 = vmatpush.msrb.mxu0 %v6438_v1  ;;  %v5736_v42 = vunpack.c.0.s8 %v12491_v61  ;;  %v6297_v1 = vcvt.s32.f32 %v5847_v22  ;;  %v5882_v30 = vunpack.c.2.s8 %v12378_v4  ;;  %v6204_v20 = vcvt.s32.f32 %v5754_v60 }
 0x9e0   : > { %7239 = vmatpush.msra.mxu2 %v6205_v32  ;;  %7190 = vmatpush.msrb.mxu1 %v6258_v17  ;;  %v6099_v17 = vunpack.c.3.s8 %v12333_v34  ;;  %v6350_v58 = vcvt.s32.f32 %v5900_v41  ;;  %v6279_v21 = vcvt.s32.f32 %v5829_v40  ;;  %v5718_v52 = vunpack.c.0.s8 %v12498_v54 }
 0x9e1   : > { %7323 = vmatpush.msrb.mxu3 %v6351_v3  ;;  %7220 = vmatpush.msrb.mxu0 %v6420_v45  ;;  %v5864_v4 = vunpack.c.2.s8 %v12390_v59  ;;  %v6567_v15 = vcvt.s32.f32 %v6117_v51  ;;  %v6186_v19 = vcvt.s32.f32 %v5736_v42  ;;  %v5793_v35 = vunpack.c.3.s8 %v12456_v57 }
 0x9e2   : > { %7240 = vmatpush.msra.mxu2 %v6187_v44  ;;  %7884 = vmatmul.msk.f32.vlgmr.msrb.gmra.mxu0 %vm3089_vm9, %v11891_v62  ;;  %v6081_v44 = vunpack.c.3.s8 %v12347_v28  ;;  %v6332_v63 = vcvt.s32.f32 %v5882_v30  ;;  %v5846_v5 = vunpack.c.2.s8 %v12406_v24  ;;  %v6549_v59 = vcvt.s32.f32 %v6099_v17 }
 0x9e3   : > { %7888 = vmatmul.msk.f32.gmra.mxu3 %vm3089_vm9, %v11937_v10  ;;  %7274 = vmatpush.msra.mxu0 %v6404_v0  ;;  %v6785_v32 = vpop.f32.mrf.mxu3  ;;  %v6808_v3 = vpop.f32.mrf.mxu2  ;;  %v6261_v0 = vcvt.s32.f32 %v5811_v13  ;;  %v6168_v36 = vcvt.s32.f32 %v5718_v52  ;;  %v5828_v41 = vunpack.c.2.s8 %v12419_v37  ;;  %v6243_v24 = vcvt.s32.f32 %v5793_v35 }
 0x9e4   : > { %7324 = vmatpush.msrb.mxu3 %v6333_v26  ;;  %7191 = vmatpush.msrb.mxu1 %v6240_v7  ;;  %v12540_v45 = vadd.f32 %v6808_v3, %v6785_v32  ;;  %v5700_v26 = vunpack.c.0.s8 %v12508_v8  ;;  %v5775_v7 = vunpack.c.3.s8 %v12462_v14  ;;  %v6531_v40 = vcvt.s32.f32 %v6081_v44 }
 0x9e5   : > { %7241 = vmatpush.msra.mxu2 %v6169_v39  ;;  %7275 = vmatpush.msra.mxu0 %v6386_v50  ;;  %v6063_v39 = vunpack.c.3.s8 %v12361_v46  ;;  %v6314_v50 = vcvt.s32.f32 %v5864_v4  ;;  %v6296_v42 = vcvt.s32.f32 %v5846_v5  ;;  %v6098_v13 = vunpack.c.2.s8 %v12333_v34 }
 0x9e6   : > { %7325 = vmatpush.msrb.mxu3 %v6315_v53  ;;  %7192 = vmatpush.msrb.mxu1 %v6222_v56  ;;  %v6739_v43 = vpop.f32.mrf.mxu0  ;;  %v6762_v22 = vpop.f32.mrf.mxu1  ;;  %v5682_v53 = vunpack.c.0.s8 %v12517_v27  ;;  %v6116_v56 = vunpack.c.2.s8 %v12321_v33  ;;  %v6150_v51 = vcvt.s32.f32 %v5700_v26  ;;  %v6225_v37 = vcvt.s32.f32 %v5775_v7 }
 0x9e7   : > { %7242 = vmatpush.msra.mxu2 %v6151_v48  ;;  %7276 = vmatpush.msra.mxu0 %v6368_v31  ;;  %v12550_v60 = vadd.f32 %v6762_v22, %v6739_v43  ;;  %v5757_v48 = vunpack.c.3.s8 %v12473_v49  ;;  %v6045_v31 = vunpack.c.3.s8 %v12384_v16  ;;  %v6513_v30 = vcvt.s32.f32 %v6063_v39 }
 0x9e8   : > { %7326 = vmatpush.msrb.mxu3 %v6297_v1  ;;  %7193 = vmatpush.msrb.mxu1 %v6204_v20  ;;  %v5810_v1 = vunpack.c.2.s8 %v12436_v38  ;;  %v5739_v33 = vunpack.c.3.s8 %v12491_v61  ;;  %v6132_v32 = vcvt.s32.f32 %v5682_v53  ;;  %v6278_v3 = vcvt.s32.f32 %v5828_v41  ;;  %v12591_v53 = vld [vmem:[%s12897_s5 + $0x23c] sm:$0xf] }
 0x9e9   : > { %7243 = vmatpush.msra.mxu2 %v6133_v6  ;;  %7277 = vmatpush.msra.mxu0 %v6350_v58  ;;  %v6027_v20 = vunpack.c.3.s8 %v12397_v12  ;;  %v5792_v6 = vunpack.c.2.s8 %v12456_v57  ;;  %v6566_v38 = vcvt.s32.f32 %v6116_v56  ;;  %v6207_v58 = vcvt.s32.f32 %v5757_v48 }
 0x9ea   : > { %7244 = vmatmul.f32.vlgmr.msra.gmra.mxu2 %v11844_v55  ;;  %7327 = vmatpush.msrb.mxu3 %v6279_v21  ;;  %v7463_v21 = vrot.slane %v12540_v45, 4  ;;  %v7462_v52 = vrot.slane %v12550_v60, 4  ;;  %v6495_v4 = vcvt.s32.f32 %v6045_v31  ;;  %v6548_v57 = vcvt.s32.f32 %v6098_v13  ;;  %v12641_v60 = vld [vmem:[%s12897_s5 + $0x1d0] sm:$0xf] }
 0x9eb   : > { %7892 = vmatpush.msk.msrb.mxu2 %vm2381_vm5, %v6567_v15  ;;  %7194 = vmatpush.msrb.mxu1 %v6186_v19  ;;  %v6260_v15 = vcvt.s32.f32 %v5810_v1  ;;  %v6080_v19 = vunpack.c.2.s8 %v12347_v28  ;;  %v6189_v44 = vcvt.s32.f32 %v5739_v33  ;;  %v5721_v43 = vunpack.c.3.s8 %v12498_v54 }
 0x9ec   : > { %7885 = vmatmul.msk.f32.gmra.mxu0 %vm3089_vm9, %v11937_v10  ;;  %7328 = vmatpush.msrb.mxu3 %v6261_v0  ;;  %v6477_v45 = vcvt.s32.f32 %v6027_v20  ;;  %v6242_v0 = vcvt.s32.f32 %v5792_v6  ;;  %v5774_v26 = vunpack.c.2.s8 %v12462_v14  ;;  %v6062_v28 = vunpack.c.2.s8 %v12361_v46 }
 0x9ed   : > { %7278 = vmatpush.msra.mxu0 %v6332_v63  ;;  %7351 = vmatpush.msrb.mxu2 %v6549_v59  ;;  %v6811_v34 = vpop.f32.mrf.mxu2  ;;  %v6009_v63 = vunpack.c.3.s8 %v12411_v23  ;;  %v5703_v59 = vunpack.c.3.s8 %v12508_v8  ;;  %v12577_v39 = vsel %vm2381_vm5, %v12521_v2, %v7463_v21  ;;  %v6530_v14 = vcvt.s32.f32 %v6080_v19 }
 0x9ee   : > { %v6788_v17 = vpop.f32.mrf.mxu3  ;;  %7195 = vmatpush.msrb.mxu1 %v6168_v36  ;;  %7329 = vmatpush.msrb.mxu3 %v6243_v24  ;;  %v12583_v36 = vsel %vm2381_vm5, %v12519_v18, %v7462_v52  ;;  %v5756_v46 = vunpack.c.2.s8 %v12473_v49  ;;  %v6171_v41 = vcvt.s32.f32 %v5721_v43  ;;  %v6044_v24 = vunpack.c.2.s8 %v12384_v16 }
 0x9ef   : > { %7279 = vmatpush.msra.mxu0 %v6314_v50  ;;  %7352 = vmatpush.msrb.mxu2 %v6531_v40  ;;  %v6812_v35 = vadd.f32 %v6811_v34, %v6788_v17  ;;  %v5991_v50 = vunpack.c.3.s8 %v12424_v29  ;;  %v6459_v18 = vcvt.s32.f32 %v6009_v63  ;;  %v12598_v40 = vld [vmem:[%s12897_s5 + $0x380] sm:$0x5]  ;;  %v6224_v56 = vcvt.s32.f32 %v5774_v26 }
 0x9f0   : > { %7196 = vmatpush.msrb.mxu1 %v6150_v51  ;;  %7330 = vmatpush.msrb.mxu3 %v6225_v37  ;;  %v6742_v22 = vpop.f32.mrf.mxu0  ;;  %v5685_v48 = vunpack.c.3.s8 %v12517_v27  ;;  %v5973_v51 = vunpack.c.3.s8 %v12447_v11  ;;  %v6512_v31 = vcvt.s32.f32 %v6062_v28  ;;  %v6153_v1 = vcvt.s32.f32 %v5703_v59 }
 0x9f1   : > { %7280 = vmatpush.msra.mxu0 %v6296_v42  ;;  %7353 = vmatpush.msrb.mxu2 %v6513_v30  ;;  %v7466_v5 = vrot.slane %v6812_v35, 4  ;;  %v12608_v42 = vld [vmem:[%s12897_s5 + $0x218] sm:$0xf]  ;;  %v5957_v37 = vunpack.c.1.s8 %v12591_v53  ;;  %v12614_v30 = vld [vmem:[%s12897_s5 + $0x35c] sm:$0xf]  ;;  %v6441_v13 = vcvt.s32.f32 %v5991_v50  ;;  %v6206_v33 = vcvt.s32.f32 %v5756_v46 }
 0x9f2   : > { %7197 = vmatpush.msrb.mxu1 %v6132_v32  ;;  %7247 = vmatmul.f32.gmra.mxu2 %v11889_v47  ;;  %v6765_v7 = vpop.f32.mrf.mxu1  ;;  %v6119_v32 = vunpack.c.1.s8 %v12598_v40  ;;  %v6494_v20 = vcvt.s32.f32 %v6044_v24  ;;  %v6026_v6 = vunpack.c.2.s8 %v12397_v12  ;;  %v5939_v17 = vunpack.c.1.s8 %v12608_v42 }
 0x9f3   : > { %7198 = vmatmul.f32.vlgmr.msrb.gmra.mxu1 %v11844_v55  ;;  %7281 = vmatpush.msra.mxu0 %v6278_v3  ;;  %v6766_v2 = vadd.f32 %v6765_v7, %v6742_v22  ;;  %v12601_v49 = vsel %vm2381_vm5, %v7463_v21, %v7466_v5  ;;  %v5738_v3 = vunpack.c.2.s8 %v12491_v61  ;;  %v6135_v12 = vcvt.s32.f32 %v5685_v48 }
 0x9f4   : > { %7889 = vmatpush.msk.msra.mxu1 %vm2381_vm5, %v6566_v38  ;;  %7331 = vmatpush.msrb.mxu3 %v6207_v58  ;;  %v12623_v38 = vld [vmem:[%s12897_s5 + $0x1f4] sm:$0xf]  ;;  %v12628_v58 = vld [vmem:[%s12897_s5 + $0x338] sm:$0xf]  ;;  %v6423_v34 = vcvt.s32.f32 %v5973_v51  ;;  %v6407_v19 = vcvt.s32.f32 %v5957_v37  ;;  %v5720_v35 = vunpack.c.2.s8 %v12498_v54  ;;  %v6569_v43 = vcvt.s32.f32 %v6119_v32  ;;  %v12681_v37 = vld [vmem:[%s12897_s5 + $0x188] sm:$0xf] }
 0x9f5   : > { %7354 = vmatpush.msrb.mxu2 %v6495_v4  ;;  %7282 = vmatpush.msra.mxu0 %v6260_v15  ;;  %v7464_v16 = vrot.slane %v6766_v2, 4  ;;  %v6101_v4 = vunpack.c.1.s8 %v12614_v30  ;;  %v6188_v63 = vcvt.s32.f32 %v5738_v3  ;;  %v5921_v54 = vunpack.c.1.s8 %v12623_v38 }
 0x9f6   : > { %7305 = vmatpush.msra.mxu1 %v6548_v57  ;;  %7332 = vmatpush.msrb.mxu3 %v6189_v44  ;;  %v6008_v57 = vunpack.c.2.s8 %v12411_v23  ;;  %v6083_v23 = vunpack.c.1.s8 %v12628_v58  ;;  %v5702_v26 = vunpack.c.2.s8 %v12508_v8  ;;  %v5990_v5 = vunpack.c.2.s8 %v12424_v29 }
 0x9f7   : > { %7355 = vmatpush.msrb.mxu2 %v6477_v45  ;;  %7283 = vmatpush.msra.mxu0 %v6242_v0  ;;  %v12633_v61 = vsel %vm2381_vm5, %v7462_v52, %v7464_v16  ;;  %v12646_v52 = vld [vmem:[%s12897_s5 + $0x314] sm:$0xf]  ;;  %v6476_v45 = vcvt.s32.f32 %v6026_v6  ;;  %v6389_v0 = vcvt.s32.f32 %v5939_v17  ;;  %v6551_v59 = vcvt.s32.f32 %v6101_v4  ;;  %v12699_v6 = vld [vmem:[%s12897_s5 + $0x2a8] sm:$0xf] }
 0x9f8   : > { %7306 = vmatpush.msra.mxu1 %v6530_v14  ;;  %7333 = vmatpush.msrb.mxu3 %v6171_v41  ;;  %v6877_v21 = vpop.f32.mrf.mxu2  ;;  %v5903_v7 = vunpack.c.1.s8 %v12641_v60  ;;  %v6065_v14 = vunpack.c.1.s8 %v12646_v52  ;;  %v6170_v46 = vcvt.s32.f32 %v5720_v35  ;;  %v6458_v8 = vcvt.s32.f32 %v6008_v57  ;;  %v12667_v41 = vld [vmem:[%s12897_s5 + $0x1ac] sm:$0xf]  ;;  %v12710_v57 = vld [vmem:[%s12897_s5 + $0x140] sm:$0xf] }
 0x9f9   : > { %7356 = vmatpush.msrb.mxu2 %v6459_v18  ;;  %7284 = vmatpush.msra.mxu0 %v6224_v56  ;;  %v6900_v15 = vpop.f32.mrf.mxu3  ;;  %v5684_v29 = vunpack.c.2.s8 %v12517_v27  ;;  %v5972_v2 = vunpack.c.2.s8 %v12447_v11  ;;  %v6371_v18 = vcvt.s32.f32 %v5921_v54  ;;  %v6533_v24 = vcvt.s32.f32 %v6083_v23  ;;  %v12673_v56 = vld [vmem:[%s12897_s5 + $0x2f0] sm:$0xf] }
 0x9fa   : > { %7307 = vmatpush.msra.mxu1 %v6512_v31  ;;  %7334 = vmatpush.msrb.mxu3 %v6153_v1  ;;  %v12648_v44 = vadd.f32 %v6900_v15, %v6877_v21  ;;  %v6152_v27 = vcvt.s32.f32 %v5702_v26  ;;  %v6440_v48 = vcvt.s32.f32 %v5990_v5  ;;  %v5956_v11 = vunpack.c.0.s8 %v12591_v53 }
 0x9fb   : > { %7357 = vmatpush.msrb.mxu2 %v6441_v13  ;;  %7201 = vmatmul.f32.gmra.mxu1 %v11889_v47  ;;  %v6353_v51 = vcvt.s32.f32 %v5903_v7  ;;  %v6515_v16 = vcvt.s32.f32 %v6065_v14  ;;  %v6118_v31 = vunpack.c.0.s8 %v12598_v40  ;;  %v5885_v1 = vunpack.c.1.s8 %v12667_v41  ;;  %v12686_v13 = vld [vmem:[%s12897_s5 + $0x2cc] sm:$0xf] }
 0x9fc   : > { %7285 = vmatpush.msra.mxu0 %v6206_v33  ;;  %7308 = vmatpush.msra.mxu1 %v6494_v20  ;;  %v6831_v22 = vpop.f32.mrf.mxu1  ;;  %v6854_v28 = vpop.f32.mrf.mxu0  ;;  %v6134_v53 = vcvt.s32.f32 %v5684_v29  ;;  %v6422_v33 = vcvt.s32.f32 %v5972_v2  ;;  %v6047_v32 = vunpack.c.1.s8 %v12673_v56  ;;  %v5938_v40 = vunpack.c.0.s8 %v12608_v42  ;;  %v12694_v20 = vld [vmem:[%s12897_s5 + $0x164] sm:$0xf] }
 0x9fd   : > { %7335 = vmatpush.msrb.mxu3 %v6135_v12  ;;  %7358 = vmatpush.msrb.mxu2 %v6423_v34  ;;  %v12657_v50 = vadd.f32 %v6854_v28, %v6831_v22  ;;  %v6100_v3 = vunpack.c.0.s8 %v12614_v30  ;;  %v6406_v12 = vcvt.s32.f32 %v5956_v11  ;;  %v5867_v42 = vunpack.c.1.s8 %v12681_v37 }
 0x9fe   : > { %7336 = vmatmul.f32.vlgmr.msrb.gmra.mxu3 %v11844_v55  ;;  %7893 = vmatmul.msk.f32.vlgmr.msrb.gmra.mxu2 %vm3089_vm9, %v11891_v62  ;;  %v6029_v34 = vunpack.c.1.s8 %v12686_v13  ;;  %v6568_v4 = vcvt.s32.f32 %v6118_v31  ;;  %v6335_v15 = vcvt.s32.f32 %v5885_v1  ;;  %v6082_v35 = vunpack.c.0.s8 %v12628_v58 }
 0x9ff   : > { %7412 = vmatpush.msra.mxu2 %v6407_v19  ;;  %7898 = vmatpush.msk.msra.mxu3 %vm2381_vm5, %v6569_v43  ;;  %v5920_v19 = vunpack.c.0.s8 %v12623_v38  ;;  %v12715_v43 = vld [vmem:[%s12897_s5 + $0x284] sm:$0xf]  ;;  %v6388_v54 = vcvt.s32.f32 %v5938_v40  ;;  %v5849_v23 = vunpack.c.1.s8 %v12694_v20  ;;  %v6011_v38 = vunpack.c.1.s8 %v12699_v6 }
 0xa00   : > { %7286 = vmatpush.msra.mxu0 %v6188_v63  ;;  %7309 = vmatpush.msra.mxu1 %v6476_v45  ;;  %v6497_v63 = vcvt.s32.f32 %v6047_v32  ;;  %v5902_v26 = vunpack.c.0.s8 %v12641_v60  ;;  %v6064_v5 = vunpack.c.0.s8 %v12646_v52  ;;  %v6317_v28 = vcvt.s32.f32 %v5867_v42  ;;  %v12739_v60 = vld [vmem:[%s12897_s5 + $0x260] sm:$0xf] }
 0xa01   : > { %7413 = vmatpush.msra.mxu2 %v6389_v0  ;;  %7443 = vmatpush.msra.mxu3 %v6551_v59  ;;  %v6550_v0 = vcvt.s32.f32 %v6100_v3  ;;  %v6479_v59 = vcvt.s32.f32 %v6029_v34  ;;  %v5831_v7 = vunpack.c.1.s8 %v12710_v57  ;;  %v5993_v14 = vunpack.c.1.s8 %v12715_v43 }
 0xa02   : > { %7287 = vmatpush.msra.mxu0 %v6170_v46  ;;  %7310 = vmatpush.msra.mxu1 %v6458_v8  ;;  %v12734_v46 = vld [vmem:[%s12897_s5 + $0x11c] sm:$0xf]  ;;  %v6370_v52 = vcvt.s32.f32 %v5920_v19  ;;  %v6532_v8 = vcvt.s32.f32 %v6082_v35  ;;  %v5884_v29 = vunpack.c.0.s8 %v12667_v41  ;;  %v6299_v2 = vcvt.s32.f32 %v5849_v23  ;;  %v12774_v19 = vld [vmem:[%s12897_s5 + $0x8c] sm:$0xf] }
 0xa03   : > { %7414 = vmatpush.msra.mxu2 %v6371_v18  ;;  %7444 = vmatpush.msra.mxu3 %v6533_v24  ;;  %v6880_v17 = vpop.f32.mrf.mxu2  ;;  %v6903_v21 = vpop.f32.mrf.mxu3  ;;  %v6461_v18 = vcvt.s32.f32 %v6011_v38  ;;  %v6046_v24 = vunpack.c.0.s8 %v12673_v56  ;;  %v6514_v11 = vcvt.s32.f32 %v6064_v5  ;;  %v6281_v41 = vcvt.s32.f32 %v5831_v7  ;;  %v12755_v56 = vld [vmem:[%s12897_s5 + $0xd4] sm:$0xf] }
 0xa04   : > { %7288 = vmatpush.msra.mxu0 %v6152_v27  ;;  %7311 = vmatpush.msra.mxu1 %v6440_v48  ;;  %v12703_v30 = vadd.f32 %v6903_v21, %v6880_v17  ;;  %v12747_v27 = vld [vmem:[%s12897_s5 + $0xf8] sm:$0xf]  ;;  %v6352_v48 = vcvt.s32.f32 %v5902_v26  ;;  %v6443_v31 = vcvt.s32.f32 %v5993_v14  ;;  %v5866_v1 = vunpack.c.0.s8 %v12681_v37  ;;  %v12787_v26 = vld [vmem:[%s12897_s5 + $0x68] sm:$0xf] }
 0xa05   : > { %7415 = vmatpush.msra.mxu2 %v6353_v51  ;;  %7445 = vmatpush.msra.mxu3 %v6515_v16  ;;  %v5813_v51 = vunpack.c.1.s8 %v12734_v46  ;;  %v5975_v16 = vunpack.c.1.s8 %v12739_v60  ;;  %v5795_v32 = vunpack.c.1.s8 %v12747_v27  ;;  %v6496_v17 = vcvt.s32.f32 %v6046_v24  ;;  %v5549_v24 = vld [vmem:[%s12897_s5 + $0x20] sm:$0xf] }
 0xa06   : > { %7289 = vmatpush.msra.mxu0 %v6134_v53  ;;  %7312 = vmatpush.msra.mxu1 %v6422_v33  ;;  %v6834_v45 = vpop.f32.mrf.mxu1  ;;  %v6857_v58 = vpop.f32.mrf.mxu0  ;;  %v6334_v53 = vcvt.s32.f32 %v5884_v29  ;;  %v6028_v33 = vunpack.c.0.s8 %v12686_v13  ;;  %v5848_v21 = vunpack.c.0.s8 %v12694_v20  ;;  %v6010_v37 = vunpack.c.0.s8 %v12699_v6 }
 0xa07   : > { %7290 = vmatmul.f32.vlgmr.msra.gmra.mxu0 %v11844_v55  ;;  %7890 = vmatmul.msk.f32.vlgmr.msra.gmra.mxu1 %vm3089_vm9, %v11891_v62  ;;  %v12724_v22 = vadd.f32 %v6857_v58, %v6834_v45  ;;  %v6263_v13 = vcvt.s32.f32 %v5813_v51  ;;  %v6425_v34 = vcvt.s32.f32 %v5975_v16  ;;  %v5830_v20 = vunpack.c.0.s8 %v12710_v57 }
 0xa08   : > { %7339 = vmatmul.f32.gmra.mxu3 %v11889_v47  ;;  %7894 = vmatmul.msk.f32.gmra.mxu2 %vm3089_vm9, %v11937_v10  ;;  %v5992_v6 = vunpack.c.0.s8 %v12715_v43  ;;  %v6478_v23 = vcvt.s32.f32 %v6028_v33  ;;  %v6245_v38 = vcvt.s32.f32 %v5795_v32  ;;  %v6298_v43 = vcvt.s32.f32 %v5848_v21 }
 0xa09   : > { %7366 = vmatpush.msrb.mxu1 %v6406_v12  ;;  %7895 = vmatpush.msk.msrb.mxu0 %vm2381_vm5, %v6568_v4  ;;  %v12764_v12 = vld [vmem:[%s12897_s5 + $0xb0] sm:$0xf]  ;;  %v5777_v4 = vunpack.c.1.s8 %v12755_v56  ;;  %v6460_v58 = vcvt.s32.f32 %v6010_v37  ;;  %v5741_v7 = vunpack.c.1.s8 %v12774_v19  ;;  %v5794_v29 = vunpack.c.0.s8 %v12747_v27 }
 0xa0a   : > { %7416 = vmatpush.msra.mxu2 %v6335_v15  ;;  %7446 = vmatpush.msra.mxu3 %v6497_v63  ;;  %v6316_v15 = vcvt.s32.f32 %v5866_v1  ;;  %v5759_v57 = vunpack.c.1.s8 %v12764_v12  ;;  %v5776_v51 = vunpack.c.0.s8 %v12755_v56  ;;  %v5687_v33 = vunpack.c.1.s8 %v5549_v24 }
 0xa0b   : > { %7367 = vmatpush.msrb.mxu1 %v6388_v54  ;;  %7397 = vmatpush.msrb.mxu0 %v6550_v0  ;;  %v5812_v0 = vunpack.c.0.s8 %v12734_v46  ;;  %v6280_v46 = vcvt.s32.f32 %v5830_v20  ;;  %v5740_v21 = vunpack.c.0.s8 %v12774_v19  ;;  %v5686_v19 = vunpack.c.0.s8 %v5549_v24 }
 0xa0c   : > { %7417 = vmatpush.msra.mxu2 %v6317_v28  ;;  %7447 = vmatpush.msra.mxu3 %v6479_v59  ;;  %v6227_v28 = vcvt.s32.f32 %v5777_v4  ;;  %v5974_v59 = vunpack.c.0.s8 %v12739_v60  ;;  %v5723_v60 = vunpack.c.1.s8 %v12787_v26  ;;  %v5722_v4 = vunpack.c.0.s8 %v12787_v26 }
 0xa0d   : > { %7368 = vmatpush.msrb.mxu1 %v6370_v52  ;;  %7398 = vmatpush.msrb.mxu0 %v6532_v8  ;;  %v6969_v40 = vpop.f32.mrf.mxu3  ;;  %v6992_v3 = vpop.f32.mrf.mxu2  ;;  %v6442_v52 = vcvt.s32.f32 %v5992_v6  ;;  %v6209_v8 = vcvt.s32.f32 %v5759_v57  ;;  %v6190_v20 = vcvt.s32.f32 %v5740_v21 }
 0xa0e   : > { %7418 = vmatpush.msra.mxu2 %v6299_v2  ;;  %7448 = vmatpush.msra.mxu3 %v6461_v18  ;;  %v12766_v42 = vadd.f32 %v6992_v3, %v6969_v40  ;;  %v6262_v18 = vcvt.s32.f32 %v5812_v0  ;;  %v6173_v1 = vcvt.s32.f32 %v5723_v60 }
 0xa0f   : > { %7369 = vmatpush.msrb.mxu1 %v6352_v48  ;;  %7399 = vmatpush.msrb.mxu0 %v6514_v11  ;;  %v6424_v48 = vcvt.s32.f32 %v5974_v59  ;;  %v6191_v11 = vcvt.s32.f32 %v5741_v7 }
 0xa10   : > { %7419 = vmatpush.msra.mxu2 %v6281_v41  ;;  %7449 = vmatpush.msra.mxu3 %v6443_v31  ;;  %v7477_v35 = vrot.slane %v12766_v42, 4  ;;  %v6923_v63 = vpop.f32.mrf.mxu0  ;;  %v6946_v54 = vpop.f32.mrf.mxu1  ;;  %v6172_v42 = vcvt.s32.f32 %v5722_v4 }
 0xa11   : > { %7293 = vmatmul.f32.gmra.mxu0 %v11889_v47  ;;  %7891 = vmatmul.msk.f32.gmra.mxu1 %vm3089_vm9, %v11937_v10  ;;  %v12781_v45 = vadd.f32 %v6946_v54, %v6923_v63  ;;  %v6136_v63 = vcvt.s32.f32 %v5686_v19 }
 0xa12   : > { %7370 = vmatpush.msrb.mxu1 %v6334_v53  ;;  %7400 = vmatpush.msrb.mxu0 %v6496_v17  ;;  %v12793_v5 = vsel %vm2381_vm5, %v12703_v30, %v7477_v35  ;;  %v5554_v30 = vld [vmem:[%s12897_s5 + $0x44] sm:$0xf]  ;;  %v5758_v53 = vunpack.c.0.s8 %v12764_v12  ;;  %v6226_v17 = vcvt.s32.f32 %v5776_v51 }
 0xa13   : > { %7420 = vmatpush.msra.mxu2 %v6263_v13  ;;  %7450 = vmatpush.msra.mxu3 %v6425_v34  ;;  %v7476_v14 = vrot.slane %v12781_v45, 4  ;;  %v5705_v16 = vunpack.c.1.s8 %v5554_v30  ;;  %v6137_v34 = vcvt.s32.f32 %v5687_v33  ;;  %v5704_v6 = vunpack.c.0.s8 %v5554_v30 }
 0xa14   : > { %7899 = vmatmul.msk.f32.vlgmr.msra.gmra.mxu3 %vm3089_vm9, %v11891_v62  ;;  %7371 = vmatpush.msrb.mxu1 %v6316_v15  ;;  %v6208_v13 = vcvt.s32.f32 %v5758_v53 }
 0xa15   : > { %7401 = vmatpush.msrb.mxu0 %v6478_v23  ;;  %7421 = vmatpush.msra.mxu2 %v6245_v38  ;;  %v12807_v2 = vsel %vm2381_vm5, %v12724_v22, %v7476_v14  ;;  %v6244_v22 = vcvt.s32.f32 %v5794_v29  ;;  %v6155_v56 = vcvt.s32.f32 %v5705_v16 }
 0xa16   : > { %7372 = vmatpush.msrb.mxu1 %v6298_v43 }
 0xa17   : > { %7402 = vmatpush.msrb.mxu0 %v6460_v58  ;;  %7422 = vmatpush.msra.mxu2 %v6227_v28  ;;  %v6972_v27 = vpop.f32.mrf.mxu3  ;;  %v6995_v41 = vpop.f32.mrf.mxu2 }
 0xa18   : > { %7373 = vmatpush.msrb.mxu1 %v6280_v46  ;;  %v6996_v31 = vadd.f32 %v6995_v41, %v6972_v27 }
 0xa19   : > { %7403 = vmatpush.msrb.mxu0 %v6442_v52  ;;  %7423 = vmatpush.msra.mxu2 %v6209_v8 }
 0xa1a   : > { %7374 = vmatpush.msrb.mxu1 %v6262_v18  ;;  %v7480_v32 = vrot.slane %v6996_v31, 4  ;;  %v6926_v40 = vpop.f32.mrf.mxu0  ;;  %v6949_v3 = vpop.f32.mrf.mxu1 }
 0xa1b   : > { %7404 = vmatpush.msrb.mxu0 %v6424_v48  ;;  %7424 = vmatpush.msra.mxu2 %v6191_v11  ;;  %v6950_v37 = vadd.f32 %v6949_v3, %v6926_v40 }
 0xa1c   : > { %7896 = vmatmul.msk.f32.vlgmr.msrb.gmra.mxu0 %vm3089_vm9, %v11891_v62  ;;  %7900 = vmatmul.msk.f32.gmra.mxu3 %vm3089_vm9, %v11937_v10  ;;  %v12822_v12 = vsel %vm2381_vm5, %v7477_v35, %v7480_v32  ;;  %v6154_v35 = vcvt.s32.f32 %v5704_v6 }
 0xa1d   : > { %7375 = vmatpush.msrb.mxu1 %v6244_v22  ;;  %7425 = vmatpush.msra.mxu2 %v6173_v1  ;;  %v7478_v15 = vrot.slane %v6950_v37, 4 }
 0xa1f   : > { %7376 = vmatpush.msrb.mxu1 %v6226_v17  ;;  %7426 = vmatpush.msra.mxu2 %v6155_v56  ;;  %v12826_v62 = vsel %vm2381_vm5, %v7476_v14, %v7478_v15  ;;  %v7523_v15 = vld [vmem:[%s12909_s17] sm:$0xf] }
 0xa20   : > { %7526 = vperm.xlu0 %8139, %v7523_v15  }
 0xa21   : > { %7377 = vmatpush.msrb.mxu1 %v6208_v13  ;;  %7427 = vmatpush.msra.mxu2 %v6137_v34 }
 0xa22   : > { %7428 = vmatmul.f32.vlgmr.msra.gmra.mxu2 %v11844_v55 }
 0xa23   : > { %7378 = vmatpush.msrb.mxu1 %v6190_v20  ;;  %v7084_v54 = vpop.f32.mrf.mxu3 }
 0xa24   : > { %7897 = vmatmul.msk.f32.gmra.mxu0 %vm3089_vm9, %v11937_v10 }
 0xa25   : > { %7379 = vmatpush.msrb.mxu1 %v6172_v42  ;;  %v7038_v38 = vpop.f32.mrf.mxu0 }
 0xa27   : > { %7380 = vmatpush.msrb.mxu1 %v6154_v35 }
 0xa29   : > { %7381 = vmatpush.msrb.mxu1 %v6136_v63 }
 0xa2a   : > { %7382 = vmatmul.f32.vlgmr.msrb.gmra.mxu1 %v11844_v55  ;;  %7431 = vmatmul.f32.gmra.mxu2 %v11889_v47 }
 0xa2c   : > { %v7087_v58 = vpop.f32.mrf.mxu3 }
 0xa2f   : > { %v7041_v26 = vpop.f32.mrf.mxu0 }
 0xa32   : > { %7385 = vmatmul.f32.gmra.mxu1 %v11889_v47 }
 0xa33   : > { %v7061_v23 = vpop.f32.mrf.mxu2 }
 0xa34   : > { %v12834_v57 = vadd.f32 %v7084_v54, %v7061_v23 }
 0xa36   : > { %v7015_v45 = vpop.f32.mrf.mxu1 }
 0xa37   : > { %v12836_v43 = vadd.f32 %v7038_v38, %v7015_v45 }
 0xa3b   : > { %v7064_v10 = vpop.f32.mrf.mxu2 }
 0xa3c   : > { %v12838_v0 = vadd.f32 %v7087_v58, %v7064_v10 }
 0xa3e   : > { %v7018_v28 = vpop.f32.mrf.mxu1 }
 0xa3f   : > { %v12840_v59 = vadd.f32 %v7041_v26, %v7018_v28 }
 0xa47   : > { %v7153_v55 = vpop.f32.mrf.mxu3  ;;  %v7176_v14 = vpop.f32.mrf.mxu2 }
 0xa48   : > { %v7177_v58 = vadd.f32 %v7176_v14, %v7153_v55 }
 0xa4a   : > { %v7107_v7 = vpop.f32.mrf.mxu0  ;;  %v7130_v46 = vpop.f32.mrf.mxu1  ;;  %v7491_v55 = vrot.slane %v7177_v58, 4 }
 0xa51   : > { %v7156_v47 = vpop.f32.mrf.mxu3  ;;  %v7179_v30 = vpop.f32.mrf.mxu2 }
 0xa52   : > { %v7180_v23 = vadd.f32 %v7179_v30, %v7156_v47 }
 0xa54   : > { %v7110_v52 = vpop.f32.mrf.mxu0  ;;  %v7133_v8 = vpop.f32.mrf.mxu1 }
 0xa55   : > { %v7134_v26 = vadd.f32 %v7133_v8, %v7110_v52 }
 0xa57   : > { %v7492_v14 = vrot.slane %v7134_v26, 4 }
 0xa5d   : > { %v7268_v29 = vpop.f32.mrf.mxu3 }
 0xa5f   : > { %v7222_v60 = vpop.f32.mrf.mxu0 }
 0xa66   : > { %v7271_v48 = vpop.f32.mrf.mxu3 }
 0xa69   : > { %v7225_v11 = vpop.f32.mrf.mxu0 }
 0xa6d   : > { %v7245_v18 = vpop.f32.mrf.mxu2 }
 0xa6e   : > { %v7269_v30 = vadd.f32 %v7268_v29, %v7245_v18 }
 0xa70   : > { %v7199_v24 = vpop.f32.mrf.mxu1 }
 0xa71   : > { %v7223_v8 = vadd.f32 %v7222_v60, %v7199_v24 }
 0xa75   : > { %v7248_v51 = vpop.f32.mrf.mxu2 }
 0xa76   : > { %v7272_v28 = vadd.f32 %v7271_v48, %v7248_v51 }
 0xa78   : > { %v7202_v16 = vpop.f32.mrf.mxu1 }
 0xa81   : > { %v7337_v27 = vpop.f32.mrf.mxu3  ;;  %v7360_v31 = vpop.f32.mrf.mxu2 }
 0xa82   : > { %v7361_v37 = vadd.f32 %v7360_v31, %v7337_v27  ;;  %v7131_v31 = vadd.f32 %v7130_v46, %v7107_v7 }
 0xa84   : > { %v7291_v41 = vpop.f32.mrf.mxu0  ;;  %v7314_v22 = vpop.f32.mrf.mxu1  ;;  %v7505_v38 = vrot.slane %v7361_v37, 4  ;;  %v7490_v48 = vrot.slane %v7131_v31, 4 }
 0xa85   : > { %v7315_v6 = vadd.f32 %v7314_v22, %v7291_v41  ;;  %v7494_v22 = vrot.slane %v7180_v23, 4 }
 0xa86   : > { %v7521_v47 = vsel %vm2381_vm5, %v7272_v28, %v7505_v38  ;;  %v7493_v46 = vsel %vm2381_vm5, %v7490_v48, %v7492_v14  ;;  %v7518_v29 = vsel %vm2381_vm5, %v12840_v59, %v7490_v48 }
 0xa87   : > { %v7504_v27 = vrot.slane %v7315_v6, 4  ;;  %v7495_v7 = vsel %vm2381_vm5, %v7491_v55, %v7494_v22 }
 0xa8b   : > { %v7340_v1 = vpop.f32.mrf.mxu3  ;;  %v7363_v33 = vpop.f32.mrf.mxu2 }
 0xa8c   : > { %v7364_v21 = vadd.f32 %v7363_v33, %v7340_v1  ;;  %v7226_v1 = vadd.f32 %v7225_v11, %v7202_v16  ;;  %v7519_v11 = vsel %vm2381_vm5, %v12838_v0, %v7491_v55 }
 0xa8e   : > { %v7294_v53 = vpop.f32.mrf.mxu0  ;;  %v7317_v32 = vpop.f32.mrf.mxu1  ;;  %v7508_v42 = vrot.slane %v7364_v21, 4  ;;  %v7520_v52 = vsel %vm2381_vm5, %v7226_v1, %v7504_v27 }
 0xa8f   : > { %v7318_v13 = vadd.f32 %v7317_v32, %v7294_v53 }
 0xa90   : > { %v7509_v41 = vsel %vm2381_vm5, %v7505_v38, %v7508_v42 }
 0xa91   : > { %v7506_v45 = vrot.slane %v7318_v13, 4 }
 0xa93   : > { %v7507_v53 = vsel %vm2381_vm5, %v7504_v27, %v7506_v45 }
 0xa97   : > { %v7452_v40 = vpop.f32.mrf.mxu3 }
 0xa99   : > { %v7406_v3 = vpop.f32.mrf.mxu0 }
 0xa9f   : > { %v7455_v34 = vpop.f32.mrf.mxu3 }
 0xaa1   : > { %v7409_v19 = vpop.f32.mrf.mxu0 }
 0xaa5   : > { %v7429_v17 = vpop.f32.mrf.mxu2 }
 0xaa6   : > { %v7453_v63 = vadd.f32 %v7452_v40, %v7429_v17 }
 0xaa7   : > { %v7383_v56 = vpop.f32.mrf.mxu1 }
 0xaa8   : > { %v7407_v10 = vadd.f32 %v7406_v3, %v7383_v56 }
 0xaad   : > { %v7432_v4 = vpop.f32.mrf.mxu2 }
 0xaae   : > { %v7456_v20 = vadd.f32 %v7455_v34, %v7432_v4 }
 0xaaf   : > { %v7386_v35 = vpop.f32.mrf.mxu1 }
 0xab0   : > { %v7410_v54 = vadd.f32 %v7409_v19, %v7386_v35  ;;  %7903 = vmatpush.msk.msra.mxu1 %vm2381_vm5, %v7456_v20 }
 0xab2   : > { %7901 = vmatpush.msk.msra.mxu0 %vm2381_vm5, %v7410_v54  ;;  %7561 = vmatpush.msra.mxu1 %v7453_v63 }
 0xab4   : > { %7541 = vmatpush.msra.mxu0 %v7407_v10  ;;  %7562 = vmatpush.msra.mxu1 %v7509_v41 }
 0xab6   : > { %7542 = vmatpush.msra.mxu0 %v7507_v53  ;;  %7563 = vmatpush.msra.mxu1 %v7521_v47 }
 0xab8   : > { %7543 = vmatpush.msra.mxu0 %v7520_v52  ;;  %7564 = vmatpush.msra.mxu1 %v7269_v30 }
 0xaba   : > { %7544 = vmatpush.msra.mxu0 %v7223_v8  ;;  %7565 = vmatpush.msra.mxu1 %v7495_v7 }
 0xabc   : > { %7545 = vmatpush.msra.mxu0 %v7493_v46  ;;  %7566 = vmatpush.msra.mxu1 %v7519_v11 }
 0xabe   : > { %7546 = vmatpush.msra.mxu0 %v7518_v29  ;;  %7567 = vmatpush.msra.mxu1 %v12834_v57  ;;  %v7522_v57 = vld [vmem:[#allocation9] sm:$0xf] }
 0xac0   : > { %7547 = vmatpush.msra.mxu0 %v12836_v43  ;;  %7568 = vmatpush.msra.mxu1 %v12822_v12 }
 0xac2   : > { %7548 = vmatpush.msra.mxu0 %v12826_v62  ;;  %7569 = vmatpush.msra.mxu1 %v12793_v5 }
 0xac4   : > { %7549 = vmatpush.msra.mxu0 %v12807_v2  ;;  %7570 = vmatpush.msra.mxu1 %v12648_v44  ;;  %v7527_v44 = vpop.permute.xlu0 %7526 }
 0xac6   : > { %7550 = vmatpush.msra.mxu0 %v12657_v50  ;;  %7571 = vmatpush.msra.mxu1 %v12601_v49 }
 0xac8   : > { %7551 = vmatpush.msra.mxu0 %v12633_v61  ;;  %7572 = vmatpush.msra.mxu1 %v12577_v39 }
 0xaca   : > { %7552 = vmatpush.msra.mxu0 %v12583_v36  ;;  %7573 = vmatpush.msra.mxu1 %v12475_v9 }
 0xacb   : > { %7904 = vmatmul.msk.f32.vlgmr.msra.gmra.mxu1 %vm3793_vm15, %v7522_v57 }
 0xacc   : > { %7553 = vmatpush.msra.mxu0 %v12466_v25 }
 0xacd   : > { %7902 = vmatmul.msk.f32.vlgmr.msra.gmra.mxu0 %vm3793_vm15, %v7522_v57 }
 0xb48   : > { %v7575_v5 = vpop.f32.mrf.mxu1 }
 0xb49   : > { %v7576_v50 = vadd.f32 %v7575_v5, %v7527_v44 }
 0xb4a   : > { %v7555_v2 = vpop.f32.mrf.mxu0 }
 0xb4b   : > { %v7906_v49 = vmul.f32 -1.442695, %v7576_v50  ;;  %v7556_v12 = vadd.f32 %v7555_v2, %v7527_v44 }
 0xb4d   : > { %8142 = vpow2.f32 %v7906_v49  ;;  %v7905_v61 = vmul.f32 -1.442695, %v7556_v12 }
 0xb4f   : > { %8144 = vpow2.f32 %v7905_v61 }
 0xb53   : > { %v8143_v39 = vpop.eup %8142 }
 0xb54   : > { %v7585_v62 = vadd.f32 1.0, %v8143_v39 }
 0xb55   : > { %v8145_v36 = vpop.eup %8144 }
 0xb56   : > { %8146 = vrcp.f32 %v7585_v62  ;;  %v7584_v9 = vadd.f32 1.0, %v8145_v36  ;;  %v7612_v60 = vand.u32 2147483648, %v7585_v62  ;;  %v7610_v51 = vand.u32 2147483647, %v7585_v62 }
 0xb57   : > { %vm7606_vm1 = vweird.f32 %v7585_v62 }
 0xb58   : > { %8148 = vrcp.f32 %v7584_v9  ;;  %v7597_v32 = vand.u32 2147483648, %v7584_v9  ;;  %v7613_v40 = vor.u32 1.1754944e-38, %v7612_v60  ;;  %v7595_v17 = vand.u32 2147483647, %v7584_v9 }
 0xb59   : > { %vm7611_vm4 = vcmp.eq.f32.partialorder %v7610_v51, 8.507059e+37  ;;  %vm7591_vm6 = vweird.f32 %v7584_v9 }
 0xb5a   : > { %v7598_v34 = vor.u32 1.1754944e-38, %v7597_v32  ;;  %vm7596_vm8 = vcmp.eq.f32.partialorder %v7595_v17, 8.507059e+37 }
 0xb5c   : > { %v8147_v43 = vpop.eup %8146 }
 0xb5d   : > { %v7602_v0 = vmul.f32 %v8147_v43, %v7585_v62  ;;  %vm7607_vm0 = vweird.f32 %v8147_v43 }
 0xb5e   : > { %v8149_v25 = vpop.eup %8148  ;;  %vm7608_vm2 = vmor %vm7606_vm1, %vm7607_vm0 }
 0xb5f   : > { %v7603_v59 = vsub.f32 1.0, %v7602_v0  ;;  %v7587_v18 = vmul.f32 %v8149_v25, %v7584_v9  ;;  %vm7592_vm3 = vweird.f32 %v8149_v25 }
 0xb60   : > { %vm7593_vm7 = vmor %vm7591_vm6, %vm7592_vm3 }
 0xb61   : > { %v7604_v24 = vmul.f32 %v8147_v43, %v7603_v59  ;;  %v7588_v16 = vsub.f32 1.0, %v7587_v18 }
 0xb63   : > { %v7605_v33 = vadd.f32 %v8147_v43, %v7604_v24  ;;  %v7589_v3 = vmul.f32 %v8149_v25, %v7588_v16 }
 0xb65   : > { %v7609_v56 = vsel %vm7608_vm2, %v8147_v43, %v7605_v33  ;;  %v7590_v37 = vadd.f32 %v8149_v25, %v7589_v3 }
 0xb66   : > { %v7614_v21 = vsel %vm7611_vm4, %v7613_v40, %v7609_v56 }
 0xb67   : > { %v7618_v13 = vrot.slane %v7614_v21, 4  ;;  %v7594_v4 = vsel %vm7593_vm7, %v8149_v25, %v7590_v37 }
 0xb68   : > { %v7599_v15 = vsel %vm7596_vm8, %v7598_v34, %v7594_v4 }
 0xb69   : > { %v7619_v20 = vsel %vm2381_vm5, %v7599_v15, %v7618_v13 }
 0xb6a   : > { %7621 = vst [vmem:[%s703_s18] sm:$0xff] %v7619_v20 }
 0xb6b PF: > { %s12968_s21 = sld [smem:[#allocation13_spill]]  ;;  %p32_p3 = scmp.ge.s32.totalorder %s8527_s28, 4  }
 0xb6c   : > { %s12969_s0 = smov %s8338_s30  ;;  %s12970_s30 = smov %s8342_s20 }
 0xb6d   :  { %34 = sbr.rel (!%p32_p3) target bundleno = 15 (0xf), region = 163 }
 0xb71   : > { %s12971_s20 = smov %s12968_s21  ;;  %s12972_s21 = smov %s8527_s28 }
 0xb72   :  { %7657 = vsyncpa [#allocation3], 1 }
 0xb73   :  { %7659 = vsyncpa [#allocation3 + $0x1], 1 }
 0xb74   :  { %7660 = vsyncpa [#allocation5], 1 }
 0xb75   :  { %7661 = vsyncpa [#allocation8], 1 }

</bundles_post_ra>
